<compile_context>
chip_gen: v5e
topology: v5e:2x2
jax: 0.10.0
libtpu: 0.0.40
codegen_flags: <defaults>
</compile_context>

<pallas_src>
import jax
import jax.numpy as jnp
import numpy as np
from jax.experimental import pallas as pl
from jax.experimental.pallas import tpu as pltpu


# ------------------------------- helpers ------------------------------------


def _round_up(x, m):
    return ((x + m - 1) // m) * m


def _full_spec(shape):
    return pl.BlockSpec(shape, lambda i: (0,) * len(shape))


_ARBITRARY = pltpu.CompilerParams(dimension_semantics=("arbitrary",))
_PARALLEL = pltpu.CompilerParams(dimension_semantics=("parallel",))


# ----------------------------- Pallas kernels -------------------------------


def _conv_pool_kernel(cols_ref, w_ref, b_ref, o_ref):
    """relu(cols[k] @ w + b) max-reduced over the 4 pool offsets k.

    cols_ref: (4, tm, K) -- k indexes the 2x2 max-pool offset, rows are pooled
    output positions (b, ph, pw).  Fuses Conv2d + ReLU + MaxPool2d(2).
    """
    w = w_ref[...]
    b = b_ref[...]
    out = None
    for k in range(4):
        y = jnp.dot(cols_ref[k], w, preferred_element_type=jnp.float32) + b
        y = jnp.maximum(y, 0.0)
        out = y if out is None else jnp.maximum(out, y)
    o_ref[...] = out.astype(o_ref.dtype)


def _conv3_head_kernel(cols3_ref, w3_ref, b3_ref,
                       wa4_ref, ba4_ref, wa5_ref, ba5_ref,
                       wv4_ref, bv4_ref, wv5_ref, bv5_ref, q_ref):
    """conv3 + ReLU + 2x2 max-pool + dueling head, fully fused.

    cols3_ref: (16, B, 256) = (final-2x2-position p * 4 + pool-offset, batch,
    conv3 im2col patch).  wa4/wv4 are pre-split per position p, so the torch
    NCHW flatten + fc4 becomes an accumulation of four (B,128)@(128,out)
    matmuls -- no in-kernel reshape of the feature map is needed.
    """
    w3 = w3_ref[...]
    b3 = b3_ref[...]
    a_pre = ba4_ref[...]              # (1, 512): broadcasts up to (B, 512)
    v_pre = bv4_ref[...]              # (1, 128)
    for p in range(4):                # final 2x2 spatial positions (ph*2+pw)
        pooled = None
        for k in range(4):            # conv3 outputs inside this pool window
            y = jnp.dot(cols3_ref[4 * p + k], w3,
                        preferred_element_type=jnp.float32) + b3
            y = jnp.maximum(y, 0.0)
            pooled = y if pooled is None else jnp.maximum(pooled, y)
        a_pre = a_pre + jnp.dot(pooled, wa4_ref[p],
                                preferred_element_type=jnp.float32)
        v_pre = v_pre + jnp.dot(pooled, wv4_ref[p],
                                preferred_element_type=jnp.float32)
    adv = jnp.dot(a_pre, wa5_ref[...],
                  preferred_element_type=jnp.float32) + ba5_ref[...]
    # Value_fc5 has out_features=1: VPU multiply-reduce, not an N=1 MXU matmul.
    val = jnp.sum(v_pre * wv5_ref[...], axis=1, keepdims=True) + bv5_ref[...]
    a_mean = jnp.mean(adv, axis=1, keepdims=True)
    q_ref[...] = (val + (adv - a_mean)).astype(q_ref.dtype)


# ------------------------------ JAX glue -------------------------------------


def pooled_im2col(x, kh, kw, stride):
    """NHWC x -> 4 im2col matrices (one per 2x2 pool offset), each of shape
    (B*PH*PW, kh*kw*C).  Rows ordered (b, ph, pw); columns ordered (dh, dw, c).
    PH, PW are the *pooled* output dims (conv output // 2, floor mode)."""
    B, H, W, C = x.shape
    OH = (H - kh) // stride + 1
    OW = (W - kw) // stride + 1
    PH, PW = OH // 2, OW // 2
    mats = []
    for a in range(2):
        for c in range(2):
            cols = []
            for dh in range(kh):
                for dw in range(kw):
                    h0 = stride * a + dh
                    w0 = stride * c + dw
                    cols.append(x[:, h0:h0 + 2 * stride * PH:2 * stride,
                                  w0:w0 + 2 * stride * PW:2 * stride, :])
            p = jnp.stack(cols, axis=3)                  # (B, PH, PW, kh*kw, C)
            mats.append(p.reshape(B * PH * PW, kh * kw * C))
    return mats, PH, PW


def _conv_pool_call(cols, w, b, tm):
    """cols: (4, Mp, K), w: (K, N), b: (1, N). Grid over M; weights resident."""
    _, Mp, K = cols.shape
    N = w.shape[1]
    grid_m = Mp // tm
    return pl.pallas_call(
        _conv_pool_kernel,
        out_shape=jax.ShapeDtypeStruct((Mp, N), jnp.float32),
        grid=(grid_m,),
        in_specs=[pl.BlockSpec((4, tm, K), lambda i: (0, i, 0)),
                  pl.BlockSpec((K, N), lambda i: (0, 0)),
                  pl.BlockSpec((1, N), lambda i: (0, 0))],
        out_specs=pl.BlockSpec((tm, N), lambda i: (i, 0)),
        compiler_params=_PARALLEL,      # megacore shards the M tiles on v7x
    )(cols, w, b)


def conv_relu_pool(x_nhwc, w_mat, b_row, kh, kw, stride, tile_m=512):
    """Conv2d(VALID) + ReLU + MaxPool2d(2) on NHWC input as one Pallas call.
    w_mat: (kh*kw*C, O) with (dh, dw, c) column order; b_row: (1, O)."""
    B = x_nhwc.shape[0]
    O = w_mat.shape[1]
    mats, PH, PW = pooled_im2col(x_nhwc, kh, kw, stride)
    cols = jnp.stack(mats, axis=0)                       # (4, M, kh*kw*C)
    M = B * PH * PW
    tm = min(tile_m, _round_up(M, 8))
    Mp = _round_up(M, tm)
    if Mp != M:
        cols = jnp.pad(cols, ((0, 0), (0, Mp - M), (0, 0)))
    out = _conv_pool_call(cols, w_mat, b_row, tm)        # (Mp, O) f32
    return out[:M].reshape(B, PH, PW, O)                 # NHWC pooled output


def conv3_pool_cols(x2):
    """x2: (B, 5, 5, C) pooled conv2 output (NHWC).  Returns (16, B, 4*C)
    im2col patches for conv3 (k=2, s=1), ordered (final 2x2 position p,
    pool offset); columns ordered (dh, dw, c)."""
    B, _, _, C = x2.shape
    groups = []
    for ph in range(2):
        for pw in range(2):
            for a in range(2):
                for c in range(2):
                    oh, ow = 2 * ph + a, 2 * pw + c
                    patch = x2[:, oh:oh + 2, ow:ow + 2, :]   # (B, 2, 2, C)
                    groups.append(patch.reshape(B, 4 * C))
    return jnp.stack(groups, axis=0)                          # (16, B, 4*C)


def conv3_and_head(x2, prep):
    B = x2.shape[0]
    cols3 = conv3_pool_cols(x2)
    na = prep["wa5_t"].shape[1]
    args = (cols3, prep["w3m"], prep["b3r"],
            prep["wa4_p"], prep["ba4r"], prep["wa5_t"], prep["ba5r"],
            prep["wv4_p"], prep["bv4r"], prep["wv5r"], prep["bv5r"])
    return pl.pallas_call(
        _conv3_head_kernel,
        out_shape=jax.ShapeDtypeStruct((B, na), jnp.float32),
        grid=(1,),
        in_specs=[_full_spec(a.shape) for a in args],
        out_specs=_full_spec((B, na)),
        compiler_params=_ARBITRARY,
    )(*args)


# --------------------------- parameter repacking -----------------------------


def prepare_params(params):
    """One-time repacking: conv weights to im2col layout (dh, dw, c) x O,
    fc4 weights split by the 2x2 spatial position of the NCHW flatten
    (in-index = c*4 + ph*2 + pw), head weights pre-transposed, biases as rows.
    conv1 weights are bf16 (matmul accumulates in f32)."""
    def conv_mat(w):
        O = w.shape[0]
        return jnp.transpose(w, (2, 3, 1, 0)).reshape(-1, O)

    def fc4_split(w):       # (out, 512_in) -> (4, 128, out)
        out = w.shape[0]
        return w.T.reshape(128, 4, out).transpose(1, 0, 2)

    return {
        "w1m": conv_mat(params["w1"]).astype(jnp.bfloat16),   # (256, 32)
        "b1r": params["b1"].reshape(1, -1),
        "w2m": conv_mat(params["w2"]),                         # (512, 64)
        "b2r": params["b2"].reshape(1, -1),
        "w3m": conv_mat(params["w3"]),                         # (256, 128)
        "b3r": params["b3"].reshape(1, -1),
        "wa4_p": fc4_split(params["wa4"]),                     # (4, 128, 512)
        "ba4r": params["ba4"].reshape(1, -1),
        "wa5_t": params["wa5"].T,                              # (512, na)
        "ba5r": params["ba5"].reshape(1, -1),
        "wv4_p": fc4_split(params["wv4"]),                     # (4, 128, 128)
        "bv4r": params["bv4"].reshape(1, -1),
        "wv5r": params["wv5"].reshape(1, -1),                  # (1, 128)
        "bv5r": params["bv5"].reshape(1, 1),
    }


# ------------------------------- forward -------------------------------------


@jax.jit
def dueling_cnn_forward(x, prep):
    """x: (B, C, H, W) NCHW float32 (PyTorch convention)."""
    x_nhwc = jnp.transpose(x, (0, 2, 3, 1)).astype(jnp.bfloat16)
    h1 = conv_relu_pool(x_nhwc, prep["w1m"], prep["b1r"], 8, 8, 4)  # (B,22,22,32)
    h2 = conv_relu_pool(h1, prep["w2m"], prep["b2r"], 4, 4, 2)      # (B,5,5,64)
    return conv3_and_head(h2, prep)                                 # (B, num_action)


# --------------------------- pure-JAX reference -------------------------------


def reference_forward(x, params):
    def conv(x, w, b, s):
        y = jax.lax.conv_general_dilated(
            x, w, window_strides=(s, s), padding="VALID",
            dimension_numbers=("NCHW", "OIHW", "NCHW"))
        return y + b.reshape(1, -1, 1, 1)

    def pool(x):
        return jax.lax.reduce_window(x, -jnp.inf, jax.lax.max,
                                     (1, 1, 2, 2), (1, 1, 2, 2), "VALID")

    h = pool(jax.nn.relu(conv(x, params["w1"], params["b1"], 4)))
    h = pool(jax.nn.relu(conv(h, params["w2"], params["b2"], 2)))
    h = pool(jax.nn.relu(conv(h, params["w3"], params["b3"], 1)))
    f = h.reshape(h.shape[0], -1)
    a = f @ params["wa4"].T + params["ba4"]
    a = a @ params["wa5"].T + params["ba5"]
    v = f @ params["wv4"].T + params["bv4"]
    v = v @ params["wv5"].T + params["bv5"]
    return v + (a - jnp.mean(a, axis=1, keepdims=True))


# --------------------------------- main ---------------------------------------


if __name__ == "__main__":
    B, C_in, S, num_action = 2, 4, 180, 6   # 180x180 -> 2x2x128 = 512 features

    key = jax.random.PRNGKey(0)
    ks = jax.random.split(key, 15)
    sw, sb = 0.03, 0.01
    params = {
        "w1": sw * jax.random.normal(ks[0], (32, C_in, 8, 8), jnp.float32),
        "b1": sb * jax.random.normal(ks[1], (32,), jnp.float32),
        "w2": sw * jax.random.normal(ks[2], (64, 32, 4, 4), jnp.float32),
        "b2": sb * jax.random.normal(ks[3], (64,), jnp.float32),
        "w3": sw * jax.random.normal(ks[4], (128, 64, 2, 2), jnp.float32),
        "b3": sb * jax.random.normal(ks[5], (128,), jnp.float32),
        "wa4": sw * jax.random.normal(ks[6], (512, 512), jnp.float32),
        "ba4": sb * jax.random.normal(ks[7], (512,), jnp.float32),
        "wa5": sw * jax.random.normal(ks[8], (num_action, 512), jnp.float32),
        "ba5": sb * jax.random.normal(ks[9], (num_action,), jnp.float32),
        "wv4": sw * jax.random.normal(ks[10], (128, 512), jnp.float32),
        "bv4": sb * jax.random.normal(ks[11], (128,), jnp.float32),
        "wv5": sw * jax.random.normal(ks[12], (1, 128), jnp.float32),
        "bv5": sb * jax.random.normal(ks[13], (1,), jnp.float32),
    }
    x = jax.random.normal(ks[14], (B, C_in, S, S), jnp.float32)

    prep = prepare_params(params)          # one-time weight repacking

    q = dueling_cnn_forward(x, prep)
    q = jax.block_until_ready(q)
    assert q.shape == (B, num_action), q.shape

    q_ref = np.asarray(jax.block_until_ready(reference_forward(x, params)))
    q_np = np.asarray(q)
    err = np.max(np.abs(q_np - q_ref))
    tol = 1e-2 * (1.0 + np.max(np.abs(q_ref)))
    assert err < tol, f"mismatch: max abs err {err} vs tol {tol}"

    print("KERNEL_OK")
</pallas_src>

<mosaic_0001>
module attributes {stable_mosaic.version = 11 : i64} {
  func.func @_conv_pool_kernel(%arg0: i32, %arg1: memref<4x512x256xbf16, #tpu.memory_space<vmem>>, %arg2: memref<256x32xbf16, #tpu.memory_space<vmem>>, %arg3: memref<1x32xf32, #tpu.memory_space<vmem>>, %arg4: memref<512x32xf32, #tpu.memory_space<vmem>>) attributes {dimension_semantics = [#tpu.dimension_semantics<parallel>], iteration_bounds = array<i64: 2>, scalar_prefetch = 0 : i64, scratch_operands = 0 : i64, tpu.core_type = #tpu.core_type<tc>, window_params = [{transform_indices = @transform_0, window_bounds = array<i64: 4, 512, 256>}, {pipeline_mode = #tpu.pipeline_mode<synchronous>, transform_indices = @transform_1, window_bounds = array<i64: 256, 32>}, {pipeline_mode = #tpu.pipeline_mode<synchronous>, transform_indices = @transform_2, window_bounds = array<i64: 1, 32>}, {transform_indices = @transform_3, window_bounds = array<i64: 512, 32>}]} {
    %c0 = arith.constant 0 : index
    %c0_0 = arith.constant 0 : index
    %0 = vector.load %arg2[%c0, %c0_0] : memref<256x32xbf16, #tpu.memory_space<vmem>>, vector<256x32xbf16>
    %c0_1 = arith.constant 0 : index
    %c0_2 = arith.constant 0 : index
    %1 = vector.load %arg3[%c0_1, %c0_2] : memref<1x32xf32, #tpu.memory_space<vmem>>, vector<1x32xf32>
    %c0_3 = arith.constant 0 : index
    %c0_4 = arith.constant 0 : index
    %c0_5 = arith.constant 0 : index
    %2 = vector.load %arg1[%c0_3, %c0_4, %c0_5] : memref<4x512x256xbf16, #tpu.memory_space<vmem>>, vector<1x512x256xbf16>
    %3 = vector.shape_cast %2 : vector<1x512x256xbf16> to vector<512x256xbf16>
    %cst = arith.constant dense<0.000000e+00> : vector<512x32xf32>
    %4 = tpu.matmul %3, %0, %cst {dimension_numbers = #tpu.dot_dimension_numbers<[1], [0], [0], [1], [0, 0, 1, 1], [], []>} : vector<512x256xbf16>, vector<256x32xbf16>, vector<512x32xf32> -> vector<512x32xf32>
    %5 = vector.broadcast %1 : vector<1x32xf32> to vector<512x32xf32>
    %6 = arith.addf %4, %5 : vector<512x32xf32>
    %cst_6 = arith.constant 0.000000e+00 : f32
    %7 = vector.broadcast %cst_6 : f32 to vector<512x32xf32>
    %8 = arith.maximumf %6, %7 : vector<512x32xf32>
    %c1 = arith.constant 1 : index
    %c0_7 = arith.constant 0 : index
    %c0_8 = arith.constant 0 : index
    %9 = vector.load %arg1[%c1, %c0_7, %c0_8] : memref<4x512x256xbf16, #tpu.memory_space<vmem>>, vector<1x512x256xbf16>
    %10 = vector.shape_cast %9 : vector<1x512x256xbf16> to vector<512x256xbf16>
    %cst_9 = arith.constant dense<0.000000e+00> : vector<512x32xf32>
    %11 = tpu.matmul %10, %0, %cst_9 {dimension_numbers = #tpu.dot_dimension_numbers<[1], [0], [0], [1], [0, 0, 1, 1], [], []>} : vector<512x256xbf16>, vector<256x32xbf16>, vector<512x32xf32> -> vector<512x32xf32>
    %12 = vector.broadcast %1 : vector<1x32xf32> to vector<512x32xf32>
    %13 = arith.addf %11, %12 : vector<512x32xf32>
    %cst_10 = arith.constant 0.000000e+00 : f32
    %14 = vector.broadcast %cst_10 : f32 to vector<512x32xf32>
    %15 = arith.maximumf %13, %14 : vector<512x32xf32>
    %16 = arith.maximumf %8, %15 : vector<512x32xf32>
    %c2 = arith.constant 2 : index
    %c0_11 = arith.constant 0 : index
    %c0_12 = arith.constant 0 : index
    %17 = vector.load %arg1[%c2, %c0_11, %c0_12] : memref<4x512x256xbf16, #tpu.memory_space<vmem>>, vector<1x512x256xbf16>
    %18 = vector.shape_cast %17 : vector<1x512x256xbf16> to vector<512x256xbf16>
    %cst_13 = arith.constant dense<0.000000e+00> : vector<512x32xf32>
    %19 = tpu.matmul %18, %0, %cst_13 {dimension_numbers = #tpu.dot_dimension_numbers<[1], [0], [0], [1], [0, 0, 1, 1], [], []>} : vector<512x256xbf16>, vector<256x32xbf16>, vector<512x32xf32> -> vector<512x32xf32>
    %20 = vector.broadcast %1 : vector<1x32xf32> to vector<512x32xf32>
    %21 = arith.addf %19, %20 : vector<512x32xf32>
    %cst_14 = arith.constant 0.000000e+00 : f32
    %22 = vector.broadcast %cst_14 : f32 to vector<512x32xf32>
    %23 = arith.maximumf %21, %22 : vector<512x32xf32>
    %24 = arith.maximumf %16, %23 : vector<512x32xf32>
    %c3 = arith.constant 3 : index
    %c0_15 = arith.constant 0 : index
    %c0_16 = arith.constant 0 : index
    %25 = vector.load %arg1[%c3, %c0_15, %c0_16] : memref<4x512x256xbf16, #tpu.memory_space<vmem>>, vector<1x512x256xbf16>
    %26 = vector.shape_cast %25 : vector<1x512x256xbf16> to vector<512x256xbf16>
    %cst_17 = arith.constant dense<0.000000e+00> : vector<512x32xf32>
    %27 = tpu.matmul %26, %0, %cst_17 {dimension_numbers = #tpu.dot_dimension_numbers<[1], [0], [0], [1], [0, 0, 1, 1], [], []>} : vector<512x256xbf16>, vector<256x32xbf16>, vector<512x32xf32> -> vector<512x32xf32>
    %28 = vector.broadcast %1 : vector<1x32xf32> to vector<512x32xf32>
    %29 = arith.addf %27, %28 : vector<512x32xf32>
    %cst_18 = arith.constant 0.000000e+00 : f32
    %30 = vector.broadcast %cst_18 : f32 to vector<512x32xf32>
    %31 = arith.maximumf %29, %30 : vector<512x32xf32>
    %32 = arith.maximumf %24, %31 : vector<512x32xf32>
    %c0_19 = arith.constant 0 : index
    %c0_20 = arith.constant 0 : index
    %33 = vector.load %arg4[%c0_19, %c0_20] : memref<512x32xf32, #tpu.memory_space<vmem>>, vector<512x32xf32>
    tpu.vector_store %arg4[%c0_19, %c0_20], %32 {strides = array<i32>} : memref<512x32xf32, #tpu.memory_space<vmem>>, vector<512x32xf32>,
    return
  }
  func.func @transform_0(%arg0: i32) -> (i32, i32, i32) {
    %c0_i32 = arith.constant 0 : i32
    %c0_i32_0 = arith.constant 0 : i32
    %c0_i32_1 = arith.constant 0 : i32
    return %c0_i32, %arg0, %c0_i32_0 : i32, i32, i32
  }
  func.func @transform_1(%arg0: i32) -> (i32, i32) {
    %c0_i32 = arith.constant 0 : i32
    %c0_i32_0 = arith.constant 0 : i32
    %c0_i32_1 = arith.constant 0 : i32
    return %c0_i32, %c0_i32_0 : i32, i32
  }
  func.func @transform_2(%arg0: i32) -> (i32, i32) {
    %c0_i32 = arith.constant 0 : i32
    %c0_i32_0 = arith.constant 0 : i32
    %c0_i32_1 = arith.constant 0 : i32
    return %c0_i32, %c0_i32_0 : i32, i32
  }
  func.func @transform_3(%arg0: i32) -> (i32, i32) {
    %c0_i32 = arith.constant 0 : i32
    %c0_i32_0 = arith.constant 0 : i32
    return %arg0, %c0_i32 : i32, i32
  }
}

module attributes {stable_mosaic.version = 11 : i64} {
  func.func @_conv_pool_kernel(%arg0: i32, %arg1: memref<4x56x512xf32, #tpu.memory_space<vmem>>, %arg2: memref<512x64xf32, #tpu.memory_space<vmem>>, %arg3: memref<1x64xf32, #tpu.memory_space<vmem>>, %arg4: memref<56x64xf32, #tpu.memory_space<vmem>>) attributes {dimension_semantics = [#tpu.dimension_semantics<parallel>], iteration_bounds = array<i64: 1>, scalar_prefetch = 0 : i64, scratch_operands = 0 : i64, tpu.core_type = #tpu.core_type<tc>, window_params = [{transform_indices = @transform_0, window_bounds = array<i64: 4, 56, 512>}, {pipeline_mode = #tpu.pipeline_mode<synchronous>, transform_indices = @transform_1, window_bounds = array<i64: 512, 64>}, {pipeline_mode = #tpu.pipeline_mode<synchronous>, transform_indices = @transform_2, window_bounds = array<i64: 1, 64>}, {transform_indices = @transform_3, window_bounds = array<i64: 56, 64>}]} {
    %c0 = arith.constant 0 : index
    %c0_0 = arith.constant 0 : index
    %0 = vector.load %arg2[%c0, %c0_0] : memref<512x64xf32, #tpu.memory_space<vmem>>, vector<512x64xf32>
    %c0_1 = arith.constant 0 : index
    %c0_2 = arith.constant 0 : index
    %1 = vector.load %arg3[%c0_1, %c0_2] : memref<1x64xf32, #tpu.memory_space<vmem>>, vector<1x64xf32>
    %c0_3 = arith.constant 0 : index
    %c0_4 = arith.constant 0 : index
    %c0_5 = arith.constant 0 : index
    %2 = vector.load %arg1[%c0_3, %c0_4, %c0_5] : memref<4x56x512xf32, #tpu.memory_space<vmem>>, vector<1x56x512xf32>
    %3 = vector.shape_cast %2 : vector<1x56x512xf32> to vector<56x512xf32>
    %cst = arith.constant dense<0.000000e+00> : vector<56x64xf32>
    %4 = tpu.matmul %3, %0, %cst {dimension_numbers = #tpu.dot_dimension_numbers<[1], [0], [0], [1], [0, 0, 1, 1], [], []>} : vector<56x512xf32>, vector<512x64xf32>, vector<56x64xf32> -> vector<56x64xf32>
    %5 = vector.broadcast %1 : vector<1x64xf32> to vector<56x64xf32>
    %6 = arith.addf %4, %5 : vector<56x64xf32>
    %cst_6 = arith.constant 0.000000e+00 : f32
    %7 = vector.broadcast %cst_6 : f32 to vector<56x64xf32>
    %8 = arith.maximumf %6, %7 : vector<56x64xf32>
    %c1 = arith.constant 1 : index
    %c0_7 = arith.constant 0 : index
    %c0_8 = arith.constant 0 : index
    %9 = vector.load %arg1[%c1, %c0_7, %c0_8] : memref<4x56x512xf32, #tpu.memory_space<vmem>>, vector<1x56x512xf32>
    %10 = vector.shape_cast %9 : vector<1x56x512xf32> to vector<56x512xf32>
    %cst_9 = arith.constant dense<0.000000e+00> : vector<56x64xf32>
    %11 = tpu.matmul %10, %0, %cst_9 {dimension_numbers = #tpu.dot_dimension_numbers<[1], [0], [0], [1], [0, 0, 1, 1], [], []>} : vector<56x512xf32>, vector<512x64xf32>, vector<56x64xf32> -> vector<56x64xf32>
    %12 = vector.broadcast %1 : vector<1x64xf32> to vector<56x64xf32>
    %13 = arith.addf %11, %12 : vector<56x64xf32>
    %cst_10 = arith.constant 0.000000e+00 : f32
    %14 = vector.broadcast %cst_10 : f32 to vector<56x64xf32>
    %15 = arith.maximumf %13, %14 : vector<56x64xf32>
    %16 = arith.maximumf %8, %15 : vector<56x64xf32>
    %c2 = arith.constant 2 : index
    %c0_11 = arith.constant 0 : index
    %c0_12 = arith.constant 0 : index
    %17 = vector.load %arg1[%c2, %c0_11, %c0_12] : memref<4x56x512xf32, #tpu.memory_space<vmem>>, vector<1x56x512xf32>
    %18 = vector.shape_cast %17 : vector<1x56x512xf32> to vector<56x512xf32>
    %cst_13 = arith.constant dense<0.000000e+00> : vector<56x64xf32>
    %19 = tpu.matmul %18, %0, %cst_13 {dimension_numbers = #tpu.dot_dimension_numbers<[1], [0], [0], [1], [0, 0, 1, 1], [], []>} : vector<56x512xf32>, vector<512x64xf32>, vector<56x64xf32> -> vector<56x64xf32>
    %20 = vector.broadcast %1 : vector<1x64xf32> to vector<56x64xf32>
    %21 = arith.addf %19, %20 : vector<56x64xf32>
    %cst_14 = arith.constant 0.000000e+00 : f32
    %22 = vector.broadcast %cst_14 : f32 to vector<56x64xf32>
    %23 = arith.maximumf %21, %22 : vector<56x64xf32>
    %24 = arith.maximumf %16, %23 : vector<56x64xf32>
    %c3 = arith.constant 3 : index
    %c0_15 = arith.constant 0 : index
    %c0_16 = arith.constant 0 : index
    %25 = vector.load %arg1[%c3, %c0_15, %c0_16] : memref<4x56x512xf32, #tpu.memory_space<vmem>>, vector<1x56x512xf32>
    %26 = vector.shape_cast %25 : vector<1x56x512xf32> to vector<56x512xf32>
    %cst_17 = arith.constant dense<0.000000e+00> : vector<56x64xf32>
    %27 = tpu.matmul %26, %0, %cst_17 {dimension_numbers = #tpu.dot_dimension_numbers<[1], [0], [0], [1], [0, 0, 1, 1], [], []>} : vector<56x512xf32>, vector<512x64xf32>, vector<56x64xf32> -> vector<56x64xf32>
    %28 = vector.broadcast %1 : vector<1x64xf32> to vector<56x64xf32>
    %29 = arith.addf %27, %28 : vector<56x64xf32>
    %cst_18 = arith.constant 0.000000e+00 : f32
    %30 = vector.broadcast %cst_18 : f32 to vector<56x64xf32>
    %31 = arith.maximumf %29, %30 : vector<56x64xf32>
    %32 = arith.maximumf %24, %31 : vector<56x64xf32>
    %c0_19 = arith.constant 0 : index
    %c0_20 = arith.constant 0 : index
    %33 = vector.load %arg4[%c0_19, %c0_20] : memref<56x64xf32, #tpu.memory_space<vmem>>, vector<56x64xf32>
    tpu.vector_store %arg4[%c0_19, %c0_20], %32 {strides = array<i32>} : memref<56x64xf32, #tpu.memory_space<vmem>>, vector<56x64xf32>,
    return
  }
  func.func @transform_0(%arg0: i32) -> (i32, i32, i32) {
    %c0_i32 = arith.constant 0 : i32
    %c0_i32_0 = arith.constant 0 : i32
    %c0_i32_1 = arith.constant 0 : i32
    return %c0_i32, %arg0, %c0_i32_0 : i32, i32, i32
  }
  func.func @transform_1(%arg0: i32) -> (i32, i32) {
    %c0_i32 = arith.constant 0 : i32
    %c0_i32_0 = arith.constant 0 : i32
    %c0_i32_1 = arith.constant 0 : i32
    return %c0_i32, %c0_i32_0 : i32, i32
  }
  func.func @transform_2(%arg0: i32) -> (i32, i32) {
    %c0_i32 = arith.constant 0 : i32
    %c0_i32_0 = arith.constant 0 : i32
    %c0_i32_1 = arith.constant 0 : i32
    return %c0_i32, %c0_i32_0 : i32, i32
  }
  func.func @transform_3(%arg0: i32) -> (i32, i32) {
    %c0_i32 = arith.constant 0 : i32
    %c0_i32_0 = arith.constant 0 : i32
    return %arg0, %c0_i32 : i32, i32
  }
}

module attributes {stable_mosaic.version = 11 : i64} {
  func.func @_conv3_head_kernel(%arg0: i32, %arg1: memref<16x2x256xf32, #tpu.memory_space<vmem>>, %arg2: memref<256x128xf32, #tpu.memory_space<vmem>>, %arg3: memref<1x128xf32, #tpu.memory_space<vmem>>, %arg4: memref<4x128x512xf32, #tpu.memory_space<vmem>>, %arg5: memref<1x512xf32, #tpu.memory_space<vmem>>, %arg6: memref<512x6xf32, #tpu.memory_space<vmem>>, %arg7: memref<1x6xf32, #tpu.memory_space<vmem>>, %arg8: memref<4x128x128xf32, #tpu.memory_space<vmem>>, %arg9: memref<1x128xf32, #tpu.memory_space<vmem>>, %arg10: memref<1x128xf32, #tpu.memory_space<vmem>>, %arg11: memref<1x1xf32, #tpu.memory_space<vmem>>, %arg12: memref<2x6xf32, #tpu.memory_space<vmem>>) attributes {dimension_semantics = [#tpu.dimension_semantics<arbitrary>], iteration_bounds = array<i64: 1>, scalar_prefetch = 0 : i64, scratch_operands = 0 : i64, tpu.core_type = #tpu.core_type<tc>, window_params = [{pipeline_mode = #tpu.pipeline_mode<synchronous>, transform_indices = @transform_0, window_bounds = array<i64: 16, 2, 256>}, {pipeline_mode = #tpu.pipeline_mode<synchronous>, transform_indices = @transform_1, window_bounds = array<i64: 256, 128>}, {pipeline_mode = #tpu.pipeline_mode<synchronous>, transform_indices = @transform_2, window_bounds = array<i64: 1, 128>}, {pipeline_mode = #tpu.pipeline_mode<synchronous>, transform_indices = @transform_3, window_bounds = array<i64: 4, 128, 512>}, {pipeline_mode = #tpu.pipeline_mode<synchronous>, transform_indices = @transform_4, window_bounds = array<i64: 1, 512>}, {pipeline_mode = #tpu.pipeline_mode<synchronous>, transform_indices = @transform_5, window_bounds = array<i64: 512, 6>}, {pipeline_mode = #tpu.pipeline_mode<synchronous>, transform_indices = @transform_6, window_bounds = array<i64: 1, 6>}, {pipeline_mode = #tpu.pipeline_mode<synchronous>, transform_indices = @transform_7, window_bounds = array<i64: 4, 128, 128>}, {pipeline_mode = #tpu.pipeline_mode<synchronous>, transform_indices = @transform_8, window_bounds = array<i64: 1, 128>}, {pipeline_mode = #tpu.pipeline_mode<synchronous>, transform_indices = @transform_9, window_bounds = array<i64: 1, 128>}, {pipeline_mode = #tpu.pipeline_mode<synchronous>, transform_indices = @transform_10, window_bounds = array<i64: 1, 1>}, {pipeline_mode = #tpu.pipeline_mode<synchronous>, transform_indices = @transform_11, window_bounds = array<i64: 2, 6>}]} {
    %c0 = arith.constant 0 : index
    %c0_0 = arith.constant 0 : index
    %0 = vector.load %arg2[%c0, %c0_0] : memref<256x128xf32, #tpu.memory_space<vmem>>, vector<256x128xf32>
    %c0_1 = arith.constant 0 : index
    %c0_2 = arith.constant 0 : index
    %1 = vector.load %arg3[%c0_1, %c0_2] : memref<1x128xf32, #tpu.memory_space<vmem>>, vector<1x128xf32>
    %c0_3 = arith.constant 0 : index
    %c0_4 = arith.constant 0 : index
    %2 = vector.load %arg5[%c0_3, %c0_4] : memref<1x512xf32, #tpu.memory_space<vmem>>, vector<1x512xf32>
    %c0_5 = arith.constant 0 : index
    %c0_6 = arith.constant 0 : index
    %3 = vector.load %arg9[%c0_5, %c0_6] : memref<1x128xf32, #tpu.memory_space<vmem>>, vector<1x128xf32>
    %c0_7 = arith.constant 0 : index
    %c0_8 = arith.constant 0 : index
    %c0_9 = arith.constant 0 : index
    %4 = vector.load %arg1[%c0_7, %c0_8, %c0_9] : memref<16x2x256xf32, #tpu.memory_space<vmem>>, vector<1x2x256xf32>
    %5 = vector.shape_cast %4 : vector<1x2x256xf32> to vector<2x256xf32>
    %cst = arith.constant dense<0.000000e+00> : vector<2x128xf32>
    %6 = tpu.matmul %5, %0, %cst {dimension_numbers = #tpu.dot_dimension_numbers<[1], [0], [0], [1], [0, 0, 1, 1], [], []>} : vector<2x256xf32>, vector<256x128xf32>, vector<2x128xf32> -> vector<2x128xf32>
    %7 = vector.broadcast %1 : vector<1x128xf32> to vector<2x128xf32>
    %8 = arith.addf %6, %7 : vector<2x128xf32>
    %cst_10 = arith.constant 0.000000e+00 : f32
    %9 = vector.broadcast %cst_10 : f32 to vector<2x128xf32>
    %10 = arith.maximumf %8, %9 : vector<2x128xf32>
    %c1 = arith.constant 1 : index
    %c0_11 = arith.constant 0 : index
    %c0_12 = arith.constant 0 : index
    %11 = vector.load %arg1[%c1, %c0_11, %c0_12] : memref<16x2x256xf32, #tpu.memory_space<vmem>>, vector<1x2x256xf32>
    %12 = vector.shape_cast %11 : vector<1x2x256xf32> to vector<2x256xf32>
    %cst_13 = arith.constant dense<0.000000e+00> : vector<2x128xf32>
    %13 = tpu.matmul %12, %0, %cst_13 {dimension_numbers = #tpu.dot_dimension_numbers<[1], [0], [0], [1], [0, 0, 1, 1], [], []>} : vector<2x256xf32>, vector<256x128xf32>, vector<2x128xf32> -> vector<2x128xf32>
    %14 = vector.broadcast %1 : vector<1x128xf32> to vector<2x128xf32>
    %15 = arith.addf %13, %14 : vector<2x128xf32>
    %cst_14 = arith.constant 0.000000e+00 : f32
    %16 = vector.broadcast %cst_14 : f32 to vector<2x128xf32>
    %17 = arith.maximumf %15, %16 : vector<2x128xf32>
    %18 = arith.maximumf %10, %17 : vector<2x128xf32>
    %c2 = arith.constant 2 : index
    %c0_15 = arith.constant 0 : index
    %c0_16 = arith.constant 0 : index
    %19 = vector.load %arg1[%c2, %c0_15, %c0_16] : memref<16x2x256xf32, #tpu.memory_space<vmem>>, vector<1x2x256xf32>
    %20 = vector.shape_cast %19 : vector<1x2x256xf32> to vector<2x256xf32>
    %cst_17 = arith.constant dense<0.000000e+00> : vector<2x128xf32>
    %21 = tpu.matmul %20, %0, %cst_17 {dimension_numbers = #tpu.dot_dimension_numbers<[1], [0], [0], [1], [0, 0, 1, 1], [], []>} : vector<2x256xf32>, vector<256x128xf32>, vector<2x128xf32> -> vector<2x128xf32>
    %22 = vector.broadcast %1 : vector<1x128xf32> to vector<2x128xf32>
    %23 = arith.addf %21, %22 : vector<2x128xf32>
    %cst_18 = arith.constant 0.000000e+00 : f32
    %24 = vector.broadcast %cst_18 : f32 to vector<2x128xf32>
    %25 = arith.maximumf %23, %24 : vector<2x128xf32>
    %26 = arith.maximumf %18, %25 : vector<2x128xf32>
    %c3 = arith.constant 3 : index
    %c0_19 = arith.constant 0 : index
    %c0_20 = arith.constant 0 : index
    %27 = vector.load %arg1[%c3, %c0_19, %c0_20] : memref<16x2x256xf32, #tpu.memory_space<vmem>>, vector<1x2x256xf32>
    %28 = vector.shape_cast %27 : vector<1x2x256xf32> to vector<2x256xf32>
    %cst_21 = arith.constant dense<0.000000e+00> : vector<2x128xf32>
    %29 = tpu.matmul %28, %0, %cst_21 {dimension_numbers = #tpu.dot_dimension_numbers<[1], [0], [0], [1], [0, 0, 1, 1], [], []>} : vector<2x256xf32>, vector<256x128xf32>, vector<2x128xf32> -> vector<2x128xf32>
    %30 = vector.broadcast %1 : vector<1x128xf32> to vector<2x128xf32>
    %31 = arith.addf %29, %30 : vector<2x128xf32>
    %cst_22 = arith.constant 0.000000e+00 : f32
    %32 = vector.broadcast %cst_22 : f32 to vector<2x128xf32>
    %33 = arith.maximumf %31, %32 : vector<2x128xf32>
    %34 = arith.maximumf %26, %33 : vector<2x128xf32>
    %c0_23 = arith.constant 0 : index
    %c0_24 = arith.constant 0 : index
    %c0_25 = arith.constant 0 : index
    %35 = vector.load %arg4[%c0_23, %c0_24, %c0_25] : memref<4x128x512xf32, #tpu.memory_space<vmem>>, vector<1x128x512xf32>
    %36 = vector.shape_cast %35 : vector<1x128x512xf32> to vector<128x512xf32>
    %cst_26 = arith.constant dense<0.000000e+00> : vector<2x512xf32>
    %37 = tpu.matmul %34, %36, %cst_26 {dimension_numbers = #tpu.dot_dimension_numbers<[1], [0], [0], [1], [0, 0, 1, 1], [], []>} : vector<2x128xf32>, vector<128x512xf32>, vector<2x512xf32> -> vector<2x512xf32>
    %38 = vector.broadcast %2 : vector<1x512xf32> to vector<2x512xf32>
    %39 = arith.addf %38, %37 : vector<2x512xf32>
    %c0_27 = arith.constant 0 : index
    %c0_28 = arith.constant 0 : index
    %c0_29 = arith.constant 0 : index
    %40 = vector.load %arg8[%c0_27, %c0_28, %c0_29] : memref<4x128x128xf32, #tpu.memory_space<vmem>>, vector<1x128x128xf32>
    %41 = vector.shape_cast %40 : vector<1x128x128xf32> to vector<128x128xf32>
    %cst_30 = arith.constant dense<0.000000e+00> : vector<2x128xf32>
    %42 = tpu.matmul %34, %41, %cst_30 {dimension_numbers = #tpu.dot_dimension_numbers<[1], [0], [0], [1], [0, 0, 1, 1], [], []>} : vector<2x128xf32>, vector<128x128xf32>, vector<2x128xf32> -> vector<2x128xf32>
    %43 = vector.broadcast %3 : vector<1x128xf32> to vector<2x128xf32>
    %44 = arith.addf %43, %42 : vector<2x128xf32>
    %c4 = arith.constant 4 : index
    %c0_31 = arith.constant 0 : index
    %c0_32 = arith.constant 0 : index
    %45 = vector.load %arg1[%c4, %c0_31, %c0_32] : memref<16x2x256xf32, #tpu.memory_space<vmem>>, vector<1x2x256xf32>
    %46 = vector.shape_cast %45 : vector<1x2x256xf32> to vector<2x256xf32>
    %cst_33 = arith.constant dense<0.000000e+00> : vector<2x128xf32>
    %47 = tpu.matmul %46, %0, %cst_33 {dimension_numbers = #tpu.dot_dimension_numbers<[1], [0], [0], [1], [0, 0, 1, 1], [], []>} : vector<2x256xf32>, vector<256x128xf32>, vector<2x128xf32> -> vector<2x128xf32>
    %48 = vector.broadcast %1 : vector<1x128xf32> to vector<2x128xf32>
    %49 = arith.addf %47, %48 : vector<2x128xf32>
    %cst_34 = arith.constant 0.000000e+00 : f32
    %50 = vector.broadcast %cst_34 : f32 to vector<2x128xf32>
    %51 = arith.maximumf %49, %50 : vector<2x128xf32>
    %c5 = arith.constant 5 : index
    %c0_35 = arith.constant 0 : index
    %c0_36 = arith.constant 0 : index
    %52 = vector.load %arg1[%c5, %c0_35, %c0_36] : memref<16x2x256xf32, #tpu.memory_space<vmem>>, vector<1x2x256xf32>
    %53 = vector.shape_cast %52 : vector<1x2x256xf32> to vector<2x256xf32>
    %cst_37 = arith.constant dense<0.000000e+00> : vector<2x128xf32>
    %54 = tpu.matmul %53, %0, %cst_37 {dimension_numbers = #tpu.dot_dimension_numbers<[1], [0], [0], [1], [0, 0, 1, 1], [], []>} : vector<2x256xf32>, vector<256x128xf32>, vector<2x128xf32> -> vector<2x128xf32>
    %55 = vector.broadcast %1 : vector<1x128xf32> to vector<2x128xf32>
    %56 = arith.addf %54, %55 : vector<2x128xf32>
    %cst_38 = arith.constant 0.000000e+00 : f32
    %57 = vector.broadcast %cst_38 : f32 to vector<2x128xf32>
    %58 = arith.maximumf %56, %57 : vector<2x128xf32>
    %59 = arith.maximumf %51, %58 : vector<2x128xf32>
    %c6 = arith.constant 6 : index
    %c0_39 = arith.constant 0 : index
    %c0_40 = arith.constant 0 : index
    %60 = vector.load %arg1[%c6, %c0_39, %c0_40] : memref<16x2x256xf32, #tpu.memory_space<vmem>>, vector<1x2x256xf32>
    %61 = vector.shape_cast %60 : vector<1x2x256xf32> to vector<2x256xf32>
    %cst_41 = arith.constant dense<0.000000e+00> : vector<2x128xf32>
    %62 = tpu.matmul %61, %0, %cst_41 {dimension_numbers = #tpu.dot_dimension_numbers<[1], [0], [0], [1], [0, 0, 1, 1], [], []>} : vector<2x256xf32>, vector<256x128xf32>, vector<2x128xf32> -> vector<2x128xf32>
    %63 = vector.broadcast %1 : vector<1x128xf32> to vector<2x128xf32>
    %64 = arith.addf %62, %63 : vector<2x128xf32>
    %cst_42 = arith.constant 0.000000e+00 : f32
    %65 = vector.broadcast %cst_42 : f32 to vector<2x128xf32>
    %66 = arith.maximumf %64, %65 : vector<2x128xf32>
    %67 = arith.maximumf %59, %66 : vector<2x128xf32>
    %c7 = arith.constant 7 : index
    %c0_43 = arith.constant 0 : index
    %c0_44 = arith.constant 0 : index
    %68 = vector.load %arg1[%c7, %c0_43, %c0_44] : memref<16x2x256xf32, #tpu.memory_space<vmem>>, vector<1x2x256xf32>
    %69 = vector.shape_cast %68 : vector<1x2x256xf32> to vector<2x256xf32>
    %cst_45 = arith.constant dense<0.000000e+00> : vector<2x128xf32>
    %70 = tpu.matmul %69, %0, %cst_45 {dimension_numbers = #tpu.dot_dimension_numbers<[1], [0], [0], [1], [0, 0, 1, 1], [], []>} : vector<2x256xf32>, vector<256x128xf32>, vector<2x128xf32> -> vector<2x128xf32>
    %71 = vector.broadcast %1 : vector<1x128xf32> to vector<2x128xf32>
    %72 = arith.addf %70, %71 : vector<2x128xf32>
    %cst_46 = arith.constant 0.000000e+00 : f32
    %73 = vector.broadcast %cst_46 : f32 to vector<2x128xf32>
    %74 = arith.maximumf %72, %73 : vector<2x128xf32>
    %75 = arith.maximumf %67, %74 : vector<2x128xf32>
    %c1_47 = arith.constant 1 : index
    %c0_48 = arith.constant 0 : index
    %c0_49 = arith.constant 0 : index
    %76 = vector.load %arg4[%c1_47, %c0_48, %c0_49] : memref<4x128x512xf32, #tpu.memory_space<vmem>>, vector<1x128x512xf32>
    %77 = vector.shape_cast %76 : vector<1x128x512xf32> to vector<128x512xf32>
    %cst_50 = arith.constant dense<0.000000e+00> : vector<2x512xf32>
    %78 = tpu.matmul %75, %77, %cst_50 {dimension_numbers = #tpu.dot_dimension_numbers<[1], [0], [0], [1], [0, 0, 1, 1], [], []>} : vector<2x128xf32>, vector<128x512xf32>, vector<2x512xf32> -> vector<2x512xf32>
    %79 = arith.addf %39, %78 : vector<2x512xf32>
    %c1_51 = arith.constant 1 : index
    %c0_52 = arith.constant 0 : index
    %c0_53 = arith.constant 0 : index
    %80 = vector.load %arg8[%c1_51, %c0_52, %c0_53] : memref<4x128x128xf32, #tpu.memory_space<vmem>>, vector<1x128x128xf32>
    %81 = vector.shape_cast %80 : vector<1x128x128xf32> to vector<128x128xf32>
    %cst_54 = arith.constant dense<0.000000e+00> : vector<2x128xf32>
    %82 = tpu.matmul %75, %81, %cst_54 {dimension_numbers = #tpu.dot_dimension_numbers<[1], [0], [0], [1], [0, 0, 1, 1], [], []>} : vector<2x128xf32>, vector<128x128xf32>, vector<2x128xf32> -> vector<2x128xf32>
    %83 = arith.addf %44, %82 : vector<2x128xf32>
    %c8 = arith.constant 8 : index
    %c0_55 = arith.constant 0 : index
    %c0_56 = arith.constant 0 : index
    %84 = vector.load %arg1[%c8, %c0_55, %c0_56] : memref<16x2x256xf32, #tpu.memory_space<vmem>>, vector<1x2x256xf32>
    %85 = vector.shape_cast %84 : vector<1x2x256xf32> to vector<2x256xf32>
    %cst_57 = arith.constant dense<0.000000e+00> : vector<2x128xf32>
    %86 = tpu.matmul %85, %0, %cst_57 {dimension_numbers = #tpu.dot_dimension_numbers<[1], [0], [0], [1], [0, 0, 1, 1], [], []>} : vector<2x256xf32>, vector<256x128xf32>, vector<2x128xf32> -> vector<2x128xf32>
    %87 = vector.broadcast %1 : vector<1x128xf32> to vector<2x128xf32>
    %88 = arith.addf %86, %87 : vector<2x128xf32>
    %cst_58 = arith.constant 0.000000e+00 : f32
    %89 = vector.broadcast %cst_58 : f32 to vector<2x128xf32>
    %90 = arith.maximumf %88, %89 : vector<2x128xf32>
    %c9 = arith.constant 9 : index
    %c0_59 = arith.constant 0 : index
    %c0_60 = arith.constant 0 : index
    %91 = vector.load %arg1[%c9, %c0_59, %c0_60] : memref<16x2x256xf32, #tpu.memory_space<vmem>>, vector<1x2x256xf32>
    %92 = vector.shape_cast %91 : vector<1x2x256xf32> to vector<2x256xf32>
    %cst_61 = arith.constant dense<0.000000e+00> : vector<2x128xf32>
    %93 = tpu.matmul %92, %0, %cst_61 {dimension_numbers = #tpu.dot_dimension_numbers<[1], [0], [0], [1], [0, 0, 1, 1], [], []>} : vector<2x256xf32>, vector<256x128xf32>, vector<2x128xf32> -> vector<2x128xf32>
    %94 = vector.broadcast %1 : vector<1x128xf32> to vector<2x128xf32>
    %95 = arith.addf %93, %94 : vector<2x128xf32>
    %cst_62 = arith.constant 0.000000e+00 : f32
    %96 = vector.broadcast %cst_62 : f32 to vector<2x128xf32>
    %97 = arith.maximumf %95, %96 : vector<2x128xf32>
    %98 = arith.maximumf %90, %97 : vector<2x128xf32>
    %c10 = arith.constant 10 : index
    %c0_63 = arith.constant 0 : index
    %c0_64 = arith.constant 0 : index
    %99 = vector.load %arg1[%c10, %c0_63, %c0_64] : memref<16x2x256xf32, #tpu.memory_space<vmem>>, vector<1x2x256xf32>
    %100 = vector.shape_cast %99 : vector<1x2x256xf32> to vector<2x256xf32>
    %cst_65 = arith.constant dense<0.000000e+00> : vector<2x128xf32>
    %101 = tpu.matmul %100, %0, %cst_65 {dimension_numbers = #tpu.dot_dimension_numbers<[1], [0], [0], [1], [0, 0, 1, 1], [], []>} : vector<2x256xf32>, vector<256x128xf32>, vector<2x128xf32> -> vector<2x128xf32>
    %102 = vector.broadcast %1 : vector<1x128xf32> to vector<2x128xf32>
    %103 = arith.addf %101, %102 : vector<2x128xf32>
    %cst_66 = arith.constant 0.000000e+00 : f32
    %104 = vector.broadcast %cst_66 : f32 to vector<2x128xf32>
    %105 = arith.maximumf %103, %104 : vector<2x128xf32>
    %106 = arith.maximumf %98, %105 : vector<2x128xf32>
    %c11 = arith.constant 11 : index
    %c0_67 = arith.constant 0 : index
    %c0_68 = arith.constant 0 : index
    %107 = vector.load %arg1[%c11, %c0_67, %c0_68] : memref<16x2x256xf32, #tpu.memory_space<vmem>>, vector<1x2x256xf32>
    %108 = vector.shape_cast %107 : vector<1x2x256xf32> to vector<2x256xf32>
    %cst_69 = arith.constant dense<0.000000e+00> : vector<2x128xf32>
    %109 = tpu.matmul %108, %0, %cst_69 {dimension_numbers = #tpu.dot_dimension_numbers<[1], [0], [0], [1], [0, 0, 1, 1], [], []>} : vector<2x256xf32>, vector<256x128xf32>, vector<2x128xf32> -> vector<2x128xf32>
    %110 = vector.broadcast %1 : vector<1x128xf32> to vector<2x128xf32>
    %111 = arith.addf %109, %110 : vector<2x128xf32>
    %cst_70 = arith.constant 0.000000e+00 : f32
    %112 = vector.broadcast %cst_70 : f32 to vector<2x128xf32>
    %113 = arith.maximumf %111, %112 : vector<2x128xf32>
    %114 = arith.maximumf %106, %113 : vector<2x128xf32>
    %c2_71 = arith.constant 2 : index
    %c0_72 = arith.constant 0 : index
    %c0_73 = arith.constant 0 : index
    %115 = vector.load %arg4[%c2_71, %c0_72, %c0_73] : memref<4x128x512xf32, #tpu.memory_space<vmem>>, vector<1x128x512xf32>
    %116 = vector.shape_cast %115 : vector<1x128x512xf32> to vector<128x512xf32>
    %cst_74 = arith.constant dense<0.000000e+00> : vector<2x512xf32>
    %117 = tpu.matmul %114, %116, %cst_74 {dimension_numbers = #tpu.dot_dimension_numbers<[1], [0], [0], [1], [0, 0, 1, 1], [], []>} : vector<2x128xf32>, vector<128x512xf32>, vector<2x512xf32> -> vector<2x512xf32>
    %118 = arith.addf %79, %117 : vector<2x512xf32>
    %c2_75 = arith.constant 2 : index
    %c0_76 = arith.constant 0 : index
    %c0_77 = arith.constant 0 : index
    %119 = vector.load %arg8[%c2_75, %c0_76, %c0_77] : memref<4x128x128xf32, #tpu.memory_space<vmem>>, vector<1x128x128xf32>
    %120 = vector.shape_cast %119 : vector<1x128x128xf32> to vector<128x128xf32>
    %cst_78 = arith.constant dense<0.000000e+00> : vector<2x128xf32>
    %121 = tpu.matmul %114, %120, %cst_78 {dimension_numbers = #tpu.dot_dimension_numbers<[1], [0], [0], [1], [0, 0, 1, 1], [], []>} : vector<2x128xf32>, vector<128x128xf32>, vector<2x128xf32> -> vector<2x128xf32>
    %122 = arith.addf %83, %121 : vector<2x128xf32>
    %c12 = arith.constant 12 : index
    %c0_79 = arith.constant 0 : index
    %c0_80 = arith.constant 0 : index
    %123 = vector.load %arg1[%c12, %c0_79, %c0_80] : memref<16x2x256xf32, #tpu.memory_space<vmem>>, vector<1x2x256xf32>
    %124 = vector.shape_cast %123 : vector<1x2x256xf32> to vector<2x256xf32>
    %cst_81 = arith.constant dense<0.000000e+00> : vector<2x128xf32>
    %125 = tpu.matmul %124, %0, %cst_81 {dimension_numbers = #tpu.dot_dimension_numbers<[1], [0], [0], [1], [0, 0, 1, 1], [], []>} : vector<2x256xf32>, vector<256x128xf32>, vector<2x128xf32> -> vector<2x128xf32>
    %126 = vector.broadcast %1 : vector<1x128xf32> to vector<2x128xf32>
    %127 = arith.addf %125, %126 : vector<2x128xf32>
    %cst_82 = arith.constant 0.000000e+00 : f32
    %128 = vector.broadcast %cst_82 : f32 to vector<2x128xf32>
    %129 = arith.maximumf %127, %128 : vector<2x128xf32>
    %c13 = arith.constant 13 : index
    %c0_83 = arith.constant 0 : index
    %c0_84 = arith.constant 0 : index
    %130 = vector.load %arg1[%c13, %c0_83, %c0_84] : memref<16x2x256xf32, #tpu.memory_space<vmem>>, vector<1x2x256xf32>
    %131 = vector.shape_cast %130 : vector<1x2x256xf32> to vector<2x256xf32>
    %cst_85 = arith.constant dense<0.000000e+00> : vector<2x128xf32>
    %132 = tpu.matmul %131, %0, %cst_85 {dimension_numbers = #tpu.dot_dimension_numbers<[1], [0], [0], [1], [0, 0, 1, 1], [], []>} : vector<2x256xf32>, vector<256x128xf32>, vector<2x128xf32> -> vector<2x128xf32>
    %133 = vector.broadcast %1 : vector<1x128xf32> to vector<2x128xf32>
    %134 = arith.addf %132, %133 : vector<2x128xf32>
    %cst_86 = arith.constant 0.000000e+00 : f32
    %135 = vector.broadcast %cst_86 : f32 to vector<2x128xf32>
    %136 = arith.maximumf %134, %135 : vector<2x128xf32>
    %137 = arith.maximumf %129, %136 : vector<2x128xf32>
    %c14 = arith.constant 14 : index
    %c0_87 = arith.constant 0 : index
    %c0_88 = arith.constant 0 : index
    %138 = vector.load %arg1[%c14, %c0_87, %c0_88] : memref<16x2x256xf32, #tpu.memory_space<vmem>>, vector<1x2x256xf32>
    %139 = vector.shape_cast %138 : vector<1x2x256xf32> to vector<2x256xf32>
    %cst_89 = arith.constant dense<0.000000e+00> : vector<2x128xf32>
    %140 = tpu.matmul %139, %0, %cst_89 {dimension_numbers = #tpu.dot_dimension_numbers<[1], [0], [0], [1], [0, 0, 1, 1], [], []>} : vector<2x256xf32>, vector<256x128xf32>, vector<2x128xf32> -> vector<2x128xf32>
    %141 = vector.broadcast %1 : vector<1x128xf32> to vector<2x128xf32>
    %142 = arith.addf %140, %141 : vector<2x128xf32>
    %cst_90 = arith.constant 0.000000e+00 : f32
    %143 = vector.broadcast %cst_90 : f32 to vector<2x128xf32>
    %144 = arith.maximumf %142, %143 : vector<2x128xf32>
    %145 = arith.maximumf %137, %144 : vector<2x128xf32>
    %c15 = arith.constant 15 : index
    %c0_91 = arith.constant 0 : index
    %c0_92 = arith.constant 0 : index
    %146 = vector.load %arg1[%c15, %c0_91, %c0_92] : memref<16x2x256xf32, #tpu.memory_space<vmem>>, vector<1x2x256xf32>
    %147 = vector.shape_cast %146 : vector<1x2x256xf32> to vector<2x256xf32>
    %cst_93 = arith.constant dense<0.000000e+00> : vector<2x128xf32>
    %148 = tpu.matmul %147, %0, %cst_93 {dimension_numbers = #tpu.dot_dimension_numbers<[1], [0], [0], [1], [0, 0, 1, 1], [], []>} : vector<2x256xf32>, vector<256x128xf32>, vector<2x128xf32> -> vector<2x128xf32>
    %149 = vector.broadcast %1 : vector<1x128xf32> to vector<2x128xf32>
    %150 = arith.addf %148, %149 : vector<2x128xf32>
    %cst_94 = arith.constant 0.000000e+00 : f32
    %151 = vector.broadcast %cst_94 : f32 to vector<2x128xf32>
    %152 = arith.maximumf %150, %151 : vector<2x128xf32>
    %153 = arith.maximumf %145, %152 : vector<2x128xf32>
    %c3_95 = arith.constant 3 : index
    %c0_96 = arith.constant 0 : index
    %c0_97 = arith.constant 0 : index
    %154 = vector.load %arg4[%c3_95, %c0_96, %c0_97] : memref<4x128x512xf32, #tpu.memory_space<vmem>>, vector<1x128x512xf32>
    %155 = vector.shape_cast %154 : vector<1x128x512xf32> to vector<128x512xf32>
    %cst_98 = arith.constant dense<0.000000e+00> : vector<2x512xf32>
    %156 = tpu.matmul %153, %155, %cst_98 {dimension_numbers = #tpu.dot_dimension_numbers<[1], [0], [0], [1], [0, 0, 1, 1], [], []>} : vector<2x128xf32>, vector<128x512xf32>, vector<2x512xf32> -> vector<2x512xf32>
    %157 = arith.addf %118, %156 : vector<2x512xf32>
    %c3_99 = arith.constant 3 : index
    %c0_100 = arith.constant 0 : index
    %c0_101 = arith.constant 0 : index
    %158 = vector.load %arg8[%c3_99, %c0_100, %c0_101] : memref<4x128x128xf32, #tpu.memory_space<vmem>>, vector<1x128x128xf32>
    %159 = vector.shape_cast %158 : vector<1x128x128xf32> to vector<128x128xf32>
    %cst_102 = arith.constant dense<0.000000e+00> : vector<2x128xf32>
    %160 = tpu.matmul %153, %159, %cst_102 {dimension_numbers = #tpu.dot_dimension_numbers<[1], [0], [0], [1], [0, 0, 1, 1], [], []>} : vector<2x128xf32>, vector<128x128xf32>, vector<2x128xf32> -> vector<2x128xf32>
    %161 = arith.addf %122, %160 : vector<2x128xf32>
    %c0_103 = arith.constant 0 : index
    %c0_104 = arith.constant 0 : index
    %162 = vector.load %arg6[%c0_103, %c0_104] : memref<512x6xf32, #tpu.memory_space<vmem>>, vector<512x6xf32>
    %cst_105 = arith.constant dense<0.000000e+00> : vector<2x6xf32>
    %163 = tpu.matmul %157, %162, %cst_105 {dimension_numbers = #tpu.dot_dimension_numbers<[1], [0], [0], [1], [0, 0, 1, 1], [], []>} : vector<2x512xf32>, vector<512x6xf32>, vector<2x6xf32> -> vector<2x6xf32>
    %c0_106 = arith.constant 0 : index
    %c0_107 = arith.constant 0 : index
    %164 = vector.load %arg7[%c0_106, %c0_107] : memref<1x6xf32, #tpu.memory_space<vmem>>, vector<1x6xf32>
    %165 = vector.broadcast %164 : vector<1x6xf32> to vector<2x6xf32>
    %166 = arith.addf %163, %165 : vector<2x6xf32>
    %c0_108 = arith.constant 0 : index
    %c0_109 = arith.constant 0 : index
    %167 = vector.load %arg10[%c0_108, %c0_109] : memref<1x128xf32, #tpu.memory_space<vmem>>, vector<1x128xf32>
    %168 = vector.broadcast %167 : vector<1x128xf32> to vector<2x128xf32>
    %169 = arith.mulf %161, %168 : vector<2x128xf32>
    %cst_110 = arith.constant dense<0.000000e+00> : vector<2xf32>
    %170 = vector.multi_reduction <add>, %169, %cst_110 [1] : vector<2x128xf32> to vector<2xf32>
    %171 = vector.shape_cast %170 : vector<2xf32> to vector<2x1xf32>
    %c0_111 = arith.constant 0 : index
    %c0_112 = arith.constant 0 : index
    %172 = vector.load %arg11[%c0_111, %c0_112] : memref<1x1xf32, #tpu.memory_space<vmem>>, vector<1x1xf32>
    %173 = vector.broadcast %172 : vector<1x1xf32> to vector<2x1xf32>
    %174 = arith.addf %171, %173 : vector<2x1xf32>
    %cst_113 = arith.constant dense<0.000000e+00> : vector<2xf32>
    %175 = vector.multi_reduction <add>, %166, %cst_113 [1] : vector<2x6xf32> to vector<2xf32>
    %176 = vector.shape_cast %175 : vector<2xf32> to vector<2x1xf32>
    %cst_114 = arith.constant 6.000000e+00 : f32
    %177 = vector.broadcast %cst_114 : f32 to vector<2x1xf32>
    %178 = arith.divf %176, %177 : vector<2x1xf32>
    %179 = vector.broadcast %178 : vector<2x1xf32> to vector<2x6xf32>
    %180 = arith.subf %166, %179 : vector<2x6xf32>
    %181 = vector.broadcast %174 : vector<2x1xf32> to vector<2x6xf32>
    %182 = arith.addf %181, %180 : vector<2x6xf32>
    %c0_115 = arith.constant 0 : index
    %c0_116 = arith.constant 0 : index
    %183 = vector.load %arg12[%c0_115, %c0_116] : memref<2x6xf32, #tpu.memory_space<vmem>>, vector<2x6xf32>
    tpu.vector_store %arg12[%c0_115, %c0_116], %182 {strides = array<i32>} : memref<2x6xf32, #tpu.memory_space<vmem>>, vector<2x6xf32>,
    return
  }
  func.func @transform_0(%arg0: i32) -> (i32, i32, i32) {
    %c0_i32 = arith.constant 0 : i32
    %c0_i32_0 = arith.constant 0 : i32
    %c0_i32_1 = arith.constant 0 : i32
    %c0_i32_2 = arith.constant 0 : i32
    return %c0_i32, %c0_i32_0, %c0_i32_1 : i32, i32, i32
  }
  func.func @transform_1(%arg0: i32) -> (i32, i32) {
    %c0_i32 = arith.constant 0 : i32
    %c0_i32_0 = arith.constant 0 : i32
    %c0_i32_1 = arith.constant 0 : i32
    return %c0_i32, %c0_i32_0 : i32, i32
  }
  func.func @transform_2(%arg0: i32) -> (i32, i32) {
    %c0_i32 = arith.constant 0 : i32
    %c0_i32_0 = arith.constant 0 : i32
    %c0_i32_1 = arith.constant 0 : i32
    return %c0_i32, %c0_i32_0 : i32, i32
  }
  func.func @transform_3(%arg0: i32) -> (i32, i32, i32) {
    %c0_i32 = arith.constant 0 : i32
    %c0_i32_0 = arith.constant 0 : i32
    %c0_i32_1 = arith.constant 0 : i32
    %c0_i32_2 = arith.constant 0 : i32
    return %c0_i32, %c0_i32_0, %c0_i32_1 : i32, i32, i32
  }
  func.func @transform_4(%arg0: i32) -> (i32, i32) {
    %c0_i32 = arith.constant 0 : i32
    %c0_i32_0 = arith.constant 0 : i32
    %c0_i32_1 = arith.constant 0 : i32
    return %c0_i32, %c0_i32_0 : i32, i32
  }
  func.func @transform_5(%arg0: i32) -> (i32, i32) {
    %c0_i32 = arith.constant 0 : i32
    %c0_i32_0 = arith.constant 0 : i32
    %c0_i32_1 = arith.constant 0 : i32
    return %c0_i32, %c0_i32_0 : i32, i32
  }
  func.func @transform_6(%arg0: i32) -> (i32, i32) {
    %c0_i32 = arith.constant 0 : i32
    %c0_i32_0 = arith.constant 0 : i32
    %c0_i32_1 = arith.constant 0 : i32
    return %c0_i32, %c0_i32_0 : i32, i32
  }
  func.func @transform_7(%arg0: i32) -> (i32, i32, i32) {
    %c0_i32 = arith.constant 0 : i32
    %c0_i32_0 = arith.constant 0 : i32
    %c0_i32_1 = arith.constant 0 : i32
    %c0_i32_2 = arith.constant 0 : i32
    return %c0_i32, %c0_i32_0, %c0_i32_1 : i32, i32, i32
  }
  func.func @transform_8(%arg0: i32) -> (i32, i32) {
    %c0_i32 = arith.constant 0 : i32
    %c0_i32_0 = arith.constant 0 : i32
    %c0_i32_1 = arith.constant 0 : i32
    return %c0_i32, %c0_i32_0 : i32, i32
  }
  func.func @transform_9(%arg0: i32) -> (i32, i32) {
    %c0_i32 = arith.constant 0 : i32
    %c0_i32_0 = arith.constant 0 : i32
    %c0_i32_1 = arith.constant 0 : i32
    return %c0_i32, %c0_i32_0 : i32, i32
  }
  func.func @transform_10(%arg0: i32) -> (i32, i32) {
    %c0_i32 = arith.constant 0 : i32
    %c0_i32_0 = arith.constant 0 : i32
    %c0_i32_1 = arith.constant 0 : i32
    return %c0_i32, %c0_i32_0 : i32, i32
  }
  func.func @transform_11(%arg0: i32) -> (i32, i32) {
    %c0_i32 = arith.constant 0 : i32
    %c0_i32_0 = arith.constant 0 : i32
    %c0_i32_1 = arith.constant 0 : i32
    return %c0_i32, %c0_i32_0 : i32, i32
  }
}

</mosaic_0001>

<bundles_post_ra>
// kernel: dueling_cnn_forward.3
= control target key start
LH: loop header
LB: loop body
LE: loop exit
PB: predicated region body
PF: predicated region fallthrough
CT: control target
= control target key end

     0   :  { %s7538_s12 = smov 0   ;;  %s7540_s13 = smov 0   ;;  %s9367_s0 = inlined_call_operand.vmem [shape: bf16[4,1024,256], index: 0, kind: input, shape index: {}]   ;;  %s9368_s1 = inlined_call_operand.vmem [shape: bf16[256,32], index: 1, kind: input, shape index: {}]   ;;  %s9369_s2 = inlined_call_operand.vmem [shape: f32[1,32], index: 2, kind: input, shape index: {}]   ;;  %s9370_s3 = inlined_call_operand.vmem [shape: f32[1024,32], index: 3, kind: output, shape index: {}]  }
   0x1   :  { %s7542_s14 = smov 0  }
   0x2 LB: > { %s5897_s15 = sadd.s32 4294967295, %s7516_s14   ;;  %s7555_s16 = sadd.s32 1, %s7516_s14   ;;  %s7516_s14 = sphi %s7542_s14, %s9421_s14   ;;  %s7512_s13 = sphi %s7540_s13, %s9420_s13   ;;  %s7508_s12 = sphi %s7538_s12, %s9419_s12  }
   0x3   : > { %s17_s17 = ssub.s32 %s7516_s14, %s7555_s16  ;;  %s20_s18 = sadd.s32 1, %s7512_s13 }
   0x4   : > { %p18_p0 = scmp.eq.s32.totalorder %s17_s17, 0  ;;  %p27_p1 = scmp.ne.s32.totalorder %s7512_s13, %s7508_s12 }
   0x5   : > { %p28_p2 = scmp.eq.s32.totalorder %s7516_s14, 0  ;;  %p5900_p4 = scmp.ge.s32.totalorder %s7516_s14, 2 }
   0x6   : > { %s7564_s19 = scalar_select %p18_p0, %s7512_s13, %s20_s18  }
   0x7   : > { %p29_p3 = por %p28_p2, %p27_p1  ;;  %127 = sbr.rel (%p5900_p4) target bundleno = 272 (0x110), region = 24 }
   0xc   : > { %130 = sbr.rel (!%p29_p3) target bundleno = 272 (0x110), region = 28  ;;  %s132_s20 = sand.u32 (%p29_p3), 1, %s7512_s13  }
   0xd   : > { %s7192_s21 = sshll.u32 (%p29_p3), %s7516_s14, 9  ;;  %s5901_s22 = sshll.u32 (%p29_p3), %s132_s20, 11 }
   0xe   : > { %s7572_s25 = scalar_lea.vmem (%p29_p3), %s9367_s0, %s7192_s21  ;;  %s7577_s26 = scalar_lea.vmem (%p29_p3), [#allocation2], %s5901_s22 }
   0xf   : > { %v678_v0 = vld [vmem:[%s7572_s25] sm:$0xff] (%p29_p3)  ;;  %v680_v1 = vld [vmem:[%s7572_s25 + $0x8] sm:$0xff] (%p29_p3)  ;;  %v682_v2 = vld [vmem:[%s7572_s25 + $0x10] sm:$0xff] (%p29_p3) }
  0x10   : > { %679 = vst [vmem:[%s7577_s26] sm:$0xff] (%p29_p3), %v678_v0  ;;  %v684_v3 = vld [vmem:[%s7572_s25 + $0x18] sm:$0xff] (%p29_p3)  ;;  %v686_v4 = vld [vmem:[%s7572_s25 + $0x20] sm:$0xff] (%p29_p3)  ;;  %v688_v5 = vld [vmem:[%s7572_s25 + $0x28] sm:$0xff] (%p29_p3) }
  0x11   : > { %681 = vst [vmem:[%s7577_s26 + $0x8] sm:$0xff] %v680_v1  ;;  %v690_v6 = vld [vmem:[%s7572_s25 + $0x30] sm:$0xff]  ;;  %v692_v7 = vld [vmem:[%s7572_s25 + $0x38] sm:$0xff]  ;;  %v694_v8 = vld [vmem:[%s7572_s25 + $0x40] sm:$0xff] }
  0x12   : > { %683 = vst [vmem:[%s7577_s26 + $0x10] sm:$0xff] %v682_v2  ;;  %v696_v9 = vld [vmem:[%s7572_s25 + $0x48] sm:$0xff]  ;;  %v698_v10 = vld [vmem:[%s7572_s25 + $0x50] sm:$0xff]  ;;  %v700_v11 = vld [vmem:[%s7572_s25 + $0x58] sm:$0xff] }
  0x13   : > { %685 = vst [vmem:[%s7577_s26 + $0x18] sm:$0xff] %v684_v3  ;;  %v702_v12 = vld [vmem:[%s7572_s25 + $0x60] sm:$0xff]  ;;  %v704_v13 = vld [vmem:[%s7572_s25 + $0x68] sm:$0xff]  ;;  %v706_v14 = vld [vmem:[%s7572_s25 + $0x70] sm:$0xff] }
  0x14   : > { %687 = vst [vmem:[%s7577_s26 + $0x20] sm:$0xff] %v686_v4  ;;  %v708_v15 = vld [vmem:[%s7572_s25 + $0x78] sm:$0xff]  ;;  %v710_v16 = vld [vmem:[%s7572_s25 + $0x80] sm:$0xff]  ;;  %v712_v17 = vld [vmem:[%s7572_s25 + $0x88] sm:$0xff] }
  0x15   : > { %689 = vst [vmem:[%s7577_s26 + $0x28] sm:$0xff] %v688_v5  ;;  %v714_v18 = vld [vmem:[%s7572_s25 + $0x90] sm:$0xff]  ;;  %v716_v19 = vld [vmem:[%s7572_s25 + $0x98] sm:$0xff]  ;;  %v718_v20 = vld [vmem:[%s7572_s25 + $0xa0] sm:$0xff] }
  0x16   : > { %691 = vst [vmem:[%s7577_s26 + $0x30] sm:$0xff] %v690_v6  ;;  %v720_v21 = vld [vmem:[%s7572_s25 + $0xa8] sm:$0xff]  ;;  %v722_v22 = vld [vmem:[%s7572_s25 + $0xb0] sm:$0xff]  ;;  %v724_v23 = vld [vmem:[%s7572_s25 + $0xb8] sm:$0xff] }
  0x17   : > { %693 = vst [vmem:[%s7577_s26 + $0x38] sm:$0xff] %v692_v7  ;;  %v726_v24 = vld [vmem:[%s7572_s25 + $0xc0] sm:$0xff]  ;;  %v728_v25 = vld [vmem:[%s7572_s25 + $0xc8] sm:$0xff]  ;;  %v730_v26 = vld [vmem:[%s7572_s25 + $0xd0] sm:$0xff] }
  0x18   : > { %695 = vst [vmem:[%s7577_s26 + $0x40] sm:$0xff] %v694_v8  ;;  %v732_v27 = vld [vmem:[%s7572_s25 + $0xd8] sm:$0xff]  ;;  %v734_v28 = vld [vmem:[%s7572_s25 + $0xe0] sm:$0xff]  ;;  %v736_v29 = vld [vmem:[%s7572_s25 + $0xe8] sm:$0xff] }
  0x19   : > { %697 = vst [vmem:[%s7577_s26 + $0x48] sm:$0xff] %v696_v9  ;;  %v738_v30 = vld [vmem:[%s7572_s25 + $0xf0] sm:$0xff]  ;;  %v740_v31 = vld [vmem:[%s7572_s25 + $0xf8] sm:$0xff]  ;;  %v742_v32 = vld [vmem:[%s7572_s25 + $0x100] sm:$0xff] }
  0x1a   : > { %699 = vst [vmem:[%s7577_s26 + $0x50] sm:$0xff] %v698_v10  ;;  %v744_v33 = vld [vmem:[%s7572_s25 + $0x108] sm:$0xff]  ;;  %v746_v34 = vld [vmem:[%s7572_s25 + $0x110] sm:$0xff]  ;;  %v748_v35 = vld [vmem:[%s7572_s25 + $0x118] sm:$0xff] }
  0x1b   : > { %701 = vst [vmem:[%s7577_s26 + $0x58] sm:$0xff] %v700_v11  ;;  %v750_v36 = vld [vmem:[%s7572_s25 + $0x120] sm:$0xff]  ;;  %v752_v37 = vld [vmem:[%s7572_s25 + $0x128] sm:$0xff]  ;;  %v754_v38 = vld [vmem:[%s7572_s25 + $0x130] sm:$0xff] }
  0x1c   : > { %703 = vst [vmem:[%s7577_s26 + $0x60] sm:$0xff] %v702_v12  ;;  %v756_v39 = vld [vmem:[%s7572_s25 + $0x138] sm:$0xff]  ;;  %v758_v40 = vld [vmem:[%s7572_s25 + $0x140] sm:$0xff]  ;;  %v760_v41 = vld [vmem:[%s7572_s25 + $0x148] sm:$0xff] }
  0x1d   : > { %705 = vst [vmem:[%s7577_s26 + $0x68] sm:$0xff] %v704_v13  ;;  %v762_v42 = vld [vmem:[%s7572_s25 + $0x150] sm:$0xff]  ;;  %v764_v43 = vld [vmem:[%s7572_s25 + $0x158] sm:$0xff]  ;;  %v766_v44 = vld [vmem:[%s7572_s25 + $0x160] sm:$0xff] }
  0x1e   : > { %707 = vst [vmem:[%s7577_s26 + $0x70] sm:$0xff] %v706_v14  ;;  %v768_v45 = vld [vmem:[%s7572_s25 + $0x168] sm:$0xff]  ;;  %v770_v46 = vld [vmem:[%s7572_s25 + $0x170] sm:$0xff]  ;;  %v772_v47 = vld [vmem:[%s7572_s25 + $0x178] sm:$0xff] }
  0x1f   : > { %709 = vst [vmem:[%s7577_s26 + $0x78] sm:$0xff] %v708_v15  ;;  %v774_v48 = vld [vmem:[%s7572_s25 + $0x180] sm:$0xff]  ;;  %v776_v49 = vld [vmem:[%s7572_s25 + $0x188] sm:$0xff]  ;;  %v778_v50 = vld [vmem:[%s7572_s25 + $0x190] sm:$0xff] }
  0x20   : > { %711 = vst [vmem:[%s7577_s26 + $0x80] sm:$0xff] %v710_v16  ;;  %v780_v51 = vld [vmem:[%s7572_s25 + $0x198] sm:$0xff]  ;;  %v782_v52 = vld [vmem:[%s7572_s25 + $0x1a0] sm:$0xff]  ;;  %v784_v53 = vld [vmem:[%s7572_s25 + $0x1a8] sm:$0xff] }
  0x21   : > { %713 = vst [vmem:[%s7577_s26 + $0x88] sm:$0xff] %v712_v17  ;;  %v786_v54 = vld [vmem:[%s7572_s25 + $0x1b0] sm:$0xff]  ;;  %v788_v55 = vld [vmem:[%s7572_s25 + $0x1b8] sm:$0xff]  ;;  %v790_v56 = vld [vmem:[%s7572_s25 + $0x1c0] sm:$0xff] }
  0x22   : > { %715 = vst [vmem:[%s7577_s26 + $0x90] sm:$0xff] %v714_v18  ;;  %v792_v57 = vld [vmem:[%s7572_s25 + $0x1c8] sm:$0xff]  ;;  %v794_v58 = vld [vmem:[%s7572_s25 + $0x1d0] sm:$0xff]  ;;  %v796_v59 = vld [vmem:[%s7572_s25 + $0x1d8] sm:$0xff] }
  0x23   : > { %717 = vst [vmem:[%s7577_s26 + $0x98] sm:$0xff] %v716_v19  ;;  %v798_v60 = vld [vmem:[%s7572_s25 + $0x1e0] sm:$0xff]  ;;  %v800_v61 = vld [vmem:[%s7572_s25 + $0x1e8] sm:$0xff]  ;;  %v802_v62 = vld [vmem:[%s7572_s25 + $0x1f0] sm:$0xff] }
  0x24   : > { %719 = vst [vmem:[%s7577_s26 + $0xa0] sm:$0xff] %v718_v20  ;;  %v804_v63 = vld [vmem:[%s7572_s25 + $0x1f8] sm:$0xff]  ;;  %v806_v0 = vld [vmem:[%s7572_s25 + $0x400] sm:$0xff]  ;;  %v808_v1 = vld [vmem:[%s7572_s25 + $0x408] sm:$0xff] }
  0x25   : > { %721 = vst [vmem:[%s7577_s26 + $0xa8] sm:$0xff] %v720_v21  ;;  %v810_v2 = vld [vmem:[%s7572_s25 + $0x410] sm:$0xff]  ;;  %v812_v3 = vld [vmem:[%s7572_s25 + $0x418] sm:$0xff]  ;;  %v814_v4 = vld [vmem:[%s7572_s25 + $0x420] sm:$0xff] }
  0x26   : > { %723 = vst [vmem:[%s7577_s26 + $0xb0] sm:$0xff] %v722_v22  ;;  %v816_v5 = vld [vmem:[%s7572_s25 + $0x428] sm:$0xff]  ;;  %v818_v6 = vld [vmem:[%s7572_s25 + $0x430] sm:$0xff]  ;;  %v820_v7 = vld [vmem:[%s7572_s25 + $0x438] sm:$0xff] }
  0x27   : > { %725 = vst [vmem:[%s7577_s26 + $0xb8] sm:$0xff] %v724_v23  ;;  %v822_v8 = vld [vmem:[%s7572_s25 + $0x440] sm:$0xff]  ;;  %v824_v9 = vld [vmem:[%s7572_s25 + $0x448] sm:$0xff]  ;;  %v826_v10 = vld [vmem:[%s7572_s25 + $0x450] sm:$0xff] }
  0x28   : > { %727 = vst [vmem:[%s7577_s26 + $0xc0] sm:$0xff] %v726_v24  ;;  %v828_v11 = vld [vmem:[%s7572_s25 + $0x458] sm:$0xff]  ;;  %v830_v12 = vld [vmem:[%s7572_s25 + $0x460] sm:$0xff]  ;;  %v832_v13 = vld [vmem:[%s7572_s25 + $0x468] sm:$0xff] }
  0x29   : > { %729 = vst [vmem:[%s7577_s26 + $0xc8] sm:$0xff] %v728_v25  ;;  %v834_v14 = vld [vmem:[%s7572_s25 + $0x470] sm:$0xff]  ;;  %v836_v15 = vld [vmem:[%s7572_s25 + $0x478] sm:$0xff]  ;;  %v838_v16 = vld [vmem:[%s7572_s25 + $0x480] sm:$0xff] }
  0x2a   : > { %731 = vst [vmem:[%s7577_s26 + $0xd0] sm:$0xff] %v730_v26  ;;  %v840_v17 = vld [vmem:[%s7572_s25 + $0x488] sm:$0xff]  ;;  %v842_v18 = vld [vmem:[%s7572_s25 + $0x490] sm:$0xff]  ;;  %v844_v19 = vld [vmem:[%s7572_s25 + $0x498] sm:$0xff] }
  0x2b   : > { %733 = vst [vmem:[%s7577_s26 + $0xd8] sm:$0xff] %v732_v27  ;;  %v846_v20 = vld [vmem:[%s7572_s25 + $0x4a0] sm:$0xff]  ;;  %v848_v21 = vld [vmem:[%s7572_s25 + $0x4a8] sm:$0xff]  ;;  %v850_v22 = vld [vmem:[%s7572_s25 + $0x4b0] sm:$0xff] }
  0x2c   : > { %735 = vst [vmem:[%s7577_s26 + $0xe0] sm:$0xff] %v734_v28  ;;  %v852_v23 = vld [vmem:[%s7572_s25 + $0x4b8] sm:$0xff]  ;;  %v854_v24 = vld [vmem:[%s7572_s25 + $0x4c0] sm:$0xff]  ;;  %v856_v25 = vld [vmem:[%s7572_s25 + $0x4c8] sm:$0xff] }
  0x2d   : > { %737 = vst [vmem:[%s7577_s26 + $0xe8] sm:$0xff] %v736_v29  ;;  %v858_v26 = vld [vmem:[%s7572_s25 + $0x4d0] sm:$0xff]  ;;  %v860_v27 = vld [vmem:[%s7572_s25 + $0x4d8] sm:$0xff]  ;;  %v862_v28 = vld [vmem:[%s7572_s25 + $0x4e0] sm:$0xff] }
  0x2e   : > { %739 = vst [vmem:[%s7577_s26 + $0xf0] sm:$0xff] %v738_v30  ;;  %v864_v29 = vld [vmem:[%s7572_s25 + $0x4e8] sm:$0xff]  ;;  %v866_v30 = vld [vmem:[%s7572_s25 + $0x4f0] sm:$0xff] }
  0x2f   : > { %741 = vst [vmem:[%s7577_s26 + $0xf8] sm:$0xff] %v740_v31  ;;  %v868_v31 = vld [vmem:[%s7572_s25 + $0x4f8] sm:$0xff] }
  0x30   : > { %743 = vst [vmem:[%s7577_s26 + $0x100] sm:$0xff] %v742_v32  ;;  %v870_v32 = vld [vmem:[%s7572_s25 + $0x500] sm:$0xff] }
  0x31   : > { %745 = vst [vmem:[%s7577_s26 + $0x108] sm:$0xff] %v744_v33  ;;  %v872_v33 = vld [vmem:[%s7572_s25 + $0x508] sm:$0xff] }
  0x32   : > { %747 = vst [vmem:[%s7577_s26 + $0x110] sm:$0xff] %v746_v34  ;;  %v874_v34 = vld [vmem:[%s7572_s25 + $0x510] sm:$0xff] }
  0x33   : > { %749 = vst [vmem:[%s7577_s26 + $0x118] sm:$0xff] %v748_v35  ;;  %v876_v35 = vld [vmem:[%s7572_s25 + $0x518] sm:$0xff] }
  0x34   : > { %751 = vst [vmem:[%s7577_s26 + $0x120] sm:$0xff] %v750_v36  ;;  %v878_v36 = vld [vmem:[%s7572_s25 + $0x520] sm:$0xff] }
  0x35   : > { %753 = vst [vmem:[%s7577_s26 + $0x128] sm:$0xff] %v752_v37  ;;  %v880_v37 = vld [vmem:[%s7572_s25 + $0x528] sm:$0xff] }
  0x36   : > { %755 = vst [vmem:[%s7577_s26 + $0x130] sm:$0xff] %v754_v38  ;;  %v882_v38 = vld [vmem:[%s7572_s25 + $0x530] sm:$0xff] }
  0x37   : > { %757 = vst [vmem:[%s7577_s26 + $0x138] sm:$0xff] %v756_v39  ;;  %v884_v39 = vld [vmem:[%s7572_s25 + $0x538] sm:$0xff] }
  0x38   : > { %759 = vst [vmem:[%s7577_s26 + $0x140] sm:$0xff] %v758_v40  ;;  %v886_v40 = vld [vmem:[%s7572_s25 + $0x540] sm:$0xff] }
  0x39   : > { %761 = vst [vmem:[%s7577_s26 + $0x148] sm:$0xff] %v760_v41  ;;  %v888_v41 = vld [vmem:[%s7572_s25 + $0x548] sm:$0xff] }
  0x3a   : > { %763 = vst [vmem:[%s7577_s26 + $0x150] sm:$0xff] %v762_v42  ;;  %v890_v42 = vld [vmem:[%s7572_s25 + $0x550] sm:$0xff] }
  0x3b   : > { %765 = vst [vmem:[%s7577_s26 + $0x158] sm:$0xff] %v764_v43  ;;  %v892_v43 = vld [vmem:[%s7572_s25 + $0x558] sm:$0xff] }
  0x3c   : > { %767 = vst [vmem:[%s7577_s26 + $0x160] sm:$0xff] %v766_v44  ;;  %v894_v44 = vld [vmem:[%s7572_s25 + $0x560] sm:$0xff] }
  0x3d   : > { %769 = vst [vmem:[%s7577_s26 + $0x168] sm:$0xff] %v768_v45  ;;  %v896_v45 = vld [vmem:[%s7572_s25 + $0x568] sm:$0xff] }
  0x3e   : > { %771 = vst [vmem:[%s7577_s26 + $0x170] sm:$0xff] %v770_v46  ;;  %v898_v46 = vld [vmem:[%s7572_s25 + $0x570] sm:$0xff] }
  0x3f   : > { %773 = vst [vmem:[%s7577_s26 + $0x178] sm:$0xff] %v772_v47  ;;  %v900_v47 = vld [vmem:[%s7572_s25 + $0x578] sm:$0xff] }
  0x40   : > { %775 = vst [vmem:[%s7577_s26 + $0x180] sm:$0xff] %v774_v48  ;;  %v902_v48 = vld [vmem:[%s7572_s25 + $0x580] sm:$0xff] }
  0x41   : > { %777 = vst [vmem:[%s7577_s26 + $0x188] sm:$0xff] %v776_v49  ;;  %v904_v49 = vld [vmem:[%s7572_s25 + $0x588] sm:$0xff] }
  0x42   : > { %779 = vst [vmem:[%s7577_s26 + $0x190] sm:$0xff] %v778_v50  ;;  %v906_v50 = vld [vmem:[%s7572_s25 + $0x590] sm:$0xff] }
  0x43   : > { %781 = vst [vmem:[%s7577_s26 + $0x198] sm:$0xff] %v780_v51  ;;  %v908_v51 = vld [vmem:[%s7572_s25 + $0x598] sm:$0xff] }
  0x44   : > { %783 = vst [vmem:[%s7577_s26 + $0x1a0] sm:$0xff] %v782_v52  ;;  %v910_v52 = vld [vmem:[%s7572_s25 + $0x5a0] sm:$0xff] }
  0x45   : > { %785 = vst [vmem:[%s7577_s26 + $0x1a8] sm:$0xff] %v784_v53  ;;  %v912_v53 = vld [vmem:[%s7572_s25 + $0x5a8] sm:$0xff] }
  0x46   : > { %787 = vst [vmem:[%s7577_s26 + $0x1b0] sm:$0xff] %v786_v54  ;;  %v914_v54 = vld [vmem:[%s7572_s25 + $0x5b0] sm:$0xff] }
  0x47   : > { %789 = vst [vmem:[%s7577_s26 + $0x1b8] sm:$0xff] %v788_v55  ;;  %v916_v55 = vld [vmem:[%s7572_s25 + $0x5b8] sm:$0xff] }
  0x48   : > { %791 = vst [vmem:[%s7577_s26 + $0x1c0] sm:$0xff] %v790_v56  ;;  %v918_v56 = vld [vmem:[%s7572_s25 + $0x5c0] sm:$0xff] }
  0x49   : > { %793 = vst [vmem:[%s7577_s26 + $0x1c8] sm:$0xff] %v792_v57  ;;  %v920_v57 = vld [vmem:[%s7572_s25 + $0x5c8] sm:$0xff] }
  0x4a   : > { %795 = vst [vmem:[%s7577_s26 + $0x1d0] sm:$0xff] %v794_v58  ;;  %v922_v58 = vld [vmem:[%s7572_s25 + $0x5d0] sm:$0xff] }
  0x4b   : > { %797 = vst [vmem:[%s7577_s26 + $0x1d8] sm:$0xff] %v796_v59  ;;  %v924_v59 = vld [vmem:[%s7572_s25 + $0x5d8] sm:$0xff] }
  0x4c   : > { %799 = vst [vmem:[%s7577_s26 + $0x1e0] sm:$0xff] %v798_v60  ;;  %v926_v60 = vld [vmem:[%s7572_s25 + $0x5e0] sm:$0xff] }
  0x4d   : > { %801 = vst [vmem:[%s7577_s26 + $0x1e8] sm:$0xff] %v800_v61  ;;  %v928_v61 = vld [vmem:[%s7572_s25 + $0x5e8] sm:$0xff] }
  0x4e   : > { %803 = vst [vmem:[%s7577_s26 + $0x1f0] sm:$0xff] %v802_v62  ;;  %v930_v62 = vld [vmem:[%s7572_s25 + $0x5f0] sm:$0xff] }
  0x4f   : > { %805 = vst [vmem:[%s7577_s26 + $0x1f8] sm:$0xff] %v804_v63  ;;  %v932_v63 = vld [vmem:[%s7572_s25 + $0x5f8] sm:$0xff] }
  0x50   : > { %807 = vst [vmem:[%s7577_s26 + $0x200] sm:$0xff] %v806_v0  ;;  %v934_v0 = vld [vmem:[%s7572_s25 + $0x800] sm:$0xff] }
  0x51   : > { %809 = vst [vmem:[%s7577_s26 + $0x208] sm:$0xff] %v808_v1  ;;  %v936_v1 = vld [vmem:[%s7572_s25 + $0x808] sm:$0xff] }
  0x52   : > { %811 = vst [vmem:[%s7577_s26 + $0x210] sm:$0xff] %v810_v2  ;;  %v938_v2 = vld [vmem:[%s7572_s25 + $0x810] sm:$0xff] }
  0x53   : > { %813 = vst [vmem:[%s7577_s26 + $0x218] sm:$0xff] %v812_v3  ;;  %v940_v3 = vld [vmem:[%s7572_s25 + $0x818] sm:$0xff] }
  0x54   : > { %815 = vst [vmem:[%s7577_s26 + $0x220] sm:$0xff] %v814_v4  ;;  %v942_v4 = vld [vmem:[%s7572_s25 + $0x820] sm:$0xff] }
  0x55   : > { %817 = vst [vmem:[%s7577_s26 + $0x228] sm:$0xff] %v816_v5  ;;  %v944_v5 = vld [vmem:[%s7572_s25 + $0x828] sm:$0xff] }
  0x56   : > { %819 = vst [vmem:[%s7577_s26 + $0x230] sm:$0xff] %v818_v6  ;;  %v946_v6 = vld [vmem:[%s7572_s25 + $0x830] sm:$0xff] }
  0x57   : > { %821 = vst [vmem:[%s7577_s26 + $0x238] sm:$0xff] %v820_v7  ;;  %v948_v7 = vld [vmem:[%s7572_s25 + $0x838] sm:$0xff] }
  0x58   : > { %823 = vst [vmem:[%s7577_s26 + $0x240] sm:$0xff] %v822_v8  ;;  %v950_v8 = vld [vmem:[%s7572_s25 + $0x840] sm:$0xff] }
  0x59   : > { %825 = vst [vmem:[%s7577_s26 + $0x248] sm:$0xff] %v824_v9  ;;  %v952_v9 = vld [vmem:[%s7572_s25 + $0x848] sm:$0xff] }
  0x5a   : > { %827 = vst [vmem:[%s7577_s26 + $0x250] sm:$0xff] %v826_v10  ;;  %v954_v10 = vld [vmem:[%s7572_s25 + $0x850] sm:$0xff] }
  0x5b   : > { %829 = vst [vmem:[%s7577_s26 + $0x258] sm:$0xff] %v828_v11  ;;  %v956_v11 = vld [vmem:[%s7572_s25 + $0x858] sm:$0xff] }
  0x5c   : > { %831 = vst [vmem:[%s7577_s26 + $0x260] sm:$0xff] %v830_v12  ;;  %v958_v12 = vld [vmem:[%s7572_s25 + $0x860] sm:$0xff] }
  0x5d   : > { %833 = vst [vmem:[%s7577_s26 + $0x268] sm:$0xff] %v832_v13  ;;  %v960_v13 = vld [vmem:[%s7572_s25 + $0x868] sm:$0xff] }
  0x5e   : > { %835 = vst [vmem:[%s7577_s26 + $0x270] sm:$0xff] %v834_v14  ;;  %v962_v14 = vld [vmem:[%s7572_s25 + $0x870] sm:$0xff] }
  0x5f   : > { %837 = vst [vmem:[%s7577_s26 + $0x278] sm:$0xff] %v836_v15  ;;  %v964_v15 = vld [vmem:[%s7572_s25 + $0x878] sm:$0xff] }
  0x60   : > { %839 = vst [vmem:[%s7577_s26 + $0x280] sm:$0xff] %v838_v16  ;;  %v966_v16 = vld [vmem:[%s7572_s25 + $0x880] sm:$0xff] }
  0x61   : > { %841 = vst [vmem:[%s7577_s26 + $0x288] sm:$0xff] %v840_v17  ;;  %v968_v17 = vld [vmem:[%s7572_s25 + $0x888] sm:$0xff] }
  0x62   : > { %843 = vst [vmem:[%s7577_s26 + $0x290] sm:$0xff] %v842_v18  ;;  %v970_v18 = vld [vmem:[%s7572_s25 + $0x890] sm:$0xff] }
  0x63   : > { %845 = vst [vmem:[%s7577_s26 + $0x298] sm:$0xff] %v844_v19  ;;  %v972_v19 = vld [vmem:[%s7572_s25 + $0x898] sm:$0xff] }
  0x64   : > { %847 = vst [vmem:[%s7577_s26 + $0x2a0] sm:$0xff] %v846_v20  ;;  %v974_v20 = vld [vmem:[%s7572_s25 + $0x8a0] sm:$0xff] }
  0x65   : > { %849 = vst [vmem:[%s7577_s26 + $0x2a8] sm:$0xff] %v848_v21  ;;  %v976_v21 = vld [vmem:[%s7572_s25 + $0x8a8] sm:$0xff] }
  0x66   : > { %851 = vst [vmem:[%s7577_s26 + $0x2b0] sm:$0xff] %v850_v22  ;;  %v978_v22 = vld [vmem:[%s7572_s25 + $0x8b0] sm:$0xff] }
  0x67   : > { %853 = vst [vmem:[%s7577_s26 + $0x2b8] sm:$0xff] %v852_v23  ;;  %v980_v23 = vld [vmem:[%s7572_s25 + $0x8b8] sm:$0xff] }
  0x68   : > { %855 = vst [vmem:[%s7577_s26 + $0x2c0] sm:$0xff] %v854_v24  ;;  %v982_v24 = vld [vmem:[%s7572_s25 + $0x8c0] sm:$0xff] }
  0x69   : > { %857 = vst [vmem:[%s7577_s26 + $0x2c8] sm:$0xff] %v856_v25  ;;  %v984_v25 = vld [vmem:[%s7572_s25 + $0x8c8] sm:$0xff] }
  0x6a   : > { %859 = vst [vmem:[%s7577_s26 + $0x2d0] sm:$0xff] %v858_v26  ;;  %v986_v26 = vld [vmem:[%s7572_s25 + $0x8d0] sm:$0xff] }
  0x6b   : > { %861 = vst [vmem:[%s7577_s26 + $0x2d8] sm:$0xff] %v860_v27  ;;  %v988_v27 = vld [vmem:[%s7572_s25 + $0x8d8] sm:$0xff] }
  0x6c   : > { %863 = vst [vmem:[%s7577_s26 + $0x2e0] sm:$0xff] %v862_v28  ;;  %v990_v28 = vld [vmem:[%s7572_s25 + $0x8e0] sm:$0xff] }
  0x6d   : > { %865 = vst [vmem:[%s7577_s26 + $0x2e8] sm:$0xff] %v864_v29  ;;  %v992_v29 = vld [vmem:[%s7572_s25 + $0x8e8] sm:$0xff] }
  0x6e   : > { %867 = vst [vmem:[%s7577_s26 + $0x2f0] sm:$0xff] %v866_v30  ;;  %v994_v30 = vld [vmem:[%s7572_s25 + $0x8f0] sm:$0xff] }
  0x6f   : > { %869 = vst [vmem:[%s7577_s26 + $0x2f8] sm:$0xff] %v868_v31  ;;  %v996_v31 = vld [vmem:[%s7572_s25 + $0x8f8] sm:$0xff] }
  0x70   : > { %871 = vst [vmem:[%s7577_s26 + $0x300] sm:$0xff] %v870_v32  ;;  %v998_v32 = vld [vmem:[%s7572_s25 + $0x900] sm:$0xff] }
  0x71   : > { %873 = vst [vmem:[%s7577_s26 + $0x308] sm:$0xff] %v872_v33  ;;  %v1000_v33 = vld [vmem:[%s7572_s25 + $0x908] sm:$0xff] }
  0x72   : > { %875 = vst [vmem:[%s7577_s26 + $0x310] sm:$0xff] %v874_v34  ;;  %v1002_v34 = vld [vmem:[%s7572_s25 + $0x910] sm:$0xff] }
  0x73   : > { %877 = vst [vmem:[%s7577_s26 + $0x318] sm:$0xff] %v876_v35  ;;  %v1004_v35 = vld [vmem:[%s7572_s25 + $0x918] sm:$0xff] }
  0x74   : > { %879 = vst [vmem:[%s7577_s26 + $0x320] sm:$0xff] %v878_v36  ;;  %v1006_v36 = vld [vmem:[%s7572_s25 + $0x920] sm:$0xff] }
  0x75   : > { %881 = vst [vmem:[%s7577_s26 + $0x328] sm:$0xff] %v880_v37  ;;  %v1008_v37 = vld [vmem:[%s7572_s25 + $0x928] sm:$0xff] }
  0x76   : > { %883 = vst [vmem:[%s7577_s26 + $0x330] sm:$0xff] %v882_v38  ;;  %v1010_v38 = vld [vmem:[%s7572_s25 + $0x930] sm:$0xff] }
  0x77   : > { %885 = vst [vmem:[%s7577_s26 + $0x338] sm:$0xff] %v884_v39  ;;  %v1012_v39 = vld [vmem:[%s7572_s25 + $0x938] sm:$0xff] }
  0x78   : > { %887 = vst [vmem:[%s7577_s26 + $0x340] sm:$0xff] %v886_v40  ;;  %v1014_v40 = vld [vmem:[%s7572_s25 + $0x940] sm:$0xff] }
  0x79   : > { %889 = vst [vmem:[%s7577_s26 + $0x348] sm:$0xff] %v888_v41  ;;  %v1016_v41 = vld [vmem:[%s7572_s25 + $0x948] sm:$0xff] }
  0x7a   : > { %891 = vst [vmem:[%s7577_s26 + $0x350] sm:$0xff] %v890_v42  ;;  %v1018_v42 = vld [vmem:[%s7572_s25 + $0x950] sm:$0xff] }
  0x7b   : > { %893 = vst [vmem:[%s7577_s26 + $0x358] sm:$0xff] %v892_v43  ;;  %v1020_v43 = vld [vmem:[%s7572_s25 + $0x958] sm:$0xff] }
  0x7c   : > { %895 = vst [vmem:[%s7577_s26 + $0x360] sm:$0xff] %v894_v44  ;;  %v1022_v44 = vld [vmem:[%s7572_s25 + $0x960] sm:$0xff] }
  0x7d   : > { %897 = vst [vmem:[%s7577_s26 + $0x368] sm:$0xff] %v896_v45  ;;  %v1024_v45 = vld [vmem:[%s7572_s25 + $0x968] sm:$0xff] }
  0x7e   : > { %899 = vst [vmem:[%s7577_s26 + $0x370] sm:$0xff] %v898_v46  ;;  %v1026_v46 = vld [vmem:[%s7572_s25 + $0x970] sm:$0xff] }
  0x7f   : > { %901 = vst [vmem:[%s7577_s26 + $0x378] sm:$0xff] %v900_v47  ;;  %v1028_v47 = vld [vmem:[%s7572_s25 + $0x978] sm:$0xff] }
  0x80   : > { %903 = vst [vmem:[%s7577_s26 + $0x380] sm:$0xff] %v902_v48  ;;  %v1030_v48 = vld [vmem:[%s7572_s25 + $0x980] sm:$0xff] }
  0x81   : > { %905 = vst [vmem:[%s7577_s26 + $0x388] sm:$0xff] %v904_v49  ;;  %v1032_v49 = vld [vmem:[%s7572_s25 + $0x988] sm:$0xff] }
  0x82   : > { %907 = vst [vmem:[%s7577_s26 + $0x390] sm:$0xff] %v906_v50  ;;  %v1034_v50 = vld [vmem:[%s7572_s25 + $0x990] sm:$0xff] }
  0x83   : > { %909 = vst [vmem:[%s7577_s26 + $0x398] sm:$0xff] %v908_v51  ;;  %v1036_v51 = vld [vmem:[%s7572_s25 + $0x998] sm:$0xff] }
  0x84   : > { %911 = vst [vmem:[%s7577_s26 + $0x3a0] sm:$0xff] %v910_v52  ;;  %v1038_v52 = vld [vmem:[%s7572_s25 + $0x9a0] sm:$0xff] }
  0x85   : > { %913 = vst [vmem:[%s7577_s26 + $0x3a8] sm:$0xff] %v912_v53  ;;  %v1040_v53 = vld [vmem:[%s7572_s25 + $0x9a8] sm:$0xff] }
  0x86   : > { %915 = vst [vmem:[%s7577_s26 + $0x3b0] sm:$0xff] %v914_v54  ;;  %v1042_v54 = vld [vmem:[%s7572_s25 + $0x9b0] sm:$0xff] }
  0x87   : > { %917 = vst [vmem:[%s7577_s26 + $0x3b8] sm:$0xff] %v916_v55  ;;  %v1044_v55 = vld [vmem:[%s7572_s25 + $0x9b8] sm:$0xff] }
  0x88   : > { %919 = vst [vmem:[%s7577_s26 + $0x3c0] sm:$0xff] %v918_v56  ;;  %v1046_v56 = vld [vmem:[%s7572_s25 + $0x9c0] sm:$0xff] }
  0x89   : > { %921 = vst [vmem:[%s7577_s26 + $0x3c8] sm:$0xff] %v920_v57  ;;  %v1048_v57 = vld [vmem:[%s7572_s25 + $0x9c8] sm:$0xff] }
  0x8a   : > { %923 = vst [vmem:[%s7577_s26 + $0x3d0] sm:$0xff] %v922_v58  ;;  %v1050_v58 = vld [vmem:[%s7572_s25 + $0x9d0] sm:$0xff] }
  0x8b   : > { %925 = vst [vmem:[%s7577_s26 + $0x3d8] sm:$0xff] %v924_v59  ;;  %v1052_v59 = vld [vmem:[%s7572_s25 + $0x9d8] sm:$0xff] }
  0x8c   : > { %927 = vst [vmem:[%s7577_s26 + $0x3e0] sm:$0xff] %v926_v60  ;;  %v1054_v60 = vld [vmem:[%s7572_s25 + $0x9e0] sm:$0xff] }
  0x8d   : > { %929 = vst [vmem:[%s7577_s26 + $0x3e8] sm:$0xff] %v928_v61  ;;  %v1056_v61 = vld [vmem:[%s7572_s25 + $0x9e8] sm:$0xff] }
  0x8e   : > { %931 = vst [vmem:[%s7577_s26 + $0x3f0] sm:$0xff] %v930_v62  ;;  %v1058_v62 = vld [vmem:[%s7572_s25 + $0x9f0] sm:$0xff] }
  0x8f   : > { %933 = vst [vmem:[%s7577_s26 + $0x3f8] sm:$0xff] %v932_v63  ;;  %v1060_v63 = vld [vmem:[%s7572_s25 + $0x9f8] sm:$0xff] }
  0x90   : > { %935 = vst [vmem:[%s7577_s26 + $0x400] sm:$0xff] %v934_v0  ;;  %v1062_v0 = vld [vmem:[%s7572_s25 + $0xc00] sm:$0xff] }
  0x91   : > { %937 = vst [vmem:[%s7577_s26 + $0x408] sm:$0xff] %v936_v1  ;;  %v1064_v1 = vld [vmem:[%s7572_s25 + $0xc08] sm:$0xff] }
  0x92   : > { %939 = vst [vmem:[%s7577_s26 + $0x410] sm:$0xff] %v938_v2  ;;  %v1066_v2 = vld [vmem:[%s7572_s25 + $0xc10] sm:$0xff] }
  0x93   : > { %941 = vst [vmem:[%s7577_s26 + $0x418] sm:$0xff] %v940_v3  ;;  %v1068_v3 = vld [vmem:[%s7572_s25 + $0xc18] sm:$0xff] }
  0x94   : > { %943 = vst [vmem:[%s7577_s26 + $0x420] sm:$0xff] %v942_v4  ;;  %v1070_v4 = vld [vmem:[%s7572_s25 + $0xc20] sm:$0xff] }
  0x95   : > { %945 = vst [vmem:[%s7577_s26 + $0x428] sm:$0xff] %v944_v5  ;;  %v1072_v5 = vld [vmem:[%s7572_s25 + $0xc28] sm:$0xff] }
  0x96   : > { %947 = vst [vmem:[%s7577_s26 + $0x430] sm:$0xff] %v946_v6  ;;  %v1074_v6 = vld [vmem:[%s7572_s25 + $0xc30] sm:$0xff] }
  0x97   : > { %949 = vst [vmem:[%s7577_s26 + $0x438] sm:$0xff] %v948_v7  ;;  %v1076_v7 = vld [vmem:[%s7572_s25 + $0xc38] sm:$0xff] }
  0x98   : > { %951 = vst [vmem:[%s7577_s26 + $0x440] sm:$0xff] %v950_v8  ;;  %v1078_v8 = vld [vmem:[%s7572_s25 + $0xc40] sm:$0xff] }
  0x99   : > { %953 = vst [vmem:[%s7577_s26 + $0x448] sm:$0xff] %v952_v9  ;;  %v1080_v9 = vld [vmem:[%s7572_s25 + $0xc48] sm:$0xff] }
  0x9a   : > { %955 = vst [vmem:[%s7577_s26 + $0x450] sm:$0xff] %v954_v10  ;;  %v1082_v10 = vld [vmem:[%s7572_s25 + $0xc50] sm:$0xff] }
  0x9b   : > { %957 = vst [vmem:[%s7577_s26 + $0x458] sm:$0xff] %v956_v11  ;;  %v1084_v11 = vld [vmem:[%s7572_s25 + $0xc58] sm:$0xff] }
  0x9c   : > { %959 = vst [vmem:[%s7577_s26 + $0x460] sm:$0xff] %v958_v12  ;;  %v1086_v12 = vld [vmem:[%s7572_s25 + $0xc60] sm:$0xff] }
  0x9d   : > { %961 = vst [vmem:[%s7577_s26 + $0x468] sm:$0xff] %v960_v13  ;;  %v1088_v13 = vld [vmem:[%s7572_s25 + $0xc68] sm:$0xff] }
  0x9e   : > { %963 = vst [vmem:[%s7577_s26 + $0x470] sm:$0xff] %v962_v14  ;;  %v1090_v14 = vld [vmem:[%s7572_s25 + $0xc70] sm:$0xff] }
  0x9f   : > { %965 = vst [vmem:[%s7577_s26 + $0x478] sm:$0xff] %v964_v15  ;;  %v1092_v15 = vld [vmem:[%s7572_s25 + $0xc78] sm:$0xff] }
  0xa0   : > { %967 = vst [vmem:[%s7577_s26 + $0x480] sm:$0xff] %v966_v16  ;;  %v1094_v16 = vld [vmem:[%s7572_s25 + $0xc80] sm:$0xff] }
  0xa1   : > { %969 = vst [vmem:[%s7577_s26 + $0x488] sm:$0xff] %v968_v17  ;;  %v1096_v17 = vld [vmem:[%s7572_s25 + $0xc88] sm:$0xff] }
  0xa2   : > { %971 = vst [vmem:[%s7577_s26 + $0x490] sm:$0xff] %v970_v18  ;;  %v1098_v18 = vld [vmem:[%s7572_s25 + $0xc90] sm:$0xff] }
  0xa3   : > { %973 = vst [vmem:[%s7577_s26 + $0x498] sm:$0xff] %v972_v19  ;;  %v1100_v19 = vld [vmem:[%s7572_s25 + $0xc98] sm:$0xff] }
  0xa4   : > { %975 = vst [vmem:[%s7577_s26 + $0x4a0] sm:$0xff] %v974_v20  ;;  %v1102_v20 = vld [vmem:[%s7572_s25 + $0xca0] sm:$0xff] }
  0xa5   : > { %977 = vst [vmem:[%s7577_s26 + $0x4a8] sm:$0xff] %v976_v21  ;;  %v1104_v21 = vld [vmem:[%s7572_s25 + $0xca8] sm:$0xff] }
  0xa6   : > { %979 = vst [vmem:[%s7577_s26 + $0x4b0] sm:$0xff] %v978_v22  ;;  %v1106_v22 = vld [vmem:[%s7572_s25 + $0xcb0] sm:$0xff] }
  0xa7   : > { %981 = vst [vmem:[%s7577_s26 + $0x4b8] sm:$0xff] %v980_v23  ;;  %v1108_v23 = vld [vmem:[%s7572_s25 + $0xcb8] sm:$0xff] }
  0xa8   : > { %983 = vst [vmem:[%s7577_s26 + $0x4c0] sm:$0xff] %v982_v24  ;;  %v1110_v24 = vld [vmem:[%s7572_s25 + $0xcc0] sm:$0xff] }
  0xa9   : > { %985 = vst [vmem:[%s7577_s26 + $0x4c8] sm:$0xff] %v984_v25  ;;  %v1112_v25 = vld [vmem:[%s7572_s25 + $0xcc8] sm:$0xff] }
  0xaa   : > { %987 = vst [vmem:[%s7577_s26 + $0x4d0] sm:$0xff] %v986_v26  ;;  %v1114_v26 = vld [vmem:[%s7572_s25 + $0xcd0] sm:$0xff] }
  0xab   : > { %989 = vst [vmem:[%s7577_s26 + $0x4d8] sm:$0xff] %v988_v27  ;;  %v1116_v27 = vld [vmem:[%s7572_s25 + $0xcd8] sm:$0xff] }
  0xac   : > { %991 = vst [vmem:[%s7577_s26 + $0x4e0] sm:$0xff] %v990_v28  ;;  %v1118_v28 = vld [vmem:[%s7572_s25 + $0xce0] sm:$0xff] }
  0xad   : > { %993 = vst [vmem:[%s7577_s26 + $0x4e8] sm:$0xff] %v992_v29  ;;  %v1120_v29 = vld [vmem:[%s7572_s25 + $0xce8] sm:$0xff] }
  0xae   : > { %995 = vst [vmem:[%s7577_s26 + $0x4f0] sm:$0xff] %v994_v30  ;;  %v1122_v30 = vld [vmem:[%s7572_s25 + $0xcf0] sm:$0xff] }
  0xaf   : > { %997 = vst [vmem:[%s7577_s26 + $0x4f8] sm:$0xff] %v996_v31  ;;  %v1124_v31 = vld [vmem:[%s7572_s25 + $0xcf8] sm:$0xff] }
  0xb0   : > { %999 = vst [vmem:[%s7577_s26 + $0x500] sm:$0xff] %v998_v32  ;;  %v1126_v32 = vld [vmem:[%s7572_s25 + $0xd00] sm:$0xff] }
  0xb1   : > { %1001 = vst [vmem:[%s7577_s26 + $0x508] sm:$0xff] %v1000_v33  ;;  %v1128_v33 = vld [vmem:[%s7572_s25 + $0xd08] sm:$0xff] }
  0xb2   : > { %1003 = vst [vmem:[%s7577_s26 + $0x510] sm:$0xff] %v1002_v34  ;;  %v1130_v34 = vld [vmem:[%s7572_s25 + $0xd10] sm:$0xff] }
  0xb3   : > { %1005 = vst [vmem:[%s7577_s26 + $0x518] sm:$0xff] %v1004_v35  ;;  %v1132_v35 = vld [vmem:[%s7572_s25 + $0xd18] sm:$0xff] }
  0xb4   : > { %1007 = vst [vmem:[%s7577_s26 + $0x520] sm:$0xff] %v1006_v36  ;;  %v1134_v36 = vld [vmem:[%s7572_s25 + $0xd20] sm:$0xff] }
  0xb5   : > { %1009 = vst [vmem:[%s7577_s26 + $0x528] sm:$0xff] %v1008_v37  ;;  %v1136_v37 = vld [vmem:[%s7572_s25 + $0xd28] sm:$0xff] }
  0xb6   : > { %1011 = vst [vmem:[%s7577_s26 + $0x530] sm:$0xff] %v1010_v38  ;;  %v1138_v38 = vld [vmem:[%s7572_s25 + $0xd30] sm:$0xff] }
  0xb7   : > { %1013 = vst [vmem:[%s7577_s26 + $0x538] sm:$0xff] %v1012_v39  ;;  %v1140_v39 = vld [vmem:[%s7572_s25 + $0xd38] sm:$0xff] }
  0xb8   : > { %1015 = vst [vmem:[%s7577_s26 + $0x540] sm:$0xff] %v1014_v40  ;;  %v1142_v40 = vld [vmem:[%s7572_s25 + $0xd40] sm:$0xff] }
  0xb9   : > { %1017 = vst [vmem:[%s7577_s26 + $0x548] sm:$0xff] %v1016_v41  ;;  %v1144_v41 = vld [vmem:[%s7572_s25 + $0xd48] sm:$0xff] }
  0xba   : > { %1019 = vst [vmem:[%s7577_s26 + $0x550] sm:$0xff] %v1018_v42  ;;  %v1146_v42 = vld [vmem:[%s7572_s25 + $0xd50] sm:$0xff] }
  0xbb   : > { %1021 = vst [vmem:[%s7577_s26 + $0x558] sm:$0xff] %v1020_v43  ;;  %v1148_v43 = vld [vmem:[%s7572_s25 + $0xd58] sm:$0xff] }
  0xbc   : > { %1023 = vst [vmem:[%s7577_s26 + $0x560] sm:$0xff] %v1022_v44  ;;  %v1150_v44 = vld [vmem:[%s7572_s25 + $0xd60] sm:$0xff] }
  0xbd   : > { %1025 = vst [vmem:[%s7577_s26 + $0x568] sm:$0xff] %v1024_v45  ;;  %v1152_v45 = vld [vmem:[%s7572_s25 + $0xd68] sm:$0xff] }
  0xbe   : > { %1027 = vst [vmem:[%s7577_s26 + $0x570] sm:$0xff] %v1026_v46  ;;  %v1154_v46 = vld [vmem:[%s7572_s25 + $0xd70] sm:$0xff] }
  0xbf   : > { %1029 = vst [vmem:[%s7577_s26 + $0x578] sm:$0xff] %v1028_v47  ;;  %v1156_v47 = vld [vmem:[%s7572_s25 + $0xd78] sm:$0xff] }
  0xc0   : > { %1031 = vst [vmem:[%s7577_s26 + $0x580] sm:$0xff] %v1030_v48  ;;  %v1158_v48 = vld [vmem:[%s7572_s25 + $0xd80] sm:$0xff] }
  0xc1   : > { %1033 = vst [vmem:[%s7577_s26 + $0x588] sm:$0xff] %v1032_v49  ;;  %v1160_v49 = vld [vmem:[%s7572_s25 + $0xd88] sm:$0xff] }
  0xc2   : > { %1035 = vst [vmem:[%s7577_s26 + $0x590] sm:$0xff] %v1034_v50  ;;  %v1162_v50 = vld [vmem:[%s7572_s25 + $0xd90] sm:$0xff] }
  0xc3   : > { %1037 = vst [vmem:[%s7577_s26 + $0x598] sm:$0xff] %v1036_v51  ;;  %v1164_v51 = vld [vmem:[%s7572_s25 + $0xd98] sm:$0xff] }
  0xc4   : > { %1039 = vst [vmem:[%s7577_s26 + $0x5a0] sm:$0xff] %v1038_v52  ;;  %v1166_v52 = vld [vmem:[%s7572_s25 + $0xda0] sm:$0xff] }
  0xc5   : > { %1041 = vst [vmem:[%s7577_s26 + $0x5a8] sm:$0xff] %v1040_v53  ;;  %v1168_v53 = vld [vmem:[%s7572_s25 + $0xda8] sm:$0xff] }
  0xc6   : > { %1043 = vst [vmem:[%s7577_s26 + $0x5b0] sm:$0xff] %v1042_v54  ;;  %v1170_v54 = vld [vmem:[%s7572_s25 + $0xdb0] sm:$0xff] }
  0xc7   : > { %1045 = vst [vmem:[%s7577_s26 + $0x5b8] sm:$0xff] %v1044_v55  ;;  %v1172_v55 = vld [vmem:[%s7572_s25 + $0xdb8] sm:$0xff] }
  0xc8   : > { %1047 = vst [vmem:[%s7577_s26 + $0x5c0] sm:$0xff] %v1046_v56  ;;  %v1174_v56 = vld [vmem:[%s7572_s25 + $0xdc0] sm:$0xff] }
  0xc9   : > { %1049 = vst [vmem:[%s7577_s26 + $0x5c8] sm:$0xff] %v1048_v57  ;;  %v1176_v57 = vld [vmem:[%s7572_s25 + $0xdc8] sm:$0xff] }
  0xca   : > { %1051 = vst [vmem:[%s7577_s26 + $0x5d0] sm:$0xff] %v1050_v58  ;;  %v1178_v58 = vld [vmem:[%s7572_s25 + $0xdd0] sm:$0xff] }
  0xcb   : > { %1053 = vst [vmem:[%s7577_s26 + $0x5d8] sm:$0xff] %v1052_v59  ;;  %v1180_v59 = vld [vmem:[%s7572_s25 + $0xdd8] sm:$0xff] }
  0xcc   : > { %1055 = vst [vmem:[%s7577_s26 + $0x5e0] sm:$0xff] %v1054_v60  ;;  %v1182_v60 = vld [vmem:[%s7572_s25 + $0xde0] sm:$0xff] }
  0xcd   : > { %1057 = vst [vmem:[%s7577_s26 + $0x5e8] sm:$0xff] %v1056_v61  ;;  %v1184_v61 = vld [vmem:[%s7572_s25 + $0xde8] sm:$0xff] }
  0xce   : > { %1059 = vst [vmem:[%s7577_s26 + $0x5f0] sm:$0xff] %v1058_v62  ;;  %v1186_v62 = vld [vmem:[%s7572_s25 + $0xdf0] sm:$0xff] }
  0xcf   : > { %1061 = vst [vmem:[%s7577_s26 + $0x5f8] sm:$0xff] %v1060_v63  ;;  %v1188_v63 = vld [vmem:[%s7572_s25 + $0xdf8] sm:$0xff] }
  0xd0   : > { %1063 = vst [vmem:[%s7577_s26 + $0x600] sm:$0xff] %v1062_v0 }
  0xd1   : > { %1065 = vst [vmem:[%s7577_s26 + $0x608] sm:$0xff] %v1064_v1 }
  0xd2   : > { %1067 = vst [vmem:[%s7577_s26 + $0x610] sm:$0xff] %v1066_v2 }
  0xd3   : > { %1069 = vst [vmem:[%s7577_s26 + $0x618] sm:$0xff] %v1068_v3 }
  0xd4   : > { %1071 = vst [vmem:[%s7577_s26 + $0x620] sm:$0xff] %v1070_v4 }
  0xd5   : > { %1073 = vst [vmem:[%s7577_s26 + $0x628] sm:$0xff] %v1072_v5 }
  0xd6   : > { %1075 = vst [vmem:[%s7577_s26 + $0x630] sm:$0xff] %v1074_v6 }
  0xd7   : > { %1077 = vst [vmem:[%s7577_s26 + $0x638] sm:$0xff] %v1076_v7 }
  0xd8   : > { %1079 = vst [vmem:[%s7577_s26 + $0x640] sm:$0xff] %v1078_v8 }
  0xd9   : > { %1081 = vst [vmem:[%s7577_s26 + $0x648] sm:$0xff] %v1080_v9 }
  0xda   : > { %1083 = vst [vmem:[%s7577_s26 + $0x650] sm:$0xff] %v1082_v10 }
  0xdb   : > { %1085 = vst [vmem:[%s7577_s26 + $0x658] sm:$0xff] %v1084_v11 }
  0xdc   : > { %1087 = vst [vmem:[%s7577_s26 + $0x660] sm:$0xff] %v1086_v12 }
  0xdd   : > { %1089 = vst [vmem:[%s7577_s26 + $0x668] sm:$0xff] %v1088_v13 }
  0xde   : > { %1091 = vst [vmem:[%s7577_s26 + $0x670] sm:$0xff] %v1090_v14 }
  0xdf   : > { %1093 = vst [vmem:[%s7577_s26 + $0x678] sm:$0xff] %v1092_v15 }
  0xe0   : > { %1095 = vst [vmem:[%s7577_s26 + $0x680] sm:$0xff] %v1094_v16 }
  0xe1   : > { %1097 = vst [vmem:[%s7577_s26 + $0x688] sm:$0xff] %v1096_v17 }
  0xe2   : > { %1099 = vst [vmem:[%s7577_s26 + $0x690] sm:$0xff] %v1098_v18 }
  0xe3   : > { %1101 = vst [vmem:[%s7577_s26 + $0x698] sm:$0xff] %v1100_v19 }
  0xe4   : > { %1103 = vst [vmem:[%s7577_s26 + $0x6a0] sm:$0xff] %v1102_v20 }
  0xe5   : > { %1105 = vst [vmem:[%s7577_s26 + $0x6a8] sm:$0xff] %v1104_v21 }
  0xe6   : > { %1107 = vst [vmem:[%s7577_s26 + $0x6b0] sm:$0xff] %v1106_v22 }
  0xe7   : > { %1109 = vst [vmem:[%s7577_s26 + $0x6b8] sm:$0xff] %v1108_v23 }
  0xe8   : > { %1111 = vst [vmem:[%s7577_s26 + $0x6c0] sm:$0xff] %v1110_v24 }
  0xe9   : > { %1113 = vst [vmem:[%s7577_s26 + $0x6c8] sm:$0xff] %v1112_v25 }
  0xea   : > { %1115 = vst [vmem:[%s7577_s26 + $0x6d0] sm:$0xff] %v1114_v26 }
  0xeb   : > { %1117 = vst [vmem:[%s7577_s26 + $0x6d8] sm:$0xff] %v1116_v27 }
  0xec   : > { %1119 = vst [vmem:[%s7577_s26 + $0x6e0] sm:$0xff] %v1118_v28 }
  0xed   : > { %1121 = vst [vmem:[%s7577_s26 + $0x6e8] sm:$0xff] %v1120_v29 }
  0xee   : > { %1123 = vst [vmem:[%s7577_s26 + $0x6f0] sm:$0xff] %v1122_v30 }
  0xef   : > { %1125 = vst [vmem:[%s7577_s26 + $0x6f8] sm:$0xff] %v1124_v31 }
  0xf0   : > { %1127 = vst [vmem:[%s7577_s26 + $0x700] sm:$0xff] %v1126_v32 }
  0xf1   : > { %1129 = vst [vmem:[%s7577_s26 + $0x708] sm:$0xff] %v1128_v33 }
  0xf2   : > { %1131 = vst [vmem:[%s7577_s26 + $0x710] sm:$0xff] %v1130_v34 }
  0xf3   : > { %1133 = vst [vmem:[%s7577_s26 + $0x718] sm:$0xff] %v1132_v35 }
  0xf4   : > { %1135 = vst [vmem:[%s7577_s26 + $0x720] sm:$0xff] %v1134_v36 }
  0xf5   : > { %1137 = vst [vmem:[%s7577_s26 + $0x728] sm:$0xff] %v1136_v37 }
  0xf6   : > { %1139 = vst [vmem:[%s7577_s26 + $0x730] sm:$0xff] %v1138_v38 }
  0xf7   : > { %1141 = vst [vmem:[%s7577_s26 + $0x738] sm:$0xff] %v1140_v39 }
  0xf8   : > { %1143 = vst [vmem:[%s7577_s26 + $0x740] sm:$0xff] %v1142_v40 }
  0xf9   : > { %1145 = vst [vmem:[%s7577_s26 + $0x748] sm:$0xff] %v1144_v41 }
  0xfa   : > { %1147 = vst [vmem:[%s7577_s26 + $0x750] sm:$0xff] %v1146_v42 }
  0xfb   : > { %1149 = vst [vmem:[%s7577_s26 + $0x758] sm:$0xff] %v1148_v43 }
  0xfc   : > { %1151 = vst [vmem:[%s7577_s26 + $0x760] sm:$0xff] %v1150_v44 }
  0xfd   : > { %1153 = vst [vmem:[%s7577_s26 + $0x768] sm:$0xff] %v1152_v45 }
  0xfe   : > { %1155 = vst [vmem:[%s7577_s26 + $0x770] sm:$0xff] %v1154_v46 }
  0xff   : > { %1157 = vst [vmem:[%s7577_s26 + $0x778] sm:$0xff] %v1156_v47 }
 0x100   : > { %1159 = vst [vmem:[%s7577_s26 + $0x780] sm:$0xff] %v1158_v48 }
 0x101   : > { %1161 = vst [vmem:[%s7577_s26 + $0x788] sm:$0xff] %v1160_v49 }
 0x102   : > { %1163 = vst [vmem:[%s7577_s26 + $0x790] sm:$0xff] %v1162_v50 }
 0x103   : > { %1165 = vst [vmem:[%s7577_s26 + $0x798] sm:$0xff] %v1164_v51 }
 0x104   : > { %1167 = vst [vmem:[%s7577_s26 + $0x7a0] sm:$0xff] %v1166_v52 }
 0x105   : > { %1169 = vst [vmem:[%s7577_s26 + $0x7a8] sm:$0xff] %v1168_v53 }
 0x106   : > { %1171 = vst [vmem:[%s7577_s26 + $0x7b0] sm:$0xff] %v1170_v54 }
 0x107   : > { %1173 = vst [vmem:[%s7577_s26 + $0x7b8] sm:$0xff] %v1172_v55 }
 0x108   : > { %1175 = vst [vmem:[%s7577_s26 + $0x7c0] sm:$0xff] %v1174_v56 }
 0x109   : > { %1177 = vst [vmem:[%s7577_s26 + $0x7c8] sm:$0xff] %v1176_v57 }
 0x10a   : > { %1179 = vst [vmem:[%s7577_s26 + $0x7d0] sm:$0xff] %v1178_v58 }
 0x10b   : > { %1181 = vst [vmem:[%s7577_s26 + $0x7d8] sm:$0xff] %v1180_v59 }
 0x10c   : > { %1183 = vst [vmem:[%s7577_s26 + $0x7e0] sm:$0xff] %v1182_v60 }
 0x10d   : > { %1185 = vst [vmem:[%s7577_s26 + $0x7e8] sm:$0xff] %v1184_v61 }
 0x10e   : > { %1187 = vst [vmem:[%s7577_s26 + $0x7f0] sm:$0xff] %v1186_v62 }
 0x10f   : > { %1189 = vst [vmem:[%s7577_s26 + $0x7f8] sm:$0xff] %v1188_v63 }
 0x110 PF: > { %p5905_p5 = scmp.ge.s32.totalorder %s7516_s14, 1  ;;  %p2253_p6 = scmp.lt.s32.totalorder %s7516_s14, 3 }
 0x112   : > { %p2254_p7 = pnand %p5905_p5, %p2253_p6 }
 0x114   : > { %2257 = sbr.rel (%p2254_p7) target bundleno = 1471 (0x5bf), region = 80 }
 0x119   : > { %v8093_v0 = vld [vmem:[%s9368_s1 + $0x38] sm:$0xff]  ;;  %v8105_v2 = vld [vmem:[%s9368_s1 + $0x30] sm:$0xff]  ;;  %v8119_v4 = vld [vmem:[%s9368_s1 + $0x28] sm:$0xff]  ;;  %s2260_s26 = sand.u32 1, %s7508_s12   ;;  %s5907_s25 = sshll.u32 %s5897_s15, 6  ;;  %vm5761_vm0 = vcmask 261120  }
 0x11a   : > { %v8098_v1 = vld [vmem:[%s9368_s1 + $0x78] sm:$0xff]  ;;  %2806 = vmatpush.bf16.msra.mxu0 %v8093_v0  ;;  %v8110_v3 = vld [vmem:[%s9368_s1 + $0x70] sm:$0xff]  ;;  %3593 = vmatpush.bf16.msra.mxu2 %v8093_v0  ;;  %v8124_v5 = vld [vmem:[%s9368_s1 + $0x68] sm:$0xff]  ;;  %s5906_s4 = sshll.u32 %s2260_s26, 11  ;;  %p2285_p8 = scmp.lt.s32.totalorder %s5907_s25, 127 }
 0x11b   : > { %2975 = vmatpush.bf16.msra.mxu1 %v8098_v1  ;;  %3762 = vmatpush.bf16.msra.mxu3 %v8098_v1  ;;  %v8133_v6 = vld [vmem:[%s9368_s1 + $0x20] sm:$0xff]  ;;  %v8147_v8 = vld [vmem:[%s9368_s1 + $0x18] sm:$0xff]  ;;  %v8162_v10 = vld [vmem:[%s9368_s1 + $0x10] sm:$0xff]  ;;  %s8195_s17 = scalar_lea.vmem [#allocation2], %s5906_s4 }
 0x11c   : > { %v8138_v7 = vld [vmem:[%s9368_s1 + $0x60] sm:$0xff]  ;;  %v8152_v9 = vld [vmem:[%s9368_s1 + $0x58] sm:$0xff]  ;;  %v8167_v11 = vld [vmem:[%s9368_s1 + $0x50] sm:$0xff]  ;;  %s9423_s25 = smov (!%p2285_p8, %s5907_s25), 127 }
 0x11d   : > { %v8176_v12 = vld [vmem:[%s9368_s1 + $0x8] sm:$0xff]  ;;  %v8188_v14 = vld [vmem:[%s9368_s1] sm:$0xff]  ;;  %v5919_v28 = vld [vmem:[%s8195_s17 + $0x10] sm:$0xf]  ;;  %s5908_s14 = sshll.u32 %s9423_s25, 3 }
 0x11e   : > { %2807 = vmatpush.bf16.msra.mxu0 %v8105_v2  ;;  %3594 = vmatpush.bf16.msra.mxu2 %v8105_v2  ;;  %v8181_v13 = vld [vmem:[%s9368_s1 + $0x48] sm:$0xff]  ;;  %v8193_v15 = vld [vmem:[%s9368_s1 + $0x40] sm:$0xff]  ;;  %v7212_v29 = vld [vmem:[%s8195_s17 + $0x14] sm:$0xf0]  ;;  %s8850_s27 = scalar_lea.vmem %s9370_s3, %s5908_s14 }
 0x11f   : > { %2976 = vmatpush.bf16.msra.mxu1 %v8110_v3  ;;  %3763 = vmatpush.bf16.msra.mxu3 %v8110_v3  ;;  %v5911_v16 = vld [vmem:[%s8195_s17] sm:$0xf]  ;;  %v7210_v17 = vld [vmem:[%s8195_s17 + $0x4] sm:$0xf0]  ;;  %v7209_v18 = vld [vmem:[%s8195_s17 + $0x4] sm:$0xf]  ;;  %v5920_v36 = vor.u32 %v7212_v29, %v5919_v28 }
 0x120   : > { %v5913_v19 = vld [vmem:[%s8195_s17 + $0x8] sm:$0xf0]  ;;  %v6295_v20 = vld [vmem:[%s8195_s17 + $0x200] sm:$0xf]  ;;  %v7274_v21 = vld [vmem:[%s8195_s17 + $0x204] sm:$0xf0]  ;;  %v5912_v24 = vor.u32 %v7210_v17, %v5911_v16 }
 0x121   : > { %v7273_v22 = vld [vmem:[%s8195_s17 + $0x204] sm:$0xf]  ;;  %v6297_v23 = vld [vmem:[%s8195_s17 + $0x208] sm:$0xf0]  ;;  %v5916_v25 = vor.u32 %v7209_v18, %v5913_v19  ;;  %v6296_v26 = vor.u32 %v7274_v21, %v6295_v20  ;;  %v7211_v30 = vld [vmem:[%s8195_s17 + $0x14] sm:$0xf] }
 0x122   : > { %2808 = vmatpush.bf16.msra.mxu0 %v8119_v4  ;;  %3595 = vmatpush.bf16.msra.mxu2 %v8119_v4  ;;  %v6300_v27 = vor.u32 %v7273_v22, %v6297_v23  ;;  %v5921_v31 = vld [vmem:[%s8195_s17 + $0x18] sm:$0xf0]  ;;  %v6303_v32 = vld [vmem:[%s8195_s17 + $0x210] sm:$0xf]  ;;  %v7276_v33 = vld [vmem:[%s8195_s17 + $0x214] sm:$0xf0] }
 0x123   : > { %2977 = vmatpush.bf16.msra.mxu1 %v8124_v5  ;;  %3764 = vmatpush.bf16.msra.mxu3 %v8124_v5  ;;  %v7275_v34 = vld [vmem:[%s8195_s17 + $0x214] sm:$0xf]  ;;  %v6305_v35 = vld [vmem:[%s8195_s17 + $0x218] sm:$0xf0]  ;;  %v5924_v37 = vor.u32 %v7211_v30, %v5921_v31  ;;  %v6304_v38 = vor.u32 %v7276_v33, %v6303_v32  ;;  %v5927_v40 = vld [vmem:[%s8195_s17 + $0x20] sm:$0xf] }
 0x124   : > { %v6308_v39 = vor.u32 %v7275_v34, %v6305_v35  ;;  %v7214_v41 = vld [vmem:[%s8195_s17 + $0x24] sm:$0xf0]  ;;  %v7213_v42 = vld [vmem:[%s8195_s17 + $0x24] sm:$0xf]  ;;  %v5929_v43 = vld [vmem:[%s8195_s17 + $0x28] sm:$0xf0] }
 0x125   : > { %v6311_v44 = vld [vmem:[%s8195_s17 + $0x220] sm:$0xf]  ;;  %v7278_v45 = vld [vmem:[%s8195_s17 + $0x224] sm:$0xf0]  ;;  %v7277_v46 = vld [vmem:[%s8195_s17 + $0x224] sm:$0xf]  ;;  %v5928_v48 = vor.u32 %v7214_v41, %v5927_v40  ;;  %v5932_v49 = vor.u32 %v7213_v42, %v5929_v43 }
 0x126   : > { %2809 = vmatpush.bf16.msra.mxu0 %v8133_v6  ;;  %3596 = vmatpush.bf16.msra.mxu2 %v8133_v6  ;;  %v6313_v47 = vld [vmem:[%s8195_s17 + $0x228] sm:$0xf0]  ;;  %v6312_v50 = vor.u32 %v7278_v45, %v6311_v44  ;;  %v5935_v52 = vld [vmem:[%s8195_s17 + $0x30] sm:$0xf]  ;;  %v7216_v53 = vld [vmem:[%s8195_s17 + $0x34] sm:$0xf0] }
 0x127   : > { %2978 = vmatpush.bf16.msra.mxu1 %v8138_v7  ;;  %3765 = vmatpush.bf16.msra.mxu3 %v8138_v7  ;;  %v6316_v51 = vor.u32 %v7277_v46, %v6313_v47  ;;  %v7215_v54 = vld [vmem:[%s8195_s17 + $0x34] sm:$0xf]  ;;  %v5937_v55 = vld [vmem:[%s8195_s17 + $0x38] sm:$0xf0]  ;;  %v6319_v56 = vld [vmem:[%s8195_s17 + $0x230] sm:$0xf]  ;;  %v5936_v60 = vor.u32 %v7216_v53, %v5935_v52 }
 0x128   : > { %v7280_v57 = vld [vmem:[%s8195_s17 + $0x234] sm:$0xf0]  ;;  %v7279_v58 = vld [vmem:[%s8195_s17 + $0x234] sm:$0xf]  ;;  %v6321_v59 = vld [vmem:[%s8195_s17 + $0x238] sm:$0xf0]  ;;  %v5940_v61 = vor.u32 %v7215_v54, %v5937_v55 }
 0x129   : > { %v6320_v62 = vor.u32 %v7280_v57, %v6319_v56  ;;  %v6324_v63 = vor.u32 %v7279_v58, %v6321_v59  ;;  %v6335_v16 = vld [vmem:[%s8195_s17 + $0x250] sm:$0xf]  ;;  %v7284_v17 = vld [vmem:[%s8195_s17 + $0x254] sm:$0xf0]  ;;  %v7283_v18 = vld [vmem:[%s8195_s17 + $0x254] sm:$0xf] }
 0x12a   : > { %2810 = vmatpush.bf16.msra.mxu0 %v8147_v8  ;;  %3597 = vmatpush.bf16.msra.mxu2 %v8147_v8  ;;  %v6337_v19 = vld [vmem:[%s8195_s17 + $0x258] sm:$0xf0]  ;;  %v6336_v22 = vor.u32 %v7284_v17, %v6335_v16  ;;  %v6343_v28 = vld [vmem:[%s8195_s17 + $0x260] sm:$0xf]  ;;  %v7286_v29 = vld [vmem:[%s8195_s17 + $0x264] sm:$0xf0] }
 0x12b   : > { %2979 = vmatpush.bf16.msra.mxu1 %v8152_v9  ;;  %3766 = vmatpush.bf16.msra.mxu3 %v8152_v9  ;;  %v6340_v23 = vor.u32 %v7283_v18, %v6337_v19  ;;  %v7285_v30 = vld [vmem:[%s8195_s17 + $0x264] sm:$0xf]  ;;  %v6345_v31 = vld [vmem:[%s8195_s17 + $0x268] sm:$0xf0]  ;;  %v6344_v34 = vor.u32 %v7286_v29, %v6343_v28  ;;  %v6351_v40 = vld [vmem:[%s8195_s17 + $0x270] sm:$0xf] }
 0x12c   : > { %v6348_v35 = vor.u32 %v7285_v30, %v6345_v31  ;;  %v7288_v41 = vld [vmem:[%s8195_s17 + $0x274] sm:$0xf0]  ;;  %v7287_v42 = vld [vmem:[%s8195_s17 + $0x274] sm:$0xf]  ;;  %v6353_v43 = vld [vmem:[%s8195_s17 + $0x278] sm:$0xf0] }
 0x12d   : > { %v6352_v46 = vor.u32 %v7288_v41, %v6351_v40  ;;  %v6356_v47 = vor.u32 %v7287_v42, %v6353_v43  ;;  %v5977_v52 = vld [vmem:[%s8195_s17 + $0x88] sm:$0xf0]  ;;  %v6359_v53 = vld [vmem:[%s8195_s17 + $0x280] sm:$0xf]  ;;  %v7290_v54 = vld [vmem:[%s8195_s17 + $0x284] sm:$0xf0] }
 0x12e   : > { %2811 = vmatpush.bf16.msra.mxu0 %v8162_v10  ;;  %3598 = vmatpush.bf16.msra.mxu2 %v8162_v10  ;;  %v7289_v55 = vld [vmem:[%s8195_s17 + $0x284] sm:$0xf]  ;;  %v6361_v56 = vld [vmem:[%s8195_s17 + $0x288] sm:$0xf0]  ;;  %v7292_v16 = vld [vmem:[%s8195_s17 + $0x294] sm:$0xf0] }
 0x12f   : > { %2980 = vmatpush.bf16.msra.mxu1 %v8167_v11  ;;  %3767 = vmatpush.bf16.msra.mxu3 %v8167_v11  ;;  %v7291_v17 = vld [vmem:[%s8195_s17 + $0x294] sm:$0xf]  ;;  %v6369_v18 = vld [vmem:[%s8195_s17 + $0x298] sm:$0xf0]  ;;  %v5991_v43 = vld [vmem:[%s8195_s17 + $0xa0] sm:$0xf] }
 0x130   : > { %v6372_v28 = vor.u32 %v7291_v17, %v6369_v18 }
 0x132   : > { %2812 = vmatpush.bf16.msra.mxu0 %v8176_v12  ;;  %3599 = vmatpush.bf16.msra.mxu2 %v8176_v12 }
 0x133   : > { %2981 = vmatpush.bf16.msra.mxu1 %v8181_v13  ;;  %3768 = vmatpush.bf16.msra.mxu3 %v8181_v13 }
 0x136   : > { %2813 = vmatpush.bf16.msra.mxu0 %v8188_v14  ;;  %3600 = vmatpush.bf16.msra.mxu2 %v8188_v14 }
 0x137   : > { %2982 = vmatpush.bf16.msra.mxu1 %v8193_v15  ;;  %3769 = vmatpush.bf16.msra.mxu3 %v8193_v15 }
 0x139   : > { %2814 = vmatmul.bf16.vlgmr.msra.gmra.mxu0 %v5912_v24  ;;  %3601 = vmatmul.bf16.vlgmr.msra.gmra.mxu2 %v6296_v26  ;;  %v5959_v24 = vld [vmem:[%s8195_s17 + $0x60] sm:$0xf]  ;;  %v7221_v26 = vld [vmem:[%s8195_s17 + $0x64] sm:$0xf] }
 0x13a   : > { %5295 = vmatpush.bf16.msrb.mxu2 %v8093_v0  ;;  %2983 = vmatmul.bf16.vlgmr.msra.gmra.mxu1 %v5916_v25  ;;  %v7222_v25 = vld [vmem:[%s8195_s17 + $0x64] sm:$0xf0] }
 0x13b   : > { %5464 = vmatpush.bf16.msrb.mxu3 %v8098_v1  ;;  %4444 = vmatpush.bf16.msrb.mxu0 %v8093_v0  ;;  %v5943_v0 = vld [vmem:[%s8195_s17 + $0x40] sm:$0xf]  ;;  %v5960_v32 = vor.u32 %v7222_v25, %v5959_v24 }
 0x13c   : > { %3770 = vmatmul.bf16.vlgmr.msra.gmra.mxu3 %v6300_v27  ;;  %4613 = vmatpush.bf16.msrb.mxu1 %v8098_v1  ;;  %v7218_v1 = vld [vmem:[%s8195_s17 + $0x44] sm:$0xf0]  ;;  %v5961_v27 = vld [vmem:[%s8195_s17 + $0x68] sm:$0xf0] }
 0x13d   : > { %v5964_v33 = vor.u32 %v7221_v26, %v5961_v27 }
 0x13e   : > { %5296 = vmatpush.bf16.msrb.mxu2 %v8105_v2 }
 0x13f   : > { %5465 = vmatpush.bf16.msrb.mxu3 %v8110_v3  ;;  %4445 = vmatpush.bf16.msrb.mxu0 %v8105_v2  ;;  %v7217_v2 = vld [vmem:[%s8195_s17 + $0x44] sm:$0xf] }
 0x140   : > { %4614 = vmatpush.bf16.msrb.mxu1 %v8110_v3  ;;  %v5945_v3 = vld [vmem:[%s8195_s17 + $0x48] sm:$0xf0] }
 0x142   : > { %5297 = vmatpush.bf16.msrb.mxu2 %v8119_v4 }
 0x143   : > { %5466 = vmatpush.bf16.msrb.mxu3 %v8124_v5  ;;  %4446 = vmatpush.bf16.msrb.mxu0 %v8119_v4  ;;  %v6327_v4 = vld [vmem:[%s8195_s17 + $0x240] sm:$0xf] }
 0x144   : > { %4615 = vmatpush.bf16.msrb.mxu1 %v8124_v5  ;;  %v7282_v5 = vld [vmem:[%s8195_s17 + $0x244] sm:$0xf0] }
 0x146   : > { %5298 = vmatpush.bf16.msrb.mxu2 %v8133_v6 }
 0x147   : > { %5467 = vmatpush.bf16.msrb.mxu3 %v8138_v7  ;;  %4447 = vmatpush.bf16.msrb.mxu0 %v8133_v6  ;;  %v7281_v6 = vld [vmem:[%s8195_s17 + $0x244] sm:$0xf] }
 0x148   : > { %4616 = vmatpush.bf16.msrb.mxu1 %v8138_v7  ;;  %v6329_v7 = vld [vmem:[%s8195_s17 + $0x248] sm:$0xf0] }
 0x149   : > { %2819 = vmatmul.bf16.gmra.mxu0 %v5920_v36  ;;  %3606 = vmatmul.bf16.gmra.mxu2 %v6304_v38  ;;  %v5967_v36 = vld [vmem:[%s8195_s17 + $0x70] sm:$0xf]  ;;  %v7223_v38 = vld [vmem:[%s8195_s17 + $0x74] sm:$0xf] }
 0x14a   : > { %5299 = vmatpush.bf16.msrb.mxu2 %v8147_v8  ;;  %2988 = vmatmul.bf16.gmra.mxu1 %v5924_v37  ;;  %v7224_v37 = vld [vmem:[%s8195_s17 + $0x74] sm:$0xf0] }
 0x14b   : > { %5468 = vmatpush.bf16.msrb.mxu3 %v8152_v9  ;;  %4448 = vmatpush.bf16.msrb.mxu0 %v8147_v8  ;;  %v5944_v8 = vor.u32 %v7218_v1, %v5943_v0  ;;  %v5968_v44 = vor.u32 %v7224_v37, %v5967_v36 }
 0x14c   : > { %3775 = vmatmul.bf16.gmra.mxu3 %v6308_v39  ;;  %4617 = vmatpush.bf16.msrb.mxu1 %v8152_v9  ;;  %v5948_v9 = vor.u32 %v7217_v2, %v5945_v3  ;;  %v5969_v39 = vld [vmem:[%s8195_s17 + $0x78] sm:$0xf0] }
 0x14d   : > { %v5972_v45 = vor.u32 %v7223_v38, %v5969_v39 }
 0x14e   : > { %5300 = vmatpush.bf16.msrb.mxu2 %v8162_v10 }
 0x14f   : > { %5469 = vmatpush.bf16.msrb.mxu3 %v8167_v11  ;;  %4449 = vmatpush.bf16.msrb.mxu0 %v8162_v10  ;;  %v6328_v10 = vor.u32 %v7282_v5, %v6327_v4 }
 0x150   : > { %4618 = vmatpush.bf16.msrb.mxu1 %v8167_v11  ;;  %v6332_v11 = vor.u32 %v7281_v6, %v6329_v7 }
 0x152   : > { %5301 = vmatpush.bf16.msrb.mxu2 %v8176_v12 }
 0x153   : > { %5470 = vmatpush.bf16.msrb.mxu3 %v8181_v13  ;;  %4450 = vmatpush.bf16.msrb.mxu0 %v8176_v12  ;;  %v5951_v12 = vld [vmem:[%s8195_s17 + $0x50] sm:$0xf] }
 0x154   : > { %4619 = vmatpush.bf16.msrb.mxu1 %v8181_v13  ;;  %v7220_v13 = vld [vmem:[%s8195_s17 + $0x54] sm:$0xf0] }
 0x155   : > { %v5952_v20 = vor.u32 %v7220_v13, %v5951_v12 }
 0x156   : > { %5302 = vmatpush.bf16.msrb.mxu2 %v8188_v14 }
 0x157   : > { %5471 = vmatpush.bf16.msrb.mxu3 %v8193_v15  ;;  %4451 = vmatpush.bf16.msrb.mxu0 %v8188_v14  ;;  %v7219_v14 = vld [vmem:[%s8195_s17 + $0x54] sm:$0xf] }
 0x158   : > { %4620 = vmatpush.bf16.msrb.mxu1 %v8193_v15  ;;  %v5953_v15 = vld [vmem:[%s8195_s17 + $0x58] sm:$0xf0] }
 0x159   : > { %2824 = vmatmul.bf16.gmra.mxu0 %v5928_v48  ;;  %3611 = vmatmul.bf16.gmra.mxu2 %v6312_v50  ;;  %v5956_v21 = vor.u32 %v7219_v14, %v5953_v15  ;;  %v8304_v48 = vld [vmem:[%s9369_s2] ss:$0 sm:$0xff]  ;;  %v7226_v50 = vld [vmem:[%s8195_s17 + $0x84] sm:$0xf0]  ;;  %v5985_v14 = vld [vmem:[%s8195_s17 + $0x98] sm:$0xf0] }
 0x15a   : > { %2993 = vmatmul.bf16.gmra.mxu1 %v5932_v49  ;;  %v5975_v49 = vld [vmem:[%s8195_s17 + $0x80] sm:$0xf]  ;;  %v6367_v15 = vld [vmem:[%s8195_s17 + $0x290] sm:$0xf] }
 0x15b   : > { %v5976_v57 = vor.u32 %v7226_v50, %v5975_v49  ;;  %v6368_v27 = vor.u32 %v7292_v16, %v6367_v15  ;;  %v5993_v49 = vld [vmem:[%s8195_s17 + $0xa8] sm:$0xf0]  ;;  %v6375_v50 = vld [vmem:[%s8195_s17 + $0x2a0] sm:$0xf]  ;;  %v7232_v15 = vld [vmem:[%s8195_s17 + $0xb4] sm:$0xf0] }
 0x15c   : > { %3780 = vmatmul.bf16.gmra.mxu3 %v6316_v51  ;;  %v7225_v51 = vld [vmem:[%s8195_s17 + $0x84] sm:$0xf]  ;;  %v7231_v16 = vld [vmem:[%s8195_s17 + $0xb4] sm:$0xf] }
 0x15d   : > { %v5980_v58 = vor.u32 %v7225_v51, %v5977_v52  ;;  %v7294_v51 = vld [vmem:[%s8195_s17 + $0x2a4] sm:$0xf0]  ;;  %v7293_v52 = vld [vmem:[%s8195_s17 + $0x2a4] sm:$0xf] }
 0x169   : > { %2829 = vmatmul.bf16.gmra.mxu0 %v5936_v60  ;;  %3616 = vmatmul.bf16.gmra.mxu2 %v6320_v62  ;;  %v6364_v62 = vor.u32 %v7289_v55, %v6361_v56 }
 0x16a   : > { %2998 = vmatmul.bf16.gmra.mxu1 %v5940_v61  ;;  %v6360_v61 = vor.u32 %v7290_v54, %v6359_v53  ;;  %v6377_v53 = vld [vmem:[%s8195_s17 + $0x2a8] sm:$0xf0] }
 0x16c   : > { %3785 = vmatmul.bf16.gmra.mxu3 %v6324_v63 }
 0x179   : > { %2834 = vmatmul.bf16.gmra.mxu0 %v5944_v8  ;;  %3621 = vmatmul.bf16.gmra.mxu2 %v6328_v10  ;;  %v7228_v10 = vld [vmem:[%s8195_s17 + $0x94] sm:$0xf0] }
 0x17a   : > { %3003 = vmatmul.bf16.gmra.mxu1 %v5948_v9  ;;  %v5983_v9 = vld [vmem:[%s8195_s17 + $0x90] sm:$0xf] }
 0x17c   : > { %3790 = vmatmul.bf16.gmra.mxu3 %v6332_v11  ;;  %v7227_v11 = vld [vmem:[%s8195_s17 + $0x94] sm:$0xf] }
 0x189   : > { %2839 = vmatmul.bf16.gmra.mxu0 %v5952_v20  ;;  %3626 = vmatmul.bf16.gmra.mxu2 %v6336_v22  ;;  %v5984_v22 = vor.u32 %v7228_v10, %v5983_v9 }
 0x18a   : > { %3008 = vmatmul.bf16.gmra.mxu1 %v5956_v21 }
 0x18c   : > { %3795 = vmatmul.bf16.gmra.mxu3 %v6340_v23  ;;  %v5988_v23 = vor.u32 %v7227_v11, %v5985_v14  ;;  %v5999_v14 = vld [vmem:[%s8195_s17 + $0xb0] sm:$0xf] }
 0x199   : > { %2844 = vmatmul.bf16.gmra.mxu0 %v5960_v32  ;;  %3631 = vmatmul.bf16.gmra.mxu2 %v6344_v34 }
 0x19a   : > { %3013 = vmatmul.bf16.gmra.mxu1 %v5964_v33 }
 0x19c   : > { %3800 = vmatmul.bf16.gmra.mxu3 %v6348_v35 }
 0x1a9   : > { %2849 = vmatmul.bf16.gmra.mxu0 %v5968_v44  ;;  %3636 = vmatmul.bf16.gmra.mxu2 %v6352_v46  ;;  %v7230_v44 = vld [vmem:[%s8195_s17 + $0xa4] sm:$0xf0] }
 0x1aa   : > { %3018 = vmatmul.bf16.gmra.mxu1 %v5972_v45  ;;  %v7229_v45 = vld [vmem:[%s8195_s17 + $0xa4] sm:$0xf] }
 0x1ac   : > { %3805 = vmatmul.bf16.gmra.mxu3 %v6356_v47 }
 0x1b6   : > { %v2815_v59 = vpop.f32.mrf.mxu0 }
 0x1b7   : > { %v2984_v60 = vpop.f32.mrf.mxu1  ;;  %v2816_v63 = vadd.f32 %v8304_v48, %v2815_v59 }
 0x1b9   : > { %v2985_v0 = vadd.f32 %v2984_v60, %v2816_v63  ;;  %2854 = vmatmul.bf16.gmra.mxu0 %v5976_v57  ;;  %3641 = vmatmul.bf16.gmra.mxu2 %v6360_v61  ;;  %v5992_v57 = vor.u32 %v7230_v44, %v5991_v43  ;;  %v6380_v63 = vor.u32 %v7293_v52, %v6377_v53  ;;  %v7234_v52 = vld [vmem:[%s8195_s17 + $0xc4] sm:$0xf0]  ;;  %v7233_v53 = vld [vmem:[%s8195_s17 + $0xc4] sm:$0xf] }
 0x1ba   : > { %3023 = vmatmul.bf16.gmra.mxu1 %v5980_v58  ;;  %v5996_v58 = vor.u32 %v7229_v45, %v5993_v49 }
 0x1bb   : > { %v3144_v12 = vmax.f32 %v2985_v0, 0.0 }
 0x1bc   : > { %3810 = vmatmul.bf16.gmra.mxu3 %v6364_v62  ;;  %v3602_v1 = vpop.f32.mrf.mxu2  ;;  %v6376_v62 = vor.u32 %v7294_v51, %v6375_v50  ;;  %v6007_v51 = vld [vmem:[%s8195_s17 + $0xc0] sm:$0xf] }
 0x1bd   : > { %v3603_v3 = vadd.f32 %v8304_v48, %v3602_v1 }
 0x1be   : > { %v2817_v4 = vpop.f32.mrf.mxu0 }
 0x1bf   : > { %v3771_v2 = vpop.f32.mrf.mxu3  ;;  %v2986_v5 = vpop.f32.mrf.mxu1  ;;  %v2818_v6 = vadd.f32 %v8304_v48, %v2817_v4 }
 0x1c0   : > { %v3772_v7 = vadd.f32 %v3771_v2, %v3603_v3 }
 0x1c1   : > { %v2987_v8 = vadd.f32 %v2986_v5, %v2818_v6 }
 0x1c2   : > { %v3931_v13 = vmax.f32 %v3772_v7, 0.0 }
 0x1c3   : > { %v3145_v32 = vmax.f32 %v2987_v8, 0.0 }
 0x1c4   : > { %v8325_v19 = vmax.f32 %v3144_v12, %v3931_v13  ;;  %v3604_v20 = vpop.f32.mrf.mxu2 }
 0x1c5   : > { %v3605_v24 = vadd.f32 %v8304_v48, %v3604_v20  ;;  %v6001_v20 = vld [vmem:[%s8195_s17 + $0xb8] sm:$0xf0] }
 0x1c6   : > { %v2820_v25 = vpop.f32.mrf.mxu0 }
 0x1c7   : > { %v3773_v21 = vpop.f32.mrf.mxu3  ;;  %v2989_v26 = vpop.f32.mrf.mxu1  ;;  %v2821_v29 = vadd.f32 %v8304_v48, %v2820_v25 }
 0x1c8   : > { %v3774_v30 = vadd.f32 %v3773_v21, %v3605_v24  ;;  %v6383_v21 = vld [vmem:[%s8195_s17 + $0x2b0] sm:$0xf]  ;;  %v6385_v24 = vld [vmem:[%s8195_s17 + $0x2b8] sm:$0xf0] }
 0x1c9   : > { %v2990_v31 = vadd.f32 %v2989_v26, %v2821_v29  ;;  %2859 = vmatmul.bf16.gmra.mxu0 %v5984_v22  ;;  %3646 = vmatmul.bf16.gmra.mxu2 %v6368_v27  ;;  %v7296_v22 = vld [vmem:[%s8195_s17 + $0x2b4] sm:$0xf0]  ;;  %v6004_v29 = vor.u32 %v7231_v16, %v6001_v20 }
 0x1ca   : > { %3028 = vmatmul.bf16.gmra.mxu1 %v5988_v23  ;;  %v3932_v33 = vmax.f32 %v3774_v30, 0.0  ;;  %v7295_v23 = vld [vmem:[%s8195_s17 + $0x2b4] sm:$0xf] }
 0x1cb   : > { %v3146_v46 = vmax.f32 %v2990_v31, 0.0 }
 0x1cc   : > { %3815 = vmatmul.bf16.gmra.mxu3 %v6372_v28  ;;  %v8329_v34 = vmax.f32 %v3145_v32, %v3932_v33  ;;  %v3607_v35 = vpop.f32.mrf.mxu2  ;;  %v6000_v28 = vor.u32 %v7232_v15, %v5999_v14  ;;  %v6384_v33 = vor.u32 %v7296_v22, %v6383_v21 }
 0x1cd   : > { %v3608_v37 = vadd.f32 %v8304_v48, %v3607_v35  ;;  %v6388_v35 = vor.u32 %v7295_v23, %v6385_v24  ;;  %v6015_v24 = vld [vmem:[%s8195_s17 + $0xd0] sm:$0xf] }
 0x1ce   : > { %v2822_v38 = vpop.f32.mrf.mxu0 }
 0x1cf   : > { %v3776_v36 = vpop.f32.mrf.mxu3  ;;  %v2991_v39 = vpop.f32.mrf.mxu1  ;;  %v2823_v40 = vadd.f32 %v8304_v48, %v2822_v38 }
 0x1d0   : > { %v3777_v41 = vadd.f32 %v3776_v36, %v3608_v37 }
 0x1d1   : > { %v2992_v42 = vadd.f32 %v2991_v39, %v2823_v40 }
 0x1d2   : > { %v3933_v47 = vmax.f32 %v3777_v41, 0.0 }
 0x1d3   : > { %v3147_v3 = vmax.f32 %v2992_v42, 0.0 }
 0x1d4   : > { %v8341_v54 = vmax.f32 %v3146_v46, %v3933_v47  ;;  %v3609_v55 = vpop.f32.mrf.mxu2 }
 0x1d5   : > { %v3610_v59 = vadd.f32 %v8304_v48, %v3609_v55 }
 0x1d6   : > { %v2825_v60 = vpop.f32.mrf.mxu0 }
 0x1d7   : > { %v3778_v56 = vpop.f32.mrf.mxu3  ;;  %v2994_v61 = vpop.f32.mrf.mxu1  ;;  %v2826_v0 = vadd.f32 %v8304_v48, %v2825_v60  ;;  %v7297_v60 = vld [vmem:[%s8195_s17 + $0x2c4] sm:$0xf] }
 0x1d8   : > { %v3779_v1 = vadd.f32 %v3778_v56, %v3610_v59  ;;  %v7298_v59 = vld [vmem:[%s8195_s17 + $0x2c4] sm:$0xf0] }
 0x1d9   : > { %v2995_v2 = vadd.f32 %v2994_v61, %v2826_v0  ;;  %2864 = vmatmul.bf16.gmra.mxu0 %v5992_v57  ;;  %3651 = vmatmul.bf16.gmra.mxu2 %v6376_v62  ;;  %v6009_v57 = vld [vmem:[%s8195_s17 + $0xc8] sm:$0xf0] }
 0x1da   : > { %3033 = vmatmul.bf16.gmra.mxu1 %v5996_v58  ;;  %v3934_v4 = vmax.f32 %v3779_v1, 0.0  ;;  %v6391_v58 = vld [vmem:[%s8195_s17 + $0x2c0] sm:$0xf]  ;;  %v6393_v61 = vld [vmem:[%s8195_s17 + $0x2c8] sm:$0xf0]  ;;  %v6008_v1 = vor.u32 %v7234_v52, %v6007_v51 }
 0x1db   : > { %v3148_v17 = vmax.f32 %v2995_v2, 0.0  ;;  %v6012_v2 = vor.u32 %v7233_v53, %v6009_v57 }
 0x1dc   : > { %3820 = vmatmul.bf16.gmra.mxu3 %v6380_v63  ;;  %v8345_v5 = vmax.f32 %v3147_v3, %v3934_v4  ;;  %v3612_v6 = vpop.f32.mrf.mxu2 }
 0x1dd   : > { %v3613_v8 = vadd.f32 %v8304_v48, %v3612_v6 }
 0x1de   : > { %v2827_v9 = vpop.f32.mrf.mxu0 }
 0x1df   : > { %v3781_v7 = vpop.f32.mrf.mxu3  ;;  %v2996_v10 = vpop.f32.mrf.mxu1  ;;  %v2828_v11 = vadd.f32 %v8304_v48, %v2827_v9 }
 0x1e0   : > { %v3782_v12 = vadd.f32 %v3781_v7, %v3613_v8  ;;  %v6392_v7 = vor.u32 %v7298_v59, %v6391_v58  ;;  %v6396_v8 = vor.u32 %v7297_v60, %v6393_v61 }
 0x1e1   : > { %v2997_v13 = vadd.f32 %v2996_v10, %v2828_v11 }
 0x1e2   : > { %v3935_v18 = vmax.f32 %v3782_v12, 0.0 }
 0x1e3   : > { %v3149_v39 = vmax.f32 %v2997_v13, 0.0 }
 0x1e4   : > { %v8357_v25 = vmax.f32 %v3148_v17, %v3935_v18  ;;  %v3614_v26 = vpop.f32.mrf.mxu2 }
 0x1e5   : > { %v3615_v30 = vadd.f32 %v8304_v48, %v3614_v26  ;;  %v7236_v26 = vld [vmem:[%s8195_s17 + $0xd4] sm:$0xf0] }
 0x1e6   : > { %v2830_v31 = vpop.f32.mrf.mxu0 }
 0x1e7   : > { %v3783_v27 = vpop.f32.mrf.mxu3  ;;  %v2999_v32 = vpop.f32.mrf.mxu1  ;;  %v2831_v36 = vadd.f32 %v8304_v48, %v2830_v31  ;;  %v6399_v31 = vld [vmem:[%s8195_s17 + $0x2d0] sm:$0xf] }
 0x1e8   : > { %v3784_v37 = vadd.f32 %v3783_v27, %v3615_v30  ;;  %v7235_v27 = vld [vmem:[%s8195_s17 + $0xd4] sm:$0xf]  ;;  %v6017_v30 = vld [vmem:[%s8195_s17 + $0xd8] sm:$0xf0] }
 0x1e9   : > { %v3000_v38 = vadd.f32 %v2999_v32, %v2831_v36  ;;  %2869 = vmatmul.bf16.gmra.mxu0 %v6000_v28  ;;  %3656 = vmatmul.bf16.gmra.mxu2 %v6384_v33  ;;  %v7300_v32 = vld [vmem:[%s8195_s17 + $0x2d4] sm:$0xf0]  ;;  %v7299_v33 = vld [vmem:[%s8195_s17 + $0x2d4] sm:$0xf] }
 0x1ea   : > { %3038 = vmatmul.bf16.gmra.mxu1 %v6004_v29  ;;  %v3936_v40 = vmax.f32 %v3784_v37, 0.0 }
 0x1eb   : > { %v3150_v55 = vmax.f32 %v3000_v38, 0.0 }
 0x1ec   : > { %3825 = vmatmul.bf16.gmra.mxu3 %v6388_v35  ;;  %v8361_v41 = vmax.f32 %v3149_v39, %v3936_v40  ;;  %v3617_v42 = vpop.f32.mrf.mxu2  ;;  %v6401_v35 = vld [vmem:[%s8195_s17 + $0x2d8] sm:$0xf0]  ;;  %v6016_v39 = vor.u32 %v7236_v26, %v6015_v24  ;;  %v6020_v40 = vor.u32 %v7235_v27, %v6017_v30 }
 0x1ed   : > { %v3618_v44 = vadd.f32 %v8304_v48, %v3617_v42 }
 0x1ee   : > { %v2832_v45 = vpop.f32.mrf.mxu0 }
 0x1ef   : > { %v3786_v43 = vpop.f32.mrf.mxu3  ;;  %v3001_v46 = vpop.f32.mrf.mxu1  ;;  %v2833_v47 = vadd.f32 %v8304_v48, %v2832_v45  ;;  %v6400_v45 = vor.u32 %v7300_v32, %v6399_v31 }
 0x1f0   : > { %v3787_v49 = vadd.f32 %v3786_v43, %v3618_v44 }
 0x1f1   : > { %v3002_v50 = vadd.f32 %v3001_v46, %v2833_v47  ;;  %v6404_v46 = vor.u32 %v7299_v33, %v6401_v35 }
 0x1f2   : > { %v3937_v56 = vmax.f32 %v3787_v49, 0.0 }
 0x1f3   : > { %v3151_v12 = vmax.f32 %v3002_v50, 0.0 }
 0x1f4   : > { %v8373_v62 = vmax.f32 %v3150_v55, %v3937_v56  ;;  %v3619_v63 = vpop.f32.mrf.mxu2 }
 0x1f5   : > { %v3620_v3 = vadd.f32 %v8304_v48, %v3619_v63 }
 0x1f6   : > { %v2835_v4 = vpop.f32.mrf.mxu0 }
 0x1f7   : > { %v3788_v0 = vpop.f32.mrf.mxu3  ;;  %v3004_v6 = vpop.f32.mrf.mxu1  ;;  %v2836_v9 = vadd.f32 %v8304_v48, %v2835_v4 }
 0x1f8   : > { %v3789_v10 = vadd.f32 %v3788_v0, %v3620_v3  ;;  %v6023_v0 = vld [vmem:[%s8195_s17 + $0xe0] sm:$0xf] }
 0x1f9   : > { %v3005_v11 = vadd.f32 %v3004_v6, %v2836_v9  ;;  %2874 = vmatmul.bf16.gmra.mxu0 %v6008_v1  ;;  %3661 = vmatmul.bf16.gmra.mxu2 %v6392_v7  ;;  %v7238_v1 = vld [vmem:[%s8195_s17 + $0xe4] sm:$0xf0]  ;;  %v6025_v6 = vld [vmem:[%s8195_s17 + $0xe8] sm:$0xf0]  ;;  %v6407_v7 = vld [vmem:[%s8195_s17 + $0x2e0] sm:$0xf] }
 0x1fa   : > { %3043 = vmatmul.bf16.gmra.mxu1 %v6012_v2  ;;  %v3938_v13 = vmax.f32 %v3789_v10, 0.0  ;;  %v7237_v2 = vld [vmem:[%s8195_s17 + $0xe4] sm:$0xf]  ;;  %v6409_v10 = vld [vmem:[%s8195_s17 + $0x2e8] sm:$0xf0] }
 0x1fb   : > { %v3152_v28 = vmax.f32 %v3005_v11, 0.0  ;;  %v7301_v9 = vld [vmem:[%s8195_s17 + $0x2e4] sm:$0xf] }
 0x1fc   : > { %3830 = vmatmul.bf16.gmra.mxu3 %v6396_v8  ;;  %v8377_v14 = vmax.f32 %v3151_v12, %v3938_v13  ;;  %v3622_v15 = vpop.f32.mrf.mxu2  ;;  %v7302_v8 = vld [vmem:[%s8195_s17 + $0x2e4] sm:$0xf0] }
 0x1fd   : > { %v3623_v17 = vadd.f32 %v8304_v48, %v3622_v15  ;;  %v6024_v15 = vor.u32 %v7238_v1, %v6023_v0 }
 0x1fe   : > { %v2837_v18 = vpop.f32.mrf.mxu0 }
 0x1ff   : > { %v3791_v16 = vpop.f32.mrf.mxu3  ;;  %v3006_v20 = vpop.f32.mrf.mxu1  ;;  %v2838_v21 = vadd.f32 %v8304_v48, %v2837_v18 }
 0x200   : > { %v3792_v22 = vadd.f32 %v3791_v16, %v3623_v17  ;;  %v6028_v16 = vor.u32 %v7237_v2, %v6025_v6 }
 0x201   : > { %v3007_v23 = vadd.f32 %v3006_v20, %v2838_v21  ;;  %v6408_v21 = vor.u32 %v7302_v8, %v6407_v7 }
 0x202   : > { %v3939_v29 = vmax.f32 %v3792_v22, 0.0  ;;  %v6412_v22 = vor.u32 %v7301_v9, %v6409_v10 }
 0x203   : > { %v3153_v51 = vmax.f32 %v3007_v23, 0.0 }
 0x204   : > { %v8389_v36 = vmax.f32 %v3152_v28, %v3939_v29  ;;  %v3624_v37 = vpop.f32.mrf.mxu2 }
 0x205   : > { %v3625_v42 = vadd.f32 %v8304_v48, %v3624_v37 }
 0x206   : > { %v2840_v43 = vpop.f32.mrf.mxu0 }
 0x207   : > { %v3793_v38 = vpop.f32.mrf.mxu3  ;;  %v3009_v44 = vpop.f32.mrf.mxu1  ;;  %v2841_v47 = vadd.f32 %v8304_v48, %v2840_v43  ;;  %v7239_v43 = vld [vmem:[%s8195_s17 + $0xf4] sm:$0xf] }
 0x208   : > { %v3794_v49 = vadd.f32 %v3793_v38, %v3625_v42  ;;  %v7240_v42 = vld [vmem:[%s8195_s17 + $0xf4] sm:$0xf0] }
 0x209   : > { %v3010_v50 = vadd.f32 %v3009_v44, %v2841_v47  ;;  %2879 = vmatmul.bf16.gmra.mxu0 %v6016_v39  ;;  %3666 = vmatmul.bf16.gmra.mxu2 %v6400_v45  ;;  %v6415_v47 = vld [vmem:[%s8195_s17 + $0x2f0] sm:$0xf] }
 0x20a   : > { %3048 = vmatmul.bf16.gmra.mxu1 %v6020_v40  ;;  %v3940_v52 = vmax.f32 %v3794_v49, 0.0  ;;  %v6031_v40 = vld [vmem:[%s8195_s17 + $0xf0] sm:$0xf]  ;;  %v7304_v49 = vld [vmem:[%s8195_s17 + $0x2f4] sm:$0xf0] }
 0x20b   : > { %v3154_v3 = vmax.f32 %v3010_v50, 0.0  ;;  %v7303_v50 = vld [vmem:[%s8195_s17 + $0x2f4] sm:$0xf] }
 0x20c   : > { %3835 = vmatmul.bf16.gmra.mxu3 %v6404_v46  ;;  %v8393_v53 = vmax.f32 %v3153_v51, %v3940_v52  ;;  %v3627_v55 = vpop.f32.mrf.mxu2  ;;  %v6033_v46 = vld [vmem:[%s8195_s17 + $0xf8] sm:$0xf0] }
 0x20d   : > { %v3628_v57 = vadd.f32 %v8304_v48, %v3627_v55  ;;  %v6417_v51 = vld [vmem:[%s8195_s17 + $0x2f8] sm:$0xf0] }
 0x20e   : > { %v2842_v58 = vpop.f32.mrf.mxu0  ;;  %v6420_v0 = vor.u32 %v7303_v50, %v6417_v51 }
 0x20f   : > { %v3796_v56 = vpop.f32.mrf.mxu3  ;;  %v3011_v59 = vpop.f32.mrf.mxu1  ;;  %v2843_v60 = vadd.f32 %v8304_v48, %v2842_v58  ;;  %v6036_v58 = vor.u32 %v7239_v43, %v6033_v46 }
 0x210   : > { %v3797_v61 = vadd.f32 %v3796_v56, %v3628_v57  ;;  %v6032_v57 = vor.u32 %v7240_v42, %v6031_v40 }
 0x211   : > { %v3012_v63 = vadd.f32 %v3011_v59, %v2843_v60 }
 0x212   : > { %v3941_v4 = vmax.f32 %v3797_v61, 0.0 }
 0x213   : > { %v3155_v27 = vmax.f32 %v3012_v63, 0.0  ;;  %v6416_v63 = vor.u32 %v7304_v49, %v6415_v47 }
 0x214   : > { %v8405_v11 = vmax.f32 %v3154_v3, %v3941_v4  ;;  %v3629_v12 = vpop.f32.mrf.mxu2 }
 0x215   : > { %v3630_v17 = vadd.f32 %v8304_v48, %v3629_v12 }
 0x216   : > { %v2845_v18 = vpop.f32.mrf.mxu0 }
 0x217   : > { %v3798_v13 = vpop.f32.mrf.mxu3  ;;  %v3014_v20 = vpop.f32.mrf.mxu1  ;;  %v2846_v23 = vadd.f32 %v8304_v48, %v2845_v18  ;;  %v6039_v18 = vld [vmem:[%s8195_s17 + $0x100] sm:$0xf] }
 0x218   : > { %v3799_v24 = vadd.f32 %v3798_v13, %v3630_v17 }
 0x219   : > { %v3015_v26 = vadd.f32 %v3014_v20, %v2846_v23  ;;  %2884 = vmatmul.bf16.gmra.mxu0 %v6024_v15  ;;  %3671 = vmatmul.bf16.gmra.mxu2 %v6408_v21  ;;  %v7242_v20 = vld [vmem:[%s8195_s17 + $0x104] sm:$0xf0]  ;;  %v7241_v21 = vld [vmem:[%s8195_s17 + $0x104] sm:$0xf] }
 0x21a   : > { %3053 = vmatmul.bf16.gmra.mxu1 %v6028_v16  ;;  %v3942_v28 = vmax.f32 %v3799_v24, 0.0  ;;  %v6041_v24 = vld [vmem:[%s8195_s17 + $0x108] sm:$0xf0] }
 0x21b   : > { %v3156_v44 = vmax.f32 %v3015_v26, 0.0  ;;  %v6423_v26 = vld [vmem:[%s8195_s17 + $0x300] sm:$0xf] }
 0x21c   : > { %3840 = vmatmul.bf16.gmra.mxu3 %v6412_v22  ;;  %v8409_v29 = vmax.f32 %v3155_v27, %v3942_v28  ;;  %v3632_v30 = vpop.f32.mrf.mxu2  ;;  %v7306_v27 = vld [vmem:[%s8195_s17 + $0x304] sm:$0xf0]  ;;  %v7305_v28 = vld [vmem:[%s8195_s17 + $0x304] sm:$0xf] }
 0x21d   : > { %v3633_v32 = vadd.f32 %v8304_v48, %v3632_v30  ;;  %v6425_v30 = vld [vmem:[%s8195_s17 + $0x308] sm:$0xf0]  ;;  %v6424_v42 = vor.u32 %v7306_v27, %v6423_v26 }
 0x21e   : > { %v2847_v33 = vpop.f32.mrf.mxu0  ;;  %v6428_v43 = vor.u32 %v7305_v28, %v6425_v30 }
 0x21f   : > { %v3801_v31 = vpop.f32.mrf.mxu3  ;;  %v3016_v35 = vpop.f32.mrf.mxu1  ;;  %v2848_v37 = vadd.f32 %v8304_v48, %v2847_v33 }
 0x220   : > { %v3802_v38 = vadd.f32 %v3801_v31, %v3633_v32 }
 0x221   : > { %v3017_v39 = vadd.f32 %v3016_v35, %v2848_v37  ;;  %v6040_v35 = vor.u32 %v7242_v20, %v6039_v18  ;;  %v6044_v37 = vor.u32 %v7241_v21, %v6041_v24 }
 0x222   : > { %v3943_v45 = vmax.f32 %v3802_v38, 0.0 }
 0x223   : > { %v3157_v4 = vmax.f32 %v3017_v39, 0.0 }
 0x224   : > { %v8421_v52 = vmax.f32 %v3156_v44, %v3943_v45  ;;  %v3634_v55 = vpop.f32.mrf.mxu2 }
 0x225   : > { %v3635_v59 = vadd.f32 %v8304_v48, %v3634_v55 }
 0x226   : > { %v2850_v60 = vpop.f32.mrf.mxu0 }
 0x227   : > { %v3803_v56 = vpop.f32.mrf.mxu3  ;;  %v3019_v61 = vpop.f32.mrf.mxu1  ;;  %v2851_v1 = vadd.f32 %v8304_v48, %v2850_v60 }
 0x228   : > { %v3804_v2 = vadd.f32 %v3803_v56, %v3635_v59 }
 0x229   : > { %v3020_v3 = vadd.f32 %v3019_v61, %v2851_v1  ;;  %2889 = vmatmul.bf16.gmra.mxu0 %v6032_v57  ;;  %3676 = vmatmul.bf16.gmra.mxu2 %v6416_v63  ;;  %v6047_v63 = vld [vmem:[%s8195_s17 + $0x110] sm:$0xf]  ;;  %v7243_v1 = vld [vmem:[%s8195_s17 + $0x114] sm:$0xf] }
 0x22a   : > { %3058 = vmatmul.bf16.gmra.mxu1 %v6036_v58  ;;  %v3944_v6 = vmax.f32 %v3804_v2, 0.0 }
 0x22b   : > { %v3158_v22 = vmax.f32 %v3020_v3, 0.0 }
 0x22c   : > { %3845 = vmatmul.bf16.gmra.mxu3 %v6420_v0  ;;  %v8425_v7 = vmax.f32 %v3157_v4, %v3944_v6  ;;  %v3637_v8 = vpop.f32.mrf.mxu2  ;;  %v7244_v0 = vld [vmem:[%s8195_s17 + $0x114] sm:$0xf0]  ;;  %v6049_v4 = vld [vmem:[%s8195_s17 + $0x118] sm:$0xf0]  ;;  %v6431_v6 = vld [vmem:[%s8195_s17 + $0x310] sm:$0xf] }
 0x22d   : > { %v3638_v10 = vadd.f32 %v8304_v48, %v3637_v8  ;;  %v7308_v8 = vld [vmem:[%s8195_s17 + $0x314] sm:$0xf0] }
 0x22e   : > { %v2852_v12 = vpop.f32.mrf.mxu0 }
 0x22f   : > { %v3806_v9 = vpop.f32.mrf.mxu3  ;;  %v3021_v13 = vpop.f32.mrf.mxu1  ;;  %v2853_v15 = vadd.f32 %v8304_v48, %v2852_v12 }
 0x230   : > { %v3807_v16 = vadd.f32 %v3806_v9, %v3638_v10  ;;  %v7307_v9 = vld [vmem:[%s8195_s17 + $0x314] sm:$0xf]  ;;  %v6433_v10 = vld [vmem:[%s8195_s17 + $0x318] sm:$0xf0] }
 0x231   : > { %v3022_v17 = vadd.f32 %v3021_v13, %v2853_v15 }
 0x232   : > { %v3945_v23 = vmax.f32 %v3807_v16, 0.0  ;;  %v6048_v16 = vor.u32 %v7244_v0, %v6047_v63 }
 0x233   : > { %v3159_v47 = vmax.f32 %v3022_v17, 0.0  ;;  %v6052_v17 = vor.u32 %v7243_v1, %v6049_v4 }
 0x234   : > { %v8437_v31 = vmax.f32 %v3158_v22, %v3945_v23  ;;  %v3639_v32 = vpop.f32.mrf.mxu2  ;;  %v6432_v22 = vor.u32 %v7308_v8, %v6431_v6  ;;  %v6436_v23 = vor.u32 %v7307_v9, %v6433_v10 }
 0x235   : > { %v3640_v38 = vadd.f32 %v8304_v48, %v3639_v32 }
 0x236   : > { %v2855_v39 = vpop.f32.mrf.mxu0 }
 0x237   : > { %v3808_v33 = vpop.f32.mrf.mxu3  ;;  %v3024_v40 = vpop.f32.mrf.mxu1  ;;  %v2856_v44 = vadd.f32 %v8304_v48, %v2855_v39 }
 0x238   : > { %v3809_v45 = vadd.f32 %v3808_v33, %v3640_v38 }
 0x239   : > { %v3025_v46 = vadd.f32 %v3024_v40, %v2856_v44  ;;  %2894 = vmatmul.bf16.gmra.mxu0 %v6040_v35  ;;  %3681 = vmatmul.bf16.gmra.mxu2 %v6424_v42  ;;  %v6055_v44 = vld [vmem:[%s8195_s17 + $0x120] sm:$0xf] }
 0x23a   : > { %3063 = vmatmul.bf16.gmra.mxu1 %v6044_v37  ;;  %v3946_v49 = vmax.f32 %v3809_v45, 0.0  ;;  %v7246_v45 = vld [vmem:[%s8195_s17 + $0x124] sm:$0xf0] }
 0x23b   : > { %v3160_v2 = vmax.f32 %v3025_v46, 0.0  ;;  %v7245_v46 = vld [vmem:[%s8195_s17 + $0x124] sm:$0xf]  ;;  %v6056_v63 = vor.u32 %v7246_v45, %v6055_v44 }
 0x23c   : > { %3850 = vmatmul.bf16.gmra.mxu3 %v6428_v43  ;;  %v8441_v50 = vmax.f32 %v3159_v47, %v3946_v49  ;;  %v3642_v51 = vpop.f32.mrf.mxu2 }
 0x23d   : > { %v3643_v56 = vadd.f32 %v8304_v48, %v3642_v51  ;;  %v6057_v51 = vld [vmem:[%s8195_s17 + $0x128] sm:$0xf0] }
 0x23e   : > { %v2857_v57 = vpop.f32.mrf.mxu0  ;;  %v6060_v0 = vor.u32 %v7245_v46, %v6057_v51 }
 0x23f   : > { %v3811_v55 = vpop.f32.mrf.mxu3  ;;  %v3026_v58 = vpop.f32.mrf.mxu1  ;;  %v2858_v59 = vadd.f32 %v8304_v48, %v2857_v57  ;;  %v7309_v57 = vld [vmem:[%s8195_s17 + $0x324] sm:$0xf] }
 0x240   : > { %v3812_v60 = vadd.f32 %v3811_v55, %v3643_v56  ;;  %v6439_v55 = vld [vmem:[%s8195_s17 + $0x320] sm:$0xf]  ;;  %v7310_v56 = vld [vmem:[%s8195_s17 + $0x324] sm:$0xf0] }
 0x241   : > { %v3027_v61 = vadd.f32 %v3026_v58, %v2858_v59  ;;  %v6441_v58 = vld [vmem:[%s8195_s17 + $0x328] sm:$0xf0]  ;;  %v6440_v4 = vor.u32 %v7310_v56, %v6439_v55 }
 0x242   : > { %v3947_v3 = vmax.f32 %v3812_v60, 0.0  ;;  %v6444_v6 = vor.u32 %v7309_v57, %v6441_v58 }
 0x243   : > { %v3161_v28 = vmax.f32 %v3027_v61, 0.0 }
 0x244   : > { %v8453_v12 = vmax.f32 %v3160_v2, %v3947_v3  ;;  %v3644_v13 = vpop.f32.mrf.mxu2 }
 0x245   : > { %v3645_v18 = vadd.f32 %v8304_v48, %v3644_v13 }
 0x246   : > { %v2860_v20 = vpop.f32.mrf.mxu0 }
 0x247   : > { %v3813_v15 = vpop.f32.mrf.mxu3  ;;  %v3029_v21 = vpop.f32.mrf.mxu1  ;;  %v2861_v24 = vadd.f32 %v8304_v48, %v2860_v20 }
 0x248   : > { %v3814_v26 = vadd.f32 %v3813_v15, %v3645_v18 }
 0x249   : > { %v3030_v27 = vadd.f32 %v3029_v21, %v2861_v24  ;;  %2899 = vmatmul.bf16.gmra.mxu0 %v6048_v16  ;;  %3686 = vmatmul.bf16.gmra.mxu2 %v6432_v22 }
 0x24a   : > { %3068 = vmatmul.bf16.gmra.mxu1 %v6052_v17  ;;  %v3948_v30 = vmax.f32 %v3814_v26, 0.0 }
 0x24b   : > { %v3162_v47 = vmax.f32 %v3030_v27, 0.0  ;;  %v6063_v27 = vld [vmem:[%s8195_s17 + $0x130] sm:$0xf] }
 0x24c   : > { %3855 = vmatmul.bf16.gmra.mxu3 %v6436_v23  ;;  %v8457_v32 = vmax.f32 %v3161_v28, %v3948_v30  ;;  %v3647_v33 = vpop.f32.mrf.mxu2  ;;  %v7248_v28 = vld [vmem:[%s8195_s17 + $0x134] sm:$0xf0]  ;;  %v7247_v30 = vld [vmem:[%s8195_s17 + $0x134] sm:$0xf] }
 0x24d   : > { %v3648_v37 = vadd.f32 %v8304_v48, %v3647_v33  ;;  %v6064_v46 = vor.u32 %v7248_v28, %v6063_v27  ;;  %v6457_v27 = vld [vmem:[%s8195_s17 + $0x348] sm:$0xf0] }
 0x24e   : > { %v2862_v38 = vpop.f32.mrf.mxu0 }
 0x24f   : > { %v3816_v35 = vpop.f32.mrf.mxu3  ;;  %v3031_v39 = vpop.f32.mrf.mxu1  ;;  %v2863_v40 = vadd.f32 %v8304_v48, %v2862_v38  ;;  %v6447_v38 = vld [vmem:[%s8195_s17 + $0x330] sm:$0xf] }
 0x250   : > { %v3817_v42 = vadd.f32 %v3816_v35, %v3648_v37  ;;  %v6065_v37 = vld [vmem:[%s8195_s17 + $0x138] sm:$0xf0] }
 0x251   : > { %v3032_v43 = vadd.f32 %v3031_v39, %v2863_v40  ;;  %v7312_v39 = vld [vmem:[%s8195_s17 + $0x334] sm:$0xf0]  ;;  %v7311_v40 = vld [vmem:[%s8195_s17 + $0x334] sm:$0xf] }
 0x252   : > { %v3949_v49 = vmax.f32 %v3817_v42, 0.0  ;;  %v6449_v42 = vld [vmem:[%s8195_s17 + $0x338] sm:$0xf0]  ;;  %v6448_v56 = vor.u32 %v7312_v39, %v6447_v38 }
 0x253   : > { %v3163_v13 = vmax.f32 %v3032_v43, 0.0  ;;  %v6452_v57 = vor.u32 %v7311_v40, %v6449_v42 }
 0x254   : > { %v8469_v59 = vmax.f32 %v3162_v47, %v3949_v49  ;;  %v3649_v60 = vpop.f32.mrf.mxu2  ;;  %v6068_v47 = vor.u32 %v7247_v30, %v6065_v37 }
 0x255   : > { %v3650_v1 = vadd.f32 %v8304_v48, %v3649_v60 }
 0x256   : > { %v2865_v2 = vpop.f32.mrf.mxu0 }
 0x257   : > { %v3818_v61 = vpop.f32.mrf.mxu3  ;;  %v3034_v3 = vpop.f32.mrf.mxu1  ;;  %v2866_v8 = vadd.f32 %v8304_v48, %v2865_v2 }
 0x258   : > { %v3819_v9 = vadd.f32 %v3818_v61, %v3650_v1 }
 0x259   : > { %v3035_v10 = vadd.f32 %v3034_v3, %v2866_v8  ;;  %2904 = vmatmul.bf16.gmra.mxu0 %v6056_v63  ;;  %3691 = vmatmul.bf16.gmra.mxu2 %v6440_v4 }
 0x25a   : > { %3073 = vmatmul.bf16.gmra.mxu1 %v6060_v0  ;;  %v3950_v15 = vmax.f32 %v3819_v9, 0.0 }
 0x25b   : > { %v3164_v33 = vmax.f32 %v3035_v10, 0.0 }
 0x25c   : > { %3860 = vmatmul.bf16.gmra.mxu3 %v6444_v6  ;;  %v8473_v16 = vmax.f32 %v3163_v13, %v3950_v15  ;;  %v3652_v17 = vpop.f32.mrf.mxu2  ;;  %v6071_v15 = vld [vmem:[%s8195_s17 + $0x140] sm:$0xf] }
 0x25d   : > { %v3653_v20 = vadd.f32 %v8304_v48, %v3652_v17  ;;  %v7250_v17 = vld [vmem:[%s8195_s17 + $0x144] sm:$0xf0] }
 0x25e   : > { %v2867_v21 = vpop.f32.mrf.mxu0 }
 0x25f   : > { %v3821_v18 = vpop.f32.mrf.mxu3  ;;  %v3036_v22 = vpop.f32.mrf.mxu1  ;;  %v2868_v23 = vadd.f32 %v8304_v48, %v2867_v21 }
 0x260   : > { %v3822_v24 = vadd.f32 %v3821_v18, %v3653_v20  ;;  %v7249_v18 = vld [vmem:[%s8195_s17 + $0x144] sm:$0xf] }
 0x261   : > { %v3037_v26 = vadd.f32 %v3036_v22, %v2868_v23  ;;  %v6073_v22 = vld [vmem:[%s8195_s17 + $0x148] sm:$0xf0]  ;;  %v6455_v23 = vld [vmem:[%s8195_s17 + $0x340] sm:$0xf] }
 0x262   : > { %v3951_v35 = vmax.f32 %v3822_v24, 0.0  ;;  %v7314_v24 = vld [vmem:[%s8195_s17 + $0x344] sm:$0xf0]  ;;  %v6076_v37 = vor.u32 %v7249_v18, %v6073_v22  ;;  %v6465_v18 = vld [vmem:[%s8195_s17 + $0x358] sm:$0xf0] }
 0x263   : > { %v3165_v63 = vmax.f32 %v3037_v26, 0.0  ;;  %v7313_v26 = vld [vmem:[%s8195_s17 + $0x344] sm:$0xf]  ;;  %v6456_v42 = vor.u32 %v7314_v24, %v6455_v23 }
 0x264   : > { %v8485_v43 = vmax.f32 %v3164_v33, %v3951_v35  ;;  %v3654_v44 = vpop.f32.mrf.mxu2  ;;  %v6072_v35 = vor.u32 %v7250_v17, %v6071_v15  ;;  %v7316_v15 = vld [vmem:[%s8195_s17 + $0x354] sm:$0xf0]  ;;  %v7315_v17 = vld [vmem:[%s8195_s17 + $0x354] sm:$0xf] }
 0x265   : > { %v3655_v49 = vadd.f32 %v8304_v48, %v3654_v44  ;;  %v6460_v44 = vor.u32 %v7313_v26, %v6457_v27 }
 0x266   : > { %v2870_v51 = vpop.f32.mrf.mxu0 }
 0x267   : > { %v3823_v45 = vpop.f32.mrf.mxu3  ;;  %v3039_v55 = vpop.f32.mrf.mxu1  ;;  %v2871_v58 = vadd.f32 %v8304_v48, %v2870_v51 }
 0x268   : > { %v3824_v60 = vadd.f32 %v3823_v45, %v3655_v49 }
 0x269   : > { %v3040_v61 = vadd.f32 %v3039_v55, %v2871_v58  ;;  %2909 = vmatmul.bf16.gmra.mxu0 %v6064_v46  ;;  %3696 = vmatmul.bf16.gmra.mxu2 %v6448_v56 }
 0x26a   : > { %3078 = vmatmul.bf16.gmra.mxu1 %v6068_v47  ;;  %v3952_v0 = vmax.f32 %v3824_v60, 0.0 }
 0x26b   : > { %v3166_v20 = vmax.f32 %v3040_v61, 0.0 }
 0x26c   : > { %3865 = vmatmul.bf16.gmra.mxu3 %v6452_v57  ;;  %v8489_v1 = vmax.f32 %v3165_v63, %v3952_v0  ;;  %v3657_v2 = vpop.f32.mrf.mxu2 }
 0x26d   : > { %v3658_v4 = vadd.f32 %v8304_v48, %v3657_v2 }
 0x26e   : > { %v2872_v6 = vpop.f32.mrf.mxu0 }
 0x26f   : > { %v3826_v3 = vpop.f32.mrf.mxu3  ;;  %v3041_v8 = vpop.f32.mrf.mxu1  ;;  %v2873_v9 = vadd.f32 %v8304_v48, %v2872_v6  ;;  %v7251_v6 = vld [vmem:[%s8195_s17 + $0x154] sm:$0xf] }
 0x270   : > { %v3827_v10 = vadd.f32 %v3826_v3, %v3658_v4  ;;  %v6079_v3 = vld [vmem:[%s8195_s17 + $0x150] sm:$0xf]  ;;  %v7252_v4 = vld [vmem:[%s8195_s17 + $0x154] sm:$0xf0] }
 0x271   : > { %v3042_v13 = vadd.f32 %v3041_v8, %v2873_v9  ;;  %v6080_v23 = vor.u32 %v7252_v4, %v6079_v3  ;;  %v6089_v3 = vld [vmem:[%s8195_s17 + $0x168] sm:$0xf0]  ;;  %v6471_v4 = vld [vmem:[%s8195_s17 + $0x360] sm:$0xf] }
 0x272   : > { %v3953_v21 = vmax.f32 %v3827_v10, 0.0  ;;  %v6081_v10 = vld [vmem:[%s8195_s17 + $0x158] sm:$0xf0] }
 0x273   : > { %v3167_v49 = vmax.f32 %v3042_v13, 0.0  ;;  %v6463_v13 = vld [vmem:[%s8195_s17 + $0x350] sm:$0xf]  ;;  %v6084_v24 = vor.u32 %v7251_v6, %v6081_v10  ;;  %v7318_v6 = vld [vmem:[%s8195_s17 + $0x364] sm:$0xf0] }
 0x274   : > { %v8501_v28 = vmax.f32 %v3166_v20, %v3953_v21  ;;  %v3659_v30 = vpop.f32.mrf.mxu2 }
 0x275   : > { %v3660_v38 = vadd.f32 %v8304_v48, %v3659_v30 }
 0x276   : > { %v2875_v39 = vpop.f32.mrf.mxu0 }
 0x277   : > { %v3828_v33 = vpop.f32.mrf.mxu3  ;;  %v3044_v40 = vpop.f32.mrf.mxu1  ;;  %v2876_v45 = vadd.f32 %v8304_v48, %v2875_v39 }
 0x278   : > { %v3829_v46 = vadd.f32 %v3828_v33, %v3660_v38  ;;  %v6464_v33 = vor.u32 %v7316_v15, %v6463_v13 }
 0x279   : > { %v3045_v47 = vadd.f32 %v3044_v40, %v2876_v45  ;;  %2914 = vmatmul.bf16.gmra.mxu0 %v6072_v35  ;;  %3701 = vmatmul.bf16.gmra.mxu2 %v6456_v42  ;;  %v6468_v35 = vor.u32 %v7315_v17, %v6465_v18 }
 0x27a   : > { %3083 = vmatmul.bf16.gmra.mxu1 %v6076_v37  ;;  %v3954_v51 = vmax.f32 %v3829_v46, 0.0 }
 0x27b   : > { %v3168_v8 = vmax.f32 %v3045_v47, 0.0 }
 0x27c   : > { %3870 = vmatmul.bf16.gmra.mxu3 %v6460_v44  ;;  %v8505_v55 = vmax.f32 %v3167_v49, %v3954_v51  ;;  %v3662_v56 = vpop.f32.mrf.mxu2 }
 0x27d   : > { %v3663_v58 = vadd.f32 %v8304_v48, %v3662_v56 }
 0x27e   : > { %v2877_v60 = vpop.f32.mrf.mxu0 }
 0x27f   : > { %v3831_v57 = vpop.f32.mrf.mxu3  ;;  %v3046_v61 = vpop.f32.mrf.mxu1  ;;  %v2878_v63 = vadd.f32 %v8304_v48, %v2877_v60  ;;  %v6087_v60 = vld [vmem:[%s8195_s17 + $0x160] sm:$0xf] }
 0x280   : > { %v3832_v0 = vadd.f32 %v3831_v57, %v3663_v58 }
 0x281   : > { %v3047_v2 = vadd.f32 %v3046_v61, %v2878_v63  ;;  %v7254_v61 = vld [vmem:[%s8195_s17 + $0x164] sm:$0xf0]  ;;  %v7253_v63 = vld [vmem:[%s8195_s17 + $0x164] sm:$0xf] }
 0x282   : > { %v3955_v9 = vmax.f32 %v3832_v0, 0.0  ;;  %v6088_v17 = vor.u32 %v7254_v61, %v6087_v60  ;;  %v6092_v18 = vor.u32 %v7253_v63, %v6089_v3  ;;  %v6097_v63 = vld [vmem:[%s8195_s17 + $0x178] sm:$0xf0]  ;;  %v7319_v3 = vld [vmem:[%s8195_s17 + $0x374] sm:$0xf] }
 0x283   : > { %v3169_v40 = vmax.f32 %v3047_v2, 0.0 }
 0x284   : > { %v8517_v20 = vmax.f32 %v3168_v8, %v3955_v9  ;;  %v3664_v21 = vpop.f32.mrf.mxu2  ;;  %v7317_v8 = vld [vmem:[%s8195_s17 + $0x364] sm:$0xf]  ;;  %v6473_v9 = vld [vmem:[%s8195_s17 + $0x368] sm:$0xf0] }
 0x285   : > { %v3665_v26 = vadd.f32 %v8304_v48, %v3664_v21 }
 0x286   : > { %v2880_v27 = vpop.f32.mrf.mxu0 }
 0x287   : > { %v3833_v22 = vpop.f32.mrf.mxu3  ;;  %v3049_v30 = vpop.f32.mrf.mxu1  ;;  %v2881_v37 = vadd.f32 %v8304_v48, %v2880_v27  ;;  %v8526_v48 = vld [vmem:[%s9369_s2] ss:$0 sm:$0xff] }
 0x288   : > { %v3834_v38 = vadd.f32 %v3833_v22, %v3665_v26  ;;  %v6476_v26 = vor.u32 %v7317_v8, %v6473_v9 }
 0x289   : > { %v3050_v39 = vadd.f32 %v3049_v30, %v2881_v37  ;;  %2919 = vmatmul.bf16.gmra.mxu0 %v6080_v23  ;;  %3706 = vmatmul.bf16.gmra.mxu2 %v6464_v33 }
 0x28a   : > { %3088 = vmatmul.bf16.gmra.mxu1 %v6084_v24  ;;  %v3956_v42 = vmax.f32 %v3834_v38, 0.0  ;;  %v6472_v24 = vor.u32 %v7318_v6, %v6471_v4  ;;  %v6481_v4 = vld [vmem:[%s8195_s17 + $0x378] sm:$0xf0] }
 0x28b   : > { %v3170_v0 = vmax.f32 %v3050_v39, 0.0 }
 0x28c   : > { %3875 = vmatmul.bf16.gmra.mxu3 %v6468_v35  ;;  %v8521_v44 = vmax.f32 %v3169_v40, %v3956_v42  ;;  %v3667_v45 = vpop.f32.mrf.mxu2 }
 0x28d   : > { %v3668_v47 = vadd.f32 %v8526_v48, %v3667_v45 }
 0x28e   : > { %v2882_v49 = vpop.f32.mrf.mxu0 }
 0x28f   : > { %v3836_v46 = vpop.f32.mrf.mxu3  ;;  %v3051_v51 = vpop.f32.mrf.mxu1  ;;  %v2883_v56 = vadd.f32 %v8526_v48, %v2882_v49 }
 0x290   : > { %v3837_v57 = vadd.f32 %v3836_v46, %v3668_v47 }
 0x291   : > { %v3052_v58 = vadd.f32 %v3051_v51, %v2883_v56  ;;  %v6095_v56 = vld [vmem:[%s8195_s17 + $0x170] sm:$0xf] }
 0x292   : > { %v3957_v2 = vmax.f32 %v3837_v57, 0.0  ;;  %v7256_v57 = vld [vmem:[%s8195_s17 + $0x174] sm:$0xf0] }
 0x293   : > { %v3171_v35 = vmax.f32 %v3052_v58, 0.0  ;;  %v7255_v58 = vld [vmem:[%s8195_s17 + $0x174] sm:$0xf] }
 0x294   : > { %v8538_v10 = vmax.f32 %v3170_v0, %v3957_v2  ;;  %v3669_v13 = vpop.f32.mrf.mxu2  ;;  %v6479_v0 = vld [vmem:[%s8195_s17 + $0x370] sm:$0xf]  ;;  %v7320_v2 = vld [vmem:[%s8195_s17 + $0x374] sm:$0xf0] }
 0x295   : > { %v3670_v21 = vadd.f32 %v8526_v48, %v3669_v13  ;;  %v6096_v13 = vor.u32 %v7256_v57, %v6095_v56  ;;  %v7258_v56 = vld [vmem:[%s8195_s17 + $0x184] sm:$0xf0]  ;;  %v7257_v57 = vld [vmem:[%s8195_s17 + $0x184] sm:$0xf] }
 0x296   : > { %v2885_v22 = vpop.f32.mrf.mxu0 }
 0x297   : > { %v3838_v15 = vpop.f32.mrf.mxu3  ;;  %v3054_v23 = vpop.f32.mrf.mxu1  ;;  %v2886_v27 = vadd.f32 %v8526_v48, %v2885_v22  ;;  %v6480_v22 = vor.u32 %v7320_v2, %v6479_v0  ;;  %v7322_v0 = vld [vmem:[%s8195_s17 + $0x384] sm:$0xf0]  ;;  %v7321_v2 = vld [vmem:[%s8195_s17 + $0x384] sm:$0xf] }
 0x298   : > { %v3839_v30 = vadd.f32 %v3838_v15, %v3670_v21  ;;  %v6100_v15 = vor.u32 %v7255_v58, %v6097_v63  ;;  %v6487_v63 = vld [vmem:[%s8195_s17 + $0x380] sm:$0xf] }
 0x299   : > { %v3055_v33 = vadd.f32 %v3054_v23, %v2886_v27  ;;  %2924 = vmatmul.bf16.gmra.mxu0 %v6088_v17  ;;  %3711 = vmatmul.bf16.gmra.mxu2 %v6472_v24  ;;  %v6484_v23 = vor.u32 %v7319_v3, %v6481_v4  ;;  %v6489_v3 = vld [vmem:[%s8195_s17 + $0x388] sm:$0xf0] }
 0x29a   : > { %3093 = vmatmul.bf16.gmra.mxu1 %v6092_v18  ;;  %v3958_v37 = vmax.f32 %v3839_v30, 0.0 }
 0x29b   : > { %v3172_v60 = vmax.f32 %v3055_v33, 0.0 }
 0x29c   : > { %3880 = vmatmul.bf16.gmra.mxu3 %v6476_v26  ;;  %v8542_v38 = vmax.f32 %v3171_v35, %v3958_v37  ;;  %v3672_v39 = vpop.f32.mrf.mxu2 }
 0x29d   : > { %v3673_v42 = vadd.f32 %v8526_v48, %v3672_v39 }
 0x29e   : > { %v2887_v45 = vpop.f32.mrf.mxu0 }
 0x29f   : > { %v3841_v40 = vpop.f32.mrf.mxu3  ;;  %v3056_v46 = vpop.f32.mrf.mxu1  ;;  %v2888_v47 = vadd.f32 %v8526_v48, %v2887_v45 }
 0x2a0   : > { %v3842_v49 = vadd.f32 %v3841_v40, %v3673_v42 }
 0x2a1   : > { %v3057_v51 = vadd.f32 %v3056_v46, %v2888_v47 }
 0x2a2   : > { %v3959_v61 = vmax.f32 %v3842_v49, 0.0 }
 0x2a3   : > { %v3173_v30 = vmax.f32 %v3057_v51, 0.0  ;;  %v6103_v51 = vld [vmem:[%s8195_s17 + $0x180] sm:$0xf] }
 0x2a4   : > { %v8554_v6 = vmax.f32 %v3172_v60, %v3959_v61  ;;  %v3674_v8 = vpop.f32.mrf.mxu2  ;;  %v6105_v61 = vld [vmem:[%s8195_s17 + $0x188] sm:$0xf0] }
 0x2a5   : > { %v3675_v17 = vadd.f32 %v8526_v48, %v3674_v8 }
 0x2a6   : > { %v2890_v18 = vpop.f32.mrf.mxu0 }
 0x2a7   : > { %v3843_v9 = vpop.f32.mrf.mxu3  ;;  %v3059_v21 = vpop.f32.mrf.mxu1  ;;  %v2891_v24 = vadd.f32 %v8526_v48, %v2890_v18 }
 0x2a8   : > { %v3844_v26 = vadd.f32 %v3843_v9, %v3675_v17 }
 0x2a9   : > { %v3060_v27 = vadd.f32 %v3059_v21, %v2891_v24  ;;  %2929 = vmatmul.bf16.gmra.mxu0 %v6096_v13  ;;  %3716 = vmatmul.bf16.gmra.mxu2 %v6480_v22  ;;  %v6104_v13 = vor.u32 %v7258_v56, %v6103_v51  ;;  %v6488_v22 = vor.u32 %v7322_v0, %v6487_v63  ;;  %v6111_v56 = vld [vmem:[%s8195_s17 + $0x190] sm:$0xf]  ;;  %v6113_v63 = vld [vmem:[%s8195_s17 + $0x198] sm:$0xf0] }
 0x2aa   : > { %3098 = vmatmul.bf16.gmra.mxu1 %v6100_v15  ;;  %v3960_v33 = vmax.f32 %v3844_v26, 0.0  ;;  %v6108_v15 = vor.u32 %v7257_v57, %v6105_v61  ;;  %v7260_v57 = vld [vmem:[%s8195_s17 + $0x194] sm:$0xf0]  ;;  %v6495_v0 = vld [vmem:[%s8195_s17 + $0x390] sm:$0xf] }
 0x2ab   : > { %v3174_v58 = vmax.f32 %v3060_v27, 0.0 }
 0x2ac   : > { %3885 = vmatmul.bf16.gmra.mxu3 %v6484_v23  ;;  %v8558_v35 = vmax.f32 %v3173_v30, %v3960_v33  ;;  %v3677_v37 = vpop.f32.mrf.mxu2  ;;  %v6492_v23 = vor.u32 %v7321_v2, %v6489_v3  ;;  %v7324_v2 = vld [vmem:[%s8195_s17 + $0x394] sm:$0xf0]  ;;  %v7323_v3 = vld [vmem:[%s8195_s17 + $0x394] sm:$0xf] }
 0x2ad   : > { %v3678_v40 = vadd.f32 %v8526_v48, %v3677_v37 }
 0x2ae   : > { %v2892_v42 = vpop.f32.mrf.mxu0 }
 0x2af   : > { %v3846_v39 = vpop.f32.mrf.mxu3  ;;  %v3061_v45 = vpop.f32.mrf.mxu1  ;;  %v2893_v46 = vadd.f32 %v8526_v48, %v2892_v42 }
 0x2b0   : > { %v3847_v47 = vadd.f32 %v3846_v39, %v3678_v40 }
 0x2b1   : > { %v3062_v49 = vadd.f32 %v3061_v45, %v2893_v46 }
 0x2b2   : > { %v3961_v60 = vmax.f32 %v3847_v47, 0.0 }
 0x2b3   : > { %v3175_v30 = vmax.f32 %v3062_v49, 0.0 }
 0x2b4   : > { %v8570_v4 = vmax.f32 %v3174_v58, %v3961_v60  ;;  %v3679_v8 = vpop.f32.mrf.mxu2  ;;  %v7259_v58 = vld [vmem:[%s8195_s17 + $0x194] sm:$0xf] }
 0x2b5   : > { %v3680_v17 = vadd.f32 %v8526_v48, %v3679_v8  ;;  %v6497_v8 = vld [vmem:[%s8195_s17 + $0x398] sm:$0xf0] }
 0x2b6   : > { %v2895_v18 = vpop.f32.mrf.mxu0 }
 0x2b7   : > { %v3848_v9 = vpop.f32.mrf.mxu3  ;;  %v3064_v21 = vpop.f32.mrf.mxu1  ;;  %v2896_v24 = vadd.f32 %v8526_v48, %v2895_v18  ;;  %v6116_v18 = vor.u32 %v7259_v58, %v6113_v63  ;;  %v7261_v63 = vld [vmem:[%s8195_s17 + $0x1a4] sm:$0xf] }
 0x2b8   : > { %v3849_v26 = vadd.f32 %v3848_v9, %v3680_v17  ;;  %v6112_v17 = vor.u32 %v7260_v57, %v6111_v56 }
 0x2b9   : > { %v3065_v27 = vadd.f32 %v3064_v21, %v2896_v24  ;;  %2934 = vmatmul.bf16.gmra.mxu0 %v6104_v13  ;;  %3721 = vmatmul.bf16.gmra.mxu2 %v6488_v22  ;;  %v6496_v24 = vor.u32 %v7324_v2, %v6495_v0 }
 0x2ba   : > { %3103 = vmatmul.bf16.gmra.mxu1 %v6108_v15  ;;  %v3962_v33 = vmax.f32 %v3849_v26, 0.0  ;;  %v6500_v26 = vor.u32 %v7323_v3, %v6497_v8  ;;  %v6121_v3 = vld [vmem:[%s8195_s17 + $0x1a8] sm:$0xf0]  ;;  %v6503_v8 = vld [vmem:[%s8195_s17 + $0x3a0] sm:$0xf] }
 0x2bb   : > { %v3176_v60 = vmax.f32 %v3065_v27, 0.0 }
 0x2bc   : > { %3890 = vmatmul.bf16.gmra.mxu3 %v6492_v23  ;;  %v8574_v37 = vmax.f32 %v3175_v30, %v3962_v33  ;;  %v3682_v39 = vpop.f32.mrf.mxu2 }
 0x2bd   : > { %v3683_v42 = vadd.f32 %v8526_v48, %v3682_v39 }
 0x2be   : > { %v2897_v45 = vpop.f32.mrf.mxu0 }
 0x2bf   : > { %v3851_v40 = vpop.f32.mrf.mxu3  ;;  %v3066_v46 = vpop.f32.mrf.mxu1  ;;  %v2898_v47 = vadd.f32 %v8526_v48, %v2897_v45 }
 0x2c0   : > { %v3852_v51 = vadd.f32 %v3851_v40, %v3683_v42 }
 0x2c1   : > { %v3067_v49 = vadd.f32 %v3066_v46, %v2898_v47 }
 0x2c2   : > { %v3963_v61 = vmax.f32 %v3852_v51, 0.0 }
 0x2c3   : > { %v3177_v39 = vmax.f32 %v3067_v49, 0.0 }
 0x2c4   : > { %v8586_v9 = vmax.f32 %v3176_v60, %v3963_v61  ;;  %v3684_v13 = vpop.f32.mrf.mxu2  ;;  %v6119_v60 = vld [vmem:[%s8195_s17 + $0x1a0] sm:$0xf]  ;;  %v7262_v61 = vld [vmem:[%s8195_s17 + $0x1a4] sm:$0xf0] }
 0x2c5   : > { %v3685_v21 = vadd.f32 %v8526_v48, %v3684_v13  ;;  %v7326_v13 = vld [vmem:[%s8195_s17 + $0x3a4] sm:$0xf0] }
 0x2c6   : > { %v2900_v22 = vpop.f32.mrf.mxu0 }
 0x2c7   : > { %v3853_v15 = vpop.f32.mrf.mxu3  ;;  %v3069_v23 = vpop.f32.mrf.mxu1  ;;  %v2901_v27 = vadd.f32 %v8526_v48, %v2900_v22 }
 0x2c8   : > { %v3854_v30 = vadd.f32 %v3853_v15, %v3685_v21  ;;  %v7325_v15 = vld [vmem:[%s8195_s17 + $0x3a4] sm:$0xf] }
 0x2c9   : > { %v3070_v33 = vadd.f32 %v3069_v23, %v2901_v27  ;;  %2939 = vmatmul.bf16.gmra.mxu0 %v6112_v17  ;;  %3726 = vmatmul.bf16.gmra.mxu2 %v6496_v24  ;;  %v6505_v17 = vld [vmem:[%s8195_s17 + $0x3a8] sm:$0xf0]  ;;  %v6120_v23 = vor.u32 %v7262_v61, %v6119_v60  ;;  %v6124_v24 = vor.u32 %v7261_v63, %v6121_v3  ;;  %v6127_v3 = vld [vmem:[%s8195_s17 + $0x1b0] sm:$0xf] }
 0x2ca   : > { %3108 = vmatmul.bf16.gmra.mxu1 %v6116_v18  ;;  %v3964_v40 = vmax.f32 %v3854_v30, 0.0 }
 0x2cb   : > { %v3178_v0 = vmax.f32 %v3070_v33, 0.0 }
 0x2cc   : > { %3895 = vmatmul.bf16.gmra.mxu3 %v6500_v26  ;;  %v8590_v42 = vmax.f32 %v3177_v39, %v3964_v40  ;;  %v3687_v45 = vpop.f32.mrf.mxu2  ;;  %v6504_v39 = vor.u32 %v7326_v13, %v6503_v8  ;;  %v6508_v40 = vor.u32 %v7325_v15, %v6505_v17  ;;  %v7264_v8 = vld [vmem:[%s8195_s17 + $0x1b4] sm:$0xf0]  ;;  %v7263_v13 = vld [vmem:[%s8195_s17 + $0x1b4] sm:$0xf] }
 0x2cd   : > { %v3688_v47 = vadd.f32 %v8526_v48, %v3687_v45 }
 0x2ce   : > { %v2902_v51 = vpop.f32.mrf.mxu0 }
 0x2cf   : > { %v3856_v46 = vpop.f32.mrf.mxu3  ;;  %v3071_v56 = vpop.f32.mrf.mxu1  ;;  %v2903_v57 = vadd.f32 %v8526_v48, %v2902_v51 }
 0x2d0   : > { %v3857_v58 = vadd.f32 %v3856_v46, %v3688_v47 }
 0x2d1   : > { %v3072_v49 = vadd.f32 %v3071_v56, %v2903_v57 }
 0x2d2   : > { %v3965_v2 = vmax.f32 %v3857_v58, 0.0 }
 0x2d3   : > { %v3179_v47 = vmax.f32 %v3072_v49, 0.0 }
 0x2d4   : > { %v8602_v18 = vmax.f32 %v3178_v0, %v3965_v2  ;;  %v3689_v21 = vpop.f32.mrf.mxu2 }
 0x2d5   : > { %v3690_v26 = vadd.f32 %v8526_v48, %v3689_v21  ;;  %v6129_v21 = vld [vmem:[%s8195_s17 + $0x1b8] sm:$0xf0] }
 0x2d6   : > { %v2905_v27 = vpop.f32.mrf.mxu0 }
 0x2d7   : > { %v3858_v22 = vpop.f32.mrf.mxu3  ;;  %v3074_v30 = vpop.f32.mrf.mxu1  ;;  %v2906_v33 = vadd.f32 %v8526_v48, %v2905_v27 }
 0x2d8   : > { %v3859_v45 = vadd.f32 %v3858_v22, %v3690_v26  ;;  %v6511_v22 = vld [vmem:[%s8195_s17 + $0x3b0] sm:$0xf]  ;;  %v6513_v26 = vld [vmem:[%s8195_s17 + $0x3b8] sm:$0xf0] }
 0x2d9   : > { %v3075_v46 = vadd.f32 %v3074_v30, %v2906_v33  ;;  %2944 = vmatmul.bf16.gmra.mxu0 %v6120_v23  ;;  %3731 = vmatmul.bf16.gmra.mxu2 %v6504_v39  ;;  %v7328_v23 = vld [vmem:[%s8195_s17 + $0x3b4] sm:$0xf0]  ;;  %v6132_v33 = vor.u32 %v7263_v13, %v6129_v21 }
 0x2da   : > { %3113 = vmatmul.bf16.gmra.mxu1 %v6124_v24  ;;  %v3966_v51 = vmax.f32 %v3859_v45, 0.0  ;;  %v7327_v24 = vld [vmem:[%s8195_s17 + $0x3b4] sm:$0xf] }
 0x2db   : > { %v3180_v15 = vmax.f32 %v3075_v46, 0.0 }
 0x2dc   : > { %3900 = vmatmul.bf16.gmra.mxu3 %v6508_v40  ;;  %v8606_v56 = vmax.f32 %v3179_v47, %v3966_v51  ;;  %v3692_v57 = vpop.f32.mrf.mxu2  ;;  %v6128_v40 = vor.u32 %v7264_v8, %v6127_v3 }
 0x2dd   : > { %v3693_v60 = vadd.f32 %v8526_v48, %v3692_v57  ;;  %v6512_v57 = vor.u32 %v7328_v23, %v6511_v22  ;;  %v6135_v23 = vld [vmem:[%s8195_s17 + $0x1c0] sm:$0xf] }
 0x2de   : > { %v2907_v61 = vpop.f32.mrf.mxu0 }
 0x2df   : > { %v3861_v58 = vpop.f32.mrf.mxu3  ;;  %v3076_v63 = vpop.f32.mrf.mxu1  ;;  %v2908_v0 = vadd.f32 %v8526_v48, %v2907_v61 }
 0x2e0   : > { %v3862_v2 = vadd.f32 %v3861_v58, %v3693_v60  ;;  %v6516_v58 = vor.u32 %v7327_v24, %v6513_v26  ;;  %v7266_v24 = vld [vmem:[%s8195_s17 + $0x1c4] sm:$0xf0]  ;;  %v7265_v26 = vld [vmem:[%s8195_s17 + $0x1c4] sm:$0xf] }
 0x2e1   : > { %v3077_v49 = vadd.f32 %v3076_v63, %v2908_v0 }
 0x2e2   : > { %v3967_v17 = vmax.f32 %v3862_v2, 0.0 }
 0x2e3   : > { %v3181_v63 = vmax.f32 %v3077_v49, 0.0 }
 0x2e4   : > { %v8618_v27 = vmax.f32 %v3180_v15, %v3967_v17  ;;  %v3694_v30 = vpop.f32.mrf.mxu2 }
 0x2e5   : > { %v3695_v45 = vadd.f32 %v8526_v48, %v3694_v30 }
 0x2e6   : > { %v2910_v47 = vpop.f32.mrf.mxu0 }
 0x2e7   : > { %v3863_v39 = vpop.f32.mrf.mxu3  ;;  %v3079_v51 = vpop.f32.mrf.mxu1  ;;  %v2911_v46 = vadd.f32 %v8526_v48, %v2910_v47  ;;  %v7329_v47 = vld [vmem:[%s8195_s17 + $0x3c4] sm:$0xf] }
 0x2e8   : > { %v3864_v60 = vadd.f32 %v3863_v39, %v3695_v45  ;;  %v7330_v45 = vld [vmem:[%s8195_s17 + $0x3c4] sm:$0xf0] }
 0x2e9   : > { %v3080_v61 = vadd.f32 %v3079_v51, %v2911_v46  ;;  %2949 = vmatmul.bf16.gmra.mxu0 %v6128_v40  ;;  %3736 = vmatmul.bf16.gmra.mxu2 %v6512_v57  ;;  %v6137_v40 = vld [vmem:[%s8195_s17 + $0x1c8] sm:$0xf0] }
 0x2ea   : > { %3118 = vmatmul.bf16.gmra.mxu1 %v6132_v33  ;;  %v3968_v0 = vmax.f32 %v3864_v60, 0.0  ;;  %v6519_v33 = vld [vmem:[%s8195_s17 + $0x3c0] sm:$0xf]  ;;  %v6521_v51 = vld [vmem:[%s8195_s17 + $0x3c8] sm:$0xf0]  ;;  %v6136_v60 = vor.u32 %v7266_v24, %v6135_v23 }
 0x2eb   : > { %v3182_v30 = vmax.f32 %v3080_v61, 0.0 }
 0x2ec   : > { %3905 = vmatmul.bf16.gmra.mxu3 %v6516_v58  ;;  %v8622_v2 = vmax.f32 %v3181_v63, %v3968_v0  ;;  %v3697_v3 = vpop.f32.mrf.mxu2  ;;  %v6140_v63 = vor.u32 %v7265_v26, %v6137_v40 }
 0x2ed   : > { %v3698_v13 = vadd.f32 %v8526_v48, %v3697_v3 }
 0x2ee   : > { %v2912_v15 = vpop.f32.mrf.mxu0 }
 0x2ef   : > { %v3866_v8 = vpop.f32.mrf.mxu3  ;;  %v3081_v17 = vpop.f32.mrf.mxu1  ;;  %v2913_v21 = vadd.f32 %v8526_v48, %v2912_v15  ;;  %v6524_v15 = vor.u32 %v7329_v47, %v6521_v51  ;;  %v6143_v51 = vld [vmem:[%s8195_s17 + $0x1d0] sm:$0xf] }
 0x2f0   : > { %v3867_v22 = vadd.f32 %v3866_v8, %v3698_v13  ;;  %v6520_v13 = vor.u32 %v7330_v45, %v6519_v33 }
 0x2f1   : > { %v3082_v49 = vadd.f32 %v3081_v17, %v2913_v21 }
 0x2f2   : > { %v3969_v39 = vmax.f32 %v3867_v22, 0.0 }
 0x2f3   : > { %v3183_v22 = vmax.f32 %v3082_v49, 0.0 }
 0x2f4   : > { %v8634_v57 = vmax.f32 %v3182_v30, %v3969_v39  ;;  %v3699_v58 = vpop.f32.mrf.mxu2 }
 0x2f5   : > { %v3700_v0 = vadd.f32 %v8526_v48, %v3699_v58  ;;  %v7268_v58 = vld [vmem:[%s8195_s17 + $0x1d4] sm:$0xf0] }
 0x2f6   : > { %v2915_v3 = vpop.f32.mrf.mxu0 }
 0x2f7   : > { %v3868_v46 = vpop.f32.mrf.mxu3  ;;  %v3084_v8 = vpop.f32.mrf.mxu1  ;;  %v2916_v61 = vadd.f32 %v8526_v48, %v2915_v3  ;;  %v6527_v3 = vld [vmem:[%s8195_s17 + $0x3d0] sm:$0xf] }
 0x2f8   : > { %v3869_v17 = vadd.f32 %v3868_v46, %v3700_v0  ;;  %v7267_v46 = vld [vmem:[%s8195_s17 + $0x1d4] sm:$0xf]  ;;  %v6145_v0 = vld [vmem:[%s8195_s17 + $0x1d8] sm:$0xf0] }
 0x2f9   : > { %v3085_v21 = vadd.f32 %v3084_v8, %v2916_v61  ;;  %2954 = vmatmul.bf16.gmra.mxu0 %v6136_v60  ;;  %3741 = vmatmul.bf16.gmra.mxu2 %v6520_v13  ;;  %v7332_v8 = vld [vmem:[%s8195_s17 + $0x3d4] sm:$0xf0]  ;;  %v7331_v13 = vld [vmem:[%s8195_s17 + $0x3d4] sm:$0xf] }
 0x2fa   : > { %3123 = vmatmul.bf16.gmra.mxu1 %v6140_v63  ;;  %v3970_v30 = vmax.f32 %v3869_v17, 0.0 }
 0x2fb   : > { %v3184_v60 = vmax.f32 %v3085_v21, 0.0 }
 0x2fc   : > { %3910 = vmatmul.bf16.gmra.mxu3 %v6524_v15  ;;  %v8638_v23 = vmax.f32 %v3183_v22, %v3970_v30  ;;  %v3702_v24 = vpop.f32.mrf.mxu2  ;;  %v6529_v15 = vld [vmem:[%s8195_s17 + $0x3d8] sm:$0xf0]  ;;  %v6144_v30 = vor.u32 %v7268_v58, %v6143_v51 }
 0x2fd   : > { %v3703_v39 = vadd.f32 %v8526_v48, %v3702_v24  ;;  %v6148_v24 = vor.u32 %v7267_v46, %v6145_v0 }
 0x2fe   : > { %9371 = vst [vmem:[#allocation3_spill] sm:$0xff] %v8638_v23  ;;  %v2917_v40 = vpop.f32.mrf.mxu0 }
 0x2ff   : > { %v3871_v26 = vpop.f32.mrf.mxu3  ;;  %v3086_v33 = vpop.f32.mrf.mxu1  ;;  %v2918_v45 = vadd.f32 %v8526_v48, %v2917_v40 }
 0x300   : > { %v3872_v47 = vadd.f32 %v3871_v26, %v3703_v39 }
 0x301   : > { %v3087_v49 = vadd.f32 %v3086_v33, %v2918_v45  ;;  %v6528_v33 = vor.u32 %v7332_v8, %v6527_v3  ;;  %v6532_v45 = vor.u32 %v7331_v13, %v6529_v15 }
 0x302   : > { %v3971_v63 = vmax.f32 %v3872_v47, 0.0 }
 0x304   : > { %v8650_v61 = vmax.f32 %v3184_v60, %v3971_v63  ;;  %v3704_v17 = vpop.f32.mrf.mxu2  ;;  %v3185_v60 = vmax.f32 %v3087_v49, 0.0 }
 0x305   : > { %v3705_v40 = vadd.f32 %v8526_v48, %v3704_v17  ;;  %v6151_v17 = vld [vmem:[%s8195_s17 + $0x1e0] sm:$0xf] }
 0x306   : > { %9372 = vst [vmem:[#allocation4_spill] sm:$0xff] %v8650_v61  ;;  %v2920_v26 = vpop.f32.mrf.mxu0 }
 0x307   : > { %v3873_v22 = vpop.f32.mrf.mxu3  ;;  %v3089_v39 = vpop.f32.mrf.mxu1  ;;  %v2921_v21 = vadd.f32 %v8526_v48, %v2920_v26  ;;  %v6153_v26 = vld [vmem:[%s8195_s17 + $0x1e8] sm:$0xf0] }
 0x308   : > { %v3874_v47 = vadd.f32 %v3873_v22, %v3705_v40  ;;  %v7270_v22 = vld [vmem:[%s8195_s17 + $0x1e4] sm:$0xf0] }
 0x309   : > { %v3090_v23 = vadd.f32 %v3089_v39, %v2921_v21  ;;  %2959 = vmatmul.bf16.gmra.mxu0 %v6144_v30  ;;  %3746 = vmatmul.bf16.gmra.mxu2 %v6528_v33  ;;  %v7269_v30 = vld [vmem:[%s8195_s17 + $0x1e4] sm:$0xf]  ;;  %v6535_v39 = vld [vmem:[%s8195_s17 + $0x3e0] sm:$0xf]  ;;  %v7334_v33 = vld [vmem:[%s8195_s17 + $0x3e4] sm:$0xf0] }
 0x30a   : > { %3128 = vmatmul.bf16.gmra.mxu1 %v6148_v24  ;;  %v3972_v63 = vmax.f32 %v3874_v47, 0.0  ;;  %v6537_v21 = vld [vmem:[%s8195_s17 + $0x3e8] sm:$0xf0] }
 0x30b   : > { %v3186_v24 = vmax.f32 %v3090_v23, 0.0 }
 0x30c   : > { %3915 = vmatmul.bf16.gmra.mxu3 %v6532_v45  ;;  %v8654_v51 = vmax.f32 %v3185_v60, %v3972_v63  ;;  %v3707_v58 = vpop.f32.mrf.mxu2  ;;  %v7333_v45 = vld [vmem:[%s8195_s17 + $0x3e4] sm:$0xf] }
 0x30d   : > { %v3708_v0 = vadd.f32 %v8526_v48, %v3707_v58  ;;  %v6152_v58 = vor.u32 %v7270_v22, %v6151_v17 }
 0x30e   : > { %9373 = vst [vmem:[#allocation5_spill] sm:$0xff] %v8654_v51  ;;  %v2922_v3 = vpop.f32.mrf.mxu0  ;;  %v6156_v51 = vor.u32 %v7269_v30, %v6153_v26 }
 0x30f   : > { %v3876_v46 = vpop.f32.mrf.mxu3  ;;  %v3091_v8 = vpop.f32.mrf.mxu1  ;;  %v2923_v13 = vadd.f32 %v8526_v48, %v2922_v3 }
 0x310   : > { %v3877_v15 = vadd.f32 %v3876_v46, %v3708_v0 }
 0x311   : > { %v3092_v49 = vadd.f32 %v3091_v8, %v2923_v13  ;;  %v6536_v8 = vor.u32 %v7334_v33, %v6535_v39  ;;  %v6540_v13 = vor.u32 %v7333_v45, %v6537_v21  ;;  %v6159_v21 = vld [vmem:[%s8195_s17 + $0x1f0] sm:$0xf] }
 0x312   : > { %v3973_v40 = vmax.f32 %v3877_v15, 0.0 }
 0x314   : > { %v8666_v47 = vmax.f32 %v3186_v24, %v3973_v40  ;;  %v3709_v60 = vpop.f32.mrf.mxu2  ;;  %v3187_v24 = vmax.f32 %v3092_v49, 0.0 }
 0x315   : > { %v3710_v3 = vadd.f32 %v8526_v48, %v3709_v60  ;;  %v7272_v60 = vld [vmem:[%s8195_s17 + $0x1f4] sm:$0xf0] }
 0x316   : > { %9374 = vst [vmem:[#allocation6_spill] sm:$0xff] %v8666_v47  ;;  %v2925_v46 = vpop.f32.mrf.mxu0 }
 0x317   : > { %v3878_v63 = vpop.f32.mrf.mxu3  ;;  %v3094_v0 = vpop.f32.mrf.mxu1  ;;  %v2926_v23 = vadd.f32 %v8526_v48, %v2925_v46  ;;  %v6161_v46 = vld [vmem:[%s8195_s17 + $0x1f8] sm:$0xf0] }
 0x318   : > { %v3879_v15 = vadd.f32 %v3878_v63, %v3710_v3  ;;  %v7271_v63 = vld [vmem:[%s8195_s17 + $0x1f4] sm:$0xf] }
 0x319   : > { %v3095_v61 = vadd.f32 %v3094_v0, %v2926_v23  ;;  %2964 = vmatmul.bf16.gmra.mxu0 %v6152_v58  ;;  %3751 = vmatmul.bf16.gmra.mxu2 %v6536_v8  ;;  %v6543_v0 = vld [vmem:[%s8195_s17 + $0x3f0] sm:$0xf]  ;;  %v7336_v8 = vld [vmem:[%s8195_s17 + $0x3f4] sm:$0xf0]  ;;  %v6545_v23 = vld [vmem:[%s8195_s17 + $0x3f8] sm:$0xf0] }
 0x31a   : > { %3133 = vmatmul.bf16.gmra.mxu1 %v6156_v51  ;;  %v3974_v40 = vmax.f32 %v3879_v15, 0.0 }
 0x31b   : > { %v3188_v58 = vmax.f32 %v3095_v61, 0.0 }
 0x31c   : > { %3920 = vmatmul.bf16.gmra.mxu3 %v6540_v13  ;;  %v8670_v17 = vmax.f32 %v3187_v24, %v3974_v40  ;;  %v3712_v22 = vpop.f32.mrf.mxu2  ;;  %v7335_v13 = vld [vmem:[%s8195_s17 + $0x3f4] sm:$0xf] }
 0x31d   : > { %v3713_v26 = vadd.f32 %v8526_v48, %v3712_v22  ;;  %v6160_v22 = vor.u32 %v7272_v60, %v6159_v21 }
 0x31e   : > { %9375 = vst [vmem:[#allocation7_spill] sm:$0xff] %v8670_v17  ;;  %v2927_v39 = vpop.f32.mrf.mxu0  ;;  %v6164_v17 = vor.u32 %v7271_v63, %v6161_v46 }
 0x31f   : > { %v3881_v30 = vpop.f32.mrf.mxu3  ;;  %v3096_v33 = vpop.f32.mrf.mxu1  ;;  %v2928_v51 = vadd.f32 %v8526_v48, %v2927_v39 }
 0x320   : > { %v3882_v45 = vadd.f32 %v3881_v30, %v3713_v26 }
 0x321   : > { %v3097_v49 = vadd.f32 %v3096_v33, %v2928_v51  ;;  %v6544_v33 = vor.u32 %v7336_v8, %v6543_v0  ;;  %v6548_v51 = vor.u32 %v7335_v13, %v6545_v23  ;;  %v6615_v23 = vld [vmem:[%s8195_s17 + $0x400] sm:$0xf] }
 0x322   : > { %v3975_v3 = vmax.f32 %v3882_v45, 0.0 }
 0x324   : > { %v8682_v15 = vmax.f32 %v3188_v58, %v3975_v3  ;;  %v3714_v24 = vpop.f32.mrf.mxu2  ;;  %v3189_v58 = vmax.f32 %v3097_v49, 0.0 }
 0x325   : > { %v3715_v39 = vadd.f32 %v8526_v48, %v3714_v24  ;;  %v7338_v24 = vld [vmem:[%s8195_s17 + $0x404] sm:$0xf0] }
 0x326   : > { %9376 = vst [vmem:[#allocation8_spill] sm:$0xff] %v8682_v15  ;;  %v2930_v30 = vpop.f32.mrf.mxu0 }
 0x327   : > { %v3883_v40 = vpop.f32.mrf.mxu3  ;;  %v3099_v26 = vpop.f32.mrf.mxu1  ;;  %v2931_v61 = vadd.f32 %v8526_v48, %v2930_v30  ;;  %v6617_v30 = vld [vmem:[%s8195_s17 + $0x408] sm:$0xf0] }
 0x328   : > { %v3884_v45 = vadd.f32 %v3883_v40, %v3715_v39  ;;  %v7337_v40 = vld [vmem:[%s8195_s17 + $0x404] sm:$0xf] }
 0x329   : > { %v3100_v47 = vadd.f32 %v3099_v26, %v2931_v61  ;;  %2969 = vmatmul.bf16.gmra.mxu0 %v6160_v22  ;;  %3756 = vmatmul.bf16.gmra.mxu2 %v6544_v33  ;;  %v6935_v26 = vld [vmem:[%s8195_s17 + $0x600] sm:$0xf]  ;;  %v7402_v33 = vld [vmem:[%s8195_s17 + $0x604] sm:$0xf0]  ;;  %v6937_v61 = vld [vmem:[%s8195_s17 + $0x608] sm:$0xf0] }
 0x32a   : > { %3138 = vmatmul.bf16.gmra.mxu1 %v6164_v17  ;;  %v3976_v3 = vmax.f32 %v3884_v45, 0.0 }
 0x32b   : > { %v3190_v22 = vmax.f32 %v3100_v47, 0.0 }
 0x32c   : > { %3925 = vmatmul.bf16.gmra.mxu3 %v6548_v51  ;;  %v8686_v21 = vmax.f32 %v3189_v58, %v3976_v3  ;;  %v3717_v60 = vpop.f32.mrf.mxu2  ;;  %v7401_v51 = vld [vmem:[%s8195_s17 + $0x604] sm:$0xf] }
 0x32d   : > { %v3718_v46 = vadd.f32 %v8526_v48, %v3717_v60  ;;  %v6616_v60 = vor.u32 %v7338_v24, %v6615_v23 }
 0x32e   : > { %9377 = vst [vmem:[#allocation9_spill] sm:$0xff] %v8686_v21  ;;  %v2932_v0 = vpop.f32.mrf.mxu0  ;;  %v6620_v21 = vor.u32 %v7337_v40, %v6617_v30 }
 0x32f   : > { %v3886_v63 = vpop.f32.mrf.mxu3  ;;  %v3101_v8 = vpop.f32.mrf.mxu1  ;;  %v2933_v17 = vadd.f32 %v8526_v48, %v2932_v0 }
 0x330   : > { %v3887_v13 = vadd.f32 %v3886_v63, %v3718_v46 }
 0x331   : > { %v3102_v49 = vadd.f32 %v3101_v8, %v2933_v17  ;;  %v6936_v8 = vor.u32 %v7402_v33, %v6935_v26  ;;  %v6940_v17 = vor.u32 %v7401_v51, %v6937_v61  ;;  %v6623_v61 = vld [vmem:[%s8195_s17 + $0x410] sm:$0xf] }
 0x332   : > { %v3977_v39 = vmax.f32 %v3887_v13, 0.0 }
 0x334   : > { %v8698_v45 = vmax.f32 %v3190_v22, %v3977_v39  ;;  %v3719_v58 = vpop.f32.mrf.mxu2  ;;  %v3191_v22 = vmax.f32 %v3102_v49, 0.0 }
 0x335   : > { %v3720_v0 = vadd.f32 %v8526_v48, %v3719_v58  ;;  %v7340_v58 = vld [vmem:[%s8195_s17 + $0x414] sm:$0xf0] }
 0x336   : > { %9378 = vst [vmem:[#allocation10_spill] sm:$0xff] %v8698_v45  ;;  %v2935_v63 = vpop.f32.mrf.mxu0 }
 0x337   : > { %v3888_v3 = vpop.f32.mrf.mxu3  ;;  %v3104_v46 = vpop.f32.mrf.mxu1  ;;  %v2936_v47 = vadd.f32 %v8526_v48, %v2935_v63  ;;  %v6625_v63 = vld [vmem:[%s8195_s17 + $0x418] sm:$0xf0] }
 0x338   : > { %v3889_v13 = vadd.f32 %v3888_v3, %v3720_v0  ;;  %v7339_v3 = vld [vmem:[%s8195_s17 + $0x414] sm:$0xf] }
 0x339   : > { %v3105_v15 = vadd.f32 %v3104_v46, %v2936_v47  ;;  %4452 = vmatmul.bf16.vlgmr.msrb.gmra.mxu0 %v6616_v60  ;;  %5303 = vmatmul.bf16.vlgmr.msrb.gmra.mxu2 %v6936_v8  ;;  %v6943_v46 = vld [vmem:[%s8195_s17 + $0x610] sm:$0xf]  ;;  %v7404_v8 = vld [vmem:[%s8195_s17 + $0x614] sm:$0xf0]  ;;  %v6945_v47 = vld [vmem:[%s8195_s17 + $0x618] sm:$0xf0] }
 0x33a   : > { %4621 = vmatmul.bf16.vlgmr.msrb.gmra.mxu1 %v6620_v21  ;;  %v3978_v39 = vmax.f32 %v3889_v13, 0.0 }
 0x33b   : > { %v3192_v60 = vmax.f32 %v3105_v15, 0.0 }
 0x33c   : > { %5472 = vmatmul.bf16.vlgmr.msrb.gmra.mxu3 %v6940_v17  ;;  %v8702_v23 = vmax.f32 %v3191_v22, %v3978_v39  ;;  %v3722_v24 = vpop.f32.mrf.mxu2  ;;  %v7403_v17 = vld [vmem:[%s8195_s17 + $0x614] sm:$0xf] }
 0x33d   : > { %v3723_v30 = vadd.f32 %v8526_v48, %v3722_v24  ;;  %v6624_v24 = vor.u32 %v7340_v58, %v6623_v61 }
 0x33e   : > { %9379 = vst [vmem:[#allocation11_spill] sm:$0xff] %v8702_v23  ;;  %v2937_v26 = vpop.f32.mrf.mxu0  ;;  %v6628_v23 = vor.u32 %v7339_v3, %v6625_v63 }
 0x33f   : > { %v3891_v40 = vpop.f32.mrf.mxu3  ;;  %v3106_v33 = vpop.f32.mrf.mxu1  ;;  %v2938_v21 = vadd.f32 %v8526_v48, %v2937_v26 }
 0x340   : > { %v3892_v51 = vadd.f32 %v3891_v40, %v3723_v30 }
 0x341   : > { %v3107_v49 = vadd.f32 %v3106_v33, %v2938_v21  ;;  %v6944_v33 = vor.u32 %v7404_v8, %v6943_v46  ;;  %v6948_v21 = vor.u32 %v7403_v17, %v6945_v47  ;;  %v6631_v47 = vld [vmem:[%s8195_s17 + $0x420] sm:$0xf] }
 0x342   : > { %v3979_v0 = vmax.f32 %v3892_v51, 0.0 }
 0x344   : > { %v8714_v13 = vmax.f32 %v3192_v60, %v3979_v0  ;;  %v3724_v22 = vpop.f32.mrf.mxu2  ;;  %v3193_v60 = vmax.f32 %v3107_v49, 0.0 }
 0x345   : > { %v3725_v26 = vadd.f32 %v8526_v48, %v3724_v22  ;;  %v7342_v22 = vld [vmem:[%s8195_s17 + $0x424] sm:$0xf0] }
 0x346   : > { %9380 = vst [vmem:[#allocation12_spill] sm:$0xff] %v8714_v13  ;;  %v2940_v40 = vpop.f32.mrf.mxu0 }
 0x347   : > { %v3893_v39 = vpop.f32.mrf.mxu3  ;;  %v3109_v30 = vpop.f32.mrf.mxu1  ;;  %v2941_v15 = vadd.f32 %v8526_v48, %v2940_v40  ;;  %v6633_v40 = vld [vmem:[%s8195_s17 + $0x428] sm:$0xf0] }
 0x348   : > { %v3894_v51 = vadd.f32 %v3893_v39, %v3725_v26  ;;  %v7341_v39 = vld [vmem:[%s8195_s17 + $0x424] sm:$0xf] }
 0x349   : > { %v3110_v45 = vadd.f32 %v3109_v30, %v2941_v15  ;;  %4457 = vmatmul.bf16.gmra.mxu0 %v6624_v24  ;;  %5308 = vmatmul.bf16.gmra.mxu2 %v6944_v33  ;;  %v6951_v30 = vld [vmem:[%s8195_s17 + $0x620] sm:$0xf]  ;;  %v7406_v33 = vld [vmem:[%s8195_s17 + $0x624] sm:$0xf0]  ;;  %v6953_v15 = vld [vmem:[%s8195_s17 + $0x628] sm:$0xf0] }
 0x34a   : > { %4626 = vmatmul.bf16.gmra.mxu1 %v6628_v23  ;;  %v3980_v0 = vmax.f32 %v3894_v51, 0.0 }
 0x34b   : > { %v3194_v24 = vmax.f32 %v3110_v45, 0.0 }
 0x34c   : > { %5477 = vmatmul.bf16.gmra.mxu3 %v6948_v21  ;;  %v8718_v61 = vmax.f32 %v3193_v60, %v3980_v0  ;;  %v3727_v58 = vpop.f32.mrf.mxu2  ;;  %v7405_v21 = vld [vmem:[%s8195_s17 + $0x624] sm:$0xf] }
 0x34d   : > { %v3728_v63 = vadd.f32 %v8526_v48, %v3727_v58  ;;  %v6632_v58 = vor.u32 %v7342_v22, %v6631_v47 }
 0x34e   : > { %9381 = vst [vmem:[#allocation13_spill] sm:$0xff] %v8718_v61  ;;  %v2942_v46 = vpop.f32.mrf.mxu0  ;;  %v6636_v61 = vor.u32 %v7341_v39, %v6633_v40 }
 0x34f   : > { %v3896_v3 = vpop.f32.mrf.mxu3  ;;  %v3111_v8 = vpop.f32.mrf.mxu1  ;;  %v2943_v23 = vadd.f32 %v8526_v48, %v2942_v46 }
 0x350   : > { %v3897_v17 = vadd.f32 %v3896_v3, %v3728_v63 }
 0x351   : > { %v3112_v49 = vadd.f32 %v3111_v8, %v2943_v23  ;;  %v6952_v8 = vor.u32 %v7406_v33, %v6951_v30  ;;  %v6956_v23 = vor.u32 %v7405_v21, %v6953_v15  ;;  %v6639_v15 = vld [vmem:[%s8195_s17 + $0x430] sm:$0xf] }
 0x352   : > { %v3981_v26 = vmax.f32 %v3897_v17, 0.0 }
 0x354   : > { %v8730_v51 = vmax.f32 %v3194_v24, %v3981_v26  ;;  %v3729_v60 = vpop.f32.mrf.mxu2  ;;  %v3195_v24 = vmax.f32 %v3112_v49, 0.0 }
 0x355   : > { %v3730_v46 = vadd.f32 %v8526_v48, %v3729_v60  ;;  %v7344_v60 = vld [vmem:[%s8195_s17 + $0x434] sm:$0xf0] }
 0x356   : > { %9382 = vst [vmem:[#allocation14_spill] sm:$0xff] %v8730_v51  ;;  %v2945_v3 = vpop.f32.mrf.mxu0 }
 0x357   : > { %v3898_v0 = vpop.f32.mrf.mxu3  ;;  %v3114_v63 = vpop.f32.mrf.mxu1  ;;  %v2946_v45 = vadd.f32 %v8526_v48, %v2945_v3  ;;  %v6641_v3 = vld [vmem:[%s8195_s17 + $0x438] sm:$0xf0] }
 0x358   : > { %v3899_v17 = vadd.f32 %v3898_v0, %v3730_v46  ;;  %v7343_v0 = vld [vmem:[%s8195_s17 + $0x434] sm:$0xf] }
 0x359   : > { %v3115_v13 = vadd.f32 %v3114_v63, %v2946_v45  ;;  %4462 = vmatmul.bf16.gmra.mxu0 %v6632_v58  ;;  %5313 = vmatmul.bf16.gmra.mxu2 %v6952_v8  ;;  %v6959_v63 = vld [vmem:[%s8195_s17 + $0x630] sm:$0xf]  ;;  %v7408_v8 = vld [vmem:[%s8195_s17 + $0x634] sm:$0xf0]  ;;  %v6961_v45 = vld [vmem:[%s8195_s17 + $0x638] sm:$0xf0] }
 0x35a   : > { %4631 = vmatmul.bf16.gmra.mxu1 %v6636_v61  ;;  %v3982_v26 = vmax.f32 %v3899_v17, 0.0 }
 0x35b   : > { %v3196_v58 = vmax.f32 %v3115_v13, 0.0 }
 0x35c   : > { %5482 = vmatmul.bf16.gmra.mxu3 %v6956_v23  ;;  %v8734_v47 = vmax.f32 %v3195_v24, %v3982_v26  ;;  %v3732_v22 = vpop.f32.mrf.mxu2  ;;  %v7407_v23 = vld [vmem:[%s8195_s17 + $0x634] sm:$0xf] }
 0x35d   : > { %v3733_v40 = vadd.f32 %v8526_v48, %v3732_v22  ;;  %v6640_v22 = vor.u32 %v7344_v60, %v6639_v15 }
 0x35e   : > { %9383 = vst [vmem:[#allocation15_spill] sm:$0xff] %v8734_v47  ;;  %v2947_v30 = vpop.f32.mrf.mxu0  ;;  %v6644_v47 = vor.u32 %v7343_v0, %v6641_v3 }
 0x35f   : > { %v3901_v39 = vpop.f32.mrf.mxu3  ;;  %v3116_v33 = vpop.f32.mrf.mxu1  ;;  %v2948_v61 = vadd.f32 %v8526_v48, %v2947_v30  ;;  %v8751_v48 = vld [vmem:[%s9369_s2] ss:$0 sm:$0xff]  ;;  %v6960_v30 = vor.u32 %v7408_v8, %v6959_v63 }
 0x360   : > { %v3902_v21 = vadd.f32 %v3901_v39, %v3733_v40 }
 0x361   : > { %v3117_v49 = vadd.f32 %v3116_v33, %v2948_v61  ;;  %v6964_v33 = vor.u32 %v7407_v23, %v6961_v45 }
 0x362   : > { %v3983_v46 = vmax.f32 %v3902_v21, 0.0 }
 0x363   : > { %v3197_v15 = vmax.f32 %v3117_v49, 0.0 }
 0x364   : > { %v8746_v17 = vmax.f32 %v3196_v58, %v3983_v46  ;;  %v3734_v24 = vpop.f32.mrf.mxu2 }
 0x365   : > { %v3735_v39 = vadd.f32 %v8751_v48, %v3734_v24  ;;  %v6647_v24 = vld [vmem:[%s8195_s17 + $0x440] sm:$0xf] }
 0x366   : > { %9384 = vst [vmem:[#allocation16_spill] sm:$0xff] %v8746_v17  ;;  %v2950_v13 = vpop.f32.mrf.mxu0 }
 0x367   : > { %v3903_v26 = vpop.f32.mrf.mxu3  ;;  %v3119_v40 = vpop.f32.mrf.mxu1  ;;  %v2951_v61 = vadd.f32 %v8751_v48, %v2950_v13 }
 0x368   : > { %v3904_v21 = vadd.f32 %v3903_v26, %v3735_v39  ;;  %v7346_v26 = vld [vmem:[%s8195_s17 + $0x444] sm:$0xf0] }
 0x369   : > { %v3120_v58 = vadd.f32 %v3119_v40, %v2951_v61  ;;  %4467 = vmatmul.bf16.gmra.mxu0 %v6640_v22  ;;  %5318 = vmatmul.bf16.gmra.mxu2 %v6960_v30  ;;  %v7345_v22 = vld [vmem:[%s8195_s17 + $0x444] sm:$0xf]  ;;  %v6649_v40 = vld [vmem:[%s8195_s17 + $0x448] sm:$0xf0]  ;;  %v6967_v30 = vld [vmem:[%s8195_s17 + $0x640] sm:$0xf] }
 0x36a   : > { %4636 = vmatmul.bf16.gmra.mxu1 %v6644_v47  ;;  %v3984_v60 = vmax.f32 %v3904_v21, 0.0  ;;  %v7409_v61 = vld [vmem:[%s8195_s17 + $0x644] sm:$0xf]  ;;  %v6969_v21 = vld [vmem:[%s8195_s17 + $0x648] sm:$0xf0]  ;;  %v6652_v17 = vor.u32 %v7345_v22, %v6649_v40 }
 0x36b   : > { %v3198_v39 = vmax.f32 %v3120_v58, 0.0 }
 0x36c   : > { %5487 = vmatmul.bf16.gmra.mxu3 %v6964_v33  ;;  %v8755_v0 = vmax.f32 %v3197_v15, %v3984_v60  ;;  %v3737_v46 = vpop.f32.mrf.mxu2  ;;  %v7410_v33 = vld [vmem:[%s8195_s17 + $0x644] sm:$0xf0] }
 0x36d   : > { %v3738_v63 = vadd.f32 %v8751_v48, %v3737_v46 }
 0x36e   : > { %9385 = vst [vmem:[#allocation17_spill] sm:$0xff] %v8755_v0  ;;  %v2952_v8 = vpop.f32.mrf.mxu0  ;;  %v6648_v0 = vor.u32 %v7346_v26, %v6647_v24 }
 0x36f   : > { %v3906_v3 = vpop.f32.mrf.mxu3  ;;  %v3121_v23 = vpop.f32.mrf.mxu1  ;;  %v2953_v47 = vadd.f32 %v8751_v48, %v2952_v8 }
 0x370   : > { %v3907_v45 = vadd.f32 %v3906_v3, %v3738_v63 }
 0x371   : > { %v3122_v49 = vadd.f32 %v3121_v23, %v2953_v47  ;;  %v6968_v23 = vor.u32 %v7410_v33, %v6967_v30  ;;  %v6972_v47 = vor.u32 %v7409_v61, %v6969_v21  ;;  %v6655_v61 = vld [vmem:[%s8195_s17 + $0x450] sm:$0xf]  ;;  %v7348_v21 = vld [vmem:[%s8195_s17 + $0x454] sm:$0xf0] }
 0x372   : > { %v3985_v13 = vmax.f32 %v3907_v45, 0.0 }
 0x374   : > { %v8767_v15 = vmax.f32 %v3198_v39, %v3985_v13  ;;  %v3739_v60 = vpop.f32.mrf.mxu2  ;;  %v3199_v39 = vmax.f32 %v3122_v49, 0.0 }
 0x375   : > { %v3740_v8 = vadd.f32 %v8751_v48, %v3739_v60  ;;  %v7347_v60 = vld [vmem:[%s8195_s17 + $0x454] sm:$0xf] }
 0x376   : > { %9386 = vst [vmem:[#allocation18_spill] sm:$0xff] %v8767_v15  ;;  %v2955_v3 = vpop.f32.mrf.mxu0 }
 0x377   : > { %v3908_v46 = vpop.f32.mrf.mxu3  ;;  %v3124_v63 = vpop.f32.mrf.mxu1  ;;  %v2956_v58 = vadd.f32 %v8751_v48, %v2955_v3  ;;  %v6657_v3 = vld [vmem:[%s8195_s17 + $0x458] sm:$0xf0] }
 0x378   : > { %v3909_v45 = vadd.f32 %v3908_v46, %v3740_v8 }
 0x379   : > { %v3125_v51 = vadd.f32 %v3124_v63, %v2956_v58  ;;  %4472 = vmatmul.bf16.gmra.mxu0 %v6648_v0  ;;  %5323 = vmatmul.bf16.gmra.mxu2 %v6968_v23  ;;  %v6975_v63 = vld [vmem:[%s8195_s17 + $0x650] sm:$0xf]  ;;  %v7412_v23 = vld [vmem:[%s8195_s17 + $0x654] sm:$0xf0]  ;;  %v6977_v58 = vld [vmem:[%s8195_s17 + $0x658] sm:$0xf0] }
 0x37a   : > { %4641 = vmatmul.bf16.gmra.mxu1 %v6652_v17  ;;  %v3986_v13 = vmax.f32 %v3909_v45, 0.0 }
 0x37b   : > { %v3200_v46 = vmax.f32 %v3125_v51, 0.0 }
 0x37c   : > { %5492 = vmatmul.bf16.gmra.mxu3 %v6972_v47  ;;  %v8771_v24 = vmax.f32 %v3199_v39, %v3986_v13  ;;  %v3742_v26 = vpop.f32.mrf.mxu2  ;;  %v7411_v47 = vld [vmem:[%s8195_s17 + $0x654] sm:$0xf] }
 0x37d   : > { %v3743_v40 = vadd.f32 %v8751_v48, %v3742_v26  ;;  %v6656_v26 = vor.u32 %v7348_v21, %v6655_v61 }
 0x37e   : > { %9387 = vst [vmem:[#allocation19_spill] sm:$0xff] %v8771_v24  ;;  %v2957_v30 = vpop.f32.mrf.mxu0  ;;  %v6660_v24 = vor.u32 %v7347_v60, %v6657_v3 }
 0x37f   : > { %v3911_v22 = vpop.f32.mrf.mxu3  ;;  %v3126_v0 = vpop.f32.mrf.mxu1  ;;  %v2958_v17 = vadd.f32 %v8751_v48, %v2957_v30 }
 0x380   : > { %v3912_v33 = vadd.f32 %v3911_v22, %v3743_v40 }
 0x381   : > { %v3127_v49 = vadd.f32 %v3126_v0, %v2958_v17  ;;  %v6976_v0 = vor.u32 %v7412_v23, %v6975_v63  ;;  %v6980_v17 = vor.u32 %v7411_v47, %v6977_v58  ;;  %v6663_v58 = vld [vmem:[%s8195_s17 + $0x460] sm:$0xf] }
 0x382   : > { %v3987_v8 = vmax.f32 %v3912_v33, 0.0 }
 0x384   : > { %v8783_v45 = vmax.f32 %v3200_v46, %v3987_v8  ;;  %v3744_v39 = vpop.f32.mrf.mxu2  ;;  %v3201_v46 = vmax.f32 %v3127_v49, 0.0 }
 0x385   : > { %v3745_v30 = vadd.f32 %v8751_v48, %v3744_v39  ;;  %v7350_v39 = vld [vmem:[%s8195_s17 + $0x464] sm:$0xf0] }
 0x386   : > { %9388 = vst [vmem:[#allocation20_spill] sm:$0xff] %v8783_v45  ;;  %v2960_v22 = vpop.f32.mrf.mxu0 }
 0x387   : > { %v3913_v13 = vpop.f32.mrf.mxu3  ;;  %v3129_v40 = vpop.f32.mrf.mxu1  ;;  %v2961_v51 = vadd.f32 %v8751_v48, %v2960_v22  ;;  %v6665_v22 = vld [vmem:[%s8195_s17 + $0x468] sm:$0xf0] }
 0x388   : > { %v3914_v33 = vadd.f32 %v3913_v13, %v3745_v30  ;;  %v7349_v13 = vld [vmem:[%s8195_s17 + $0x464] sm:$0xf] }
 0x389   : > { %v3130_v15 = vadd.f32 %v3129_v40, %v2961_v51  ;;  %4477 = vmatmul.bf16.gmra.mxu0 %v6656_v26  ;;  %5328 = vmatmul.bf16.gmra.mxu2 %v6976_v0  ;;  %v6983_v40 = vld [vmem:[%s8195_s17 + $0x660] sm:$0xf]  ;;  %v7414_v0 = vld [vmem:[%s8195_s17 + $0x664] sm:$0xf0]  ;;  %v6985_v51 = vld [vmem:[%s8195_s17 + $0x668] sm:$0xf0] }
 0x38a   : > { %4646 = vmatmul.bf16.gmra.mxu1 %v6660_v24  ;;  %v3988_v8 = vmax.f32 %v3914_v33, 0.0 }
 0x38b   : > { %v3202_v26 = vmax.f32 %v3130_v15, 0.0 }
 0x38c   : > { %5497 = vmatmul.bf16.gmra.mxu3 %v6980_v17  ;;  %v8787_v61 = vmax.f32 %v3201_v46, %v3988_v8  ;;  %v3747_v21 = vpop.f32.mrf.mxu2  ;;  %v7413_v17 = vld [vmem:[%s8195_s17 + $0x664] sm:$0xf] }
 0x38d   : > { %v3748_v3 = vadd.f32 %v8751_v48, %v3747_v21  ;;  %v6664_v21 = vor.u32 %v7350_v39, %v6663_v58 }
 0x38e   : > { %9389 = vst [vmem:[#allocation21_spill] sm:$0xff] %v8787_v61  ;;  %v2962_v63 = vpop.f32.mrf.mxu0  ;;  %v6668_v61 = vor.u32 %v7349_v13, %v6665_v22 }
 0x38f   : > { %v3916_v60 = vpop.f32.mrf.mxu3  ;;  %v3131_v23 = vpop.f32.mrf.mxu1  ;;  %v2963_v24 = vadd.f32 %v8751_v48, %v2962_v63 }
 0x390   : > { %v3917_v47 = vadd.f32 %v3916_v60, %v3748_v3 }
 0x391   : > { %v3132_v49 = vadd.f32 %v3131_v23, %v2963_v24  ;;  %v6984_v23 = vor.u32 %v7414_v0, %v6983_v40  ;;  %v6988_v24 = vor.u32 %v7413_v17, %v6985_v51  ;;  %v6671_v51 = vld [vmem:[%s8195_s17 + $0x470] sm:$0xf] }
 0x392   : > { %v3989_v30 = vmax.f32 %v3917_v47, 0.0 }
 0x394   : > { %v8799_v33 = vmax.f32 %v3202_v26, %v3989_v30  ;;  %v3749_v46 = vpop.f32.mrf.mxu2  ;;  %v3203_v26 = vmax.f32 %v3132_v49, 0.0 }
 0x395   : > { %v3750_v63 = vadd.f32 %v8751_v48, %v3749_v46  ;;  %v7352_v46 = vld [vmem:[%s8195_s17 + $0x474] sm:$0xf0] }
 0x396   : > { %9390 = vst [vmem:[#allocation22_spill] sm:$0xff] %v8799_v33  ;;  %v2965_v60 = vpop.f32.mrf.mxu0 }
 0x397   : > { %v3918_v8 = vpop.f32.mrf.mxu3  ;;  %v3134_v3 = vpop.f32.mrf.mxu1  ;;  %v2966_v15 = vadd.f32 %v8751_v48, %v2965_v60  ;;  %v6673_v60 = vld [vmem:[%s8195_s17 + $0x478] sm:$0xf0] }
 0x398   : > { %v3919_v47 = vadd.f32 %v3918_v8, %v3750_v63  ;;  %v7351_v8 = vld [vmem:[%s8195_s17 + $0x474] sm:$0xf] }
 0x399   : > { %v3135_v45 = vadd.f32 %v3134_v3, %v2966_v15  ;;  %4482 = vmatmul.bf16.gmra.mxu0 %v6664_v21  ;;  %5333 = vmatmul.bf16.gmra.mxu2 %v6984_v23  ;;  %v6991_v3 = vld [vmem:[%s8195_s17 + $0x670] sm:$0xf]  ;;  %v7416_v23 = vld [vmem:[%s8195_s17 + $0x674] sm:$0xf0]  ;;  %v6993_v15 = vld [vmem:[%s8195_s17 + $0x678] sm:$0xf0] }
 0x39a   : > { %4651 = vmatmul.bf16.gmra.mxu1 %v6668_v61  ;;  %v3990_v30 = vmax.f32 %v3919_v47, 0.0 }
 0x39b   : > { %v3204_v21 = vmax.f32 %v3135_v45, 0.0 }
 0x39c   : > { %5502 = vmatmul.bf16.gmra.mxu3 %v6988_v24  ;;  %v8803_v58 = vmax.f32 %v3203_v26, %v3990_v30  ;;  %v3752_v39 = vpop.f32.mrf.mxu2  ;;  %v7415_v24 = vld [vmem:[%s8195_s17 + $0x674] sm:$0xf] }
 0x39d   : > { %v3753_v22 = vadd.f32 %v8751_v48, %v3752_v39  ;;  %v6672_v39 = vor.u32 %v7352_v46, %v6671_v51 }
 0x39e   : > { %9391 = vst [vmem:[#allocation23_spill] sm:$0xff] %v8803_v58  ;;  %v2967_v40 = vpop.f32.mrf.mxu0  ;;  %v6676_v58 = vor.u32 %v7351_v8, %v6673_v60 }
 0x39f   : > { %v3921_v13 = vpop.f32.mrf.mxu3  ;;  %v3136_v0 = vpop.f32.mrf.mxu1  ;;  %v2968_v61 = vadd.f32 %v8751_v48, %v2967_v40 }
 0x3a0   : > { %v3922_v17 = vadd.f32 %v3921_v13, %v3753_v22 }
 0x3a1   : > { %v3137_v49 = vadd.f32 %v3136_v0, %v2968_v61  ;;  %v6992_v0 = vor.u32 %v7416_v23, %v6991_v3  ;;  %v6996_v61 = vor.u32 %v7415_v24, %v6993_v15  ;;  %v6679_v15 = vld [vmem:[%s8195_s17 + $0x480] sm:$0xf] }
 0x3a2   : > { %v3991_v63 = vmax.f32 %v3922_v17, 0.0 }
 0x3a4   : > { %v8815_v47 = vmax.f32 %v3204_v21, %v3991_v63  ;;  %v3754_v26 = vpop.f32.mrf.mxu2  ;;  %v3205_v21 = vmax.f32 %v3137_v49, 0.0 }
 0x3a5   : > { %v3755_v40 = vadd.f32 %v8751_v48, %v3754_v26  ;;  %v7354_v26 = vld [vmem:[%s8195_s17 + $0x484] sm:$0xf0] }
 0x3a6   : > { %v2970_v13 = vpop.f32.mrf.mxu0 }
 0x3a7   : > { %v3923_v30 = vpop.f32.mrf.mxu3  ;;  %v3139_v22 = vpop.f32.mrf.mxu1  ;;  %v2971_v45 = vadd.f32 %v8751_v48, %v2970_v13  ;;  %v6681_v13 = vld [vmem:[%s8195_s17 + $0x488] sm:$0xf0] }
 0x3a8   : > { %v3924_v17 = vadd.f32 %v3923_v30, %v3755_v40  ;;  %v7353_v30 = vld [vmem:[%s8195_s17 + $0x484] sm:$0xf] }
 0x3a9   : > { %v3140_v33 = vadd.f32 %v3139_v22, %v2971_v45  ;;  %4487 = vmatmul.bf16.gmra.mxu0 %v6672_v39  ;;  %5338 = vmatmul.bf16.gmra.mxu2 %v6992_v0  ;;  %v6999_v22 = vld [vmem:[%s8195_s17 + $0x680] sm:$0xf]  ;;  %v7418_v0 = vld [vmem:[%s8195_s17 + $0x684] sm:$0xf0]  ;;  %v7001_v45 = vld [vmem:[%s8195_s17 + $0x688] sm:$0xf0] }
 0x3aa   : > { %4656 = vmatmul.bf16.gmra.mxu1 %v6676_v58  ;;  %v3992_v63 = vmax.f32 %v3924_v17, 0.0 }
 0x3ab   : > { %v3206_v39 = vmax.f32 %v3140_v33, 0.0 }
 0x3ac   : > { %5507 = vmatmul.bf16.gmra.mxu3 %v6996_v61  ;;  %v8819_v51 = vmax.f32 %v3205_v21, %v3992_v63  ;;  %v3757_v46 = vpop.f32.mrf.mxu2  ;;  %v7417_v61 = vld [vmem:[%s8195_s17 + $0x684] sm:$0xf] }
 0x3ad   : > { %v3758_v60 = vadd.f32 %v8751_v48, %v3757_v46  ;;  %v6680_v46 = vor.u32 %v7354_v26, %v6679_v15  ;;  %v7004_v33 = vor.u32 %v7417_v61, %v7001_v45 }
 0x3ae   : > { %9392 = vst [vmem:[#allocation24_spill] sm:$0xff] %v8819_v51  ;;  %v2972_v3 = vpop.f32.mrf.mxu0  ;;  %v6684_v51 = vor.u32 %v7353_v30, %v6681_v13 }
 0x3af   : > { %v3926_v8 = vpop.f32.mrf.mxu3  ;;  %v3141_v23 = vpop.f32.mrf.mxu1  ;;  %v2973_v58 = vadd.f32 %v8751_v48, %v2972_v3 }
 0x3b0   : > { %v3927_v24 = vadd.f32 %v3926_v8, %v3758_v60 }
 0x3b1   : > { %v3142_v49 = vadd.f32 %v3141_v23, %v2973_v58  ;;  %v7000_v23 = vor.u32 %v7418_v0, %v6999_v22 }
 0x3b2   : > { %v3993_v40 = vmax.f32 %v3927_v24, 0.0 }
 0x3b4   : > { %v8831_v17 = vmax.f32 %v3206_v39, %v3993_v40  ;;  %v3759_v21 = vpop.f32.mrf.mxu2  ;;  %v3207_v39 = vmax.f32 %v3142_v49, 0.0 }
 0x3b5   : > { %v3760_v8 = vadd.f32 %v8751_v48, %v3759_v21  ;;  %v6687_v21 = vld [vmem:[%s8195_s17 + $0x490] sm:$0xf] }
 0x3b6   : > { %9393 = vst [vmem:[#allocation25_spill] sm:$0xff] %v8831_v17  ;;  %v4453_v60 = vpop.f32.mrf.mxu0 }
 0x3b7   : > { %v3928_v63 = vpop.f32.mrf.mxu3  ;;  %v4622_v3 = vpop.f32.mrf.mxu1  ;;  %v4454_v58 = vadd.f32 %v8751_v48, %v4453_v60 }
 0x3b8   : > { %v3929_v24 = vadd.f32 %v3928_v63, %v3760_v8  ;;  %v7356_v63 = vld [vmem:[%s8195_s17 + $0x494] sm:$0xf0] }
 0x3b9   : > { %4492 = vmatmul.bf16.gmra.mxu0 %v6680_v46  ;;  %v4623_v15 = vadd.f32 %v4622_v3, %v4454_v58  ;;  %5343 = vmatmul.bf16.gmra.mxu2 %v7000_v23  ;;  %v7355_v46 = vld [vmem:[%s8195_s17 + $0x494] sm:$0xf]  ;;  %v6689_v23 = vld [vmem:[%s8195_s17 + $0x498] sm:$0xf0]  ;;  %v7420_v58 = vld [vmem:[%s8195_s17 + $0x694] sm:$0xf0] }
 0x3ba   : > { %4661 = vmatmul.bf16.gmra.mxu1 %v6684_v51  ;;  %v3994_v40 = vmax.f32 %v3929_v24, 0.0  ;;  %v7419_v24 = vld [vmem:[%s8195_s17 + $0x694] sm:$0xf] }
 0x3bb   : > { %v4782_v22 = vmax.f32 %v4623_v15, 0.0 }
 0x3bc   : > { %5512 = vmatmul.bf16.gmra.mxu3 %v7004_v33  ;;  %v8837_v26 = vmax.f32 %v3207_v39, %v3994_v40  ;;  %v5304_v30 = vpop.f32.mrf.mxu2  ;;  %v7007_v33 = vld [vmem:[%s8195_s17 + $0x690] sm:$0xf]  ;;  %v7009_v39 = vld [vmem:[%s8195_s17 + $0x698] sm:$0xf0] }
 0x3bd   : > { %v5305_v0 = vadd.f32 %v8751_v48, %v5304_v30  ;;  %v4846_v8 = vmax.f32 %v8325_v19, %v4782_v22 }
 0x3be   : > { %9394 = vst [vmem:[#allocation26_spill] sm:$0xff] %v8837_v26  ;;  %v4455_v51 = vpop.f32.mrf.mxu0 }
 0x3bf   : > { %v5473_v13 = vpop.f32.mrf.mxu3  ;;  %v4624_v49 = vpop.f32.mrf.mxu1  ;;  %v4456_v61 = vadd.f32 %v8751_v48, %v4455_v51 }
 0x3c0   : > { %v5474_v45 = vadd.f32 %v5473_v13, %v5305_v0  ;;  %v6688_v13 = vor.u32 %v7356_v63, %v6687_v21  ;;  %v6692_v0 = vor.u32 %v7355_v46, %v6689_v23 }
 0x3c1   : > { %v4625_v3 = vadd.f32 %v4624_v49, %v4456_v61  ;;  %v7008_v61 = vor.u32 %v7420_v58, %v7007_v33 }
 0x3c2   : > { %v5633_v60 = vmax.f32 %v5474_v45, 0.0  ;;  %v7012_v45 = vor.u32 %v7419_v24, %v7009_v39  ;;  %v6695_v24 = vld [vmem:[%s8195_s17 + $0x4a0] sm:$0xf]  ;;  %v7358_v39 = vld [vmem:[%s8195_s17 + $0x4a4] sm:$0xf0] }
 0x3c3   : > { %v4783_v19 = vmax.f32 %v4625_v3, 0.0 }
 0x3c4   : > { %v5697_v40 = vmax.f32 %v4846_v8, %v5633_v60  ;;  %v5306_v15 = vpop.f32.mrf.mxu2 }
 0x3c5   : > { %v5307_v22 = vadd.f32 %v8751_v48, %v5306_v15  ;;  %v4847_v8 = vmax.f32 %v8329_v34, %v4783_v19  ;;  %v7015_v19 = vld [vmem:[%s8195_s17 + $0x6a0] sm:$0xf] }
 0x3c6   : > { %5762 = vst.msk [vmem:[%s8850_s27] sm:$0xff] %vm5761_vm0, %v5697_v40  ;;  %v4458_v51 = vpop.f32.mrf.mxu0  ;;  %v7357_v40 = vld [vmem:[%s8195_s17 + $0x4a4] sm:$0xf] }
 0x3c7   : > { %v5475_v30 = vpop.f32.mrf.mxu3  ;;  %v4627_v49 = vpop.f32.mrf.mxu1  ;;  %v4459_v26 = vadd.f32 %v8751_v48, %v4458_v51  ;;  %v7421_v51 = vld [vmem:[%s8195_s17 + $0x6a4] sm:$0xf] }
 0x3c8   : > { %v5476_v17 = vadd.f32 %v5475_v30, %v5307_v22  ;;  %v7422_v22 = vld [vmem:[%s8195_s17 + $0x6a4] sm:$0xf0] }
 0x3c9   : > { %4497 = vmatmul.bf16.gmra.mxu0 %v6688_v13  ;;  %v4628_v63 = vadd.f32 %v4627_v49, %v4459_v26  ;;  %5348 = vmatmul.bf16.gmra.mxu2 %v7008_v61  ;;  %v7017_v49 = vld [vmem:[%s8195_s17 + $0x6a8] sm:$0xf0] }
 0x3ca   : > { %4666 = vmatmul.bf16.gmra.mxu1 %v6692_v0  ;;  %v5634_v21 = vmax.f32 %v5476_v17, 0.0  ;;  %v6697_v0 = vld [vmem:[%s8195_s17 + $0x4a8] sm:$0xf0] }
 0x3cb   : > { %v4784_v23 = vmax.f32 %v4628_v63, 0.0  ;;  %v6700_v63 = vor.u32 %v7357_v40, %v6697_v0 }
 0x3cc   : > { %5517 = vmatmul.bf16.gmra.mxu3 %v7012_v45  ;;  %v5698_v46 = vmax.f32 %v4847_v8, %v5634_v21  ;;  %v5309_v60 = vpop.f32.mrf.mxu2  ;;  %v6696_v21 = vor.u32 %v7358_v39, %v6695_v24 }
 0x3cd   : > { %v5310_v33 = vadd.f32 %v8751_v48, %v5309_v60  ;;  %v4848_v15 = vmax.f32 %v8341_v54, %v4784_v23  ;;  %v7016_v23 = vor.u32 %v7422_v22, %v7015_v19 }
 0x3ce   : > { %5763 = vst.msk [vmem:[%s8850_s27 + $0x8] sm:$0xff] %vm5761_vm0, %v5698_v46  ;;  %v4460_v34 = vpop.f32.mrf.mxu0 }
 0x3cf   : > { %v5478_v3 = vpop.f32.mrf.mxu3  ;;  %v4629_v58 = vpop.f32.mrf.mxu1  ;;  %v4461_v17 = vadd.f32 %v8751_v48, %v4460_v34 }
 0x3d0   : > { %v5479_v26 = vadd.f32 %v5478_v3, %v5310_v33  ;;  %v7020_v33 = vor.u32 %v7421_v51, %v7017_v49  ;;  %v6703_v51 = vld [vmem:[%s8195_s17 + $0x4b0] sm:$0xf]  ;;  %v7360_v49 = vld [vmem:[%s8195_s17 + $0x4b4] sm:$0xf0] }
 0x3d1   : > { %v4630_v13 = vadd.f32 %v4629_v58, %v4461_v17 }
 0x3d2   : > { %v5635_v30 = vmax.f32 %v5479_v26, 0.0 }
 0x3d3   : > { %v4785_v46 = vmax.f32 %v4630_v13, 0.0 }
 0x3d4   : > { %v5699_v61 = vmax.f32 %v4848_v15, %v5635_v30  ;;  %v5311_v45 = vpop.f32.mrf.mxu2 }
 0x3d5   : > { %v5312_v60 = vadd.f32 %v8751_v48, %v5311_v45  ;;  %v4849_v17 = vmax.f32 %v8345_v5, %v4785_v46  ;;  %v7023_v46 = vld [vmem:[%s8195_s17 + $0x6b0] sm:$0xf] }
 0x3d6   : > { %5764 = vst.msk [vmem:[%s8850_s27 + $0x10] sm:$0xff] %vm5761_vm0, %v5699_v61  ;;  %v4463_v3 = vpop.f32.mrf.mxu0  ;;  %v7359_v61 = vld [vmem:[%s8195_s17 + $0x4b4] sm:$0xf] }
 0x3d7   : > { %v5480_v8 = vpop.f32.mrf.mxu3  ;;  %v4632_v54 = vpop.f32.mrf.mxu1  ;;  %v4464_v34 = vadd.f32 %v8751_v48, %v4463_v3  ;;  %v7423_v3 = vld [vmem:[%s8195_s17 + $0x6b4] sm:$0xf] }
 0x3d8   : > { %v5481_v58 = vadd.f32 %v5480_v8, %v5312_v60  ;;  %v7424_v60 = vld [vmem:[%s8195_s17 + $0x6b4] sm:$0xf0] }
 0x3d9   : > { %4502 = vmatmul.bf16.gmra.mxu0 %v6696_v21  ;;  %v4633_v24 = vadd.f32 %v4632_v54, %v4464_v34  ;;  %5353 = vmatmul.bf16.gmra.mxu2 %v7016_v23  ;;  %v7025_v54 = vld [vmem:[%s8195_s17 + $0x6b8] sm:$0xf0] }
 0x3da   : > { %4671 = vmatmul.bf16.gmra.mxu1 %v6700_v63  ;;  %v5636_v26 = vmax.f32 %v5481_v58, 0.0  ;;  %v6705_v63 = vld [vmem:[%s8195_s17 + $0x4b8] sm:$0xf0]  ;;  %v6704_v58 = vor.u32 %v7360_v49, %v6703_v51 }
 0x3db   : > { %v4786_v30 = vmax.f32 %v4633_v24, 0.0 }
 0x3dc   : > { %5522 = vmatmul.bf16.gmra.mxu3 %v7020_v33  ;;  %v5700_v39 = vmax.f32 %v4849_v17, %v5636_v26  ;;  %v5314_v40 = vpop.f32.mrf.mxu2  ;;  %v6708_v17 = vor.u32 %v7359_v61, %v6705_v63 }
 0x3dd   : > { %v5315_v13 = vadd.f32 %v8751_v48, %v5314_v40  ;;  %v4850_v45 = vmax.f32 %v8357_v25, %v4786_v30  ;;  %v7024_v40 = vor.u32 %v7424_v60, %v7023_v46  ;;  %v6711_v46 = vld [vmem:[%s8195_s17 + $0x4c0] sm:$0xf]  ;;  %v7362_v60 = vld [vmem:[%s8195_s17 + $0x4c4] sm:$0xf0] }
 0x3de   : > { %5765 = vst.msk [vmem:[%s8850_s27 + $0x18] sm:$0xff] %vm5761_vm0, %v5700_v39  ;;  %v4465_v5 = vpop.f32.mrf.mxu0 }
 0x3df   : > { %v5483_v15 = vpop.f32.mrf.mxu3  ;;  %v4634_v0 = vpop.f32.mrf.mxu1  ;;  %v4466_v19 = vadd.f32 %v8751_v48, %v4465_v5 }
 0x3e0   : > { %v5484_v22 = vadd.f32 %v5483_v15, %v5315_v13  ;;  %v7028_v15 = vor.u32 %v7423_v3, %v7025_v54  ;;  %v7361_v3 = vld [vmem:[%s8195_s17 + $0x4c4] sm:$0xf] }
 0x3e1   : > { %v4635_v21 = vadd.f32 %v4634_v0, %v4466_v19 }
 0x3e2   : > { %v5637_v8 = vmax.f32 %v5484_v22, 0.0 }
 0x3e3   : > { %v4787_v26 = vmax.f32 %v4635_v21, 0.0 }
 0x3e4   : > { %v5701_v23 = vmax.f32 %v4850_v45, %v5637_v8  ;;  %v5316_v33 = vpop.f32.mrf.mxu2 }
 0x3e5   : > { %v5317_v24 = vadd.f32 %v8751_v48, %v5316_v33  ;;  %v4851_v5 = vmax.f32 %v8361_v41, %v4787_v26  ;;  %v7425_v26 = vld [vmem:[%s8195_s17 + $0x6c4] sm:$0xf] }
 0x3e6   : > { %5766 = vst.msk [vmem:[%s8850_s27 + $0x20] sm:$0xff] %vm5761_vm0, %v5701_v23  ;;  %v4468_v39 = vpop.f32.mrf.mxu0 }
 0x3e7   : > { %v5485_v34 = vpop.f32.mrf.mxu3  ;;  %v4637_v25 = vpop.f32.mrf.mxu1  ;;  %v4469_v30 = vadd.f32 %v8751_v48, %v4468_v39 }
 0x3e8   : > { %v5486_v13 = vadd.f32 %v5485_v34, %v5317_v24  ;;  %v6713_v34 = vld [vmem:[%s8195_s17 + $0x4c8] sm:$0xf0] }
 0x3e9   : > { %4507 = vmatmul.bf16.gmra.mxu0 %v6704_v58  ;;  %v4638_v19 = vadd.f32 %v4637_v25, %v4469_v30  ;;  %5358 = vmatmul.bf16.gmra.mxu2 %v7024_v40  ;;  %v7031_v58 = vld [vmem:[%s8195_s17 + $0x6c0] sm:$0xf]  ;;  %v7033_v24 = vld [vmem:[%s8195_s17 + $0x6c8] sm:$0xf0]  ;;  %v6716_v30 = vor.u32 %v7361_v3, %v6713_v34  ;;  %v7364_v34 = vld [vmem:[%s8195_s17 + $0x4d4] sm:$0xf0] }
 0x3ea   : > { %4676 = vmatmul.bf16.gmra.mxu1 %v6708_v17  ;;  %v5638_v0 = vmax.f32 %v5486_v13, 0.0  ;;  %v7426_v17 = vld [vmem:[%s8195_s17 + $0x6c4] sm:$0xf0] }
 0x3eb   : > { %v4788_v61 = vmax.f32 %v4638_v19, 0.0  ;;  %v7032_v19 = vor.u32 %v7426_v17, %v7031_v58  ;;  %v7363_v58 = vld [vmem:[%s8195_s17 + $0x4d4] sm:$0xf] }
 0x3ec   : > { %5527 = vmatmul.bf16.gmra.mxu3 %v7028_v15  ;;  %v5702_v22 = vmax.f32 %v4851_v5, %v5638_v0  ;;  %v5319_v51 = vpop.f32.mrf.mxu2  ;;  %v6712_v15 = vor.u32 %v7362_v60, %v6711_v46 }
 0x3ed   : > { %v5320_v45 = vadd.f32 %v8751_v48, %v5319_v51  ;;  %v4852_v54 = vmax.f32 %v8373_v62, %v4788_v61 }
 0x3ee   : > { %5767 = vst.msk [vmem:[%s8850_s27 + $0x28] sm:$0xff] %vm5761_vm0, %v5702_v22  ;;  %v4470_v41 = vpop.f32.mrf.mxu0  ;;  %v7036_v22 = vor.u32 %v7425_v26, %v7033_v24 }
 0x3ef   : > { %v5488_v49 = vpop.f32.mrf.mxu3  ;;  %v4639_v8 = vpop.f32.mrf.mxu1  ;;  %v4471_v21 = vadd.f32 %v8751_v48, %v4470_v41 }
 0x3f0   : > { %v5489_v63 = vadd.f32 %v5488_v49, %v5320_v45 }
 0x3f1   : > { %v4640_v33 = vadd.f32 %v4639_v8, %v4471_v21 }
 0x3f2   : > { %v5639_v23 = vmax.f32 %v5489_v63, 0.0 }
 0x3f3   : > { %v4789_v13 = vmax.f32 %v4640_v33, 0.0  ;;  %v6719_v33 = vld [vmem:[%s8195_s17 + $0x4d0] sm:$0xf] }
 0x3f4   : > { %v5703_v39 = vmax.f32 %v4852_v54, %v5639_v23  ;;  %v5321_v25 = vpop.f32.mrf.mxu2 }
 0x3f5   : > { %v5322_v5 = vadd.f32 %v8751_v48, %v5321_v25  ;;  %v4853_v61 = vmax.f32 %v8377_v14, %v4789_v13  ;;  %v7039_v25 = vld [vmem:[%s8195_s17 + $0x6d0] sm:$0xf] }
 0x3f6   : > { %5768 = vst.msk [vmem:[%s8850_s27 + $0x30] sm:$0xff] %vm5761_vm0, %v5703_v39  ;;  %v4473_v0 = vpop.f32.mrf.mxu0  ;;  %v6721_v39 = vld [vmem:[%s8195_s17 + $0x4d8] sm:$0xf0] }
 0x3f7   : > { %v5490_v40 = vpop.f32.mrf.mxu3  ;;  %v4642_v62 = vpop.f32.mrf.mxu1  ;;  %v4474_v51 = vadd.f32 %v8751_v48, %v4473_v0 }
 0x3f8   : > { %v5491_v49 = vadd.f32 %v5490_v40, %v5322_v5  ;;  %v7428_v40 = vld [vmem:[%s8195_s17 + $0x6d4] sm:$0xf0] }
 0x3f9   : > { %4512 = vmatmul.bf16.gmra.mxu0 %v6712_v15  ;;  %v4643_v41 = vadd.f32 %v4642_v62, %v4474_v51  ;;  %5363 = vmatmul.bf16.gmra.mxu2 %v7032_v19  ;;  %v7427_v15 = vld [vmem:[%s8195_s17 + $0x6d4] sm:$0xf]  ;;  %v6720_v62 = vor.u32 %v7364_v34, %v6719_v33  ;;  %v6724_v19 = vor.u32 %v7363_v58, %v6721_v39 }
 0x3fa   : > { %4681 = vmatmul.bf16.gmra.mxu1 %v6716_v30  ;;  %v5640_v45 = vmax.f32 %v5491_v49, 0.0  ;;  %v7041_v30 = vld [vmem:[%s8195_s17 + $0x6d8] sm:$0xf0] }
 0x3fb   : > { %v4790_v46 = vmax.f32 %v4643_v41, 0.0 }
 0x3fc   : > { %5532 = vmatmul.bf16.gmra.mxu3 %v7036_v22  ;;  %v5704_v8 = vmax.f32 %v4853_v61, %v5640_v45  ;;  %v5324_v21 = vpop.f32.mrf.mxu2  ;;  %v7040_v61 = vor.u32 %v7428_v40, %v7039_v25  ;;  %v7044_v45 = vor.u32 %v7427_v15, %v7041_v30  ;;  %v6729_v15 = vld [vmem:[%s8195_s17 + $0x4e8] sm:$0xf0]  ;;  %v7047_v30 = vld [vmem:[%s8195_s17 + $0x6e0] sm:$0xf] }
 0x3fd   : > { %v5325_v60 = vadd.f32 %v8751_v48, %v5324_v21  ;;  %v4854_v17 = vmax.f32 %v8389_v36, %v4790_v46 }
 0x3fe   : > { %5769 = vst.msk [vmem:[%s8850_s27 + $0x38] sm:$0xff] %vm5761_vm0, %v5704_v8  ;;  %v4475_v14 = vpop.f32.mrf.mxu0 }
 0x3ff   : > { %v5493_v63 = vpop.f32.mrf.mxu3  ;;  %v4644_v3 = vpop.f32.mrf.mxu1  ;;  %v4476_v54 = vadd.f32 %v8751_v48, %v4475_v14 }
 0x400   : > { %v5494_v23 = vadd.f32 %v5493_v63, %v5325_v60 }
 0x401   : > { %v4645_v24 = vadd.f32 %v4644_v3, %v4476_v54 }
 0x402   : > { %v5641_v26 = vmax.f32 %v5494_v23, 0.0 }
 0x403   : > { %v4791_v22 = vmax.f32 %v4645_v24, 0.0  ;;  %v7365_v24 = vld [vmem:[%s8195_s17 + $0x4e4] sm:$0xf] }
 0x404   : > { %v5705_v13 = vmax.f32 %v4854_v17, %v5641_v26  ;;  %v5326_v5 = vpop.f32.mrf.mxu2  ;;  %v6727_v17 = vld [vmem:[%s8195_s17 + $0x4e0] sm:$0xf]  ;;  %v7366_v26 = vld [vmem:[%s8195_s17 + $0x4e4] sm:$0xf0] }
 0x405   : > { %v5327_v51 = vadd.f32 %v8751_v48, %v5326_v5  ;;  %v4855_v21 = vmax.f32 %v8393_v53, %v4791_v22  ;;  %v7429_v5 = vld [vmem:[%s8195_s17 + $0x6e4] sm:$0xf] }
 0x406   : > { %5770 = vst.msk [vmem:[%s8850_s27 + $0x40] sm:$0xff] %vm5761_vm0, %v5705_v13  ;;  %v4478_v49 = vpop.f32.mrf.mxu0  ;;  %v7430_v13 = vld [vmem:[%s8195_s17 + $0x6e4] sm:$0xf0] }
 0x407   : > { %v5495_v0 = vpop.f32.mrf.mxu3  ;;  %v4647_v36 = vpop.f32.mrf.mxu1  ;;  %v4479_v41 = vadd.f32 %v8751_v48, %v4478_v49  ;;  %v6732_v49 = vor.u32 %v7365_v24, %v6729_v15  ;;  %v7368_v24 = vld [vmem:[%s8195_s17 + $0x4f4] sm:$0xf0] }
 0x408   : > { %v5496_v8 = vadd.f32 %v5495_v0, %v5327_v51  ;;  %v7049_v0 = vld [vmem:[%s8195_s17 + $0x6e8] sm:$0xf0]  ;;  %v6728_v51 = vor.u32 %v7366_v26, %v6727_v17  ;;  %v6735_v26 = vld [vmem:[%s8195_s17 + $0x4f0] sm:$0xf] }
 0x409   : > { %4517 = vmatmul.bf16.gmra.mxu0 %v6720_v62  ;;  %v4648_v46 = vadd.f32 %v4647_v36, %v4479_v41  ;;  %5368 = vmatmul.bf16.gmra.mxu2 %v7040_v61  ;;  %v7048_v41 = vor.u32 %v7430_v13, %v7047_v30  ;;  %v6737_v30 = vld [vmem:[%s8195_s17 + $0x4f8] sm:$0xf0]  ;;  %v7055_v13 = vld [vmem:[%s8195_s17 + $0x6f0] sm:$0xf] }
 0x40a   : > { %4686 = vmatmul.bf16.gmra.mxu1 %v6724_v19  ;;  %v5642_v63 = vmax.f32 %v5496_v8, 0.0  ;;  %v7052_v8 = vor.u32 %v7429_v5, %v7049_v0  ;;  %v7432_v5 = vld [vmem:[%s8195_s17 + $0x6f4] sm:$0xf0]  ;;  %v7431_v0 = vld [vmem:[%s8195_s17 + $0x6f4] sm:$0xf] }
 0x40b   : > { %v4792_v54 = vmax.f32 %v4648_v46, 0.0 }
 0x40c   : > { %5537 = vmatmul.bf16.gmra.mxu3 %v7044_v45  ;;  %v5706_v60 = vmax.f32 %v4855_v21, %v5642_v63  ;;  %v5329_v14 = vpop.f32.mrf.mxu2 }
 0x40d   : > { %v5330_v23 = vadd.f32 %v8751_v48, %v5329_v14  ;;  %v4856_v39 = vmax.f32 %v8405_v11, %v4792_v54 }
 0x40e   : > { %5771 = vst.msk [vmem:[%s8850_s27 + $0x48] sm:$0xff] %vm5761_vm0, %v5706_v60  ;;  %v4480_v53 = vpop.f32.mrf.mxu0 }
 0x40f   : > { %v5498_v3 = vpop.f32.mrf.mxu3  ;;  %v4649_v33 = vpop.f32.mrf.mxu1  ;;  %v4481_v34 = vadd.f32 %v8751_v48, %v4480_v53 }
 0x410   : > { %v5499_v58 = vadd.f32 %v5498_v3, %v5330_v23 }
 0x411   : > { %v4650_v40 = vadd.f32 %v4649_v33, %v4481_v34 }
 0x412   : > { %v5643_v25 = vmax.f32 %v5499_v58, 0.0 }
 0x413   : > { %v4793_v36 = vmax.f32 %v4650_v40, 0.0 }
 0x414   : > { %v5707_v62 = vmax.f32 %v4856_v39, %v5643_v25  ;;  %v5331_v19 = vpop.f32.mrf.mxu2  ;;  %v7367_v39 = vld [vmem:[%s8195_s17 + $0x4f4] sm:$0xf] }
 0x415   : > { %v5332_v61 = vadd.f32 %v8751_v48, %v5331_v19  ;;  %v4857_v46 = vmax.f32 %v8409_v29, %v4793_v36  ;;  %v6740_v36 = vor.u32 %v7367_v39, %v6737_v30  ;;  %v7063_v30 = vld [vmem:[%s8195_s17 + $0x700] sm:$0xf] }
 0x416   : > { %5772 = vst.msk [vmem:[%s8850_s27 + $0x50] sm:$0xff] %vm5761_vm0, %v5707_v62  ;;  %v4483_v45 = vpop.f32.mrf.mxu0  ;;  %v7057_v62 = vld [vmem:[%s8195_s17 + $0x6f8] sm:$0xf0] }
 0x417   : > { %v5500_v22 = vpop.f32.mrf.mxu3  ;;  %v4652_v11 = vpop.f32.mrf.mxu1  ;;  %v4484_v21 = vadd.f32 %v8751_v48, %v4483_v45 }
 0x418   : > { %v5501_v63 = vadd.f32 %v5500_v22, %v5332_v61 }
 0x419   : > { %4522 = vmatmul.bf16.gmra.mxu0 %v6728_v51  ;;  %v4653_v14 = vadd.f32 %v4652_v11, %v4484_v21  ;;  %5373 = vmatmul.bf16.gmra.mxu2 %v7048_v41  ;;  %v7056_v41 = vor.u32 %v7432_v5, %v7055_v13  ;;  %v7434_v13 = vld [vmem:[%s8195_s17 + $0x704] sm:$0xf0]  ;;  %v7433_v5 = vld [vmem:[%s8195_s17 + $0x704] sm:$0xf] }
 0x41a   : > { %4691 = vmatmul.bf16.gmra.mxu1 %v6732_v49  ;;  %v5644_v60 = vmax.f32 %v5501_v63, 0.0  ;;  %v6736_v49 = vor.u32 %v7368_v24, %v6735_v26  ;;  %v7370_v26 = vld [vmem:[%s8195_s17 + $0x504] sm:$0xf0]  ;;  %v7369_v24 = vld [vmem:[%s8195_s17 + $0x504] sm:$0xf] }
 0x41b   : > { %v4794_v53 = vmax.f32 %v4653_v14, 0.0 }
 0x41c   : > { %5542 = vmatmul.bf16.gmra.mxu3 %v7052_v8  ;;  %v5708_v3 = vmax.f32 %v4857_v46, %v5644_v60  ;;  %v5334_v54 = vpop.f32.mrf.mxu2  ;;  %v7060_v8 = vor.u32 %v7431_v0, %v7057_v62  ;;  %v7065_v0 = vld [vmem:[%s8195_s17 + $0x708] sm:$0xf0] }
 0x41d   : > { %v5335_v33 = vadd.f32 %v8751_v48, %v5334_v54  ;;  %v4858_v25 = vmax.f32 %v8421_v52, %v4794_v53 }
 0x41e   : > { %5773 = vst.msk [vmem:[%s8850_s27 + $0x58] sm:$0xff] %vm5761_vm0, %v5708_v3  ;;  %v4485_v29 = vpop.f32.mrf.mxu0 }
 0x41f   : > { %v5503_v23 = vpop.f32.mrf.mxu3  ;;  %v4654_v34 = vpop.f32.mrf.mxu1  ;;  %v4486_v58 = vadd.f32 %v8751_v48, %v4485_v29 }
 0x420   : > { %v5504_v17 = vadd.f32 %v5503_v23, %v5335_v33 }
 0x421   : > { %v4655_v15 = vadd.f32 %v4654_v34, %v4486_v58 }
 0x422   : > { %v5645_v40 = vmax.f32 %v5504_v17, 0.0  ;;  %v6743_v17 = vld [vmem:[%s8195_s17 + $0x500] sm:$0xf] }
 0x423   : > { %v4795_v61 = vmax.f32 %v4655_v15, 0.0  ;;  %v6745_v15 = vld [vmem:[%s8195_s17 + $0x508] sm:$0xf0] }
 0x424   : > { %v5709_v19 = vmax.f32 %v4858_v25, %v5645_v40  ;;  %v5336_v22 = vpop.f32.mrf.mxu2 }
 0x425   : > { %v5337_v45 = vadd.f32 %v8751_v48, %v5336_v22  ;;  %v4859_v46 = vmax.f32 %v8425_v7, %v4795_v61 }
 0x426   : > { %5774 = vst.msk [vmem:[%s8850_s27 + $0x60] sm:$0xff] %vm5761_vm0, %v5709_v19  ;;  %v4488_v11 = vpop.f32.mrf.mxu0 }
 0x427   : > { %v5505_v51 = vpop.f32.mrf.mxu3  ;;  %v4657_v52 = vpop.f32.mrf.mxu1  ;;  %v4489_v21 = vadd.f32 %v8751_v48, %v4488_v11  ;;  %v7064_v11 = vor.u32 %v7434_v13, %v7063_v30  ;;  %v7073_v30 = vld [vmem:[%s8195_s17 + $0x718] sm:$0xf0] }
 0x428   : > { %v5506_v63 = vadd.f32 %v5505_v51, %v5337_v45  ;;  %v6744_v51 = vor.u32 %v7370_v26, %v6743_v17 }
 0x429   : > { %4527 = vmatmul.bf16.gmra.mxu0 %v6736_v49  ;;  %v4658_v14 = vadd.f32 %v4657_v52, %v4489_v21  ;;  %5378 = vmatmul.bf16.gmra.mxu2 %v7056_v41  ;;  %v6748_v49 = vor.u32 %v7369_v24, %v6745_v15  ;;  %v7068_v52 = vor.u32 %v7433_v5, %v7065_v0  ;;  %v7435_v15 = vld [vmem:[%s8195_s17 + $0x714] sm:$0xf] }
 0x42a   : > { %4696 = vmatmul.bf16.gmra.mxu1 %v6740_v36  ;;  %v5646_v60 = vmax.f32 %v5506_v63, 0.0  ;;  %v8986_v36 = vld [vmem:[%s9369_s2] ss:$0 sm:$0xff] }
 0x42b   : > { %v4796_v53 = vmax.f32 %v4658_v14, 0.0 }
 0x42c   : > { %5547 = vmatmul.bf16.gmra.mxu3 %v7060_v8  ;;  %v5710_v3 = vmax.f32 %v4859_v46, %v5646_v60  ;;  %v5339_v54 = vpop.f32.mrf.mxu2 }
 0x42d   : > { %v5340_v33 = vadd.f32 %v8751_v48, %v5339_v54  ;;  %v4860_v39 = vmax.f32 %v8437_v31, %v4796_v53 }
 0x42e   : > { %5775 = vst.msk [vmem:[%s8850_s27 + $0x68] sm:$0xff] %vm5761_vm0, %v5710_v3  ;;  %v4490_v7 = vpop.f32.mrf.mxu0 }
 0x42f   : > { %v5508_v23 = vpop.f32.mrf.mxu3  ;;  %v4659_v29 = vpop.f32.mrf.mxu1  ;;  %v4491_v34 = vadd.f32 %v8751_v48, %v4490_v7 }
 0x430   : > { %v5509_v58 = vadd.f32 %v5508_v23, %v5340_v33 }
 0x431   : > { %v4660_v40 = vadd.f32 %v4659_v29, %v4491_v34  ;;  %v6751_v29 = vld [vmem:[%s8195_s17 + $0x510] sm:$0xf]  ;;  %v7372_v34 = vld [vmem:[%s8195_s17 + $0x514] sm:$0xf0] }
 0x432   : > { %v5647_v25 = vmax.f32 %v5509_v58, 0.0  ;;  %v7371_v58 = vld [vmem:[%s8195_s17 + $0x514] sm:$0xf] }
 0x433   : > { %v4797_v48 = vmax.f32 %v4660_v40, 0.0  ;;  %v7436_v40 = vld [vmem:[%s8195_s17 + $0x714] sm:$0xf0] }
 0x434   : > { %v5711_v62 = vmax.f32 %v4860_v39, %v5647_v25  ;;  %v5341_v19 = vpop.f32.mrf.mxu2  ;;  %v6753_v39 = vld [vmem:[%s8195_s17 + $0x518] sm:$0xf0]  ;;  %v7071_v25 = vld [vmem:[%s8195_s17 + $0x710] sm:$0xf] }
 0x435   : > { %v5342_v31 = vadd.f32 %v8986_v36, %v5341_v19  ;;  %v4861_v21 = vmax.f32 %v8441_v50, %v4797_v48  ;;  %v6756_v19 = vor.u32 %v7371_v58, %v6753_v39  ;;  %v7072_v48 = vor.u32 %v7436_v40, %v7071_v25  ;;  %v7079_v58 = vld [vmem:[%s8195_s17 + $0x720] sm:$0xf] }
 0x436   : > { %5776 = vst.msk [vmem:[%s8850_s27 + $0x70] sm:$0xff] %vm5761_vm0, %v5711_v62  ;;  %v4493_v61 = vpop.f32.mrf.mxu0  ;;  %v6752_v62 = vor.u32 %v7372_v34, %v6751_v29  ;;  %v6761_v34 = vld [vmem:[%s8195_s17 + $0x528] sm:$0xf0] }
 0x437   : > { %v5510_v22 = vpop.f32.mrf.mxu3  ;;  %v4662_v45 = vpop.f32.mrf.mxu1  ;;  %v4494_v41 = vadd.f32 %v8986_v36, %v4493_v61 }
 0x438   : > { %v5511_v8 = vadd.f32 %v5510_v22, %v5342_v31  ;;  %v7076_v31 = vor.u32 %v7435_v15, %v7073_v30 }
 0x439   : > { %4532 = vmatmul.bf16.gmra.mxu0 %v6744_v51  ;;  %v4663_v46 = vadd.f32 %v4662_v45, %v4494_v41  ;;  %5383 = vmatmul.bf16.gmra.mxu2 %v7064_v11 }
 0x43a   : > { %4701 = vmatmul.bf16.gmra.mxu1 %v6748_v49  ;;  %v5648_v63 = vmax.f32 %v5511_v8, 0.0 }
 0x43b   : > { %v4798_v54 = vmax.f32 %v4663_v46, 0.0 }
 0x43c   : > { %5552 = vmatmul.bf16.gmra.mxu3 %v7068_v52  ;;  %v5712_v60 = vmax.f32 %v4861_v21, %v5648_v63  ;;  %v5344_v14 = vpop.f32.mrf.mxu2 }
 0x43d   : > { %v5345_v23 = vadd.f32 %v8986_v36, %v5344_v14  ;;  %v4862_v17 = vmax.f32 %v8453_v12, %v4798_v54 }
 0x43e   : > { %5777 = vst.msk [vmem:[%s8850_s27 + $0x78] sm:$0xff] %vm5761_vm0, %v5712_v60  ;;  %v4495_v50 = vpop.f32.mrf.mxu0 }
 0x43f   : > { %v5513_v3 = vpop.f32.mrf.mxu3  ;;  %v4664_v53 = vpop.f32.mrf.mxu1  ;;  %v4496_v33 = vadd.f32 %v8986_v36, %v4495_v50  ;;  %v7374_v50 = vld [vmem:[%s8195_s17 + $0x524] sm:$0xf0] }
 0x440   : > { %v5514_v7 = vadd.f32 %v5513_v3, %v5345_v23  ;;  %v6759_v23 = vld [vmem:[%s8195_s17 + $0x520] sm:$0xf] }
 0x441   : > { %v4665_v24 = vadd.f32 %v4664_v53, %v4496_v33  ;;  %v7373_v53 = vld [vmem:[%s8195_s17 + $0x524] sm:$0xf]  ;;  %v6760_v15 = vor.u32 %v7374_v50, %v6759_v23  ;;  %v7087_v23 = vld [vmem:[%s8195_s17 + $0x730] sm:$0xf]  ;;  %v7440_v50 = vld [vmem:[%s8195_s17 + $0x734] sm:$0xf0] }
 0x442   : > { %v5649_v26 = vmax.f32 %v5514_v7, 0.0  ;;  %v6764_v30 = vor.u32 %v7373_v53, %v6761_v34  ;;  %v7439_v53 = vld [vmem:[%s8195_s17 + $0x734] sm:$0xf] }
 0x443   : > { %v4799_v22 = vmax.f32 %v4665_v24, 0.0  ;;  %v7081_v24 = vld [vmem:[%s8195_s17 + $0x728] sm:$0xf0] }
 0x444   : > { %v5713_v13 = vmax.f32 %v4862_v17, %v5649_v26  ;;  %v5346_v5 = vpop.f32.mrf.mxu2  ;;  %v7438_v17 = vld [vmem:[%s8195_s17 + $0x724] sm:$0xf0]  ;;  %v7437_v26 = vld [vmem:[%s8195_s17 + $0x724] sm:$0xf] }
 0x445   : > { %v5347_v51 = vadd.f32 %v8986_v36, %v5346_v5  ;;  %v4863_v11 = vmax.f32 %v8457_v32, %v4799_v22 }
 0x446   : > { %5778 = vst.msk [vmem:[%s8850_s27 + $0x80] sm:$0xff] %vm5761_vm0, %v5713_v13  ;;  %v4498_v49 = vpop.f32.mrf.mxu0 }
 0x447   : > { %v5515_v0 = vpop.f32.mrf.mxu3  ;;  %v4667_v12 = vpop.f32.mrf.mxu1  ;;  %v4499_v61 = vadd.f32 %v8986_v36, %v4498_v49 }
 0x448   : > { %v5516_v45 = vadd.f32 %v5515_v0, %v5347_v51 }
 0x449   : > { %4537 = vmatmul.bf16.gmra.mxu0 %v6752_v62  ;;  %v4668_v41 = vadd.f32 %v4667_v12, %v4499_v61  ;;  %5388 = vmatmul.bf16.gmra.mxu2 %v7072_v48  ;;  %v7080_v62 = vor.u32 %v7438_v17, %v7079_v58 }
 0x44a   : > { %4706 = vmatmul.bf16.gmra.mxu1 %v6756_v19  ;;  %v5650_v52 = vmax.f32 %v5516_v45, 0.0  ;;  %v7084_v19 = vor.u32 %v7437_v26, %v7081_v24 }
 0x44b   : > { %v4800_v46 = vmax.f32 %v4668_v41, 0.0 }
 0x44c   : > { %5557 = vmatmul.bf16.gmra.mxu3 %v7076_v31  ;;  %v5714_v8 = vmax.f32 %v4863_v11, %v5650_v52  ;;  %v5349_v21 = vpop.f32.mrf.mxu2 }
 0x44d   : > { %v5350_v60 = vadd.f32 %v8986_v36, %v5349_v21  ;;  %v4864_v33 = vmax.f32 %v8469_v59, %v4800_v46  ;;  %v7376_v46 = vld [vmem:[%s8195_s17 + $0x534] sm:$0xf0] }
 0x44e   : > { %5779 = vst.msk [vmem:[%s8850_s27 + $0x88] sm:$0xff] %vm5761_vm0, %v5714_v8  ;;  %v4500_v32 = vpop.f32.mrf.mxu0 }
 0x44f   : > { %v5518_v63 = vpop.f32.mrf.mxu3  ;;  %v4669_v14 = vpop.f32.mrf.mxu1  ;;  %v4501_v3 = vadd.f32 %v8986_v36, %v4500_v32 }
 0x450   : > { %v5519_v54 = vadd.f32 %v5518_v63, %v5350_v60  ;;  %v6767_v63 = vld [vmem:[%s8195_s17 + $0x530] sm:$0xf]  ;;  %v7375_v60 = vld [vmem:[%s8195_s17 + $0x534] sm:$0xf] }
 0x451   : > { %v4670_v29 = vadd.f32 %v4669_v14, %v4501_v3  ;;  %v6768_v58 = vor.u32 %v7376_v46, %v6767_v63  ;;  %v7441_v63 = vld [vmem:[%s8195_s17 + $0x744] sm:$0xf]  ;;  %v7097_v46 = vld [vmem:[%s8195_s17 + $0x748] sm:$0xf0] }
 0x452   : > { %v5651_v7 = vmax.f32 %v5519_v54, 0.0  ;;  %v6769_v54 = vld [vmem:[%s8195_s17 + $0x538] sm:$0xf0] }
 0x453   : > { %v4801_v13 = vmax.f32 %v4670_v29, 0.0  ;;  %v6772_v17 = vor.u32 %v7375_v60, %v6769_v54 }
 0x454   : > { %v5715_v39 = vmax.f32 %v4864_v33, %v5651_v7  ;;  %v5351_v25 = vpop.f32.mrf.mxu2  ;;  %v7089_v33 = vld [vmem:[%s8195_s17 + $0x738] sm:$0xf0] }
 0x455   : > { %v5352_v5 = vadd.f32 %v8986_v36, %v5351_v25  ;;  %v4865_v49 = vmax.f32 %v8473_v16, %v4801_v13  ;;  %v7088_v25 = vor.u32 %v7440_v50, %v7087_v23 }
 0x456   : > { %5780 = vst.msk [vmem:[%s8850_s27 + $0x90] sm:$0xff] %vm5761_vm0, %v5715_v39  ;;  %v4503_v0 = vpop.f32.mrf.mxu0 }
 0x457   : > { %v5520_v40 = vpop.f32.mrf.mxu3  ;;  %v4672_v59 = vpop.f32.mrf.mxu1  ;;  %v4504_v22 = vadd.f32 %v8986_v36, %v4503_v0 }
 0x458   : > { %v5521_v51 = vadd.f32 %v5520_v40, %v5352_v5  ;;  %v7092_v40 = vor.u32 %v7439_v53, %v7089_v33 }
 0x459   : > { %4542 = vmatmul.bf16.gmra.mxu0 %v6760_v15  ;;  %v4673_v48 = vadd.f32 %v4672_v59, %v4504_v22  ;;  %5393 = vmatmul.bf16.gmra.mxu2 %v7080_v62 }
 0x45a   : > { %4711 = vmatmul.bf16.gmra.mxu1 %v6764_v30  ;;  %v5652_v12 = vmax.f32 %v5521_v51, 0.0 }
 0x45b   : > { %v4802_v11 = vmax.f32 %v4673_v48, 0.0 }
 0x45c   : > { %5562 = vmatmul.bf16.gmra.mxu3 %v7084_v19  ;;  %v5716_v31 = vmax.f32 %v4865_v49, %v5652_v12  ;;  %v5354_v61 = vpop.f32.mrf.mxu2 }
 0x45d   : > { %v5355_v52 = vadd.f32 %v8986_v36, %v5354_v61  ;;  %v4866_v32 = vmax.f32 %v8485_v43, %v4802_v11  ;;  %v7378_v61 = vld [vmem:[%s8195_s17 + $0x544] sm:$0xf0] }
 0x45e   : > { %5781 = vst.msk [vmem:[%s8850_s27 + $0x98] sm:$0xff] %vm5761_vm0, %v5716_v31  ;;  %v4505_v16 = vpop.f32.mrf.mxu0  ;;  %v6775_v31 = vld [vmem:[%s8195_s17 + $0x540] sm:$0xf] }
 0x45f   : > { %v5523_v45 = vpop.f32.mrf.mxu3  ;;  %v4674_v41 = vpop.f32.mrf.mxu1  ;;  %v4506_v8 = vadd.f32 %v8986_v36, %v4505_v16 }
 0x460   : > { %v5524_v21 = vadd.f32 %v5523_v45, %v5355_v52  ;;  %v7377_v45 = vld [vmem:[%s8195_s17 + $0x544] sm:$0xf] }
 0x461   : > { %v4675_v3 = vadd.f32 %v4674_v41, %v4506_v8  ;;  %v6777_v41 = vld [vmem:[%s8195_s17 + $0x548] sm:$0xf0]  ;;  %v7095_v8 = vld [vmem:[%s8195_s17 + $0x740] sm:$0xf] }
 0x462   : > { %v5653_v14 = vmax.f32 %v5524_v21, 0.0  ;;  %v7442_v21 = vld [vmem:[%s8195_s17 + $0x744] sm:$0xf0]  ;;  %v6780_v54 = vor.u32 %v7377_v45, %v6777_v41 }
 0x463   : > { %v4803_v26 = vmax.f32 %v4675_v3, 0.0  ;;  %v6776_v3 = vor.u32 %v7378_v61, %v6775_v31  ;;  %v7096_v33 = vor.u32 %v7442_v21, %v7095_v8 }
 0x464   : > { %v5717_v7 = vmax.f32 %v4866_v32, %v5653_v14  ;;  %v5356_v29 = vpop.f32.mrf.mxu2 }
 0x465   : > { %v5357_v24 = vadd.f32 %v8986_v36, %v5356_v29  ;;  %v4867_v13 = vmax.f32 %v8489_v1, %v4803_v26 }
 0x466   : > { %5782 = vst.msk [vmem:[%s8850_s27 + $0xa0] sm:$0xff] %vm5761_vm0, %v5717_v7  ;;  %v4508_v39 = vpop.f32.mrf.mxu0  ;;  %v7100_v7 = vor.u32 %v7441_v63, %v7097_v46 }
 0x467   : > { %v5525_v34 = vpop.f32.mrf.mxu3  ;;  %v4677_v43 = vpop.f32.mrf.mxu1  ;;  %v4509_v15 = vadd.f32 %v8986_v36, %v4508_v39 }
 0x468   : > { %v5526_v30 = vadd.f32 %v5525_v34, %v5357_v24 }
 0x469   : > { %4547 = vmatmul.bf16.gmra.mxu0 %v6768_v58  ;;  %v4678_v0 = vadd.f32 %v4677_v43, %v4509_v15  ;;  %5398 = vmatmul.bf16.gmra.mxu2 %v7088_v25 }
 0x46a   : > { %4716 = vmatmul.bf16.gmra.mxu1 %v6772_v17  ;;  %v5654_v5 = vmax.f32 %v5526_v30, 0.0 }
 0x46b   : > { %v4804_v22 = vmax.f32 %v4678_v0, 0.0  ;;  %v7380_v0 = vld [vmem:[%s8195_s17 + $0x554] sm:$0xf0] }
 0x46c   : > { %5567 = vmatmul.bf16.gmra.mxu3 %v7092_v40  ;;  %v5718_v59 = vmax.f32 %v4867_v13, %v5654_v5  ;;  %v5359_v62 = vpop.f32.mrf.mxu2  ;;  %v6783_v5 = vld [vmem:[%s8195_s17 + $0x550] sm:$0xf] }
 0x46d   : > { %v5360_v51 = vadd.f32 %v8986_v36, %v5359_v62  ;;  %v4868_v11 = vmax.f32 %v8501_v28, %v4804_v22 }
 0x46e   : > { %5783 = vst.msk [vmem:[%s8850_s27 + $0xa8] sm:$0xff] %vm5761_vm0, %v5718_v59  ;;  %v4510_v1 = vpop.f32.mrf.mxu0  ;;  %v7379_v59 = vld [vmem:[%s8195_s17 + $0x554] sm:$0xf] }
 0x46f   : > { %v5528_v19 = vpop.f32.mrf.mxu3  ;;  %v4679_v49 = vpop.f32.mrf.mxu1  ;;  %v4511_v12 = vadd.f32 %v8986_v36, %v4510_v1  ;;  %v7103_v1 = vld [vmem:[%s8195_s17 + $0x750] sm:$0xf] }
 0x470   : > { %v5529_v48 = vadd.f32 %v5528_v19, %v5360_v51  ;;  %v6785_v51 = vld [vmem:[%s8195_s17 + $0x558] sm:$0xf0] }
 0x471   : > { %v4680_v16 = vadd.f32 %v4679_v49, %v4511_v12  ;;  %v7444_v49 = vld [vmem:[%s8195_s17 + $0x754] sm:$0xf0]  ;;  %v7443_v12 = vld [vmem:[%s8195_s17 + $0x754] sm:$0xf] }
 0x472   : > { %v5655_v52 = vmax.f32 %v5529_v48, 0.0  ;;  %v7105_v48 = vld [vmem:[%s8195_s17 + $0x758] sm:$0xf0]  ;;  %v7104_v21 = vor.u32 %v7444_v49, %v7103_v1 }
 0x473   : > { %v4805_v23 = vmax.f32 %v4680_v16, 0.0  ;;  %v7108_v63 = vor.u32 %v7443_v12, %v7105_v48 }
 0x474   : > { %v5719_v60 = vmax.f32 %v4868_v11, %v5655_v52  ;;  %v5361_v32 = vpop.f32.mrf.mxu2  ;;  %v6784_v11 = vor.u32 %v7380_v0, %v6783_v5  ;;  %v6788_v52 = vor.u32 %v7379_v59, %v6785_v51 }
 0x475   : > { %v5362_v50 = vadd.f32 %v8986_v36, %v5361_v32  ;;  %v4869_v58 = vmax.f32 %v8505_v55, %v4805_v23 }
 0x476   : > { %5784 = vst.msk [vmem:[%s8850_s27 + $0xb0] sm:$0xff] %vm5761_vm0, %v5719_v60  ;;  %v4513_v53 = vpop.f32.mrf.mxu0 }
 0x477   : > { %v5530_v14 = vpop.f32.mrf.mxu3  ;;  %v4682_v28 = vpop.f32.mrf.mxu1  ;;  %v4514_v29 = vadd.f32 %v8986_v36, %v4513_v53 }
 0x478   : > { %v5531_v34 = vadd.f32 %v5530_v14, %v5362_v50 }
 0x479   : > { %4552 = vmatmul.bf16.gmra.mxu0 %v6776_v3  ;;  %v4683_v26 = vadd.f32 %v4682_v28, %v4514_v29  ;;  %5403 = vmatmul.bf16.gmra.mxu2 %v7096_v33 }
 0x47a   : > { %4721 = vmatmul.bf16.gmra.mxu1 %v6780_v54  ;;  %v5656_v17 = vmax.f32 %v5531_v34, 0.0  ;;  %v6791_v34 = vld [vmem:[%s8195_s17 + $0x560] sm:$0xf] }
 0x47b   : > { %v4806_v25 = vmax.f32 %v4683_v26, 0.0 }
 0x47c   : > { %5572 = vmatmul.bf16.gmra.mxu3 %v7100_v7  ;;  %v5720_v24 = vmax.f32 %v4869_v58, %v5656_v17  ;;  %v5364_v39 = vpop.f32.mrf.mxu2  ;;  %v7382_v58 = vld [vmem:[%s8195_s17 + $0x564] sm:$0xf0]  ;;  %v7381_v17 = vld [vmem:[%s8195_s17 + $0x564] sm:$0xf] }
 0x47d   : > { %v5365_v40 = vadd.f32 %v8986_v36, %v5364_v39  ;;  %v4870_v62 = vmax.f32 %v8517_v20, %v4806_v25  ;;  %v7111_v25 = vld [vmem:[%s8195_s17 + $0x760] sm:$0xf]  ;;  %v6792_v0 = vor.u32 %v7382_v58, %v6791_v34 }
 0x47e   : > { %5785 = vst.msk [vmem:[%s8850_s27 + $0xb8] sm:$0xff] %vm5761_vm0, %v5720_v24  ;;  %v4515_v55 = vpop.f32.mrf.mxu0 }
 0x47f   : > { %v5533_v43 = vpop.f32.mrf.mxu3  ;;  %v4684_v15 = vpop.f32.mrf.mxu1  ;;  %v4516_v30 = vadd.f32 %v8986_v36, %v4515_v55  ;;  %v7445_v55 = vld [vmem:[%s8195_s17 + $0x764] sm:$0xf] }
 0x480   : > { %v5534_v13 = vadd.f32 %v5533_v43, %v5365_v40  ;;  %v6793_v43 = vld [vmem:[%s8195_s17 + $0x568] sm:$0xf0]  ;;  %v7446_v40 = vld [vmem:[%s8195_s17 + $0x764] sm:$0xf0] }
 0x481   : > { %v4685_v22 = vadd.f32 %v4684_v15, %v4516_v30  ;;  %v7113_v15 = vld [vmem:[%s8195_s17 + $0x768] sm:$0xf0]  ;;  %v6796_v59 = vor.u32 %v7381_v17, %v6793_v43  ;;  %v7112_v51 = vor.u32 %v7446_v40, %v7111_v25 }
 0x482   : > { %v5657_v19 = vmax.f32 %v5534_v13, 0.0  ;;  %v7116_v1 = vor.u32 %v7445_v55, %v7113_v15 }
 0x483   : > { %v4807_v16 = vmax.f32 %v4685_v22, 0.0 }
 0x484   : > { %v5721_v31 = vmax.f32 %v4870_v62, %v5657_v19  ;;  %v5366_v61 = vpop.f32.mrf.mxu2 }
 0x485   : > { %v5367_v41 = vadd.f32 %v8986_v36, %v5366_v61  ;;  %v4871_v32 = vmax.f32 %v8521_v44, %v4807_v16 }
 0x486   : > { %5786 = vst.msk [vmem:[%s8850_s27 + $0xc0] sm:$0xff] %vm5761_vm0, %v5721_v31  ;;  %v4518_v8 = vpop.f32.mrf.mxu0 }
 0x487   : > { %v5535_v45 = vpop.f32.mrf.mxu3  ;;  %v4687_v20 = vpop.f32.mrf.mxu1  ;;  %v4519_v46 = vadd.f32 %v8986_v36, %v4518_v8 }
 0x488   : > { %v5536_v60 = vadd.f32 %v5535_v45, %v5367_v41 }
 0x489   : > { %4557 = vmatmul.bf16.gmra.mxu0 %v6784_v11  ;;  %v4688_v3 = vadd.f32 %v4687_v20, %v4519_v46  ;;  %5408 = vmatmul.bf16.gmra.mxu2 %v7104_v21  ;;  %v7384_v46 = vld [vmem:[%s8195_s17 + $0x574] sm:$0xf0] }
 0x48a   : > { %4726 = vmatmul.bf16.gmra.mxu1 %v6788_v52  ;;  %v5658_v14 = vmax.f32 %v5536_v60, 0.0  ;;  %v7383_v60 = vld [vmem:[%s8195_s17 + $0x574] sm:$0xf] }
 0x48b   : > { %v4808_v53 = vmax.f32 %v4688_v3, 0.0 }
 0x48c   : > { %5577 = vmatmul.bf16.gmra.mxu3 %v7108_v63  ;;  %v5722_v54 = vmax.f32 %v4871_v32, %v5658_v14  ;;  %v5369_v23 = vpop.f32.mrf.mxu2  ;;  %v6799_v63 = vld [vmem:[%s8195_s17 + $0x570] sm:$0xf] }
 0x48d   : > { %v5370_v28 = vadd.f32 %v8986_v36, %v5369_v23  ;;  %v4872_v26 = vmax.f32 %v8538_v10, %v4808_v53  ;;  %v7119_v23 = vld [vmem:[%s8195_s17 + $0x770] sm:$0xf]  ;;  %v7447_v53 = vld [vmem:[%s8195_s17 + $0x774] sm:$0xf] }
 0x48e   : > { %5787 = vst.msk [vmem:[%s8850_s27 + $0xc8] sm:$0xff] %vm5761_vm0, %v5722_v54  ;;  %v4520_v44 = vpop.f32.mrf.mxu0  ;;  %v6801_v54 = vld [vmem:[%s8195_s17 + $0x578] sm:$0xf0] }
 0x48f   : > { %v5538_v50 = vpop.f32.mrf.mxu3  ;;  %v4689_v33 = vpop.f32.mrf.mxu1  ;;  %v4521_v7 = vadd.f32 %v8986_v36, %v4520_v44  ;;  %v6804_v34 = vor.u32 %v7383_v60, %v6801_v54 }
 0x490   : > { %v5539_v29 = vadd.f32 %v5538_v50, %v5370_v28  ;;  %v7448_v50 = vld [vmem:[%s8195_s17 + $0x774] sm:$0xf0]  ;;  %v7121_v28 = vld [vmem:[%s8195_s17 + $0x778] sm:$0xf0] }
 0x491   : > { %v4690_v39 = vadd.f32 %v4689_v33, %v4521_v7 }
 0x492   : > { %v5659_v24 = vmax.f32 %v5539_v29, 0.0  ;;  %v6800_v29 = vor.u32 %v7384_v46, %v6799_v63 }
 0x493   : > { %v4809_v62 = vmax.f32 %v4690_v39, 0.0  ;;  %v7124_v39 = vor.u32 %v7447_v53, %v7121_v28 }
 0x494   : > { %v5723_v30 = vmax.f32 %v4872_v26, %v5659_v24  ;;  %v5371_v13 = vpop.f32.mrf.mxu2  ;;  %v7120_v24 = vor.u32 %v7448_v50, %v7119_v23 }
 0x495   : > { %v5372_v19 = vadd.f32 %v8986_v36, %v5371_v13  ;;  %v4873_v48 = vmax.f32 %v8542_v38, %v4809_v62 }
 0x496   : > { %5788 = vst.msk [vmem:[%s8850_s27 + $0xd0] sm:$0xff] %vm5761_vm0, %v5723_v30  ;;  %v4523_v22 = vpop.f32.mrf.mxu0 }
 0x497   : > { %v5540_v5 = vpop.f32.mrf.mxu3  ;;  %v4692_v10 = vpop.f32.mrf.mxu1  ;;  %v4524_v49 = vadd.f32 %v8986_v36, %v4523_v22 }
 0x498   : > { %v5541_v12 = vadd.f32 %v5540_v5, %v5372_v19 }
 0x499   : > { %4562 = vmatmul.bf16.gmra.mxu0 %v6792_v0  ;;  %v4693_v61 = vadd.f32 %v4692_v10, %v4524_v49  ;;  %5413 = vmatmul.bf16.gmra.mxu2 %v7112_v51  ;;  %v6807_v10 = vld [vmem:[%s8195_s17 + $0x580] sm:$0xf]  ;;  %v7386_v51 = vld [vmem:[%s8195_s17 + $0x584] sm:$0xf0] }
 0x49a   : > { %4731 = vmatmul.bf16.gmra.mxu1 %v6796_v59  ;;  %v5660_v31 = vmax.f32 %v5541_v12, 0.0 }
 0x49b   : > { %v4810_v16 = vmax.f32 %v4693_v61, 0.0  ;;  %v7127_v61 = vld [vmem:[%s8195_s17 + $0x780] sm:$0xf] }
 0x49c   : > { %5582 = vmatmul.bf16.gmra.mxu3 %v7116_v1  ;;  %v5724_v45 = vmax.f32 %v4873_v48, %v5660_v31  ;;  %v5374_v11 = vpop.f32.mrf.mxu2  ;;  %v7385_v1 = vld [vmem:[%s8195_s17 + $0x584] sm:$0xf]  ;;  %v6809_v31 = vld [vmem:[%s8195_s17 + $0x588] sm:$0xf0] }
 0x49d   : > { %v5375_v41 = vadd.f32 %v8986_v36, %v5374_v11  ;;  %v4874_v32 = vmax.f32 %v8554_v6, %v4810_v16  ;;  %v7449_v11 = vld [vmem:[%s8195_s17 + $0x784] sm:$0xf] }
 0x49e   : > { %5789 = vst.msk [vmem:[%s8850_s27 + $0xd8] sm:$0xff] %vm5761_vm0, %v5724_v45  ;;  %v4525_v38 = vpop.f32.mrf.mxu0  ;;  %v7450_v45 = vld [vmem:[%s8195_s17 + $0x784] sm:$0xf0] }
 0x49f   : > { %v5543_v52 = vpop.f32.mrf.mxu3  ;;  %v4694_v8 = vpop.f32.mrf.mxu1  ;;  %v4526_v20 = vadd.f32 %v8986_v36, %v4525_v38  ;;  %v7128_v60 = vor.u32 %v7450_v45, %v7127_v61 }
 0x4a0   : > { %v5544_v21 = vadd.f32 %v5543_v52, %v5375_v41  ;;  %v7129_v52 = vld [vmem:[%s8195_s17 + $0x788] sm:$0xf0] }
 0x4a1   : > { %v4695_v3 = vadd.f32 %v4694_v8, %v4526_v20  ;;  %v6808_v8 = vor.u32 %v7386_v51, %v6807_v10  ;;  %v6812_v20 = vor.u32 %v7385_v1, %v6809_v31 }
 0x4a2   : > { %v5661_v14 = vmax.f32 %v5544_v21, 0.0 }
 0x4a3   : > { %v4811_v58 = vmax.f32 %v4695_v3, 0.0 }
 0x4a4   : > { %v5725_v44 = vmax.f32 %v4874_v32, %v5661_v14  ;;  %v5376_v33 = vpop.f32.mrf.mxu2  ;;  %v7132_v32 = vor.u32 %v7449_v11, %v7129_v52 }
 0x4a5   : > { %v5377_v17 = vadd.f32 %v8986_v36, %v5376_v33  ;;  %v4875_v40 = vmax.f32 %v8558_v35, %v4811_v58 }
 0x4a6   : > { %5790 = vst.msk [vmem:[%s8850_s27 + $0xe0] sm:$0xff] %vm5761_vm0, %v5725_v44  ;;  %v4528_v26 = vpop.f32.mrf.mxu0 }
 0x4a7   : > { %v5545_v7 = vpop.f32.mrf.mxu3  ;;  %v4697_v6 = vpop.f32.mrf.mxu1  ;;  %v4529_v43 = vadd.f32 %v8986_v36, %v4528_v26  ;;  %v7388_v26 = vld [vmem:[%s8195_s17 + $0x594] sm:$0xf0] }
 0x4a8   : > { %v5546_v25 = vadd.f32 %v5545_v7, %v5377_v17  ;;  %v6815_v17 = vld [vmem:[%s8195_s17 + $0x590] sm:$0xf] }
 0x4a9   : > { %4567 = vmatmul.bf16.gmra.mxu0 %v6800_v29  ;;  %v4698_v15 = vadd.f32 %v4697_v6, %v4529_v43  ;;  %5418 = vmatmul.bf16.gmra.mxu2 %v7120_v24  ;;  %v7387_v6 = vld [vmem:[%s8195_s17 + $0x594] sm:$0xf] }
 0x4aa   : > { %4736 = vmatmul.bf16.gmra.mxu1 %v6804_v34  ;;  %v5662_v55 = vmax.f32 %v5546_v25, 0.0  ;;  %v6817_v25 = vld [vmem:[%s8195_s17 + $0x598] sm:$0xf0] }
 0x4ab   : > { %v4812_v0 = vmax.f32 %v4698_v15, 0.0  ;;  %v7451_v15 = vld [vmem:[%s8195_s17 + $0x794] sm:$0xf] }
 0x4ac   : > { %5587 = vmatmul.bf16.gmra.mxu3 %v7124_v39  ;;  %v5726_v30 = vmax.f32 %v4875_v40, %v5662_v55  ;;  %v5379_v13 = vpop.f32.mrf.mxu2  ;;  %v7135_v40 = vld [vmem:[%s8195_s17 + $0x790] sm:$0xf]  ;;  %v7452_v55 = vld [vmem:[%s8195_s17 + $0x794] sm:$0xf0] }
 0x4ad   : > { %v5380_v59 = vadd.f32 %v8986_v36, %v5379_v13  ;;  %v4876_v49 = vmax.f32 %v8570_v4, %v4812_v0  ;;  %v7136_v10 = vor.u32 %v7452_v55, %v7135_v40 }
 0x4ae   : > { %5791 = vst.msk [vmem:[%s8850_s27 + $0xe8] sm:$0xff] %vm5761_vm0, %v5726_v30  ;;  %v4530_v35 = vpop.f32.mrf.mxu0  ;;  %v7137_v30 = vld [vmem:[%s8195_s17 + $0x798] sm:$0xf0] }
 0x4af   : > { %v5548_v5 = vpop.f32.mrf.mxu3  ;;  %v4699_v62 = vpop.f32.mrf.mxu1  ;;  %v4531_v19 = vadd.f32 %v8986_v36, %v4530_v35  ;;  %v6820_v35 = vor.u32 %v7387_v6, %v6817_v25  ;;  %v7140_v51 = vor.u32 %v7451_v15, %v7137_v30 }
 0x4b0   : > { %v5549_v22 = vadd.f32 %v5548_v5, %v5380_v59  ;;  %v6816_v59 = vor.u32 %v7388_v26, %v6815_v17 }
 0x4b1   : > { %v4700_v48 = vadd.f32 %v4699_v62, %v4531_v19 }
 0x4b2   : > { %v5663_v12 = vmax.f32 %v5549_v22, 0.0 }
 0x4b3   : > { %v4813_v21 = vmax.f32 %v4700_v48, 0.0 }
 0x4b4   : > { %v5727_v16 = vmax.f32 %v4876_v49, %v5663_v12  ;;  %v5381_v41 = vpop.f32.mrf.mxu2 }
 0x4b5   : > { %v5382_v63 = vadd.f32 %v8986_v36, %v5381_v41  ;;  %v4877_v54 = vmax.f32 %v8574_v37, %v4813_v21  ;;  %v7390_v21 = vld [vmem:[%s8195_s17 + $0x5a4] sm:$0xf0] }
 0x4b6   : > { %5792 = vst.msk [vmem:[%s8850_s27 + $0xf0] sm:$0xff] %vm5761_vm0, %v5727_v16  ;;  %v4533_v46 = vpop.f32.mrf.mxu0 }
 0x4b7   : > { %v5550_v38 = vpop.f32.mrf.mxu3  ;;  %v4702_v4 = vpop.f32.mrf.mxu1  ;;  %v4534_v14 = vadd.f32 %v8986_v36, %v4533_v46 }
 0x4b8   : > { %v5551_v3 = vadd.f32 %v5550_v38, %v5382_v63  ;;  %v7389_v63 = vld [vmem:[%s8195_s17 + $0x5a4] sm:$0xf] }
 0x4b9   : > { %4572 = vmatmul.bf16.gmra.mxu0 %v6808_v8  ;;  %v4703_v50 = vadd.f32 %v4702_v4, %v4534_v14  ;;  %5423 = vmatmul.bf16.gmra.mxu2 %v7128_v60  ;;  %v7143_v14 = vld [vmem:[%s8195_s17 + $0x7a0] sm:$0xf] }
 0x4ba   : > { %4741 = vmatmul.bf16.gmra.mxu1 %v6812_v20  ;;  %v5664_v23 = vmax.f32 %v5551_v3, 0.0  ;;  %v6823_v20 = vld [vmem:[%s8195_s17 + $0x5a0] sm:$0xf]  ;;  %v7454_v3 = vld [vmem:[%s8195_s17 + $0x7a4] sm:$0xf0] }
 0x4bb   : > { %v4814_v33 = vmax.f32 %v4703_v50, 0.0 }
 0x4bc   : > { %5592 = vmatmul.bf16.gmra.mxu3 %v7132_v32  ;;  %v5728_v53 = vmax.f32 %v4877_v54, %v5664_v23  ;;  %v5384_v28 = vpop.f32.mrf.mxu2  ;;  %v6825_v32 = vld [vmem:[%s8195_s17 + $0x5a8] sm:$0xf0]  ;;  %v7453_v54 = vld [vmem:[%s8195_s17 + $0x7a4] sm:$0xf] }
 0x4bd   : > { %v5385_v7 = vadd.f32 %v8986_v36, %v5384_v28  ;;  %v4878_v24 = vmax.f32 %v8586_v9, %v4814_v33  ;;  %v7145_v23 = vld [vmem:[%s8195_s17 + $0x7a8] sm:$0xf0]  ;;  %v6828_v33 = vor.u32 %v7389_v63, %v6825_v32 }
 0x4be   : > { %5793 = vst.msk [vmem:[%s8850_s27 + $0xf8] sm:$0xff] %vm5761_vm0, %v5728_v53  ;;  %v4535_v37 = vpop.f32.mrf.mxu0 }
 0x4bf   : > { %v5553_v44 = vpop.f32.mrf.mxu3  ;;  %v4704_v29 = vpop.f32.mrf.mxu1  ;;  %v4536_v34 = vadd.f32 %v8986_v36, %v4535_v37 }
 0x4c0   : > { %v5554_v58 = vadd.f32 %v5553_v44, %v5385_v7  ;;  %v6824_v44 = vor.u32 %v7390_v21, %v6823_v20 }
 0x4c1   : > { %v4705_v43 = vadd.f32 %v4704_v29, %v4536_v34  ;;  %v7144_v34 = vor.u32 %v7454_v3, %v7143_v14 }
 0x4c2   : > { %v5665_v39 = vmax.f32 %v5554_v58, 0.0  ;;  %v7148_v58 = vor.u32 %v7453_v54, %v7145_v23 }
 0x4c3   : > { %v4815_v62 = vmax.f32 %v4705_v43, 0.0 }
 0x4c4   : > { %v5729_v13 = vmax.f32 %v4878_v24, %v5665_v39  ;;  %v5386_v5 = vpop.f32.mrf.mxu2 }
 0x4c5   : > { %v5387_v19 = vadd.f32 %v8986_v36, %v5386_v5  ;;  %v4879_v12 = vmax.f32 %v8590_v42, %v4815_v62 }
 0x4c6   : > { %5794 = vst.msk [vmem:[%s8850_s27 + $0x100] sm:$0xff] %vm5761_vm0, %v5729_v13  ;;  %v4538_v22 = vpop.f32.mrf.mxu0 }
 0x4c7   : > { %v5555_v0 = vpop.f32.mrf.mxu3  ;;  %v4707_v9 = vpop.f32.mrf.mxu1  ;;  %v4539_v1 = vadd.f32 %v8986_v36, %v4538_v22 }
 0x4c8   : > { %v5556_v49 = vadd.f32 %v5555_v0, %v5387_v19  ;;  %v6831_v0 = vld [vmem:[%s8195_s17 + $0x5b0] sm:$0xf] }
 0x4c9   : > { %4577 = vmatmul.bf16.gmra.mxu0 %v6816_v59  ;;  %v4708_v31 = vadd.f32 %v4707_v9, %v4539_v1  ;;  %5428 = vmatmul.bf16.gmra.mxu2 %v7136_v10  ;;  %v7392_v59 = vld [vmem:[%s8195_s17 + $0x5b4] sm:$0xf0]  ;;  %v6833_v9 = vld [vmem:[%s8195_s17 + $0x5b8] sm:$0xf0]  ;;  %v7151_v10 = vld [vmem:[%s8195_s17 + $0x7b0] sm:$0xf] }
 0x4ca   : > { %4746 = vmatmul.bf16.gmra.mxu1 %v6820_v35  ;;  %v5666_v48 = vmax.f32 %v5556_v49, 0.0  ;;  %v7391_v35 = vld [vmem:[%s8195_s17 + $0x5b4] sm:$0xf]  ;;  %v7153_v49 = vld [vmem:[%s8195_s17 + $0x7b8] sm:$0xf0] }
 0x4cb   : > { %v4816_v52 = vmax.f32 %v4708_v31, 0.0  ;;  %v7455_v1 = vld [vmem:[%s8195_s17 + $0x7b4] sm:$0xf] }
 0x4cc   : > { %5597 = vmatmul.bf16.gmra.mxu3 %v7140_v51  ;;  %v5730_v61 = vmax.f32 %v4879_v12, %v5666_v48  ;;  %v5389_v45 = vpop.f32.mrf.mxu2  ;;  %v7456_v51 = vld [vmem:[%s8195_s17 + $0x7b4] sm:$0xf0] }
 0x4cd   : > { %v5390_v16 = vadd.f32 %v8986_v36, %v5389_v45  ;;  %v4880_v46 = vmax.f32 %v8602_v18, %v4816_v52  ;;  %v6836_v45 = vor.u32 %v7391_v35, %v6833_v9 }
 0x4ce   : > { %5795 = vst.msk [vmem:[%s8850_s27 + $0x108] sm:$0xff] %vm5761_vm0, %v5730_v61  ;;  %v4540_v42 = vpop.f32.mrf.mxu0  ;;  %v6832_v61 = vor.u32 %v7392_v59, %v6831_v0 }
 0x4cf   : > { %v5558_v11 = vpop.f32.mrf.mxu3  ;;  %v4709_v41 = vpop.f32.mrf.mxu1  ;;  %v4541_v38 = vadd.f32 %v8986_v36, %v4540_v42  ;;  %v7152_v42 = vor.u32 %v7456_v51, %v7151_v10 }
 0x4d0   : > { %v5559_v8 = vadd.f32 %v5558_v11, %v5390_v16 }
 0x4d1   : > { %v4710_v60 = vadd.f32 %v4709_v41, %v4541_v38  ;;  %v7156_v41 = vor.u32 %v7455_v1, %v7153_v49 }
 0x4d2   : > { %v5667_v4 = vmax.f32 %v5559_v8, 0.0 }
 0x4d3   : > { %v4817_v7 = vmax.f32 %v4710_v60, 0.0 }
 0x4d4   : > { %v5731_v50 = vmax.f32 %v4880_v46, %v5667_v4  ;;  %v5391_v53 = vpop.f32.mrf.mxu2 }
 0x4d5   : > { %v5392_v37 = vadd.f32 %v8986_v36, %v5391_v53  ;;  %v4881_v6 = vmax.f32 %v8606_v56, %v4817_v7  ;;  %v7394_v53 = vld [vmem:[%s8195_s17 + $0x5c4] sm:$0xf0] }
 0x4d6   : > { %5796 = vst.msk [vmem:[%s8850_s27 + $0x110] sm:$0xff] %vm5761_vm0, %v5731_v50  ;;  %v4543_v29 = vpop.f32.mrf.mxu0  ;;  %v6839_v50 = vld [vmem:[%s8195_s17 + $0x5c0] sm:$0xf] }
 0x4d7   : > { %v5560_v28 = vpop.f32.mrf.mxu3  ;;  %v4712_v18 = vpop.f32.mrf.mxu1  ;;  %v4544_v17 = vadd.f32 %v8986_v36, %v4543_v29  ;;  %v7159_v29 = vld [vmem:[%s8195_s17 + $0x7c0] sm:$0xf] }
 0x4d8   : > { %v5561_v26 = vadd.f32 %v5560_v28, %v5392_v37  ;;  %v7393_v28 = vld [vmem:[%s8195_s17 + $0x5c4] sm:$0xf]  ;;  %v6841_v37 = vld [vmem:[%s8195_s17 + $0x5c8] sm:$0xf0] }
 0x4d9   : > { %4582 = vmatmul.bf16.gmra.mxu0 %v6824_v44  ;;  %v4713_v39 = vadd.f32 %v4712_v18, %v4544_v17  ;;  %5433 = vmatmul.bf16.gmra.mxu2 %v7144_v34  ;;  %v7458_v18 = vld [vmem:[%s8195_s17 + $0x7c4] sm:$0xf0]  ;;  %v7457_v34 = vld [vmem:[%s8195_s17 + $0x7c4] sm:$0xf] }
 0x4da   : > { %4751 = vmatmul.bf16.gmra.mxu1 %v6828_v33  ;;  %v5668_v24 = vmax.f32 %v5561_v26, 0.0 }
 0x4db   : > { %v4818_v55 = vmax.f32 %v4713_v39, 0.0  ;;  %v6844_v39 = vor.u32 %v7393_v28, %v6841_v37 }
 0x4dc   : > { %5602 = vmatmul.bf16.gmra.mxu3 %v7148_v58  ;;  %v5732_v43 = vmax.f32 %v4881_v6, %v5668_v24  ;;  %v5394_v25 = vpop.f32.mrf.mxu2  ;;  %v7161_v58 = vld [vmem:[%s8195_s17 + $0x7c8] sm:$0xf0]  ;;  %v6840_v24 = vor.u32 %v7394_v53, %v6839_v50  ;;  %v9397_v50 = vld [vmem:[#allocation5_spill] sm:$0xff] }
 0x4dd   : > { %v5395_v15 = vadd.f32 %v8986_v36, %v5394_v25  ;;  %v4882_v62 = vmax.f32 %v8618_v27, %v4818_v55  ;;  %v7160_v55 = vor.u32 %v7458_v18, %v7159_v29 }
 0x4de   : > { %5797 = vst.msk [vmem:[%s8850_s27 + $0x118] sm:$0xff] %vm5761_vm0, %v5732_v43  ;;  %v4545_v56 = vpop.f32.mrf.mxu0 }
 0x4df   : > { %v5563_v40 = vpop.f32.mrf.mxu3  ;;  %v4714_v30 = vpop.f32.mrf.mxu1  ;;  %v4546_v13 = vadd.f32 %v8986_v36, %v4545_v56 }
 0x4e0   : > { %v5564_v5 = vadd.f32 %v5563_v40, %v5395_v15  ;;  %v7164_v15 = vor.u32 %v7457_v34, %v7161_v58 }
 0x4e1   : > { %v4715_v22 = vadd.f32 %v4714_v30, %v4546_v13  ;;  %v9395_v13 = vld [vmem:[#allocation3_spill] sm:$0xff] }
 0x4e2   : > { %v5669_v19 = vmax.f32 %v5564_v5, 0.0 }
 0x4e3   : > { %v4819_v11 = vmax.f32 %v4715_v22, 0.0  ;;  %v9212_v22 = vld [vmem:[%s9369_s2] ss:$0 sm:$0xff] }
 0x4e4   : > { %v5733_v12 = vmax.f32 %v4882_v62, %v5669_v19  ;;  %v5396_v48 = vpop.f32.mrf.mxu2 }
 0x4e5   : > { %v5397_v52 = vadd.f32 %v8986_v36, %v5396_v48  ;;  %v4883_v20 = vmax.f32 %v8622_v2, %v4819_v11  ;;  %v7396_v48 = vld [vmem:[%s8195_s17 + $0x5d4] sm:$0xf0] }
 0x4e6   : > { %5798 = vst.msk [vmem:[%s8850_s27 + $0x120] sm:$0xff] %vm5761_vm0, %v5733_v12  ;;  %v4548_v16 = vpop.f32.mrf.mxu0  ;;  %v6847_v12 = vld [vmem:[%s8195_s17 + $0x5d0] sm:$0xf] }
 0x4e7   : > { %v5565_v31 = vpop.f32.mrf.mxu3  ;;  %v4717_v27 = vpop.f32.mrf.mxu1  ;;  %v4549_v38 = vadd.f32 %v8986_v36, %v4548_v16  ;;  %v6849_v16 = vld [vmem:[%s8195_s17 + $0x5d8] sm:$0xf0] }
 0x4e8   : > { %v5566_v8 = vadd.f32 %v5565_v31, %v5397_v52  ;;  %v7395_v31 = vld [vmem:[%s8195_s17 + $0x5d4] sm:$0xf] }
 0x4e9   : > { %4587 = vmatmul.bf16.gmra.mxu0 %v6832_v61  ;;  %v4718_v63 = vadd.f32 %v4717_v27, %v4549_v38  ;;  %5438 = vmatmul.bf16.gmra.mxu2 %v7152_v42  ;;  %v9396_v61 = vld [vmem:[#allocation4_spill] sm:$0xff]  ;;  %v7167_v27 = vld [vmem:[%s8195_s17 + $0x7d0] sm:$0xf]  ;;  %v7460_v42 = vld [vmem:[%s8195_s17 + $0x7d4] sm:$0xf0] }
 0x4ea   : > { %4756 = vmatmul.bf16.gmra.mxu1 %v6836_v45  ;;  %v5670_v21 = vmax.f32 %v5566_v8, 0.0  ;;  %v7169_v38 = vld [vmem:[%s8195_s17 + $0x7d8] sm:$0xf0] }
 0x4eb   : > { %v4820_v32 = vmax.f32 %v4718_v63, 0.0  ;;  %v6848_v63 = vor.u32 %v7396_v48, %v6847_v12  ;;  %v9399_v48 = vld [vmem:[#allocation7_spill] sm:$0xff] }
 0x4ec   : > { %5607 = vmatmul.bf16.gmra.mxu3 %v7156_v41  ;;  %v5734_v46 = vmax.f32 %v4883_v20, %v5670_v21  ;;  %v5399_v4 = vpop.f32.mrf.mxu2  ;;  %v7459_v41 = vld [vmem:[%s8195_s17 + $0x7d4] sm:$0xf] }
 0x4ed   : > { %v5400_v14 = vadd.f32 %v8986_v36, %v5399_v4  ;;  %v4884_v44 = vmax.f32 %v8634_v57, %v4820_v32 }
 0x4ee   : > { %5799 = vst.msk [vmem:[%s8850_s27 + $0x128] sm:$0xff] %vm5761_vm0, %v5734_v46  ;;  %v4550_v2 = vpop.f32.mrf.mxu0  ;;  %v6852_v46 = vor.u32 %v7395_v31, %v6849_v16 }
 0x4ef   : > { %v5568_v60 = vpop.f32.mrf.mxu3  ;;  %v4719_v3 = vpop.f32.mrf.mxu1  ;;  %v4551_v54 = vadd.f32 %v8986_v36, %v4550_v2  ;;  %v7168_v2 = vor.u32 %v7460_v42, %v7167_v27 }
 0x4f0   : > { %v5569_v23 = vadd.f32 %v5568_v60, %v5400_v14 }
 0x4f1   : > { %v4720_v7 = vadd.f32 %v4719_v3, %v4551_v54  ;;  %v7172_v3 = vor.u32 %v7459_v41, %v7169_v38 }
 0x4f2   : > { %v5671_v33 = vmax.f32 %v5569_v23, 0.0 }
 0x4f3   : > { %v4821_v43 = vmax.f32 %v4720_v7, 0.0 }
 0x4f4   : > { %v5735_v17 = vmax.f32 %v4884_v44, %v5671_v33  ;;  %v5401_v26 = vpop.f32.mrf.mxu2 }
 0x4f5   : > { %v5402_v25 = vadd.f32 %v8986_v36, %v5401_v26  ;;  %v4885_v5 = vmax.f32 %v9395_v13, %v4821_v43  ;;  %v9398_v43 = vld [vmem:[#allocation6_spill] sm:$0xff]  ;;  %v7177_v13 = vld [vmem:[%s8195_s17 + $0x7e8] sm:$0xf0] }
 0x4f6   : > { %5800 = vst.msk [vmem:[%s8850_s27 + $0x130] sm:$0xff] %vm5761_vm0, %v5735_v17  ;;  %v4553_v40 = vpop.f32.mrf.mxu0 }
 0x4f7   : > { %v5570_v6 = vpop.f32.mrf.mxu3  ;;  %v4722_v57 = vpop.f32.mrf.mxu1  ;;  %v4554_v56 = vadd.f32 %v8986_v36, %v4553_v40 }
 0x4f8   : > { %v5571_v30 = vadd.f32 %v5570_v6, %v5402_v25  ;;  %v6855_v6 = vld [vmem:[%s8195_s17 + $0x5e0] sm:$0xf] }
 0x4f9   : > { %4592 = vmatmul.bf16.gmra.mxu0 %v6840_v24  ;;  %v4723_v59 = vadd.f32 %v4722_v57, %v4554_v56  ;;  %5443 = vmatmul.bf16.gmra.mxu2 %v7160_v55  ;;  %v7398_v24 = vld [vmem:[%s8195_s17 + $0x5e4] sm:$0xf0]  ;;  %v6857_v55 = vld [vmem:[%s8195_s17 + $0x5e8] sm:$0xf0] }
 0x4fa   : > { %4761 = vmatmul.bf16.gmra.mxu1 %v6844_v39  ;;  %v5672_v0 = vmax.f32 %v5571_v30, 0.0  ;;  %v7397_v39 = vld [vmem:[%s8195_s17 + $0x5e4] sm:$0xf]  ;;  %v7462_v56 = vld [vmem:[%s8195_s17 + $0x7e4] sm:$0xf0] }
 0x4fb   : > { %v4822_v36 = vmax.f32 %v4723_v59, 0.0  ;;  %v7461_v30 = vld [vmem:[%s8195_s17 + $0x7e4] sm:$0xf] }
 0x4fc   : > { %5612 = vmatmul.bf16.gmra.mxu3 %v7164_v15  ;;  %v5736_v35 = vmax.f32 %v4885_v5, %v5672_v0  ;;  %v5404_v62 = vpop.f32.mrf.mxu2  ;;  %v7175_v15 = vld [vmem:[%s8195_s17 + $0x7e0] sm:$0xf] }
 0x4fd   : > { %v5405_v9 = vadd.f32 %v9212_v22, %v5404_v62  ;;  %v4886_v45 = vmax.f32 %v9396_v61, %v4822_v36  ;;  %v6860_v62 = vor.u32 %v7397_v39, %v6857_v55 }
 0x4fe   : > { %5801 = vst.msk [vmem:[%s8850_s27 + $0x138] sm:$0xff] %vm5761_vm0, %v5736_v35  ;;  %v4555_v10 = vpop.f32.mrf.mxu0  ;;  %v6856_v35 = vor.u32 %v7398_v24, %v6855_v6  ;;  %v9401_v24 = vld [vmem:[#allocation9_spill] sm:$0xff] }
 0x4ff   : > { %v5573_v19 = vpop.f32.mrf.mxu3  ;;  %v4724_v51 = vpop.f32.mrf.mxu1  ;;  %v4556_v1 = vadd.f32 %v9212_v22, %v4555_v10 }
 0x500   : > { %v5574_v49 = vadd.f32 %v5573_v19, %v5405_v9 }
 0x501   : > { %v4725_v52 = vadd.f32 %v4724_v51, %v4556_v1  ;;  %v7176_v51 = vor.u32 %v7462_v56, %v7175_v15  ;;  %v7180_v1 = vor.u32 %v7461_v30, %v7177_v13 }
 0x502   : > { %v5673_v11 = vmax.f32 %v5574_v49, 0.0 }
 0x503   : > { %v4823_v4 = vmax.f32 %v4725_v52, 0.0 }
 0x504   : > { %v5737_v8 = vmax.f32 %v4886_v45, %v5673_v11  ;;  %v5406_v20 = vpop.f32.mrf.mxu2 }
 0x505   : > { %v5407_v60 = vadd.f32 %v9212_v22, %v5406_v20  ;;  %v4887_v53 = vmax.f32 %v9397_v50, %v4823_v4  ;;  %v9400_v4 = vld [vmem:[#allocation8_spill] sm:$0xff]  ;;  %v7185_v50 = vld [vmem:[%s8195_s17 + $0x7f8] sm:$0xf0] }
 0x506   : > { %5802 = vst.msk [vmem:[%s8850_s27 + $0x140] sm:$0xff] %vm5761_vm0, %v5737_v8  ;;  %v4558_v32 = vpop.f32.mrf.mxu0 }
 0x507   : > { %v5575_v21 = vpop.f32.mrf.mxu3  ;;  %v4727_v14 = vpop.f32.mrf.mxu1  ;;  %v4559_v54 = vadd.f32 %v9212_v22, %v4558_v32 }
 0x508   : > { %v5576_v23 = vadd.f32 %v5575_v21, %v5407_v60  ;;  %v6863_v21 = vld [vmem:[%s8195_s17 + $0x5f0] sm:$0xf] }
 0x509   : > { %4597 = vmatmul.bf16.gmra.mxu0 %v6848_v63  ;;  %v4728_v44 = vadd.f32 %v4727_v14, %v4559_v54  ;;  %5448 = vmatmul.bf16.gmra.mxu2 %v7168_v2  ;;  %v7400_v63 = vld [vmem:[%s8195_s17 + $0x5f4] sm:$0xf0]  ;;  %v6865_v2 = vld [vmem:[%s8195_s17 + $0x5f8] sm:$0xf0] }
 0x50a   : > { %4766 = vmatmul.bf16.gmra.mxu1 %v6852_v46  ;;  %v5674_v28 = vmax.f32 %v5576_v23, 0.0  ;;  %v7399_v46 = vld [vmem:[%s8195_s17 + $0x5f4] sm:$0xf]  ;;  %v7464_v54 = vld [vmem:[%s8195_s17 + $0x7f4] sm:$0xf0] }
 0x50b   : > { %v4824_v29 = vmax.f32 %v4728_v44, 0.0  ;;  %v7463_v23 = vld [vmem:[%s8195_s17 + $0x7f4] sm:$0xf] }
 0x50c   : > { %5617 = vmatmul.bf16.gmra.mxu3 %v7172_v3  ;;  %v5738_v33 = vmax.f32 %v4887_v53, %v5674_v28  ;;  %v5409_v7 = vpop.f32.mrf.mxu2  ;;  %v7183_v3 = vld [vmem:[%s8195_s17 + $0x7f0] sm:$0xf] }
 0x50d   : > { %v5410_v18 = vadd.f32 %v9212_v22, %v5409_v7  ;;  %v4888_v25 = vmax.f32 %v9398_v43, %v4824_v29  ;;  %v6868_v7 = vor.u32 %v7399_v46, %v6865_v2  ;;  %v9404_v46 = vld [vmem:[#allocation12_spill] sm:$0xff] }
 0x50e   : > { %5803 = vst.msk [vmem:[%s8850_s27 + $0x148] sm:$0xff] %vm5761_vm0, %v5738_v33  ;;  %v4560_v34 = vpop.f32.mrf.mxu0  ;;  %v6864_v33 = vor.u32 %v7400_v63, %v6863_v21 }
 0x50f   : > { %v5578_v37 = vpop.f32.mrf.mxu3  ;;  %v4729_v58 = vpop.f32.mrf.mxu1  ;;  %v4561_v17 = vadd.f32 %v9212_v22, %v4560_v34 }
 0x510   : > { %v5579_v26 = vadd.f32 %v5578_v37, %v5410_v18 }
 0x511   : > { %v4730_v57 = vadd.f32 %v4729_v58, %v4561_v17  ;;  %v7184_v58 = vor.u32 %v7464_v54, %v7183_v3  ;;  %v7188_v17 = vor.u32 %v7463_v23, %v7185_v50 }
 0x512   : > { %v5675_v40 = vmax.f32 %v5579_v26, 0.0 }
 0x513   : > { %v4825_v19 = vmax.f32 %v4730_v57, 0.0 }
 0x514   : > { %v5739_v5 = vmax.f32 %v4888_v25, %v5675_v40  ;;  %v5411_v0 = vpop.f32.mrf.mxu2 }
 0x515   : > { %v5412_v36 = vadd.f32 %v9212_v22, %v5411_v0  ;;  %v4889_v31 = vmax.f32 %v9399_v48, %v4825_v19 }
 0x516   : > { %5804 = vst.msk [vmem:[%s8850_s27 + $0x150] sm:$0xff] %vm5761_vm0, %v5739_v5  ;;  %v4563_v9 = vpop.f32.mrf.mxu0 }
 0x517   : > { %v5580_v59 = vpop.f32.mrf.mxu3  ;;  %v4732_v10 = vpop.f32.mrf.mxu1  ;;  %v4564_v49 = vadd.f32 %v9212_v22, %v4563_v9 }
 0x518   : > { %v5581_v12 = vadd.f32 %v5580_v59, %v5412_v36  ;;  %v9402_v59 = vld [vmem:[#allocation10_spill] sm:$0xff] }
 0x519   : > { %4602 = vmatmul.bf16.gmra.mxu0 %v6856_v35  ;;  %v4733_v45 = vadd.f32 %v4732_v10, %v4564_v49  ;;  %5453 = vmatmul.bf16.gmra.mxu2 %v7176_v51 }
 0x51a   : > { %4771 = vmatmul.bf16.gmra.mxu1 %v6860_v62  ;;  %v5676_v61 = vmax.f32 %v5581_v12, 0.0 }
 0x51b   : > { %v4826_v27 = vmax.f32 %v4733_v45, 0.0 }
 0x51c   : > { %5622 = vmatmul.bf16.gmra.mxu3 %v7180_v1  ;;  %v5740_v11 = vmax.f32 %v4889_v31, %v5676_v61  ;;  %v5414_v52 = vpop.f32.mrf.mxu2  ;;  %v9403_v61 = vld [vmem:[#allocation11_spill] sm:$0xff] }
 0x51d   : > { %v5415_v42 = vadd.f32 %v9212_v22, %v5414_v52  ;;  %v4890_v60 = vmax.f32 %v9400_v4, %v4826_v27 }
 0x51e   : > { %5805 = vst.msk [vmem:[%s8850_s27 + $0x158] sm:$0xff] %vm5761_vm0, %v5740_v11  ;;  %v4565_v41 = vpop.f32.mrf.mxu0 }
 0x51f   : > { %v5583_v16 = vpop.f32.mrf.mxu3  ;;  %v4734_v38 = vpop.f32.mrf.mxu1  ;;  %v4566_v8 = vadd.f32 %v9212_v22, %v4565_v41 }
 0x520   : > { %v5584_v20 = vadd.f32 %v5583_v16, %v5415_v42 }
 0x521   : > { %v4735_v14 = vadd.f32 %v4734_v38, %v4566_v8 }
 0x522   : > { %v5677_v32 = vmax.f32 %v5584_v20, 0.0 }
 0x523   : > { %v4827_v37 = vmax.f32 %v4735_v14, 0.0 }
 0x524   : > { %v5741_v53 = vmax.f32 %v4890_v60, %v5677_v32  ;;  %v5416_v28 = vpop.f32.mrf.mxu2 }
 0x525   : > { %v5417_v29 = vadd.f32 %v9212_v22, %v5416_v28  ;;  %v4891_v39 = vmax.f32 %v9401_v24, %v4827_v37 }
 0x526   : > { %5806 = vst.msk [vmem:[%s8850_s27 + $0x160] sm:$0xff] %vm5761_vm0, %v5741_v53  ;;  %v4568_v18 = vpop.f32.mrf.mxu0 }
 0x527   : > { %v5585_v44 = vpop.f32.mrf.mxu3  ;;  %v4737_v34 = vpop.f32.mrf.mxu1  ;;  %v4569_v26 = vadd.f32 %v9212_v22, %v4568_v18 }
 0x528   : > { %v5586_v6 = vadd.f32 %v5585_v44, %v5417_v29 }
 0x529   : > { %4607 = vmatmul.bf16.gmra.mxu0 %v6864_v33  ;;  %v4738_v25 = vadd.f32 %v4737_v34, %v4569_v26  ;;  %5458 = vmatmul.bf16.gmra.mxu2 %v7184_v58  ;;  %v9405_v33 = vld [vmem:[#allocation13_spill] sm:$0xff] }
 0x52a   : > { %4776 = vmatmul.bf16.gmra.mxu1 %v6868_v7  ;;  %v5678_v43 = vmax.f32 %v5586_v6, 0.0 }
 0x52b   : > { %v4828_v15 = vmax.f32 %v4738_v25, 0.0  ;;  %v9406_v25 = vld [vmem:[#allocation14_spill] sm:$0xff] }
 0x52c   : > { %5627 = vmatmul.bf16.gmra.mxu3 %v7188_v17  ;;  %v5742_v40 = vmax.f32 %v4891_v39, %v5678_v43  ;;  %v5419_v57 = vpop.f32.mrf.mxu2 }
 0x52d   : > { %v5420_v56 = vadd.f32 %v9212_v22, %v5419_v57  ;;  %v4892_v35 = vmax.f32 %v9402_v59, %v4828_v15 }
 0x52e   : > { %5807 = vst.msk [vmem:[%s8850_s27 + $0x168] sm:$0xff] %vm5761_vm0, %v5742_v40  ;;  %v4570_v30 = vpop.f32.mrf.mxu0 }
 0x52f   : > { %v5588_v55 = vpop.f32.mrf.mxu3  ;;  %v4739_v13 = vpop.f32.mrf.mxu1  ;;  %v4571_v5 = vadd.f32 %v9212_v22, %v4570_v30 }
 0x530   : > { %v5589_v0 = vadd.f32 %v5588_v55, %v5420_v56 }
 0x531   : > { %v4740_v19 = vadd.f32 %v4739_v13, %v4571_v5 }
 0x532   : > { %v5679_v62 = vmax.f32 %v5589_v0, 0.0 }
 0x533   : > { %v4829_v51 = vmax.f32 %v4740_v19, 0.0  ;;  %v9407_v19 = vld [vmem:[#allocation15_spill] sm:$0xff] }
 0x534   : > { %v5743_v36 = vmax.f32 %v4892_v35, %v5679_v62  ;;  %v5421_v9 = vpop.f32.mrf.mxu2 }
 0x535   : > { %v5422_v1 = vadd.f32 %v9212_v22, %v5421_v9  ;;  %v4893_v45 = vmax.f32 %v9403_v61, %v4829_v51 }
 0x536   : > { %5808 = vst.msk [vmem:[%s8850_s27 + $0x170] sm:$0xff] %vm5761_vm0, %v5743_v36  ;;  %v4573_v49 = vpop.f32.mrf.mxu0 }
 0x537   : > { %v5590_v10 = vpop.f32.mrf.mxu3  ;;  %v4742_v12 = vpop.f32.mrf.mxu1  ;;  %v4574_v48 = vadd.f32 %v9212_v22, %v4573_v49 }
 0x538   : > { %v5591_v31 = vadd.f32 %v5590_v10, %v5422_v1 }
 0x539   : > { %v4743_v52 = vadd.f32 %v4742_v12, %v4574_v48 }
 0x53a   : > { %v5680_v11 = vmax.f32 %v5591_v31, 0.0 }
 0x53b   : > { %v4830_v41 = vmax.f32 %v4743_v52, 0.0  ;;  %v9408_v52 = vld [vmem:[#allocation16_spill] sm:$0xff] }
 0x53c   : > { %v5744_v16 = vmax.f32 %v4893_v45, %v5680_v11  ;;  %v5424_v27 = vpop.f32.mrf.mxu2 }
 0x53d   : > { %v5425_v38 = vadd.f32 %v9212_v22, %v5424_v27  ;;  %v4894_v4 = vmax.f32 %v9404_v46, %v4830_v41 }
 0x53e   : > { %5809 = vst.msk [vmem:[%s8850_s27 + $0x178] sm:$0xff] %vm5761_vm0, %v5744_v16  ;;  %v4575_v8 = vpop.f32.mrf.mxu0 }
 0x53f   : > { %v5593_v42 = vpop.f32.mrf.mxu3  ;;  %v4744_v20 = vpop.f32.mrf.mxu1  ;;  %v4576_v21 = vadd.f32 %v9212_v22, %v4575_v8 }
 0x540   : > { %v5594_v63 = vadd.f32 %v5593_v42, %v5425_v38 }
 0x541   : > { %v4745_v32 = vadd.f32 %v4744_v20, %v4576_v21 }
 0x542   : > { %v5681_v60 = vmax.f32 %v5594_v63, 0.0 }
 0x543   : > { %v4831_v54 = vmax.f32 %v4745_v32, 0.0  ;;  %v9409_v32 = vld [vmem:[#allocation17_spill] sm:$0xff] }
 0x544   : > { %v5745_v14 = vmax.f32 %v4894_v4, %v5681_v60  ;;  %v5426_v2 = vpop.f32.mrf.mxu2 }
 0x545   : > { %v5427_v23 = vadd.f32 %v9212_v22, %v5426_v2  ;;  %v4895_v7 = vmax.f32 %v9405_v33, %v4831_v54 }
 0x546   : > { %5810 = vst.msk [vmem:[%s8850_s27 + $0x180] sm:$0xff] %vm5761_vm0, %v5745_v14  ;;  %v4578_v50 = vpop.f32.mrf.mxu0 }
 0x547   : > { %v5595_v3 = vpop.f32.mrf.mxu3  ;;  %v4747_v53 = vpop.f32.mrf.mxu1  ;;  %v4579_v28 = vadd.f32 %v9212_v22, %v4578_v50 }
 0x548   : > { %v5596_v44 = vadd.f32 %v5595_v3, %v5427_v23 }
 0x549   : > { %v4748_v29 = vadd.f32 %v4747_v53, %v4579_v28 }
 0x54a   : > { %v5682_v37 = vmax.f32 %v5596_v44, 0.0 }
 0x54b   : > { %v4832_v17 = vmax.f32 %v4748_v29, 0.0  ;;  %v9410_v29 = vld [vmem:[#allocation18_spill] sm:$0xff] }
 0x54c   : > { %v5746_v18 = vmax.f32 %v4895_v7, %v5682_v37  ;;  %v5429_v34 = vpop.f32.mrf.mxu2 }
 0x54d   : > { %v5430_v26 = vadd.f32 %v9212_v22, %v5429_v34  ;;  %v4896_v40 = vmax.f32 %v9406_v25, %v4832_v17 }
 0x54e   : > { %5811 = vst.msk [vmem:[%s8850_s27 + $0x188] sm:$0xff] %vm5761_vm0, %v5746_v18  ;;  %v4580_v6 = vpop.f32.mrf.mxu0 }
 0x54f   : > { %v5598_v58 = vpop.f32.mrf.mxu3  ;;  %v4749_v24 = vpop.f32.mrf.mxu1  ;;  %v4581_v39 = vadd.f32 %v9212_v22, %v4580_v6 }
 0x550   : > { %v5599_v43 = vadd.f32 %v5598_v58, %v5430_v26 }
 0x551   : > { %v4750_v55 = vadd.f32 %v4749_v24, %v4581_v39 }
 0x552   : > { %v5683_v57 = vmax.f32 %v5599_v43, 0.0 }
 0x553   : > { %v4833_v13 = vmax.f32 %v4750_v55, 0.0  ;;  %v9411_v55 = vld [vmem:[#allocation19_spill] sm:$0xff] }
 0x554   : > { %v5747_v15 = vmax.f32 %v4896_v40, %v5683_v57  ;;  %v5431_v56 = vpop.f32.mrf.mxu2 }
 0x555   : > { %v5432_v5 = vadd.f32 %v9212_v22, %v5431_v56  ;;  %v4897_v36 = vmax.f32 %v9407_v19, %v4833_v13 }
 0x556   : > { %5812 = vst.msk [vmem:[%s8850_s27 + $0x190] sm:$0xff] %vm5761_vm0, %v5747_v15  ;;  %v4583_v0 = vpop.f32.mrf.mxu0 }
 0x557   : > { %v5600_v30 = vpop.f32.mrf.mxu3  ;;  %v4752_v59 = vpop.f32.mrf.mxu1  ;;  %v4584_v35 = vadd.f32 %v9212_v22, %v4583_v0 }
 0x558   : > { %v5601_v62 = vadd.f32 %v5600_v30, %v5432_v5 }
 0x559   : > { %v4753_v10 = vadd.f32 %v4752_v59, %v4584_v35 }
 0x55a   : > { %v5684_v9 = vmax.f32 %v5601_v62, 0.0 }
 0x55b   : > { %v4834_v12 = vmax.f32 %v4753_v10, 0.0  ;;  %v9412_v10 = vld [vmem:[#allocation20_spill] sm:$0xff] }
 0x55c   : > { %v5748_v51 = vmax.f32 %v4897_v36, %v5684_v9  ;;  %v5434_v1 = vpop.f32.mrf.mxu2 }
 0x55d   : > { %v5435_v48 = vadd.f32 %v9212_v22, %v5434_v1  ;;  %v4898_v16 = vmax.f32 %v9408_v52, %v4834_v12 }
 0x55e   : > { %5813 = vst.msk [vmem:[%s8850_s27 + $0x198] sm:$0xff] %vm5761_vm0, %v5748_v51  ;;  %v4585_v31 = vpop.f32.mrf.mxu0 }
 0x55f   : > { %v5603_v49 = vpop.f32.mrf.mxu3  ;;  %v4754_v61 = vpop.f32.mrf.mxu1  ;;  %v4586_v45 = vadd.f32 %v9212_v22, %v4585_v31 }
 0x560   : > { %v5604_v11 = vadd.f32 %v5603_v49, %v5435_v48 }
 0x561   : > { %v4755_v42 = vadd.f32 %v4754_v61, %v4586_v45 }
 0x562   : > { %v5685_v27 = vmax.f32 %v5604_v11, 0.0 }
 0x563   : > { %v4835_v20 = vmax.f32 %v4755_v42, 0.0  ;;  %v9413_v42 = vld [vmem:[#allocation21_spill] sm:$0xff] }
 0x564   : > { %v5749_v41 = vmax.f32 %v4898_v16, %v5685_v27  ;;  %v5436_v38 = vpop.f32.mrf.mxu2 }
 0x565   : > { %v5437_v21 = vadd.f32 %v9212_v22, %v5436_v38  ;;  %v4899_v14 = vmax.f32 %v9409_v32, %v4835_v20 }
 0x566   : > { %5814 = vst.msk [vmem:[%s8850_s27 + $0x1a0] sm:$0xff] %vm5761_vm0, %v5749_v41  ;;  %v4588_v63 = vpop.f32.mrf.mxu0 }
 0x567   : > { %v5605_v8 = vpop.f32.mrf.mxu3  ;;  %v4757_v46 = vpop.f32.mrf.mxu1  ;;  %v4589_v4 = vadd.f32 %v9212_v22, %v4588_v63 }
 0x568   : > { %v5606_v60 = vadd.f32 %v5605_v8, %v5437_v21 }
 0x569   : > { %v4758_v3 = vadd.f32 %v4757_v46, %v4589_v4 }
 0x56a   : > { %v5686_v2 = vmax.f32 %v5606_v60, 0.0 }
 0x56b   : > { %v4836_v53 = vmax.f32 %v4758_v3, 0.0  ;;  %v9414_v3 = vld [vmem:[#allocation22_spill] sm:$0xff] }
 0x56c   : > { %v5750_v54 = vmax.f32 %v4899_v14, %v5686_v2  ;;  %v5439_v23 = vpop.f32.mrf.mxu2 }
 0x56d   : > { %v5440_v28 = vadd.f32 %v9212_v22, %v5439_v23  ;;  %v4900_v18 = vmax.f32 %v9410_v29, %v4836_v53 }
 0x56e   : > { %5815 = vst.msk [vmem:[%s8850_s27 + $0x1a8] sm:$0xff] %vm5761_vm0, %v5750_v54  ;;  %v4590_v44 = vpop.f32.mrf.mxu0 }
 0x56f   : > { %v5608_v50 = vpop.f32.mrf.mxu3  ;;  %v4759_v33 = vpop.f32.mrf.mxu1  ;;  %v4591_v7 = vadd.f32 %v9212_v22, %v4590_v44 }
 0x570   : > { %v5609_v37 = vadd.f32 %v5608_v50, %v5440_v28 }
 0x571   : > { %v4760_v58 = vadd.f32 %v4759_v33, %v4591_v7 }
 0x572   : > { %v5687_v34 = vmax.f32 %v5609_v37, 0.0 }
 0x573   : > { %v4837_v24 = vmax.f32 %v4760_v58, 0.0  ;;  %v9415_v58 = vld [vmem:[#allocation23_spill] sm:$0xff] }
 0x574   : > { %v5751_v17 = vmax.f32 %v4900_v18, %v5687_v34  ;;  %v5441_v26 = vpop.f32.mrf.mxu2 }
 0x575   : > { %v5442_v39 = vadd.f32 %v9212_v22, %v5441_v26  ;;  %v4901_v15 = vmax.f32 %v9411_v55, %v4837_v24 }
 0x576   : > { %5816 = vst.msk [vmem:[%s8850_s27 + $0x1b0] sm:$0xff] %vm5761_vm0, %v5751_v17  ;;  %v4593_v43 = vpop.f32.mrf.mxu0 }
 0x577   : > { %v5610_v6 = vpop.f32.mrf.mxu3  ;;  %v4762_v25 = vpop.f32.mrf.mxu1  ;;  %v4594_v40 = vadd.f32 %v9212_v22, %v4593_v43 }
 0x578   : > { %v5611_v57 = vadd.f32 %v5610_v6, %v5442_v39 }
 0x579   : > { %v4763_v30 = vadd.f32 %v4762_v25, %v4594_v40 }
 0x57a   : > { %v5688_v56 = vmax.f32 %v5611_v57, 0.0 }
 0x57b   : > { %v4838_v59 = vmax.f32 %v4763_v30, 0.0 }
 0x57c   : > { %v5752_v13 = vmax.f32 %v4901_v15, %v5688_v56  ;;  %v5444_v5 = vpop.f32.mrf.mxu2 }
 0x57d   : > { %v5445_v35 = vadd.f32 %v9212_v22, %v5444_v5  ;;  %v4902_v51 = vmax.f32 %v9412_v10, %v4838_v59 }
 0x57e   : > { %5817 = vst.msk [vmem:[%s8850_s27 + $0x1b8] sm:$0xff] %vm5761_vm0, %v5752_v13  ;;  %v4595_v62 = vpop.f32.mrf.mxu0 }
 0x57f   : > { %v5613_v0 = vpop.f32.mrf.mxu3  ;;  %v4764_v19 = vpop.f32.mrf.mxu1  ;;  %v4596_v36 = vadd.f32 %v9212_v22, %v4595_v62 }
 0x580   : > { %v5614_v9 = vadd.f32 %v5613_v0, %v5445_v35 }
 0x581   : > { %v4765_v49 = vadd.f32 %v4764_v19, %v4596_v36 }
 0x582   : > { %v5689_v1 = vmax.f32 %v5614_v9, 0.0 }
 0x583   : > { %v4839_v61 = vmax.f32 %v4765_v49, 0.0 }
 0x584   : > { %v5753_v12 = vmax.f32 %v4902_v51, %v5689_v1  ;;  %v5446_v48 = vpop.f32.mrf.mxu2  ;;  %v9416_v1 = vld [vmem:[#allocation24_spill] sm:$0xff] }
 0x585   : > { %v5447_v45 = vadd.f32 %v9212_v22, %v5446_v48  ;;  %v4903_v41 = vmax.f32 %v9413_v42, %v4839_v61 }
 0x586   : > { %5818 = vst.msk [vmem:[%s8850_s27 + $0x1c0] sm:$0xff] %vm5761_vm0, %v5753_v12  ;;  %v4598_v11 = vpop.f32.mrf.mxu0 }
 0x587   : > { %v5615_v31 = vpop.f32.mrf.mxu3  ;;  %v4767_v52 = vpop.f32.mrf.mxu1  ;;  %v4599_v16 = vadd.f32 %v9212_v22, %v4598_v11 }
 0x588   : > { %v5616_v27 = vadd.f32 %v5615_v31, %v5447_v45 }
 0x589   : > { %v4768_v8 = vadd.f32 %v4767_v52, %v4599_v16 }
 0x58a   : > { %v5690_v38 = vmax.f32 %v5616_v27, 0.0 }
 0x58b   : > { %v4840_v46 = vmax.f32 %v4768_v8, 0.0 }
 0x58c   : > { %v5754_v20 = vmax.f32 %v4903_v41, %v5690_v38  ;;  %v5449_v21 = vpop.f32.mrf.mxu2  ;;  %v9417_v41 = vld [vmem:[#allocation25_spill] sm:$0xff] }
 0x58d   : > { %v5450_v4 = vadd.f32 %v9212_v22, %v5449_v21  ;;  %v4904_v54 = vmax.f32 %v9414_v3, %v4840_v46 }
 0x58e   : > { %5819 = vst.msk [vmem:[%s8850_s27 + $0x1c8] sm:$0xff] %vm5761_vm0, %v5754_v20  ;;  %v4600_v60 = vpop.f32.mrf.mxu0 }
 0x58f   : > { %v5618_v63 = vpop.f32.mrf.mxu3  ;;  %v4769_v32 = vpop.f32.mrf.mxu1  ;;  %v4601_v14 = vadd.f32 %v9212_v22, %v4600_v60 }
 0x590   : > { %v5619_v2 = vadd.f32 %v5618_v63, %v5450_v4 }
 0x591   : > { %v4770_v50 = vadd.f32 %v4769_v32, %v4601_v14  ;;  %v9418_v14 = vld [vmem:[#allocation26_spill] sm:$0xff] }
 0x592   : > { %v5691_v23 = vmax.f32 %v5619_v2, 0.0 }
 0x593   : > { %v4841_v33 = vmax.f32 %v4770_v50, 0.0 }
 0x594   : > { %v5755_v53 = vmax.f32 %v4904_v54, %v5691_v23  ;;  %v5451_v28 = vpop.f32.mrf.mxu2 }
 0x595   : > { %v5452_v7 = vadd.f32 %v9212_v22, %v5451_v28  ;;  %v4905_v17 = vmax.f32 %v9415_v58, %v4841_v33 }
 0x596   : > { %5820 = vst.msk [vmem:[%s8850_s27 + $0x1d0] sm:$0xff] %vm5761_vm0, %v5755_v53  ;;  %v4603_v37 = vpop.f32.mrf.mxu0 }
 0x597   : > { %v5620_v44 = vpop.f32.mrf.mxu3  ;;  %v4772_v29 = vpop.f32.mrf.mxu1  ;;  %v4604_v18 = vadd.f32 %v9212_v22, %v4603_v37 }
 0x598   : > { %v5621_v34 = vadd.f32 %v5620_v44, %v5452_v7 }
 0x599   : > { %v4773_v6 = vadd.f32 %v4772_v29, %v4604_v18 }
 0x59a   : > { %v5692_v26 = vmax.f32 %v5621_v34, 0.0 }
 0x59b   : > { %v4842_v25 = vmax.f32 %v4773_v6, 0.0 }
 0x59c   : > { %v5756_v24 = vmax.f32 %v4905_v17, %v5692_v26  ;;  %v5454_v39 = vpop.f32.mrf.mxu2 }
 0x59d   : > { %v5455_v40 = vadd.f32 %v9212_v22, %v5454_v39  ;;  %v4906_v30 = vmax.f32 %v8815_v47, %v4842_v25 }
 0x59e   : > { %5821 = vst.msk [vmem:[%s8850_s27 + $0x1d8] sm:$0xff] %vm5761_vm0, %v5756_v24  ;;  %v4605_v57 = vpop.f32.mrf.mxu0 }
 0x59f   : > { %v5623_v43 = vpop.f32.mrf.mxu3  ;;  %v4774_v55 = vpop.f32.mrf.mxu1  ;;  %v4606_v15 = vadd.f32 %v9212_v22, %v4605_v57 }
 0x5a0   : > { %v5624_v56 = vadd.f32 %v5623_v43, %v5455_v40 }
 0x5a1   : > { %v4775_v5 = vadd.f32 %v4774_v55, %v4606_v15 }
 0x5a2   : > { %v5693_v13 = vmax.f32 %v5624_v56, 0.0 }
 0x5a3   : > { %v4843_v62 = vmax.f32 %v4775_v5, 0.0 }
 0x5a4   : > { %v5757_v0 = vmax.f32 %v4906_v30, %v5693_v13  ;;  %v5456_v59 = vpop.f32.mrf.mxu2 }
 0x5a5   : > { %v5457_v19 = vadd.f32 %v9212_v22, %v5456_v59  ;;  %v4907_v49 = vmax.f32 %v9416_v1, %v4843_v62 }
 0x5a6   : > { %5822 = vst.msk [vmem:[%s8850_s27 + $0x1e0] sm:$0xff] %vm5761_vm0, %v5757_v0  ;;  %v4608_v36 = vpop.f32.mrf.mxu0 }
 0x5a7   : > { %v5625_v35 = vpop.f32.mrf.mxu3  ;;  %v4609_v9 = vadd.f32 %v9212_v22, %v4608_v36  ;;  %v4777_v10 = vpop.f32.mrf.mxu1 }
 0x5a8   : > { %v5626_v51 = vadd.f32 %v5625_v35, %v5457_v19 }
 0x5a9   : > { %v4778_v47 = vadd.f32 %v4777_v10, %v4609_v9 }
 0x5aa   : > { %v5694_v12 = vmax.f32 %v5626_v51, 0.0 }
 0x5ab   : > { %v4844_v45 = vmax.f32 %v4778_v47, 0.0 }
 0x5ac   : > { %v5758_v48 = vmax.f32 %v4907_v49, %v5694_v12  ;;  %v5459_v31 = vpop.f32.mrf.mxu2 }
 0x5ad   : > { %v5460_v11 = vadd.f32 %v9212_v22, %v5459_v31  ;;  %v4908_v38 = vmax.f32 %v9417_v41, %v4844_v45 }
 0x5ae   : > { %5823 = vst.msk [vmem:[%s8850_s27 + $0x1e8] sm:$0xff] %vm5761_vm0, %v5758_v48  ;;  %v4610_v52 = vpop.f32.mrf.mxu0 }
 0x5af   : > { %v5628_v61 = vpop.f32.mrf.mxu3  ;;  %v4611_v16 = vadd.f32 %v9212_v22, %v4610_v52  ;;  %v4779_v42 = vpop.f32.mrf.mxu1 }
 0x5b0   : > { %v5629_v27 = vadd.f32 %v5628_v61, %v5460_v11 }
 0x5b1   : > { %v4780_v20 = vadd.f32 %v4779_v42, %v4611_v16 }
 0x5b2   : > { %v5695_v8 = vmax.f32 %v5629_v27, 0.0 }
 0x5b3   : > { %v4845_v46 = vmax.f32 %v4780_v20, 0.0 }
 0x5b4   : > { %v5759_v21 = vmax.f32 %v4908_v38, %v5695_v8  ;;  %v5461_v63 = vpop.f32.mrf.mxu2 }
 0x5b5   : > { %v5462_v4 = vadd.f32 %v9212_v22, %v5461_v63  ;;  %v4909_v2 = vmax.f32 %v9418_v14, %v4845_v46 }
 0x5b6   : > { %5824 = vst.msk [vmem:[%s8850_s27 + $0x1f0] sm:$0xff] %vm5761_vm0, %v5759_v21 }
 0x5b7   : > { %v5630_v60 = vpop.f32.mrf.mxu3 }
 0x5b8   : > { %v5631_v32 = vadd.f32 %v5630_v60, %v5462_v4 }
 0x5ba   : > { %v5696_v3 = vmax.f32 %v5631_v32, 0.0 }
 0x5bc   : > { %v5760_v54 = vmax.f32 %v4909_v2, %v5696_v3 }
 0x5be   : > { %5825 = vst.msk [vmem:[%s8850_s27 + $0x1f8] sm:$0xff] %vm5761_vm0, %v5760_v54 }
 0x5bf PF: > { %p10_p9 = scmp.ge.s32.totalorder %s7555_s16, 4   ;;  %s9419_s12 = smov %s7512_s13 }
 0x5c0   : > { %s9420_s13 = smov %s7564_s19  ;;  %s9421_s14 = smov %s7555_s16 }
 0x5c1   :  { %12 = sbr.rel (!%p10_p9) target bundleno = 2 (0x2), region = 128 }

// kernel: dueling_cnn_forward.4
= control target key start
LH: loop header
LB: loop body
LE: loop exit
PB: predicated region body
PF: predicated region fallthrough
CT: control target
= control target key end

     0   :  { %vm854_vm0 = vcmask 523264   ;;  %s2022_s1 = inlined_call_operand.vmem [shape: f32[512,64], index: 1, kind: input, shape index: {}]   ;;  %s2023_s0 = inlined_call_operand.vmem [shape: f32[4,56,512], index: 0, kind: input, shape index: {}]   ;;  %s2024_s2 = inlined_call_operand.vmem [shape: f32[1,64], index: 2, kind: input, shape index: {}]   ;;  %s2025_s3 = inlined_call_operand.vmem [shape: f32[56,64], index: 3, kind: output, shape index: {}]  }
   0x1   :  { %v974_v0 = vld [vmem:[%s2022_s1 + $0x178] sm:$0xff]  ;;  %v984_v2 = vld [vmem:[%s2022_s1 + $0x170] sm:$0xff]  ;;  %v1008_v6 = vld [vmem:[%s2022_s1 + $0x168] sm:$0xff] }
   0x2   :  { %v979_v1 = vld [vmem:[%s2022_s1 + $0x78] sm:$0xff]  ;;  %186 = vmatpush.msra.mxu2 %v974_v0  ;;  %v996_v4 = vld [vmem:[%s2022_s1 + $0x70] sm:$0xff]  ;;  %v1018_v8 = vld [vmem:[%s2022_s1 + $0x68] sm:$0xff] }
   0x3   :  { %110 = vmatpush.msra.mxu0 %v979_v1  ;;  %v991_v3 = vld [vmem:[%s2022_s1 + $0x1f8] sm:$0xff]  ;;  %v1013_v7 = vld [vmem:[%s2022_s1 + $0x1f0] sm:$0xff]  ;;  %v1030_v10 = vld [vmem:[%s2022_s1 + $0x1e8] sm:$0xff] }
   0x4   :  { %v1001_v5 = vld [vmem:[%s2022_s1 + $0xf8] sm:$0xff]  ;;  %224 = vmatpush.msra.mxu3 %v991_v3  ;;  %187 = vmatpush.msra.mxu2 %v984_v2  ;;  %v1025_v9 = vld [vmem:[%s2022_s1 + $0xf0] sm:$0xff]  ;;  %v1037_v11 = vld [vmem:[%s2022_s1 + $0x160] sm:$0xff] }
   0x5   :  { %148 = vmatpush.msra.mxu1 %v1001_v5  ;;  %111 = vmatpush.msra.mxu0 %v996_v4  ;;  %v1042_v12 = vld [vmem:[%s2022_s1 + $0x60] sm:$0xff]  ;;  %v1047_v13 = vld [vmem:[%s2022_s1 + $0xe8] sm:$0xff]  ;;  %v1066_v16 = vld [vmem:[%s2022_s1 + $0x158] sm:$0xff] }
   0x6   :  { %225 = vmatpush.msra.mxu3 %v1013_v7  ;;  %188 = vmatpush.msra.mxu2 %v1008_v6  ;;  %v1054_v14 = vld [vmem:[%s2022_s1 + $0x1e0] sm:$0xff]  ;;  %v1071_v17 = vld [vmem:[%s2022_s1 + $0x58] sm:$0xff]  ;;  %v1090_v20 = vld [vmem:[%s2022_s1 + $0x150] sm:$0xff] }
   0x7   :  { %149 = vmatpush.msra.mxu1 %v1025_v9  ;;  %112 = vmatpush.msra.mxu0 %v1018_v8  ;;  %v1059_v15 = vld [vmem:[%s2022_s1 + $0xe0] sm:$0xff]  ;;  %v1078_v18 = vld [vmem:[%s2022_s1 + $0x1d8] sm:$0xff]  ;;  %v1095_v21 = vld [vmem:[%s2022_s1 + $0x50] sm:$0xff] }
   0x8   :  { %226 = vmatpush.msra.mxu3 %v1030_v10  ;;  %189 = vmatpush.msra.mxu2 %v1037_v11  ;;  %v1083_v19 = vld [vmem:[%s2022_s1 + $0xd8] sm:$0xff]  ;;  %v1102_v22 = vld [vmem:[%s2022_s1 + $0x1d0] sm:$0xff]  ;;  %v1114_v24 = vld [vmem:[%s2022_s1 + $0x148] sm:$0xff] }
   0x9   :  { %150 = vmatpush.msra.mxu1 %v1047_v13  ;;  %113 = vmatpush.msra.mxu0 %v1042_v12  ;;  %v1107_v23 = vld [vmem:[%s2022_s1 + $0xd0] sm:$0xff]  ;;  %v1119_v25 = vld [vmem:[%s2022_s1 + $0x48] sm:$0xff]  ;;  %v1138_v28 = vld [vmem:[%s2022_s1 + $0x140] sm:$0xff] }
   0xa   :  { %227 = vmatpush.msra.mxu3 %v1054_v14  ;;  %190 = vmatpush.msra.mxu2 %v1066_v16  ;;  %v1126_v26 = vld [vmem:[%s2022_s1 + $0x1c8] sm:$0xff]  ;;  %v1143_v29 = vld [vmem:[%s2022_s1 + $0x40] sm:$0xff]  ;;  %v1162_v32 = vld [vmem:[%s2022_s1 + $0x138] sm:$0xff] }
   0xb   :  { %151 = vmatpush.msra.mxu1 %v1059_v15  ;;  %114 = vmatpush.msra.mxu0 %v1071_v17  ;;  %v1131_v27 = vld [vmem:[%s2022_s1 + $0xc8] sm:$0xff]  ;;  %v1150_v30 = vld [vmem:[%s2022_s1 + $0x1c0] sm:$0xff]  ;;  %v1167_v33 = vld [vmem:[%s2022_s1 + $0x38] sm:$0xff] }
   0xc   :  { %228 = vmatpush.msra.mxu3 %v1078_v18  ;;  %191 = vmatpush.msra.mxu2 %v1090_v20  ;;  %v1155_v31 = vld [vmem:[%s2022_s1 + $0xc0] sm:$0xff]  ;;  %v1174_v34 = vld [vmem:[%s2022_s1 + $0x1b8] sm:$0xff]  ;;  %v1186_v36 = vld [vmem:[%s2022_s1 + $0x130] sm:$0xff] }
   0xd   :  { %152 = vmatpush.msra.mxu1 %v1083_v19  ;;  %115 = vmatpush.msra.mxu0 %v1095_v21  ;;  %v1179_v35 = vld [vmem:[%s2022_s1 + $0xb8] sm:$0xff]  ;;  %v1191_v37 = vld [vmem:[%s2022_s1 + $0x30] sm:$0xff]  ;;  %v1210_v40 = vld [vmem:[%s2022_s1 + $0x128] sm:$0xff] }
   0xe   :  { %229 = vmatpush.msra.mxu3 %v1102_v22  ;;  %192 = vmatpush.msra.mxu2 %v1114_v24  ;;  %v1198_v38 = vld [vmem:[%s2022_s1 + $0x1b0] sm:$0xff]  ;;  %v1215_v41 = vld [vmem:[%s2022_s1 + $0x28] sm:$0xff]  ;;  %v1234_v44 = vld [vmem:[%s2022_s1 + $0x120] sm:$0xff] }
   0xf   :  { %153 = vmatpush.msra.mxu1 %v1107_v23  ;;  %116 = vmatpush.msra.mxu0 %v1119_v25  ;;  %v1203_v39 = vld [vmem:[%s2022_s1 + $0xb0] sm:$0xff]  ;;  %v1222_v42 = vld [vmem:[%s2022_s1 + $0x1a8] sm:$0xff]  ;;  %v1239_v45 = vld [vmem:[%s2022_s1 + $0x20] sm:$0xff] }
  0x10   :  { %230 = vmatpush.msra.mxu3 %v1126_v26  ;;  %193 = vmatpush.msra.mxu2 %v1138_v28  ;;  %v1227_v43 = vld [vmem:[%s2022_s1 + $0xa8] sm:$0xff]  ;;  %v1246_v46 = vld [vmem:[%s2022_s1 + $0x1a0] sm:$0xff]  ;;  %v1258_v48 = vld [vmem:[%s2022_s1 + $0x118] sm:$0xff] }
  0x11   :  { %154 = vmatpush.msra.mxu1 %v1131_v27  ;;  %117 = vmatpush.msra.mxu0 %v1143_v29  ;;  %2046 = vst [vmem:[#allocation2_spill] sm:$0xff] %v1246_v46  ;;  %v1251_v47 = vld [vmem:[%s2022_s1 + $0xa0] sm:$0xff]  ;;  %v1263_v49 = vld [vmem:[%s2022_s1 + $0x18] sm:$0xff]  ;;  %v1282_v52 = vld [vmem:[%s2022_s1 + $0x110] sm:$0xff] }
  0x12   :  { %231 = vmatpush.msra.mxu3 %v1150_v30  ;;  %194 = vmatpush.msra.mxu2 %v1162_v32  ;;  %2047 = vst [vmem:[#allocation3_spill] sm:$0xff] %v1251_v47  ;;  %v1270_v50 = vld [vmem:[%s2022_s1 + $0x198] sm:$0xff]  ;;  %v1287_v53 = vld [vmem:[%s2022_s1 + $0x10] sm:$0xff]  ;;  %v1306_v56 = vld [vmem:[%s2022_s1 + $0x108] sm:$0xff] }
  0x13   :  { %155 = vmatpush.msra.mxu1 %v1155_v31  ;;  %118 = vmatpush.msra.mxu0 %v1167_v33  ;;  %2048 = vst [vmem:[#allocation4_spill] sm:$0xff] %v1258_v48  ;;  %v1275_v51 = vld [vmem:[%s2022_s1 + $0x98] sm:$0xff]  ;;  %v1294_v54 = vld [vmem:[%s2022_s1 + $0x190] sm:$0xff]  ;;  %v1311_v57 = vld [vmem:[%s2022_s1 + $0x8] sm:$0xff] }
  0x14   :  { %232 = vmatpush.msra.mxu3 %v1174_v34  ;;  %195 = vmatpush.msra.mxu2 %v1186_v36  ;;  %2049 = vst [vmem:[#allocation5_spill] sm:$0xff] %v1263_v49  ;;  %v1299_v55 = vld [vmem:[%s2022_s1 + $0x90] sm:$0xff]  ;;  %v1318_v58 = vld [vmem:[%s2022_s1 + $0x188] sm:$0xff]  ;;  %v1330_v60 = vld [vmem:[%s2022_s1 + $0x100] sm:$0xff] }
  0x15   :  { %156 = vmatpush.msra.mxu1 %v1179_v35  ;;  %119 = vmatpush.msra.mxu0 %v1191_v37  ;;  %2050 = vst [vmem:[#allocation6_spill] sm:$0xff] %v1275_v51  ;;  %v1323_v59 = vld [vmem:[%s2022_s1 + $0x88] sm:$0xff]  ;;  %v1335_v61 = vld [vmem:[%s2022_s1] sm:$0xff]  ;;  %v81_v62 = vld [vmem:[%s2023_s0 + $0x10] sm:$0xff] }
  0x16   :  { %233 = vmatpush.msra.mxu3 %v1198_v38  ;;  %196 = vmatpush.msra.mxu2 %v1210_v40  ;;  %2051 = vst [vmem:[#allocation7_spill] sm:$0xff] %v1282_v52  ;;  %v1345_v63 = vld [vmem:[%s2022_s1 + $0x180] sm:$0xff] }
  0x17   :  { %157 = vmatpush.msra.mxu1 %v1203_v39  ;;  %120 = vmatpush.msra.mxu0 %v1215_v41  ;;  %2052 = vst [vmem:[#allocation8_spill] sm:$0xff] %v1287_v53 }
  0x18   :  { %234 = vmatpush.msra.mxu3 %v1222_v42  ;;  %197 = vmatpush.msra.mxu2 %v1234_v44  ;;  %2053 = vst [vmem:[#allocation9_spill] sm:$0xff] %v1299_v55 }
  0x19   :  { %158 = vmatpush.msra.mxu1 %v1227_v43  ;;  %121 = vmatpush.msra.mxu0 %v1239_v45  ;;  %2054 = vst [vmem:[#allocation10_spill] sm:$0xff] %v1306_v56 }
  0x1a   :  { %235 = vmatpush.msra.mxu3 %v1246_v46  ;;  %198 = vmatpush.msra.mxu2 %v1258_v48  ;;  %2055 = vst [vmem:[#allocation11_spill] sm:$0xff] %v1311_v57 }
  0x1b   :  { %159 = vmatpush.msra.mxu1 %v1251_v47  ;;  %122 = vmatpush.msra.mxu0 %v1263_v49  ;;  %2056 = vst [vmem:[#allocation12_spill] sm:$0xff] %v1318_v58 }
  0x1c   :  { %236 = vmatpush.msra.mxu3 %v1270_v50  ;;  %199 = vmatpush.msra.mxu2 %v1282_v52  ;;  %2057 = vst [vmem:[#allocation13_spill] sm:$0xff] %v1330_v60 }
  0x1d   :  { %160 = vmatpush.msra.mxu1 %v1275_v51  ;;  %123 = vmatpush.msra.mxu0 %v1287_v53 }
  0x1e   :  { %237 = vmatpush.msra.mxu3 %v1294_v54  ;;  %200 = vmatpush.msra.mxu2 %v1306_v56 }
  0x1f   :  { %161 = vmatpush.msra.mxu1 %v1299_v55  ;;  %124 = vmatpush.msra.mxu0 %v1311_v57  ;;  %v79_v55 = vld [vmem:[%s2023_s0] sm:$0xff]  ;;  %v82_v57 = vld [vmem:[%s2023_s0 + $0x18] sm:$0xff] }
  0x20   :  { %238 = vmatpush.msra.mxu3 %v1318_v58  ;;  %201 = vmatpush.msra.mxu2 %v1330_v60  ;;  %v1361_v58 = vld [vmem:[%s2022_s1 + $0x80] sm:$0xff]  ;;  %v80_v60 = vld [vmem:[%s2023_s0 + $0x8] sm:$0xff] }
  0x21   :  { %162 = vmatpush.msra.mxu1 %v1323_v59  ;;  %125 = vmatpush.msra.mxu0 %v1335_v61 }
  0x22   :  { %202 = vmatmul.f32.vlgmr.msra.gmra.mxu2 %v81_v62  ;;  %239 = vmatpush.msra.mxu3 %v1345_v63  ;;  %v84_v62 = vld [vmem:[%s2023_s0 + $0x28] sm:$0xff] }
  0x23   :  { %374 = vmatpush.msrb.mxu2 %v974_v0  ;;  %126 = vmatmul.f32.vlgmr.msra.gmra.mxu0 %v79_v55  ;;  %v85_v55 = vld [vmem:[%s2023_s0 + $0x30] sm:$0xff] }
  0x24   :  { %240 = vmatmul.f32.vlgmr.msra.gmra.mxu3 %v82_v57  ;;  %298 = vmatpush.msrb.mxu0 %v979_v1  ;;  %v83_v57 = vld [vmem:[%s2023_s0 + $0x20] sm:$0xff] }
  0x25   :  { %412 = vmatpush.msrb.mxu3 %v991_v3  ;;  %163 = vmatpush.msra.mxu1 %v1361_v58 }
  0x26   :  { %164 = vmatmul.f32.vlgmr.msra.gmra.mxu1 %v80_v60  ;;  %375 = vmatpush.msrb.mxu2 %v984_v2  ;;  %v86_v60 = vld [vmem:[%s2023_s0 + $0x38] sm:$0xff] }
  0x27   :  { %336 = vmatpush.msrb.mxu1 %v1001_v5  ;;  %299 = vmatpush.msrb.mxu0 %v996_v4 }
  0x28   :  { %413 = vmatpush.msrb.mxu3 %v1013_v7  ;;  %376 = vmatpush.msrb.mxu2 %v1008_v6 }
  0x29   :  { %337 = vmatpush.msrb.mxu1 %v1025_v9  ;;  %300 = vmatpush.msrb.mxu0 %v1018_v8 }
  0x2a   :  { %205 = vmatmul.f32.gmra.mxu2 %v85_v55  ;;  %414 = vmatpush.msrb.mxu3 %v1030_v10  ;;  %v89_v55 = vld [vmem:[%s2023_s0 + $0x50] sm:$0xff] }
  0x2b   :  { %129 = vmatmul.f32.gmra.mxu0 %v83_v57  ;;  %338 = vmatpush.msrb.mxu1 %v1047_v13  ;;  %v87_v57 = vld [vmem:[%s2023_s0 + $0x40] sm:$0xff] }
  0x2c   :  { %243 = vmatmul.f32.gmra.mxu3 %v86_v60  ;;  %377 = vmatpush.msrb.mxu2 %v1037_v11  ;;  %v90_v60 = vld [vmem:[%s2023_s0 + $0x58] sm:$0xff] }
  0x2d   :  { %301 = vmatpush.msrb.mxu0 %v1042_v12  ;;  %415 = vmatpush.msrb.mxu3 %v1054_v14 }
  0x2e   :  { %167 = vmatmul.f32.gmra.mxu1 %v84_v62  ;;  %378 = vmatpush.msrb.mxu2 %v1066_v16  ;;  %v88_v62 = vld [vmem:[%s2023_s0 + $0x48] sm:$0xff] }
  0x2f   :  { %339 = vmatpush.msrb.mxu1 %v1059_v15  ;;  %302 = vmatpush.msrb.mxu0 %v1071_v17 }
  0x30   :  { %416 = vmatpush.msrb.mxu3 %v1078_v18  ;;  %379 = vmatpush.msrb.mxu2 %v1090_v20 }
  0x31   :  { %340 = vmatpush.msrb.mxu1 %v1083_v19  ;;  %303 = vmatpush.msrb.mxu0 %v1095_v21 }
  0x32   :  { %208 = vmatmul.f32.gmra.mxu2 %v89_v55  ;;  %417 = vmatpush.msrb.mxu3 %v1102_v22  ;;  %v93_v55 = vld [vmem:[%s2023_s0 + $0x70] sm:$0xff] }
  0x33   :  { %132 = vmatmul.f32.gmra.mxu0 %v87_v57  ;;  %380 = vmatpush.msrb.mxu2 %v1114_v24  ;;  %v91_v57 = vld [vmem:[%s2023_s0 + $0x60] sm:$0xff] }
  0x34   :  { %246 = vmatmul.f32.gmra.mxu3 %v90_v60  ;;  %341 = vmatpush.msrb.mxu1 %v1107_v23  ;;  %v94_v60 = vld [vmem:[%s2023_s0 + $0x78] sm:$0xff] }
  0x35   :  { %304 = vmatpush.msrb.mxu0 %v1119_v25  ;;  %418 = vmatpush.msrb.mxu3 %v1126_v26 }
  0x36   :  { %170 = vmatmul.f32.gmra.mxu1 %v88_v62  ;;  %381 = vmatpush.msrb.mxu2 %v1138_v28  ;;  %v92_v62 = vld [vmem:[%s2023_s0 + $0x68] sm:$0xff] }
  0x37   :  { %342 = vmatpush.msrb.mxu1 %v1131_v27  ;;  %305 = vmatpush.msrb.mxu0 %v1143_v29 }
  0x38   :  { %419 = vmatpush.msrb.mxu3 %v1150_v30  ;;  %382 = vmatpush.msrb.mxu2 %v1162_v32 }
  0x39   :  { %343 = vmatpush.msrb.mxu1 %v1155_v31  ;;  %306 = vmatpush.msrb.mxu0 %v1167_v33 }
  0x3a   :  { %211 = vmatmul.f32.gmra.mxu2 %v93_v55  ;;  %420 = vmatpush.msrb.mxu3 %v1174_v34  ;;  %v97_v55 = vld [vmem:[%s2023_s0 + $0x90] sm:$0xff] }
  0x3b   :  { %135 = vmatmul.f32.gmra.mxu0 %v91_v57  ;;  %344 = vmatpush.msrb.mxu1 %v1179_v35  ;;  %v95_v57 = vld [vmem:[%s2023_s0 + $0x80] sm:$0xff] }
  0x3c   :  { %249 = vmatmul.f32.gmra.mxu3 %v94_v60  ;;  %383 = vmatpush.msrb.mxu2 %v1186_v36  ;;  %v98_v60 = vld [vmem:[%s2023_s0 + $0x98] sm:$0xff] }
  0x3d   :  { %307 = vmatpush.msrb.mxu0 %v1191_v37  ;;  %421 = vmatpush.msrb.mxu3 %v1198_v38 }
  0x3e   :  { %173 = vmatmul.f32.gmra.mxu1 %v92_v62  ;;  %384 = vmatpush.msrb.mxu2 %v1210_v40  ;;  %v96_v62 = vld [vmem:[%s2023_s0 + $0x88] sm:$0xff] }
  0x3f   :  { %345 = vmatpush.msrb.mxu1 %v1203_v39  ;;  %308 = vmatpush.msrb.mxu0 %v1215_v41 }
  0x40   :  { %422 = vmatpush.msrb.mxu3 %v1222_v42  ;;  %385 = vmatpush.msrb.mxu2 %v1234_v44 }
  0x41   :  { %346 = vmatpush.msrb.mxu1 %v1227_v43  ;;  %309 = vmatpush.msrb.mxu0 %v1239_v45 }
  0x42   :  { %214 = vmatmul.f32.gmra.mxu2 %v97_v55  ;;  %423 = vmatpush.msrb.mxu3 %v1246_v46  ;;  %v101_v55 = vld [vmem:[%s2023_s0 + $0xb0] sm:$0xff] }
  0x43   :  { %138 = vmatmul.f32.gmra.mxu0 %v95_v57  ;;  %386 = vmatpush.msrb.mxu2 %v1258_v48  ;;  %v99_v57 = vld [vmem:[%s2023_s0 + $0xa0] sm:$0xff] }
  0x44   :  { %252 = vmatmul.f32.gmra.mxu3 %v98_v60  ;;  %347 = vmatpush.msrb.mxu1 %v1251_v47  ;;  %v102_v60 = vld [vmem:[%s2023_s0 + $0xb8] sm:$0xff] }
  0x45   :  { %310 = vmatpush.msrb.mxu0 %v1263_v49  ;;  %424 = vmatpush.msrb.mxu3 %v1270_v50 }
  0x46   :  { %176 = vmatmul.f32.gmra.mxu1 %v96_v62  ;;  %387 = vmatpush.msrb.mxu2 %v1282_v52  ;;  %v2058_v62 = vld [vmem:[#allocation9_spill] sm:$0xff]  ;;  %v2059_v52 = vld [vmem:[#allocation11_spill] sm:$0xff] }
  0x47   :  { %348 = vmatpush.msrb.mxu1 %v1275_v51  ;;  %311 = vmatpush.msrb.mxu0 %v1287_v53  ;;  %v2060_v51 = vld [vmem:[#allocation12_spill] sm:$0xff]  ;;  %v100_v53 = vld [vmem:[%s2023_s0 + $0xa8] sm:$0xff] }
  0x48   :  { %425 = vmatpush.msrb.mxu3 %v1294_v54  ;;  %388 = vmatpush.msrb.mxu2 %v1306_v56  ;;  %v2061_v56 = vld [vmem:[#allocation13_spill] sm:$0xff] }
  0x49   :  { %349 = vmatpush.msrb.mxu1 %v2058_v62  ;;  %312 = vmatpush.msrb.mxu0 %v2059_v52 }
  0x4a   :  { %217 = vmatmul.f32.gmra.mxu2 %v101_v55  ;;  %426 = vmatpush.msrb.mxu3 %v2060_v51  ;;  %v105_v55 = vld [vmem:[%s2023_s0 + $0xd0] sm:$0xff] }
  0x4b   :  { %141 = vmatmul.f32.gmra.mxu0 %v99_v57  ;;  %350 = vmatpush.msrb.mxu1 %v1323_v59  ;;  %v103_v57 = vld [vmem:[%s2023_s0 + $0xc0] sm:$0xff] }
  0x4c   :  { %255 = vmatmul.f32.gmra.mxu3 %v102_v60  ;;  %389 = vmatpush.msrb.mxu2 %v2061_v56  ;;  %v104_v60 = vld [vmem:[%s2023_s0 + $0xc8] sm:$0xff] }
  0x4d   :  { %313 = vmatpush.msrb.mxu0 %v1335_v61  ;;  %427 = vmatpush.msrb.mxu3 %v1345_v63 }
  0x4e   :  { %179 = vmatmul.f32.gmra.mxu1 %v100_v53  ;;  %569 = vmatpush.msra.mxu2 %v974_v0  ;;  %v106_v53 = vld [vmem:[%s2023_s0 + $0xd8] sm:$0xff] }
  0x4f   :  { %351 = vmatpush.msrb.mxu1 %v1361_v58  ;;  %493 = vmatpush.msra.mxu0 %v979_v1 }
  0x50   :  { %607 = vmatpush.msra.mxu3 %v991_v3  ;;  %570 = vmatpush.msra.mxu2 %v984_v2 }
  0x51   :  { %531 = vmatpush.msra.mxu1 %v1001_v5  ;;  %494 = vmatpush.msra.mxu0 %v996_v4 }
  0x52   :  { %220 = vmatmul.f32.gmra.mxu2 %v105_v55  ;;  %608 = vmatpush.msra.mxu3 %v1013_v7  ;;  %v868_v55 = vld [vmem:[%s2023_s0 + $0xf0] sm:$0xff] }
  0x53   :  { %144 = vmatmul.f32.gmra.mxu0 %v103_v57  ;;  %571 = vmatpush.msra.mxu2 %v1008_v6  ;;  %v866_v57 = vld [vmem:[%s2023_s0 + $0xe0] sm:$0xff] }
  0x54   :  { %258 = vmatmul.f32.gmra.mxu3 %v106_v53  ;;  %532 = vmatpush.msra.mxu1 %v1025_v9  ;;  %v869_v53 = vld [vmem:[%s2023_s0 + $0xf8] sm:$0xff] }
  0x55   :  { %495 = vmatpush.msra.mxu0 %v1018_v8  ;;  %609 = vmatpush.msra.mxu3 %v1030_v10 }
  0x56   :  { %182 = vmatmul.f32.gmra.mxu1 %v104_v60  ;;  %572 = vmatpush.msra.mxu2 %v1037_v11  ;;  %v867_v60 = vld [vmem:[%s2023_s0 + $0xe8] sm:$0xff] }
  0x57   :  { %533 = vmatpush.msra.mxu1 %v1047_v13  ;;  %496 = vmatpush.msra.mxu0 %v1042_v12 }
  0x58   :  { %610 = vmatpush.msra.mxu3 %v1054_v14  ;;  %573 = vmatpush.msra.mxu2 %v1066_v16 }
  0x59   :  { %534 = vmatpush.msra.mxu1 %v1059_v15  ;;  %497 = vmatpush.msra.mxu0 %v1071_v17 }
  0x5a   :  { %390 = vmatmul.f32.vlgmr.msrb.gmra.mxu2 %v868_v55  ;;  %611 = vmatpush.msra.mxu3 %v1078_v18  ;;  %v872_v55 = vld [vmem:[%s2023_s0 + $0x110] sm:$0xff] }
  0x5b   :  { %314 = vmatmul.f32.vlgmr.msrb.gmra.mxu0 %v866_v57  ;;  %535 = vmatpush.msra.mxu1 %v1083_v19  ;;  %v870_v57 = vld [vmem:[%s2023_s0 + $0x100] sm:$0xff] }
  0x5c   :  { %428 = vmatmul.f32.vlgmr.msrb.gmra.mxu3 %v869_v53  ;;  %574 = vmatpush.msra.mxu2 %v1090_v20  ;;  %v873_v53 = vld [vmem:[%s2023_s0 + $0x118] sm:$0xff] }
  0x5d   :  { %498 = vmatpush.msra.mxu0 %v1095_v21  ;;  %612 = vmatpush.msra.mxu3 %v1102_v22 }
  0x5e   :  { %352 = vmatmul.f32.vlgmr.msrb.gmra.mxu1 %v867_v60  ;;  %575 = vmatpush.msra.mxu2 %v1114_v24  ;;  %v871_v60 = vld [vmem:[%s2023_s0 + $0x108] sm:$0xff] }
  0x5f   :  { %536 = vmatpush.msra.mxu1 %v1107_v23  ;;  %499 = vmatpush.msra.mxu0 %v1119_v25 }
  0x60   :  { %613 = vmatpush.msra.mxu3 %v1126_v26  ;;  %576 = vmatpush.msra.mxu2 %v1138_v28 }
  0x61   :  { %537 = vmatpush.msra.mxu1 %v1131_v27  ;;  %500 = vmatpush.msra.mxu0 %v1143_v29 }
  0x62   :  { %393 = vmatmul.f32.gmra.mxu2 %v872_v55  ;;  %614 = vmatpush.msra.mxu3 %v1150_v30  ;;  %v876_v55 = vld [vmem:[%s2023_s0 + $0x130] sm:$0xff] }
  0x63   :  { %317 = vmatmul.f32.gmra.mxu0 %v870_v57  ;;  %577 = vmatpush.msra.mxu2 %v1162_v32  ;;  %v874_v57 = vld [vmem:[%s2023_s0 + $0x120] sm:$0xff] }
  0x64   :  { %431 = vmatmul.f32.gmra.mxu3 %v873_v53  ;;  %538 = vmatpush.msra.mxu1 %v1155_v31  ;;  %v877_v53 = vld [vmem:[%s2023_s0 + $0x138] sm:$0xff] }
  0x65   :  { %501 = vmatpush.msra.mxu0 %v1167_v33  ;;  %615 = vmatpush.msra.mxu3 %v1174_v34 }
  0x66   :  { %355 = vmatmul.f32.gmra.mxu1 %v871_v60  ;;  %578 = vmatpush.msra.mxu2 %v1186_v36  ;;  %v875_v60 = vld [vmem:[%s2023_s0 + $0x128] sm:$0xff] }
  0x67   :  { %539 = vmatpush.msra.mxu1 %v1179_v35  ;;  %502 = vmatpush.msra.mxu0 %v1191_v37 }
  0x68   :  { %616 = vmatpush.msra.mxu3 %v1198_v38  ;;  %579 = vmatpush.msra.mxu2 %v1210_v40 }
  0x69   :  { %540 = vmatpush.msra.mxu1 %v1203_v39  ;;  %503 = vmatpush.msra.mxu0 %v1215_v41 }
  0x6a   :  { %396 = vmatmul.f32.gmra.mxu2 %v876_v55  ;;  %617 = vmatpush.msra.mxu3 %v1222_v42  ;;  %v880_v55 = vld [vmem:[%s2023_s0 + $0x150] sm:$0xff] }
  0x6b   :  { %320 = vmatmul.f32.gmra.mxu0 %v874_v57  ;;  %541 = vmatpush.msra.mxu1 %v1227_v43  ;;  %v878_v57 = vld [vmem:[%s2023_s0 + $0x140] sm:$0xff] }
  0x6c   :  { %434 = vmatmul.f32.gmra.mxu3 %v877_v53  ;;  %580 = vmatpush.msra.mxu2 %v1234_v44  ;;  %v2062_v53 = vld [vmem:[#allocation7_spill] sm:$0xff] }
  0x6d   :  { %504 = vmatpush.msra.mxu0 %v1239_v45  ;;  %618 = vmatpush.msra.mxu3 %v1246_v46  ;;  %v2064_v46 = vld [vmem:[#allocation8_spill] sm:$0xff] }
  0x6e   :  { %358 = vmatmul.f32.gmra.mxu1 %v875_v60  ;;  %581 = vmatpush.msra.mxu2 %v1258_v48  ;;  %v881_v60 = vld [vmem:[%s2023_s0 + $0x158] sm:$0xff]  ;;  %v2063_v48 = vld [vmem:[#allocation6_spill] sm:$0xff] }
  0x6f   :  { %542 = vmatpush.msra.mxu1 %v1251_v47  ;;  %505 = vmatpush.msra.mxu0 %v1263_v49  ;;  %v879_v49 = vld [vmem:[%s2023_s0 + $0x148] sm:$0xff]  ;;  %v2065_v47 = vld [vmem:[#allocation10_spill] sm:$0xff] }
  0x70   :  { %619 = vmatpush.msra.mxu3 %v1270_v50  ;;  %582 = vmatpush.msra.mxu2 %v2062_v53 }
  0x71   :  { %543 = vmatpush.msra.mxu1 %v2063_v48  ;;  %506 = vmatpush.msra.mxu0 %v2064_v46 }
  0x72   :  { %399 = vmatmul.f32.gmra.mxu2 %v880_v55  ;;  %620 = vmatpush.msra.mxu3 %v1294_v54  ;;  %v884_v55 = vld [vmem:[%s2023_s0 + $0x170] sm:$0xff] }
  0x73   :  { %323 = vmatmul.f32.gmra.mxu0 %v878_v57  ;;  %583 = vmatpush.msra.mxu2 %v2065_v47  ;;  %v882_v57 = vld [vmem:[%s2023_s0 + $0x160] sm:$0xff] }
  0x74   :  { %437 = vmatmul.f32.gmra.mxu3 %v881_v60  ;;  %544 = vmatpush.msra.mxu1 %v2058_v62  ;;  %v883_v60 = vld [vmem:[%s2023_s0 + $0x168] sm:$0xff] }
  0x75   :  { %507 = vmatpush.msra.mxu0 %v2059_v52  ;;  %621 = vmatpush.msra.mxu3 %v2060_v51 }
  0x76   :  { %361 = vmatmul.f32.gmra.mxu1 %v879_v49  ;;  %584 = vmatpush.msra.mxu2 %v2061_v56  ;;  %v885_v49 = vld [vmem:[%s2023_s0 + $0x178] sm:$0xff] }
  0x77   :  { %545 = vmatpush.msra.mxu1 %v1323_v59  ;;  %508 = vmatpush.msra.mxu0 %v1335_v61 }
  0x78   :  { %622 = vmatpush.msra.mxu3 %v1345_v63  ;;  %764 = vmatpush.msrb.mxu2 %v974_v0  ;;  %v888_v0 = vld [vmem:[%s2023_s0 + $0x190] sm:$0xff] }
  0x79   :  { %546 = vmatpush.msra.mxu1 %v1361_v58  ;;  %688 = vmatpush.msrb.mxu0 %v979_v1  ;;  %v886_v1 = vld [vmem:[%s2023_s0 + $0x180] sm:$0xff] }
  0x7a   :  { %402 = vmatmul.f32.gmra.mxu2 %v884_v55  ;;  %802 = vmatpush.msrb.mxu3 %v991_v3  ;;  %v887_v3 = vld [vmem:[%s2023_s0 + $0x188] sm:$0xff] }
  0x7b   :  { %326 = vmatmul.f32.gmra.mxu0 %v882_v57  ;;  %726 = vmatpush.msrb.mxu1 %v1001_v5  ;;  %v890_v5 = vld [vmem:[%s2023_s0 + $0x1a0] sm:$0xff]  ;;  %v917_v57 = vld [vmem:[%s2023_s0 + $0x278] sm:$0xff] }
  0x7c   :  { %440 = vmatmul.f32.gmra.mxu3 %v885_v49  ;;  %765 = vmatpush.msrb.mxu2 %v984_v2  ;;  %v889_v2 = vld [vmem:[%s2023_s0 + $0x198] sm:$0xff] }
  0x7d   :  { %689 = vmatpush.msrb.mxu0 %v996_v4  ;;  %803 = vmatpush.msrb.mxu3 %v1013_v7  ;;  %v892_v4 = vld [vmem:[%s2023_s0 + $0x1b0] sm:$0xff]  ;;  %v891_v7 = vld [vmem:[%s2023_s0 + $0x1a8] sm:$0xff] }
  0x7e   :  { %364 = vmatmul.f32.gmra.mxu1 %v883_v60  ;;  %766 = vmatpush.msrb.mxu2 %v1008_v6  ;;  %v893_v6 = vld [vmem:[%s2023_s0 + $0x1b8] sm:$0xff]  ;;  %v915_v60 = vld [vmem:[%s2023_s0 + $0x268] sm:$0xff] }
  0x7f   :  { %727 = vmatpush.msrb.mxu1 %v1025_v9  ;;  %690 = vmatpush.msrb.mxu0 %v1018_v8  ;;  %v896_v8 = vld [vmem:[%s2023_s0 + $0x1d0] sm:$0xff]  ;;  %v894_v9 = vld [vmem:[%s2023_s0 + $0x1c0] sm:$0xff] }
  0x80   :  { %804 = vmatpush.msrb.mxu3 %v1030_v10  ;;  %767 = vmatpush.msrb.mxu2 %v1037_v11  ;;  %v897_v10 = vld [vmem:[%s2023_s0 + $0x1d8] sm:$0xff]  ;;  %v895_v11 = vld [vmem:[%s2023_s0 + $0x1c8] sm:$0xff] }
  0x81   :  { %728 = vmatpush.msrb.mxu1 %v1047_v13  ;;  %691 = vmatpush.msrb.mxu0 %v1042_v12  ;;  %v900_v12 = vld [vmem:[%s2023_s0 + $0x1f0] sm:$0xff]  ;;  %v898_v13 = vld [vmem:[%s2023_s0 + $0x1e0] sm:$0xff] }
  0x82   :  { %405 = vmatmul.f32.gmra.mxu2 %v888_v0  ;;  %805 = vmatpush.msrb.mxu3 %v1054_v14  ;;  %v2066_v14 = vld [vmem:[#allocation2_spill] sm:$0xff] }
  0x83   :  { %329 = vmatmul.f32.gmra.mxu0 %v886_v1  ;;  %768 = vmatpush.msrb.mxu2 %v1066_v16  ;;  %v901_v16 = vld [vmem:[%s2023_s0 + $0x1f8] sm:$0xff] }
  0x84   :  { %443 = vmatmul.f32.gmra.mxu3 %v889_v2  ;;  %729 = vmatpush.msrb.mxu1 %v1059_v15  ;;  %v2067_v15 = vld [vmem:[#allocation4_spill] sm:$0xff] }
  0x85   :  { %692 = vmatpush.msrb.mxu0 %v1071_v17  ;;  %806 = vmatpush.msrb.mxu3 %v1078_v18  ;;  %v2068_v17 = vld [vmem:[#allocation3_spill] sm:$0xff]  ;;  %v2069_v18 = vld [vmem:[#allocation5_spill] sm:$0xff] }
  0x86   :  { %367 = vmatmul.f32.gmra.mxu1 %v887_v3  ;;  %769 = vmatpush.msrb.mxu2 %v1090_v20  ;;  %v1731_v20 = vld [vmem:[%s2024_s2] ss:$0 sm:$0xff] }
  0x87   :  { %730 = vmatpush.msrb.mxu1 %v1083_v19  ;;  %693 = vmatpush.msrb.mxu0 %v1095_v21  ;;  %v899_v19 = vld [vmem:[%s2023_s0 + $0x1e8] sm:$0xff]  ;;  %v904_v21 = vld [vmem:[%s2023_s0 + $0x210] sm:$0xff] }
  0x88   :  { %807 = vmatpush.msrb.mxu3 %v1102_v22  ;;  %770 = vmatpush.msrb.mxu2 %v1114_v24 }
  0x89   :  { %731 = vmatpush.msrb.mxu1 %v1107_v23  ;;  %694 = vmatpush.msrb.mxu0 %v1119_v25  ;;  %v902_v23 = vld [vmem:[%s2023_s0 + $0x200] sm:$0xff]  ;;  %v905_v25 = vld [vmem:[%s2023_s0 + $0x218] sm:$0xff] }
  0x8a   :  { %408 = vmatmul.f32.gmra.mxu2 %v892_v4  ;;  %808 = vmatpush.msrb.mxu3 %v1126_v26  ;;  %v920_v4 = vld [vmem:[%s2023_s0 + $0x290] sm:$0xff] }
  0x8b   :  { %332 = vmatmul.f32.gmra.mxu0 %v890_v5  ;;  %732 = vmatpush.msrb.mxu1 %v1131_v27  ;;  %v903_v27 = vld [vmem:[%s2023_s0 + $0x208] sm:$0xff] }
  0x8c   :  { %446 = vmatmul.f32.gmra.mxu3 %v893_v6  ;;  %771 = vmatpush.msrb.mxu2 %v1138_v28 }
  0x8d   :  { %695 = vmatpush.msrb.mxu0 %v1143_v29  ;;  %809 = vmatpush.msrb.mxu3 %v1150_v30 }
  0x8e   :  { %370 = vmatmul.f32.gmra.mxu1 %v891_v7  ;;  %772 = vmatpush.msrb.mxu2 %v1162_v32  ;;  %v908_v32 = vld [vmem:[%s2023_s0 + $0x230] sm:$0xff]  ;;  %v918_v7 = vld [vmem:[%s2023_s0 + $0x280] sm:$0xff] }
  0x8f   :  { %733 = vmatpush.msrb.mxu1 %v1155_v31  ;;  %696 = vmatpush.msrb.mxu0 %v1167_v33 }
  0x90   :  { %810 = vmatpush.msrb.mxu3 %v1174_v34  ;;  %773 = vmatpush.msrb.mxu2 %v1186_v36 }
  0x91   :  { %734 = vmatpush.msrb.mxu1 %v1179_v35  ;;  %697 = vmatpush.msrb.mxu0 %v1191_v37  ;;  %v906_v35 = vld [vmem:[%s2023_s0 + $0x220] sm:$0xff]  ;;  %v909_v37 = vld [vmem:[%s2023_s0 + $0x238] sm:$0xff] }
  0x92   :  { %585 = vmatmul.f32.vlgmr.msra.gmra.mxu2 %v896_v8  ;;  %811 = vmatpush.msrb.mxu3 %v1198_v38 }
  0x93   :  { %509 = vmatmul.f32.vlgmr.msra.gmra.mxu0 %v894_v9  ;;  %774 = vmatpush.msrb.mxu2 %v1210_v40  ;;  %v921_v9 = vld [vmem:[%s2023_s0 + $0x298] sm:$0xff] }
  0x94   :  { %623 = vmatmul.f32.vlgmr.msra.gmra.mxu3 %v897_v10  ;;  %735 = vmatpush.msrb.mxu1 %v1203_v39  ;;  %v907_v39 = vld [vmem:[%s2023_s0 + $0x228] sm:$0xff] }
  0x95   :  { %698 = vmatpush.msrb.mxu0 %v1215_v41  ;;  %812 = vmatpush.msrb.mxu3 %v1222_v42 }
  0x96   :  { %547 = vmatmul.f32.vlgmr.msra.gmra.mxu1 %v895_v11  ;;  %775 = vmatpush.msrb.mxu2 %v1234_v44  ;;  %v912_v44 = vld [vmem:[%s2023_s0 + $0x250] sm:$0xff]  ;;  %v919_v11 = vld [vmem:[%s2023_s0 + $0x288] sm:$0xff] }
  0x97   :  { %736 = vmatpush.msrb.mxu1 %v1227_v43  ;;  %699 = vmatpush.msrb.mxu0 %v1239_v45 }
  0x98   :  { %813 = vmatpush.msrb.mxu3 %v2066_v14  ;;  %776 = vmatpush.msrb.mxu2 %v2067_v15 }
  0x99   :  { %737 = vmatpush.msrb.mxu1 %v2068_v17  ;;  %700 = vmatpush.msrb.mxu0 %v2069_v18 }
  0x9a   :  { %588 = vmatmul.f32.gmra.mxu2 %v900_v12  ;;  %814 = vmatpush.msrb.mxu3 %v1270_v50  ;;  %v913_v50 = vld [vmem:[%s2023_s0 + $0x258] sm:$0xff] }
  0x9b   :  { %512 = vmatmul.f32.gmra.mxu0 %v898_v13  ;;  %738 = vmatpush.msrb.mxu1 %v2063_v48 }
  0x9c   :  { %626 = vmatmul.f32.gmra.mxu3 %v901_v16  ;;  %777 = vmatpush.msrb.mxu2 %v2062_v53  ;;  %v914_v53 = vld [vmem:[%s2023_s0 + $0x260] sm:$0xff]  ;;  %v924_v16 = vld [vmem:[%s2023_s0 + $0x2b0] sm:$0xff] }
  0x9d   :  { %701 = vmatpush.msrb.mxu0 %v2064_v46  ;;  %815 = vmatpush.msrb.mxu3 %v1294_v54 }
  0x9e   :  { %550 = vmatmul.f32.gmra.mxu1 %v899_v19  ;;  %778 = vmatpush.msrb.mxu2 %v2065_v47  ;;  %v910_v47 = vld [vmem:[%s2023_s0 + $0x240] sm:$0xff] }
  0x9f   :  { %739 = vmatpush.msrb.mxu1 %v2058_v62  ;;  %702 = vmatpush.msrb.mxu0 %v2059_v52  ;;  %v911_v52 = vld [vmem:[%s2023_s0 + $0x248] sm:$0xff]  ;;  %v922_v19 = vld [vmem:[%s2023_s0 + $0x2a0] sm:$0xff] }
  0xa0   :  { %v127_v22 = vpop.f32.mrf.mxu0  ;;  %816 = vmatpush.msrb.mxu3 %v2060_v51  ;;  %779 = vmatpush.msrb.mxu2 %v2061_v56 }
  0xa1   :  { %v128_v24 = vadd.f32 %v1731_v20, %v127_v22  ;;  %740 = vmatpush.msrb.mxu1 %v1323_v59  ;;  %703 = vmatpush.msrb.mxu0 %v1335_v61  ;;  %v916_v61 = vld [vmem:[%s2023_s0 + $0x270] sm:$0xff]  ;;  %v925_v22 = vld [vmem:[%s2023_s0 + $0x2b8] sm:$0xff] }
  0xa2   :  { %591 = vmatmul.f32.gmra.mxu2 %v904_v21  ;;  %817 = vmatpush.msrb.mxu3 %v1345_v63 }
  0xa3   :  { %v165_v26 = vpop.f32.mrf.mxu1  ;;  %515 = vmatmul.f32.gmra.mxu0 %v902_v23  ;;  %741 = vmatpush.msrb.mxu1 %v1361_v58 }
  0xa4   :  { %v166_v28 = vadd.f32 %v165_v26, %v128_v24  ;;  %629 = vmatmul.f32.gmra.mxu3 %v905_v25  ;;  %v923_v24 = vld [vmem:[%s2023_s0 + $0x2a8] sm:$0xff] }
  0xa5   :  { %v203_v29 = vpop.f32.mrf.mxu2 }
  0xa6   :  { %v204_v30 = vadd.f32 %v203_v29, %v166_v28  ;;  %553 = vmatmul.f32.gmra.mxu1 %v903_v27  ;;  %v928_v29 = vld [vmem:[%s2023_s0 + $0x2d0] sm:$0xff] }
  0xa7   :  { %v241_v31 = vpop.f32.mrf.mxu3 }
  0xa8   :  { %v1760_v33 = vadd.f32 %v241_v31, %v204_v30  ;;  %v130_v34 = vpop.f32.mrf.mxu0 }
  0xa9   :  { %v131_v36 = vadd.f32 %v1731_v20, %v130_v34 }
  0xaa   :  { %594 = vmatmul.f32.gmra.mxu2 %v908_v32  ;;  %v926_v32 = vld [vmem:[%s2023_s0 + $0x2c0] sm:$0xff] }
  0xab   :  { %v168_v38 = vpop.f32.mrf.mxu1  ;;  %518 = vmatmul.f32.gmra.mxu0 %v906_v35  ;;  %v929_v35 = vld [vmem:[%s2023_s0 + $0x2d8] sm:$0xff] }
  0xac   :  { %v169_v40 = vadd.f32 %v168_v38, %v131_v36  ;;  %632 = vmatmul.f32.gmra.mxu3 %v909_v37  ;;  %v927_v37 = vld [vmem:[%s2023_s0 + $0x2c8] sm:$0xff] }
  0xad   :  { %v206_v41 = vpop.f32.mrf.mxu2 }
  0xae   :  { %v207_v42 = vadd.f32 %v206_v41, %v169_v40  ;;  %556 = vmatmul.f32.gmra.mxu1 %v907_v39 }
  0xaf   :  { %v244_v43 = vpop.f32.mrf.mxu3 }
  0xb0   :  { %v1775_v45 = vadd.f32 %v244_v43, %v207_v42  ;;  %v133_v46 = vpop.f32.mrf.mxu0  ;;  %v932_v42 = vld [vmem:[%s2023_s0 + $0x2f0] sm:$0xff] }
  0xb1   :  { %v134_v48 = vadd.f32 %v1731_v20, %v133_v46  ;;  %v930_v46 = vld [vmem:[%s2023_s0 + $0x2e0] sm:$0xff] }
  0xb2   :  { %597 = vmatmul.f32.gmra.mxu2 %v912_v44 }
  0xb3   :  { %v171_v51 = vpop.f32.mrf.mxu1  ;;  %521 = vmatmul.f32.gmra.mxu0 %v910_v47 }
  0xb4   :  { %v172_v54 = vadd.f32 %v171_v51, %v134_v48  ;;  %635 = vmatmul.f32.gmra.mxu3 %v913_v50  ;;  %v933_v48 = vld [vmem:[%s2023_s0 + $0x2f8] sm:$0xff]  ;;  %v931_v51 = vld [vmem:[%s2023_s0 + $0x2e8] sm:$0xff] }
  0xb5   :  { %v209_v56 = vpop.f32.mrf.mxu2 }
  0xb6   :  { %v210_v58 = vadd.f32 %v209_v56, %v172_v54  ;;  %559 = vmatmul.f32.gmra.mxu1 %v911_v52 }
  0xb7   :  { %v247_v59 = vpop.f32.mrf.mxu3 }
  0xb8   :  { %v1790_v63 = vadd.f32 %v247_v59, %v210_v58  ;;  %v136_v62 = vpop.f32.mrf.mxu0  ;;  %v936_v59 = vld [vmem:[%s2023_s0 + $0x310] sm:$0xff] }
  0xb9   :  { %v137_v55 = vadd.f32 %v1731_v20, %v136_v62 }
  0xba   :  { %600 = vmatmul.f32.gmra.mxu2 %v916_v61 }
  0xbb   :  { %v174_v49 = vpop.f32.mrf.mxu1  ;;  %524 = vmatmul.f32.gmra.mxu0 %v914_v53  ;;  %v934_v53 = vld [vmem:[%s2023_s0 + $0x300] sm:$0xff] }
  0xbc   :  { %v175_v0 = vadd.f32 %v174_v49, %v137_v55  ;;  %638 = vmatmul.f32.gmra.mxu3 %v917_v57  ;;  %v937_v57 = vld [vmem:[%s2023_s0 + $0x318] sm:$0xff]  ;;  %v262_v49 = vmax.f32 %v1760_v33, 0.0  ;;  %v940_v33 = vld [vmem:[%s2023_s0 + $0x330] sm:$0xff] }
  0xbd   :  { %v212_v1 = vpop.f32.mrf.mxu2 }
  0xbe   :  { %v213_v2 = vadd.f32 %v212_v1, %v175_v0  ;;  %562 = vmatmul.f32.gmra.mxu1 %v915_v60  ;;  %v935_v1 = vld [vmem:[%s2023_s0 + $0x308] sm:$0xff] }
  0xbf   :  { %v250_v3 = vpop.f32.mrf.mxu3 }
  0xc0   :  { %v1805_v5 = vadd.f32 %v250_v3, %v213_v2  ;;  %v139_v6 = vpop.f32.mrf.mxu0 }
  0xc1   :  { %v140_v8 = vadd.f32 %v1731_v20, %v139_v6 }
  0xc2   :  { %603 = vmatmul.f32.gmra.mxu2 %v920_v4 }
  0xc3   :  { %v177_v10 = vpop.f32.mrf.mxu1  ;;  %527 = vmatmul.f32.gmra.mxu0 %v918_v7 }
  0xc4   :  { %v178_v12 = vadd.f32 %v177_v10, %v140_v8  ;;  %641 = vmatmul.f32.gmra.mxu3 %v921_v9  ;;  %v938_v10 = vld [vmem:[%s2023_s0 + $0x320] sm:$0xff] }
  0xc5   :  { %v215_v13 = vpop.f32.mrf.mxu2 }
  0xc6   :  { %v216_v14 = vadd.f32 %v215_v13, %v178_v12  ;;  %565 = vmatmul.f32.gmra.mxu1 %v919_v11  ;;  %v941_v12 = vld [vmem:[%s2023_s0 + $0x338] sm:$0xff]  ;;  %v263_v13 = vmax.f32 %v1775_v45, 0.0  ;;  %v944_v45 = vld [vmem:[%s2023_s0 + $0x350] sm:$0xff] }
  0xc7   :  { %v253_v15 = vpop.f32.mrf.mxu3 }
  0xc8   :  { %v1820_v17 = vadd.f32 %v253_v15, %v216_v14  ;;  %v142_v18 = vpop.f32.mrf.mxu0 }
  0xc9   :  { %v143_v21 = vadd.f32 %v1731_v20, %v142_v18 }
  0xca   :  { %780 = vmatmul.f32.vlgmr.msrb.gmra.mxu2 %v924_v16  ;;  %v939_v16 = vld [vmem:[%s2023_s0 + $0x328] sm:$0xff] }
  0xcb   :  { %v180_v23 = vpop.f32.mrf.mxu1  ;;  %704 = vmatmul.f32.vlgmr.msrb.gmra.mxu0 %v922_v19 }
  0xcc   :  { %v181_v25 = vadd.f32 %v180_v23, %v143_v21  ;;  %818 = vmatmul.f32.vlgmr.msrb.gmra.mxu3 %v925_v22 }
  0xcd   :  { %v218_v26 = vpop.f32.mrf.mxu2 }
  0xce   :  { %v219_v27 = vadd.f32 %v218_v26, %v181_v25  ;;  %742 = vmatmul.f32.vlgmr.msrb.gmra.mxu1 %v923_v24  ;;  %v942_v26 = vld [vmem:[%s2023_s0 + $0x340] sm:$0xff] }
  0xcf   :  { %v256_v28 = vpop.f32.mrf.mxu3 }
  0xd0   :  { %v1835_v30 = vadd.f32 %v256_v28, %v219_v27  ;;  %v145_v31 = vpop.f32.mrf.mxu0  ;;  %v945_v28 = vld [vmem:[%s2023_s0 + $0x358] sm:$0xff] }
  0xd1   :  { %v146_v34 = vadd.f32 %v1731_v20, %v145_v31 }
  0xd2   :  { %783 = vmatmul.f32.gmra.mxu2 %v928_v29  ;;  %v264_v29 = vmax.f32 %v1790_v63, 0.0  ;;  %v948_v63 = vld [vmem:[%s2023_s0 + $0x370] sm:$0xff] }
  0xd3   :  { %v183_v36 = vpop.f32.mrf.mxu1  ;;  %707 = vmatmul.f32.gmra.mxu0 %v926_v32 }
  0xd4   :  { %v184_v38 = vadd.f32 %v183_v36, %v146_v34  ;;  %821 = vmatmul.f32.gmra.mxu3 %v929_v35  ;;  %v943_v34 = vld [vmem:[%s2023_s0 + $0x348] sm:$0xff] }
  0xd5   :  { %v221_v39 = vpop.f32.mrf.mxu2 }
  0xd6   :  { %v222_v40 = vadd.f32 %v221_v39, %v184_v38  ;;  %745 = vmatmul.f32.gmra.mxu1 %v927_v37 }
  0xd7   :  { %v259_v41 = vpop.f32.mrf.mxu3 }
  0xd8   :  { %v1850_v43 = vadd.f32 %v259_v41, %v222_v40  ;;  %v315_v44 = vpop.f32.mrf.mxu0 }
  0xd9   :  { %v316_v47 = vadd.f32 %v1731_v20, %v315_v44 }
  0xda   :  { %786 = vmatmul.f32.gmra.mxu2 %v932_v42  ;;  %v946_v42 = vld [vmem:[%s2023_s0 + $0x360] sm:$0xff] }
  0xdb   :  { %v353_v50 = vpop.f32.mrf.mxu1  ;;  %710 = vmatmul.f32.gmra.mxu0 %v930_v46  ;;  %v949_v46 = vld [vmem:[%s2023_s0 + $0x378] sm:$0xff] }
  0xdc   :  { %v354_v52 = vadd.f32 %v353_v50, %v316_v47  ;;  %824 = vmatmul.f32.gmra.mxu3 %v933_v48  ;;  %v265_v47 = vmax.f32 %v1805_v5, 0.0 }
  0xdd   :  { %v391_v54 = vpop.f32.mrf.mxu2 }
  0xde   :  { %v392_v56 = vadd.f32 %v391_v54, %v354_v52  ;;  %748 = vmatmul.f32.gmra.mxu1 %v931_v51  ;;  %v947_v51 = vld [vmem:[%s2023_s0 + $0x368] sm:$0xff] }
  0xdf   :  { %v429_v58 = vpop.f32.mrf.mxu3 }
  0xe0   :  { %v430_v61 = vadd.f32 %v429_v58, %v392_v56  ;;  %v318_v62 = vpop.f32.mrf.mxu0 }
  0xe1   :  { %v319_v55 = vadd.f32 %v1731_v20, %v318_v62 }
  0xe2   :  { %v450_v60 = vmax.f32 %v430_v61, 0.0  ;;  %789 = vmatmul.f32.gmra.mxu2 %v936_v59 }
  0xe3   :  { %v356_v0 = vpop.f32.mrf.mxu1  ;;  %713 = vmatmul.f32.gmra.mxu0 %v934_v53  ;;  %v266_v53 = vmax.f32 %v1820_v17, 0.0 }
  0xe4   :  { %v1876_v2 = vmax.f32 %v262_v49, %v450_v60  ;;  %v357_v3 = vadd.f32 %v356_v0, %v319_v55  ;;  %827 = vmatmul.f32.gmra.mxu3 %v937_v57 }
  0xe5   :  { %v394_v4 = vpop.f32.mrf.mxu2 }
  0xe6   :  { %v395_v6 = vadd.f32 %v394_v4, %v357_v3  ;;  %751 = vmatmul.f32.gmra.mxu1 %v935_v1 }
  0xe7   :  { %v432_v7 = vpop.f32.mrf.mxu3 }
  0xe8   :  { %v433_v8 = vadd.f32 %v432_v7, %v395_v6  ;;  %v321_v9 = vpop.f32.mrf.mxu0 }
  0xe9   :  { %v322_v11 = vadd.f32 %v1731_v20, %v321_v9 }
  0xea   :  { %v451_v14 = vmax.f32 %v433_v8, 0.0  ;;  %792 = vmatmul.f32.gmra.mxu2 %v940_v33  ;;  %v267_v33 = vmax.f32 %v1835_v30, 0.0 }
  0xeb   :  { %v359_v15 = vpop.f32.mrf.mxu1  ;;  %716 = vmatmul.f32.gmra.mxu0 %v938_v10 }
  0xec   :  { %v1892_v18 = vmax.f32 %v263_v13, %v451_v14  ;;  %v360_v19 = vadd.f32 %v359_v15, %v322_v11  ;;  %830 = vmatmul.f32.gmra.mxu3 %v941_v12 }
  0xed   :  { %v397_v21 = vpop.f32.mrf.mxu2 }
  0xee   :  { %v398_v22 = vadd.f32 %v397_v21, %v360_v19  ;;  %754 = vmatmul.f32.gmra.mxu1 %v939_v16  ;;  %v268_v16 = vmax.f32 %v1850_v43, 0.0 }
  0xef   :  { %v435_v23 = vpop.f32.mrf.mxu3 }
  0xf0   :  { %v436_v24 = vadd.f32 %v435_v23, %v398_v22  ;;  %v324_v25 = vpop.f32.mrf.mxu0 }
  0xf1   :  { %v325_v27 = vadd.f32 %v1731_v20, %v324_v25 }
  0xf2   :  { %v452_v31 = vmax.f32 %v436_v24, 0.0  ;;  %795 = vmatmul.f32.gmra.mxu2 %v944_v45 }
  0xf3   :  { %v362_v32 = vpop.f32.mrf.mxu1  ;;  %719 = vmatmul.f32.gmra.mxu0 %v942_v26 }
  0xf4   :  { %v1908_v35 = vmax.f32 %v264_v29, %v452_v31  ;;  %v363_v36 = vadd.f32 %v362_v32, %v325_v27  ;;  %833 = vmatmul.f32.gmra.mxu3 %v945_v28 }
  0xf5   :  { %v400_v37 = vpop.f32.mrf.mxu2 }
  0xf6   :  { %v401_v38 = vadd.f32 %v400_v37, %v363_v36  ;;  %757 = vmatmul.f32.gmra.mxu1 %v943_v34 }
  0xf7   :  { %v438_v39 = vpop.f32.mrf.mxu3 }
  0xf8   :  { %v439_v40 = vadd.f32 %v438_v39, %v401_v38  ;;  %v327_v41 = vpop.f32.mrf.mxu0 }
  0xf9   :  { %v328_v44 = vadd.f32 %v1731_v20, %v327_v41 }
  0xfa   :  { %v453_v48 = vmax.f32 %v439_v40, 0.0  ;;  %798 = vmatmul.f32.gmra.mxu2 %v948_v63 }
  0xfb   :  { %v365_v50 = vpop.f32.mrf.mxu1  ;;  %722 = vmatmul.f32.gmra.mxu0 %v946_v42 }
  0xfc   :  { %v1924_v52 = vmax.f32 %v265_v47, %v453_v48  ;;  %v366_v54 = vadd.f32 %v365_v50, %v328_v44  ;;  %836 = vmatmul.f32.gmra.mxu3 %v949_v46 }
  0xfd   :  { %v403_v56 = vpop.f32.mrf.mxu2 }
  0xfe   :  { %v404_v58 = vadd.f32 %v403_v56, %v366_v54  ;;  %760 = vmatmul.f32.gmra.mxu1 %v947_v51 }
  0xff   :  { %v441_v59 = vpop.f32.mrf.mxu3 }
 0x100   :  { %v442_v61 = vadd.f32 %v441_v59, %v404_v58  ;;  %v330_v62 = vpop.f32.mrf.mxu0 }
 0x101   :  { %v331_v5 = vadd.f32 %v1731_v20, %v330_v62 }
 0x102   :  { %v454_v55 = vmax.f32 %v442_v61, 0.0 }
 0x103   :  { %v368_v57 = vpop.f32.mrf.mxu1 }
 0x104   :  { %v1928_v49 = vmax.f32 %v266_v53, %v454_v55  ;;  %v369_v60 = vadd.f32 %v368_v57, %v331_v5 }
 0x105   :  { %v406_v0 = vpop.f32.mrf.mxu2 }
 0x106   :  { %v407_v1 = vadd.f32 %v406_v0, %v369_v60 }
 0x107   :  { %v444_v3 = vpop.f32.mrf.mxu3 }
 0x108   :  { %v445_v4 = vadd.f32 %v444_v3, %v407_v1  ;;  %v333_v6 = vpop.f32.mrf.mxu0 }
 0x109   :  { %v334_v7 = vadd.f32 %v1731_v20, %v333_v6 }
 0x10a   :  { %v455_v8 = vmax.f32 %v445_v4, 0.0 }
 0x10b   :  { %v371_v9 = vpop.f32.mrf.mxu1 }
 0x10c   :  { %v1932_v10 = vmax.f32 %v267_v33, %v455_v8  ;;  %v372_v11 = vadd.f32 %v371_v9, %v334_v7 }
 0x10d   :  { %v409_v17 = vpop.f32.mrf.mxu2 }
 0x10e   :  { %v410_v12 = vadd.f32 %v409_v17, %v372_v11 }
 0x10f   :  { %v447_v13 = vpop.f32.mrf.mxu3 }
 0x110   :  { %v448_v14 = vadd.f32 %v447_v13, %v410_v12  ;;  %v510_v15 = vpop.f32.mrf.mxu0 }
 0x111   :  { %v511_v44 = vadd.f32 %v1731_v20, %v510_v15 }
 0x112   :  { %v456_v19 = vmax.f32 %v448_v14, 0.0 }
 0x113   :  { %v548_v21 = vpop.f32.mrf.mxu1 }
 0x114   :  { %v1935_v22 = vmax.f32 %v268_v16, %v456_v19  ;;  %v549_v48 = vadd.f32 %v548_v21, %v511_v44 }
 0x115   :  { %v586_v23 = vpop.f32.mrf.mxu2 }
 0x116   :  { %v587_v54 = vadd.f32 %v586_v23, %v549_v48 }
 0x117   :  { %v624_v45 = vpop.f32.mrf.mxu3 }
 0x118   :  { %v513_v24 = vpop.f32.mrf.mxu0  ;;  %v625_v62 = vadd.f32 %v624_v45, %v587_v54 }
 0x119   :  { %v514_v56 = vadd.f32 %v1731_v20, %v513_v24 }
 0x11a   :  { %v645_v60 = vmax.f32 %v625_v62, 0.0 }
 0x11b   :  { %v551_v30 = vpop.f32.mrf.mxu1 }
 0x11c   :  { %v552_v5 = vadd.f32 %v551_v30, %v514_v56  ;;  %v652_v8 = vmax.f32 %v1876_v2, %v645_v60 }
 0x11d   :  { %v589_v25 = vpop.f32.mrf.mxu2 }
 0x11e   :  { %v590_v0 = vadd.f32 %v589_v25, %v552_v5 }
 0x11f   :  { %v627_v26 = vpop.f32.mrf.mxu3 }
 0x120   :  { %v516_v27 = vpop.f32.mrf.mxu0  ;;  %v628_v9 = vadd.f32 %v627_v26, %v590_v0 }
 0x121   :  { %v517_v1 = vadd.f32 %v1731_v20, %v516_v27 }
 0x122   :  { %v646_v16 = vmax.f32 %v628_v9, 0.0 }
 0x123   :  { %v554_v28 = vpop.f32.mrf.mxu1 }
 0x124   :  { %v555_v11 = vadd.f32 %v554_v28, %v517_v1  ;;  %v653_v25 = vmax.f32 %v1892_v18, %v646_v16 }
 0x125   :  { %v592_v29 = vpop.f32.mrf.mxu2 }
 0x126   :  { %v593_v19 = vadd.f32 %v592_v29, %v555_v11 }
 0x127   :  { %v630_v31 = vpop.f32.mrf.mxu3 }
 0x128   :  { %v519_v32 = vpop.f32.mrf.mxu0  ;;  %v631_v26 = vadd.f32 %v630_v31, %v593_v19 }
 0x129   :  { %v520_v21 = vadd.f32 %v1731_v20, %v519_v32 }
 0x12a   :  { %v647_v54 = vmax.f32 %v631_v26, 0.0 }
 0x12b   :  { %v557_v34 = vpop.f32.mrf.mxu1 }
 0x12c   :  { %v558_v27 = vadd.f32 %v557_v34, %v520_v21  ;;  %v654_v34 = vmax.f32 %v1908_v35, %v647_v54 }
 0x12d   :  { %v595_v36 = vpop.f32.mrf.mxu2 }
 0x12e   :  { %v596_v56 = vadd.f32 %v595_v36, %v558_v27 }
 0x12f   :  { %v1937_v37 = vpop.f32.mrf.mxu3 }
 0x130   :  { %v522_v43 = vpop.f32.mrf.mxu0 }
 0x133   :  { %v1939_v38 = vpop.f32.mrf.mxu1 }
 0x135   :  { %v1941_v39 = vpop.f32.mrf.mxu2 }
 0x137   :  { %v1943_v63 = vpop.f32.mrf.mxu3 }
 0x138   :  { %v1945_v40 = vpop.f32.mrf.mxu0 }
 0x13b   :  { %v1947_v41 = vpop.f32.mrf.mxu1 }
 0x13d   :  { %v1949_v42 = vpop.f32.mrf.mxu2 }
 0x13f   :  { %v1952_v46 = vpop.f32.mrf.mxu3 }
 0x140   :  { %v1954_v47 = vpop.f32.mrf.mxu0 }
 0x143   :  { %v1956_v50 = vpop.f32.mrf.mxu1 }
 0x145   :  { %v1958_v51 = vpop.f32.mrf.mxu2 }
 0x147   :  { %v1961_v58 = vpop.f32.mrf.mxu3 }
 0x148   :  { %v705_v59 = vpop.f32.mrf.mxu0 }
 0x149   :  { %v706_v61 = vadd.f32 %v1731_v20, %v705_v59  ;;  %v523_v59 = vadd.f32 %v1731_v20, %v522_v43 }
 0x14b   :  { %v743_v53 = vpop.f32.mrf.mxu1 }
 0x14c   :  { %v744_v55 = vadd.f32 %v743_v53, %v706_v61  ;;  %v634_v53 = vadd.f32 %v1937_v37, %v596_v56 }
 0x14d   :  { %v781_v57 = vpop.f32.mrf.mxu2 }
 0x14e   :  { %v782_v3 = vadd.f32 %v781_v57, %v744_v55  ;;  %v561_v55 = vadd.f32 %v1939_v38, %v523_v59  ;;  %v648_v1 = vmax.f32 %v634_v53, 0.0 }
 0x14f   :  { %v819_v4 = vpop.f32.mrf.mxu3 }
 0x150   :  { %v820_v6 = vadd.f32 %v819_v4, %v782_v3  ;;  %v708_v7 = vpop.f32.mrf.mxu0  ;;  %v599_v3 = vadd.f32 %v1941_v39, %v561_v55  ;;  %v526_v4 = vadd.f32 %v1731_v20, %v1945_v40 }
 0x151   :  { %v709_v33 = vadd.f32 %v1731_v20, %v708_v7 }
 0x152   :  { %v840_v17 = vmax.f32 %v820_v6, 0.0  ;;  %v564_v39 = vadd.f32 %v1947_v41, %v526_v4 }
 0x153   :  { %v746_v12 = vpop.f32.mrf.mxu1 }
 0x154   :  { %v847_v13 = vmax.f32 %v652_v8, %v840_v17  ;;  %v747_v14 = vadd.f32 %v746_v12, %v709_v33  ;;  %v655_v33 = vmax.f32 %v1924_v52, %v648_v1  ;;  %v637_v8 = vadd.f32 %v1943_v63, %v599_v3 }
 0x155   :  { %v784_v15 = vpop.f32.mrf.mxu2 }
 0x156   :  { %855 = vst.msk [vmem:[%s2025_s3] sm:$0xff] %vm854_vm0, %v847_v13  ;;  %v785_v23 = vadd.f32 %v784_v15, %v747_v14  ;;  %v649_v13 = vmax.f32 %v637_v8, 0.0  ;;  %v602_v14 = vadd.f32 %v1949_v42, %v564_v39  ;;  %v529_v15 = vadd.f32 %v1731_v20, %v1954_v47 }
 0x157   :  { %v822_v45 = vpop.f32.mrf.mxu3 }
 0x158   :  { %v823_v2 = vadd.f32 %v822_v45, %v785_v23  ;;  %v711_v24 = vpop.f32.mrf.mxu0  ;;  %v656_v21 = vmax.f32 %v1928_v49, %v649_v13  ;;  %v640_v23 = vadd.f32 %v1952_v46, %v602_v14  ;;  %v567_v42 = vadd.f32 %v1956_v50, %v529_v15 }
 0x159   :  { %v712_v30 = vadd.f32 %v1731_v20, %v711_v24 }
 0x15a   :  { %v841_v28 = vmax.f32 %v823_v2, 0.0  ;;  %v605_v26 = vadd.f32 %v1958_v51, %v567_v42 }
 0x15b   :  { %v749_v44 = vpop.f32.mrf.mxu1 }
 0x15c   :  { %v848_v29 = vmax.f32 %v653_v25, %v841_v28  ;;  %v750_v48 = vadd.f32 %v749_v44, %v712_v30  ;;  %v650_v25 = vmax.f32 %v640_v23, 0.0 }
 0x15d   :  { %v787_v32 = vpop.f32.mrf.mxu2 }
 0x15e   :  { %856 = vst.msk [vmem:[%s2025_s3 + $0x8] sm:$0xff] %vm854_vm0, %v848_v29  ;;  %v788_v61 = vadd.f32 %v787_v32, %v750_v48  ;;  %v657_v50 = vmax.f32 %v1932_v10, %v650_v25  ;;  %v643_v29 = vadd.f32 %v1961_v58, %v605_v26 }
 0x15f   :  { %v825_v62 = vpop.f32.mrf.mxu3 }
 0x160   :  { %v826_v5 = vadd.f32 %v825_v62, %v788_v61  ;;  %v714_v18 = vpop.f32.mrf.mxu0  ;;  %v651_v59 = vmax.f32 %v643_v29, 0.0 }
 0x161   :  { %v715_v31 = vadd.f32 %v1731_v20, %v714_v18 }
 0x162   :  { %v842_v36 = vmax.f32 %v826_v5, 0.0 }
 0x163   :  { %v752_v57 = vpop.f32.mrf.mxu1 }
 0x164   :  { %v849_v43 = vmax.f32 %v654_v34, %v842_v36  ;;  %v753_v60 = vadd.f32 %v752_v57, %v715_v31 }
 0x165   :  { %v790_v0 = vpop.f32.mrf.mxu2 }
 0x166   :  { %857 = vst.msk [vmem:[%s2025_s3 + $0x10] sm:$0xff] %vm854_vm0, %v849_v43  ;;  %v791_v35 = vadd.f32 %v790_v0, %v753_v60 }
 0x167   :  { %v828_v37 = vpop.f32.mrf.mxu3 }
 0x168   :  { %v829_v6 = vadd.f32 %v828_v37, %v791_v35  ;;  %v717_v38 = vpop.f32.mrf.mxu0 }
 0x169   :  { %v718_v7 = vadd.f32 %v1731_v20, %v717_v38 }
 0x16a   :  { %v843_v9 = vmax.f32 %v829_v6, 0.0 }
 0x16b   :  { %v755_v11 = vpop.f32.mrf.mxu1 }
 0x16c   :  { %v850_v40 = vmax.f32 %v655_v33, %v843_v9  ;;  %v756_v17 = vadd.f32 %v755_v11, %v718_v7 }
 0x16d   :  { %v793_v12 = vpop.f32.mrf.mxu2 }
 0x16e   :  { %858 = vst.msk [vmem:[%s2025_s3 + $0x18] sm:$0xff] %vm854_vm0, %v850_v40  ;;  %v794_v52 = vadd.f32 %v793_v12, %v756_v17 }
 0x16f   :  { %v831_v63 = vpop.f32.mrf.mxu3 }
 0x170   :  { %v832_v16 = vadd.f32 %v831_v63, %v794_v52  ;;  %v720_v41 = vpop.f32.mrf.mxu0 }
 0x171   :  { %v721_v19 = vadd.f32 %v1731_v20, %v720_v41 }
 0x172   :  { %v844_v45 = vmax.f32 %v832_v16, 0.0 }
 0x173   :  { %v758_v2 = vpop.f32.mrf.mxu1 }
 0x174   :  { %v851_v47 = vmax.f32 %v656_v21, %v844_v45  ;;  %v759_v24 = vadd.f32 %v758_v2, %v721_v19 }
 0x175   :  { %v796_v30 = vpop.f32.mrf.mxu2 }
 0x176   :  { %859 = vst.msk [vmem:[%s2025_s3 + $0x20] sm:$0xff] %vm854_vm0, %v851_v47  ;;  %v797_v27 = vadd.f32 %v796_v30, %v759_v24 }
 0x177   :  { %v834_v28 = vpop.f32.mrf.mxu3 }
 0x178   :  { %v835_v49 = vadd.f32 %v834_v28, %v797_v27  ;;  %v723_v44 = vpop.f32.mrf.mxu0 }
 0x179   :  { %v724_v46 = vadd.f32 %v1731_v20, %v723_v44  ;;  %v658_v20 = vmax.f32 %v1935_v22, %v651_v59 }
 0x17a   :  { %v845_v48 = vmax.f32 %v835_v49, 0.0 }
 0x17b   :  { %v761_v32 = vpop.f32.mrf.mxu1 }
 0x17c   :  { %v852_v54 = vmax.f32 %v657_v50, %v845_v48  ;;  %v762_v56 = vadd.f32 %v761_v32, %v724_v46 }
 0x17d   :  { %v799_v51 = vpop.f32.mrf.mxu2 }
 0x17e   :  { %860 = vst.msk [vmem:[%s2025_s3 + $0x28] sm:$0xff] %vm854_vm0, %v852_v54  ;;  %v800_v61 = vadd.f32 %v799_v51, %v762_v56 }
 0x17f   :  { %v837_v62 = vpop.f32.mrf.mxu3 }
 0x180   :  { %v838_v5 = vadd.f32 %v837_v62, %v800_v61 }
 0x182   :  { %v846_v18 = vmax.f32 %v838_v5, 0.0 }
 0x184   :  { %v853_v10 = vmax.f32 %v658_v20, %v846_v18 }
 0x186   :  { %861 = vst.msk [vmem:[%s2025_s3 + $0x30] sm:$0xff] %vm854_vm0, %v853_v10 }

// kernel: dueling_cnn_forward.5
= control target key start
LH: loop header
LB: loop body
LE: loop exit
PB: predicated region body
PF: predicated region fallthrough
CT: control target
= control target key end

     0   :  { %s4399_s0 = inlined_call_operand.vmem [shape: f32[16,2,256], index: 0, kind: input, shape index: {}]   ;;  %s4400_s1 = inlined_call_operand.vmem [shape: f32[256,128], index: 1, kind: input, shape index: {}]   ;;  %s4401_s2 = inlined_call_operand.vmem [shape: f32[1,128], index: 2, kind: input, shape index: {}]   ;;  %s4402_s3 = inlined_call_operand.vmem [shape: f32[4,128,512], index: 3, kind: input, shape index: {}]   ;;  %s4403_s4 = inlined_call_operand.vmem [shape: f32[1,512], index: 4, kind: input, shape index: {}]   ;;  %s4404_s5 = inlined_call_operand.vmem [shape: f32[512,6], index: 5, kind: input, shape index: {}]   ;;  %s4405_s6 = inlined_call_operand.vmem [shape: f32[1,6], index: 6, kind: input, shape index: {}]   ;;  %s4406_s7 = inlined_call_operand.vmem [shape: f32[4,128,128], index: 7, kind: input, shape index: {}]   ;;  %s4407_s8 = inlined_call_operand.vmem [shape: f32[1,128], index: 8, kind: input, shape index: {}]   ;;  %s4408_s9 = inlined_call_operand.vmem [shape: f32[1,128], index: 9, kind: input, shape index: {}]   ;;  %s4409_s10 = inlined_call_operand.<no memory space> [shape: f32[1,1], index: 10, kind: input, shape index: {}]   ;;  %s4410_s11 = inlined_call_operand.hbm [shape: f32[2,6], index: 11, kind: output, shape index: {}]  }
   0x1   :  { %v16_v0 = vstv %s4409_s10 }
   0x2   :  { %17 = vst [vmem:[#allocation2] sm:$0x1] %v16_v0 }
   0x3   :  { %v2236_v1 = vld [vmem:[%s4400_s1 + $0x78] sm:$0xff]  ;;  %v2241_v2 = vld [vmem:[%s4400_s1 + $0x70] sm:$0xff]  ;;  %v2260_v5 = vld [vmem:[%s4400_s1 + $0x68] sm:$0xff] }
   0x4   :  { %v2246_v3 = vld [vmem:[%s4400_s1 + $0xf8] sm:$0xff]  ;;  %86 = vmatpush.msra.mxu0 %v2236_v1  ;;  %135 = vmatpush.msra.mxu2 %v2236_v1  ;;  %v2253_v4 = vld [vmem:[%s4400_s1 + $0xf0] sm:$0xff]  ;;  %v2267_v6 = vld [vmem:[%s4400_s1 + $0xe8] sm:$0xff] }
   0x5   :  { %106 = vmatpush.msra.mxu1 %v2246_v3  ;;  %155 = vmatpush.msra.mxu3 %v2246_v3  ;;  %v2274_v7 = vld [vmem:[%s4400_s1 + $0x60] sm:$0xff]  ;;  %v2288_v9 = vld [vmem:[%s4400_s1 + $0x58] sm:$0xff]  ;;  %v2302_v11 = vld [vmem:[%s4400_s1 + $0x50] sm:$0xff] }
   0x6   :  { %87 = vmatpush.msra.mxu0 %v2241_v2  ;;  %136 = vmatpush.msra.mxu2 %v2241_v2  ;;  %v2281_v8 = vld [vmem:[%s4400_s1 + $0xe0] sm:$0xff]  ;;  %v2295_v10 = vld [vmem:[%s4400_s1 + $0xd8] sm:$0xff]  ;;  %v2309_v12 = vld [vmem:[%s4400_s1 + $0xd0] sm:$0xff] }
   0x7   :  { %107 = vmatpush.msra.mxu1 %v2253_v4  ;;  %156 = vmatpush.msra.mxu3 %v2253_v4  ;;  %v2316_v13 = vld [vmem:[%s4400_s1 + $0x48] sm:$0xff]  ;;  %v76_v14 = vld [vmem:[%s4399_s0] sm:$0xf] }
   0x8   :  { %88 = vmatpush.msra.mxu0 %v2260_v5  ;;  %137 = vmatpush.msra.mxu2 %v2260_v5  ;;  %v2326_v15 = vld [vmem:[%s4400_s1 + $0x40] sm:$0xff]  ;;  %v2331_v16 = vld [vmem:[%s4400_s1 + $0xc8] sm:$0xff]  ;;  %81 = vst [vmem:[#allocation1] ss:$4 sm:$0xff] %v76_v14 }
   0x9   :  { %108 = vmatpush.msra.mxu1 %v2267_v6  ;;  %157 = vmatpush.msra.mxu3 %v2267_v6  ;;  %v2340_v17 = vld [vmem:[%s4400_s1 + $0xc0] sm:$0xff] }
   0xa   :  { %89 = vmatpush.msra.mxu0 %v2274_v7  ;;  %138 = vmatpush.msra.mxu2 %v2274_v7 }
   0xb   :  { %109 = vmatpush.msra.mxu1 %v2281_v8  ;;  %158 = vmatpush.msra.mxu3 %v2281_v8 }
   0xc   :  { %90 = vmatpush.msra.mxu0 %v2288_v9  ;;  %139 = vmatpush.msra.mxu2 %v2288_v9 }
   0xd   :  { %110 = vmatpush.msra.mxu1 %v2295_v10  ;;  %159 = vmatpush.msra.mxu3 %v2295_v10 }
   0xe   :  { %91 = vmatpush.msra.mxu0 %v2302_v11  ;;  %140 = vmatpush.msra.mxu2 %v2302_v11 }
   0xf   :  { %111 = vmatpush.msra.mxu1 %v2309_v12  ;;  %160 = vmatpush.msra.mxu3 %v2309_v12 }
  0x10   :  { %92 = vmatpush.msra.mxu0 %v2316_v13  ;;  %141 = vmatpush.msra.mxu2 %v2316_v13 }
  0x11   :  { %18 = vsyncpa [#allocation4], 0  ;;  %112 = vmatpush.msra.mxu1 %v2331_v16  ;;  %161 = vmatpush.msra.mxu3 %v2331_v16  ;;  %v2347_v18 = vld [vmem:[%s4400_s1 + $0x38] sm:$0xff]  ;;  %v2361_v20 = vld [vmem:[%s4400_s1 + $0x30] sm:$0xff]  ;;  %vm1785_vm0 = vcmask 1041408   ;;  %vm1794_vm1 = vcmask 41984  }
  0x12   :  { %93 = vmatpush.msra.mxu0 %v2326_v15  ;;  %142 = vmatpush.msra.mxu2 %v2326_v15  ;;  %v2354_v19 = vld [vmem:[%s4400_s1 + $0xb8] sm:$0xff]  ;;  %v1830_v21 = vld [vmem:[%s4399_s0 + $0x4] sm:$0xf]  ;;  %v2371_v22 = vld [vmem:[%s4400_s1 + $0x28] sm:$0xff]  ;;  %s1821_s18 = sshll.u32 %s4410_s11, 4  ;;  %s1822_s18 = int_to_ptr.hbm [resolvable:$true] %s1821_s18 }
  0x13   :  { %113 = vmatpush.msra.mxu1 %v2340_v17  ;;  %162 = vmatpush.msra.mxu3 %v2340_v17  ;;  %v2376_v23 = vld [vmem:[%s4400_s1 + $0xb0] sm:$0xff]  ;;  %v2380_v24 = vld.sshfl [vmem:[#allocation1] sm:$0xff pattern:$0x73625140]  ;;  %v2389_v26 = vld [vmem:[%s4400_s1 + $0xa8] sm:$0xff] }
  0x14   :  { %94 = vmatpush.msra.mxu0 %v2347_v18  ;;  %143 = vmatpush.msra.mxu2 %v2347_v18  ;;  %v2382_v25 = vld.sshfl [vmem:[#allocation1 + $0x8] sm:$0xff pattern:$0x73625140]  ;;  %v2396_v27 = vld [vmem:[%s4400_s1 + $0x20] sm:$0xff]  ;;  %v2410_v29 = vld [vmem:[%s4400_s1 + $0x18] sm:$0xff] }
  0x15   :  { %114 = vmatpush.msra.mxu1 %v2354_v19  ;;  %163 = vmatpush.msra.mxu3 %v2354_v19  ;;  %130 = vst [vmem:[#allocation1] ss:$4 sm:$0xff] %v1830_v21  ;;  %v2403_v28 = vld [vmem:[%s4400_s1 + $0xa0] sm:$0xff]  ;;  %v2417_v30 = vld [vmem:[%s4400_s1 + $0x98] sm:$0xff]  ;;  %v2424_v31 = vld [vmem:[%s4400_s1 + $0x10] sm:$0xff] }
  0x16   :  { %95 = vmatpush.msra.mxu0 %v2361_v20  ;;  %144 = vmatpush.msra.mxu2 %v2361_v20  ;;  %v1831_v32 = vld [vmem:[%s4399_s0 + $0x8] sm:$0xf]  ;;  %v2439_v34 = vld [vmem:[%s4400_s1 + $0x90] sm:$0xff]  ;;  %v2459_v38 = vld [vmem:[%s4400_s1] sm:$0xff] }
  0x17   :  { %115 = vmatpush.msra.mxu1 %v2376_v23  ;;  %164 = vmatpush.msra.mxu3 %v2376_v23  ;;  %v2434_v33 = vld [vmem:[%s4400_s1 + $0x8] sm:$0xff]  ;;  %v2468_v39 = vld [vmem:[%s4400_s1 + $0x80] sm:$0xff]  ;;  %v339_v46 = vld [vmem:[%s4402_s3 + $0x1f0] sm:$0xff] }
  0x18   :  { %96 = vmatpush.msra.mxu0 %v2371_v22  ;;  %145 = vmatpush.msra.mxu2 %v2371_v22  ;;  %v2452_v37 = vld [vmem:[%s4400_s1 + $0x88] sm:$0xff]  ;;  %v337_v45 = vld [vmem:[%s4402_s3 + $0x1e0] sm:$0xff]  ;;  %v340_v48 = vld [vmem:[%s4402_s3 + $0x1f8] sm:$0xff] }
  0x19   :  { %116 = vmatpush.msra.mxu1 %v2389_v26  ;;  %165 = vmatpush.msra.mxu3 %v2389_v26  ;;  %v1832_v40 = vld [vmem:[%s4399_s0 + $0xc] sm:$0xf]  ;;  %v333_v49 = vld [vmem:[%s4402_s3 + $0x1c0] sm:$0xff]  ;;  %v335_v50 = vld [vmem:[%s4402_s3 + $0x1d0] sm:$0xff] }
  0x1a   :  { %97 = vmatpush.msra.mxu0 %v2396_v27  ;;  %146 = vmatpush.msra.mxu2 %v2396_v27  ;;  %v338_v47 = vld [vmem:[%s4402_s3 + $0x1e8] sm:$0xff]  ;;  %v336_v52 = vld [vmem:[%s4402_s3 + $0x1d8] sm:$0xff]  ;;  %v329_v53 = vld [vmem:[%s4402_s3 + $0x1a0] sm:$0xff] }
  0x1b   :  { %117 = vmatpush.msra.mxu1 %v2403_v28  ;;  %166 = vmatpush.msra.mxu3 %v2403_v28  ;;  %v334_v51 = vld [vmem:[%s4402_s3 + $0x1c8] sm:$0xff]  ;;  %v331_v54 = vld [vmem:[%s4402_s3 + $0x1b0] sm:$0xff]  ;;  %v332_v56 = vld [vmem:[%s4402_s3 + $0x1b8] sm:$0xff] }
  0x1c   :  { %98 = vmatpush.msra.mxu0 %v2410_v29  ;;  %147 = vmatpush.msra.mxu2 %v2410_v29  ;;  %v2443_v35 = vld.sshfl [vmem:[#allocation1] sm:$0xff pattern:$0x73625140]  ;;  %v2445_v36 = vld.sshfl [vmem:[#allocation1 + $0x8] sm:$0xff pattern:$0x73625140] }
  0x1d   :  { %118 = vmatpush.msra.mxu1 %v2417_v30  ;;  %167 = vmatpush.msra.mxu3 %v2417_v30  ;;  %180 = vst [vmem:[#allocation1] ss:$4 sm:$0xff] %v1831_v32  ;;  %v330_v55 = vld [vmem:[%s4402_s3 + $0x1a8] sm:$0xff]  ;;  %v325_v57 = vld [vmem:[%s4402_s3 + $0x180] sm:$0xff]  ;;  %v327_v58 = vld [vmem:[%s4402_s3 + $0x190] sm:$0xff] }
  0x1e   :  { %99 = vmatpush.msra.mxu0 %v2424_v31  ;;  %148 = vmatpush.msra.mxu2 %v2424_v31  ;;  %v326_v59 = vld [vmem:[%s4402_s3 + $0x188] sm:$0xff]  ;;  %v328_v60 = vld [vmem:[%s4402_s3 + $0x198] sm:$0xff]  ;;  %v321_v61 = vld [vmem:[%s4402_s3 + $0x160] sm:$0xff] }
  0x1f   :  { %119 = vmatpush.msra.mxu1 %v2439_v34  ;;  %168 = vmatpush.msra.mxu3 %v2439_v34  ;;  %v323_v62 = vld [vmem:[%s4402_s3 + $0x170] sm:$0xff]  ;;  %v322_v63 = vld [vmem:[%s4402_s3 + $0x168] sm:$0xff]  ;;  %v324_v0 = vld [vmem:[%s4402_s3 + $0x178] sm:$0xff] }
  0x20   :  { %100 = vmatpush.msra.mxu0 %v2434_v33  ;;  %149 = vmatpush.msra.mxu2 %v2434_v33  ;;  %v317_v14 = vld [vmem:[%s4402_s3 + $0x140] sm:$0xff]  ;;  %v319_v21 = vld [vmem:[%s4402_s3 + $0x150] sm:$0xff] }
  0x21   :  { %120 = vmatpush.msra.mxu1 %v2452_v37  ;;  %169 = vmatpush.msra.mxu3 %v2452_v37  ;;  %v313_v32 = vld [vmem:[%s4402_s3 + $0x120] sm:$0xff] }
  0x22   :  { %101 = vmatpush.msra.mxu0 %v2459_v38  ;;  %150 = vmatpush.msra.mxu2 %v2459_v38 }
  0x23   :  { %121 = vmatpush.msra.mxu1 %v2468_v39  ;;  %170 = vmatpush.msra.mxu3 %v2468_v39 }
  0x24   :  { %185 = vmatpush.msrb.mxu0 %v2236_v1  ;;  %235 = vmatpush.msrb.mxu2 %v2236_v1  ;;  %v2481_v41 = vld.sshfl [vmem:[#allocation1] sm:$0xff pattern:$0x73625140]  ;;  %v2483_v42 = vld.sshfl [vmem:[#allocation1 + $0x8] sm:$0xff pattern:$0x73625140] }
  0x25   :  { %205 = vmatpush.msrb.mxu1 %v2246_v3  ;;  %255 = vmatpush.msrb.mxu3 %v2246_v3  ;;  %230 = vst [vmem:[#allocation1] ss:$4 sm:$0xff] %v1832_v40  ;;  %v316_v40 = vld [vmem:[%s4402_s3 + $0x138] sm:$0xff] }
  0x26   :  { %186 = vmatpush.msrb.mxu0 %v2241_v2  ;;  %236 = vmatpush.msrb.mxu2 %v2241_v2 }
  0x27   :  { %206 = vmatpush.msrb.mxu1 %v2253_v4  ;;  %256 = vmatpush.msrb.mxu3 %v2253_v4 }
  0x28   :  { %187 = vmatpush.msrb.mxu0 %v2260_v5  ;;  %237 = vmatpush.msrb.mxu2 %v2260_v5 }
  0x29   :  { %207 = vmatpush.msrb.mxu1 %v2267_v6  ;;  %257 = vmatpush.msrb.mxu3 %v2267_v6 }
  0x2a   :  { %188 = vmatpush.msrb.mxu0 %v2274_v7  ;;  %238 = vmatpush.msrb.mxu2 %v2274_v7 }
  0x2b   :  { %208 = vmatpush.msrb.mxu1 %v2281_v8  ;;  %258 = vmatpush.msrb.mxu3 %v2281_v8 }
  0x2c   :  { %189 = vmatpush.msrb.mxu0 %v2288_v9  ;;  %239 = vmatpush.msrb.mxu2 %v2288_v9  ;;  %v231_v43 = vld.sshfl [vmem:[#allocation1] sm:$0xff pattern:$0x73625140]  ;;  %v232_v44 = vld.sshfl [vmem:[#allocation1 + $0x8] sm:$0xff pattern:$0x73625140] }
  0x2d   :  { %209 = vmatpush.msrb.mxu1 %v2295_v10  ;;  %259 = vmatpush.msrb.mxu3 %v2295_v10 }
  0x2e   :  { %190 = vmatpush.msrb.mxu0 %v2302_v11  ;;  %240 = vmatpush.msrb.mxu2 %v2302_v11 }
  0x2f   :  { %210 = vmatpush.msrb.mxu1 %v2309_v12  ;;  %260 = vmatpush.msrb.mxu3 %v2309_v12 }
  0x30   :  { %191 = vmatpush.msrb.mxu0 %v2316_v13  ;;  %241 = vmatpush.msrb.mxu2 %v2316_v13 }
  0x31   :  { %211 = vmatpush.msrb.mxu1 %v2331_v16  ;;  %261 = vmatpush.msrb.mxu3 %v2331_v16 }
  0x32   :  { %192 = vmatpush.msrb.mxu0 %v2326_v15  ;;  %242 = vmatpush.msrb.mxu2 %v2326_v15 }
  0x33   :  { %212 = vmatpush.msrb.mxu1 %v2340_v17  ;;  %262 = vmatpush.msrb.mxu3 %v2340_v17 }
  0x34   :  { %193 = vmatpush.msrb.mxu0 %v2347_v18  ;;  %243 = vmatpush.msrb.mxu2 %v2347_v18 }
  0x35   :  { %213 = vmatpush.msrb.mxu1 %v2354_v19  ;;  %263 = vmatpush.msrb.mxu3 %v2354_v19 }
  0x36   :  { %194 = vmatpush.msrb.mxu0 %v2361_v20  ;;  %244 = vmatpush.msrb.mxu2 %v2361_v20 }
  0x37   :  { %214 = vmatpush.msrb.mxu1 %v2376_v23  ;;  %264 = vmatpush.msrb.mxu3 %v2376_v23 }
  0x38   :  { %195 = vmatpush.msrb.mxu0 %v2371_v22  ;;  %245 = vmatpush.msrb.mxu2 %v2371_v22 }
  0x39   :  { %151 = vmatmul.f32.vlgmr.msra.gmra.mxu2 %v2443_v35  ;;  %215 = vmatpush.msrb.mxu1 %v2389_v26  ;;  %v315_v35 = vld [vmem:[%s4402_s3 + $0x130] sm:$0xff] }
  0x3a   :  { %196 = vmatpush.msrb.mxu0 %v2396_v27  ;;  %246 = vmatpush.msrb.mxu2 %v2396_v27 }
  0x3b   :  { %265 = vmatpush.msrb.mxu3 %v2389_v26  ;;  %102 = vmatmul.f32.vlgmr.msra.gmra.mxu0 %v2380_v24  ;;  %v318_v24 = vld [vmem:[%s4402_s3 + $0x148] sm:$0xff] }
  0x3c   :  { %171 = vmatmul.f32.vlgmr.msra.gmra.mxu3 %v2445_v36  ;;  %197 = vmatpush.msrb.mxu0 %v2410_v29  ;;  %v314_v36 = vld [vmem:[%s4402_s3 + $0x128] sm:$0xff] }
  0x3d   :  { %216 = vmatpush.msrb.mxu1 %v2403_v28  ;;  %247 = vmatpush.msrb.mxu2 %v2410_v29 }
  0x3e   :  { %266 = vmatpush.msrb.mxu3 %v2403_v28  ;;  %122 = vmatmul.f32.vlgmr.msra.gmra.mxu1 %v2382_v25  ;;  %v320_v25 = vld [vmem:[%s4402_s3 + $0x158] sm:$0xff] }
  0x3f   :  { %198 = vmatpush.msrb.mxu0 %v2424_v31  ;;  %217 = vmatpush.msrb.mxu1 %v2417_v30 }
  0x40   :  { %248 = vmatpush.msrb.mxu2 %v2424_v31  ;;  %267 = vmatpush.msrb.mxu3 %v2417_v30 }
  0x41   :  { %199 = vmatpush.msrb.mxu0 %v2434_v33  ;;  %218 = vmatpush.msrb.mxu1 %v2439_v34 }
  0x42   :  { %249 = vmatpush.msrb.mxu2 %v2434_v33  ;;  %268 = vmatpush.msrb.mxu3 %v2439_v34 }
  0x43   :  { %200 = vmatpush.msrb.mxu0 %v2459_v38  ;;  %219 = vmatpush.msrb.mxu1 %v2452_v37 }
  0x44   :  { %250 = vmatpush.msrb.mxu2 %v2459_v38  ;;  %269 = vmatpush.msrb.mxu3 %v2452_v37 }
  0x45   :  { %201 = vmatmul.f32.vlgmr.msrb.gmra.mxu0 %v2481_v41  ;;  %251 = vmatmul.f32.vlgmr.msrb.gmra.mxu2 %v231_v43  ;;  %v309_v41 = vld [vmem:[%s4402_s3 + $0x100] sm:$0xff]  ;;  %v310_v43 = vld [vmem:[%s4402_s3 + $0x108] sm:$0xff] }
  0x46   :  { %220 = vmatpush.msrb.mxu1 %v2468_v39  ;;  %270 = vmatpush.msrb.mxu3 %v2468_v39 }
  0x47   :  { %221 = vmatmul.f32.vlgmr.msrb.gmra.mxu1 %v2483_v42  ;;  %271 = vmatmul.f32.vlgmr.msrb.gmra.mxu3 %v232_v44  ;;  %v311_v42 = vld [vmem:[%s4402_s3 + $0x110] sm:$0xff]  ;;  %v312_v44 = vld [vmem:[%s4402_s3 + $0x118] sm:$0xff] }
  0x48   :  { %341 = vmatpush.msra.mxu0 %v337_v45  ;;  %381 = vmatpush.msra.mxu2 %v339_v46  ;;  %v305_v45 = vld [vmem:[%s4402_s3 + $0xe0] sm:$0xff]  ;;  %v307_v46 = vld [vmem:[%s4402_s3 + $0xf0] sm:$0xff] }
  0x49   :  { %361 = vmatpush.msra.mxu1 %v338_v47  ;;  %401 = vmatpush.msra.mxu3 %v340_v48  ;;  %v306_v47 = vld [vmem:[%s4402_s3 + $0xe8] sm:$0xff]  ;;  %v301_v48 = vld [vmem:[%s4402_s3 + $0xc0] sm:$0xff] }
  0x4a   :  { %342 = vmatpush.msra.mxu0 %v333_v49  ;;  %382 = vmatpush.msra.mxu2 %v335_v50  ;;  %v303_v49 = vld [vmem:[%s4402_s3 + $0xd0] sm:$0xff]  ;;  %v297_v50 = vld [vmem:[%s4402_s3 + $0xa0] sm:$0xff] }
  0x4b   :  { %362 = vmatpush.msra.mxu1 %v334_v51  ;;  %402 = vmatpush.msra.mxu3 %v336_v52  ;;  %v299_v51 = vld [vmem:[%s4402_s3 + $0xb0] sm:$0xff]  ;;  %v293_v52 = vld [vmem:[%s4402_s3 + $0x80] sm:$0xff] }
  0x4c   :  { %343 = vmatpush.msra.mxu0 %v329_v53  ;;  %383 = vmatpush.msra.mxu2 %v331_v54  ;;  %v289_v53 = vld [vmem:[%s4402_s3 + $0x60] sm:$0xff] }
  0x4d   :  { %363 = vmatpush.msra.mxu1 %v330_v55  ;;  %403 = vmatpush.msra.mxu3 %v332_v56  ;;  %v285_v54 = vld [vmem:[%s4402_s3 + $0x40] sm:$0xff] }
  0x4e   :  { %344 = vmatpush.msra.mxu0 %v325_v57  ;;  %384 = vmatpush.msra.mxu2 %v327_v58  ;;  %v281_v55 = vld [vmem:[%s4402_s3 + $0x20] sm:$0xff]  ;;  %v449_v57 = vld [vmem:[%s4406_s7 + $0x78] sm:$0xff]  ;;  %v448_v58 = vld [vmem:[%s4406_s7 + $0x70] sm:$0xff] }
  0x4f   :  { %364 = vmatpush.msra.mxu1 %v326_v59  ;;  %404 = vmatpush.msra.mxu3 %v328_v60  ;;  %v277_v56 = vld [vmem:[%s4402_s3] sm:$0xff]  ;;  %v447_v59 = vld [vmem:[%s4406_s7 + $0x68] sm:$0xff] }
  0x50   :  { %345 = vmatpush.msra.mxu0 %v321_v61  ;;  %385 = vmatpush.msra.mxu2 %v323_v62  ;;  %v446_v60 = vld [vmem:[%s4406_s7 + $0x60] sm:$0xff]  ;;  %v302_v61 = vld [vmem:[%s4402_s3 + $0xc8] sm:$0xff]  ;;  %v295_v62 = vld [vmem:[%s4402_s3 + $0x90] sm:$0xff] }
  0x51   :  { %365 = vmatpush.msra.mxu1 %v322_v63  ;;  %405 = vmatpush.msra.mxu3 %v324_v0  ;;  %v308_v63 = vld [vmem:[%s4402_s3 + $0xf8] sm:$0xff] }
  0x52   :  { %346 = vmatpush.msra.mxu0 %v317_v14  ;;  %386 = vmatpush.msra.mxu2 %v319_v21  ;;  %v445_v0 = vld [vmem:[%s4406_s7 + $0x58] sm:$0xff]  ;;  %v298_v14 = vld [vmem:[%s4402_s3 + $0xa8] sm:$0xff]  ;;  %v291_v21 = vld [vmem:[%s4402_s3 + $0x70] sm:$0xff] }
  0x53   :  { %366 = vmatpush.msra.mxu1 %v318_v24  ;;  %406 = vmatpush.msra.mxu3 %v320_v25  ;;  %v304_v24 = vld [vmem:[%s4402_s3 + $0xd8] sm:$0xff]  ;;  %v444_v25 = vld [vmem:[%s4406_s7 + $0x50] sm:$0xff] }
  0x54   :  { %347 = vmatpush.msra.mxu0 %v313_v32  ;;  %387 = vmatpush.msra.mxu2 %v315_v35  ;;  %v294_v32 = vld [vmem:[%s4402_s3 + $0x88] sm:$0xff]  ;;  %v287_v35 = vld [vmem:[%s4402_s3 + $0x50] sm:$0xff] }
  0x55   :  { %367 = vmatpush.msra.mxu1 %v314_v36  ;;  %407 = vmatpush.msra.mxu3 %v316_v40  ;;  %v300_v36 = vld [vmem:[%s4402_s3 + $0xb8] sm:$0xff]  ;;  %v443_v40 = vld [vmem:[%s4406_s7 + $0x48] sm:$0xff] }
  0x56   :  { %348 = vmatpush.msra.mxu0 %v309_v41  ;;  %388 = vmatpush.msra.mxu2 %v311_v42  ;;  %v290_v41 = vld [vmem:[%s4402_s3 + $0x68] sm:$0xff]  ;;  %v283_v42 = vld [vmem:[%s4402_s3 + $0x30] sm:$0xff] }
  0x57   :  { %368 = vmatpush.msra.mxu1 %v310_v43  ;;  %408 = vmatpush.msra.mxu3 %v312_v44  ;;  %v296_v43 = vld [vmem:[%s4402_s3 + $0x98] sm:$0xff]  ;;  %v442_v44 = vld [vmem:[%s4406_s7 + $0x40] sm:$0xff] }
  0x58   :  { %349 = vmatpush.msra.mxu0 %v305_v45  ;;  %389 = vmatpush.msra.mxu2 %v307_v46  ;;  %v286_v45 = vld [vmem:[%s4402_s3 + $0x48] sm:$0xff]  ;;  %v279_v46 = vld [vmem:[%s4402_s3 + $0x10] sm:$0xff] }
  0x59   :  { %369 = vmatpush.msra.mxu1 %v306_v47  ;;  %409 = vmatpush.msra.mxu3 %v308_v63  ;;  %v292_v47 = vld [vmem:[%s4402_s3 + $0x78] sm:$0xff] }
  0x5a   :  { %350 = vmatpush.msra.mxu0 %v301_v48  ;;  %390 = vmatpush.msra.mxu2 %v303_v49  ;;  %v441_v48 = vld [vmem:[%s4406_s7 + $0x38] sm:$0xff]  ;;  %v282_v49 = vld [vmem:[%s4402_s3 + $0x28] sm:$0xff] }
  0x5b   :  { %370 = vmatpush.msra.mxu1 %v302_v61  ;;  %410 = vmatpush.msra.mxu3 %v304_v24 }
  0x5c   :  { %351 = vmatpush.msra.mxu0 %v297_v50  ;;  %391 = vmatpush.msra.mxu2 %v299_v51  ;;  %v288_v50 = vld [vmem:[%s4402_s3 + $0x58] sm:$0xff]  ;;  %v440_v51 = vld [vmem:[%s4406_s7 + $0x30] sm:$0xff] }
  0x5d   :  { %371 = vmatpush.msra.mxu1 %v298_v14  ;;  %411 = vmatpush.msra.mxu3 %v300_v36 }
  0x5e   :  { %352 = vmatpush.msra.mxu0 %v293_v52  ;;  %392 = vmatpush.msra.mxu2 %v295_v62  ;;  %v278_v52 = vld [vmem:[%s4402_s3 + $0x8] sm:$0xff]  ;;  %v2824_v62 = vld [vmem:[%s4401_s2] ss:$0 sm:$0xff] }
  0x5f   :  { %372 = vmatpush.msra.mxu1 %v294_v32  ;;  %412 = vmatpush.msra.mxu3 %v296_v43 }
  0x60   :  { %353 = vmatpush.msra.mxu0 %v289_v53  ;;  %393 = vmatpush.msra.mxu2 %v291_v21  ;;  %v284_v53 = vld [vmem:[%s4402_s3 + $0x38] sm:$0xff] }
  0x61   :  { %373 = vmatpush.msra.mxu1 %v290_v41  ;;  %413 = vmatpush.msra.mxu3 %v292_v47 }
  0x62   :  { %354 = vmatpush.msra.mxu0 %v285_v54  ;;  %394 = vmatpush.msra.mxu2 %v287_v35  ;;  %v439_v54 = vld [vmem:[%s4406_s7 + $0x28] sm:$0xff] }
  0x63   :  { %374 = vmatpush.msra.mxu1 %v286_v45  ;;  %414 = vmatpush.msra.mxu3 %v288_v50  ;;  %v1833_v45 = vld [vmem:[%s4399_s0 + $0x10] sm:$0xf] }
  0x64   :  { %355 = vmatpush.msra.mxu0 %v281_v55  ;;  %395 = vmatpush.msra.mxu2 %v283_v42  ;;  %v280_v55 = vld [vmem:[%s4402_s3 + $0x18] sm:$0xff]  ;;  %477 = vst [vmem:[#allocation1] ss:$4 sm:$0xff] %v1833_v45  ;;  %v1855_v45 = vld [vmem:[%s4402_s3 + $0x290] sm:$0xff] }
  0x65   :  { %375 = vmatpush.msra.mxu1 %v282_v49  ;;  %415 = vmatpush.msra.mxu3 %v284_v53 }
  0x66   :  { %356 = vmatpush.msra.mxu0 %v277_v56  ;;  %396 = vmatpush.msra.mxu2 %v279_v46  ;;  %v438_v56 = vld [vmem:[%s4406_s7 + $0x20] sm:$0xff] }
  0x67   :  { %376 = vmatpush.msra.mxu1 %v278_v52  ;;  %416 = vmatpush.msra.mxu3 %v280_v55 }
  0x68   :  { %450 = vmatpush.msrb.mxu0 %v449_v57  ;;  %502 = vmatpush.msrb.mxu2 %v2246_v3  ;;  %v437_v57 = vld [vmem:[%s4406_s7 + $0x18] sm:$0xff] }
  0x69   :  { %482 = vmatpush.msrb.mxu1 %v2236_v1  ;;  %531 = vmatpush.msrb.mxu3 %v2236_v1 }
  0x6a   :  { %451 = vmatpush.msrb.mxu0 %v448_v58  ;;  %503 = vmatpush.msrb.mxu2 %v2253_v4  ;;  %v436_v58 = vld [vmem:[%s4406_s7 + $0x10] sm:$0xff] }
  0x6b   :  { %483 = vmatpush.msrb.mxu1 %v2241_v2  ;;  %532 = vmatpush.msrb.mxu3 %v2241_v2  ;;  %v2851_v55 = vld.sshfl [vmem:[#allocation1] sm:$0xff pattern:$0x73625140] }
  0x6c   :  { %452 = vmatpush.msrb.mxu0 %v447_v59  ;;  %504 = vmatpush.msrb.mxu2 %v2267_v6  ;;  %v435_v59 = vld [vmem:[%s4406_s7 + $0x8] sm:$0xff] }
  0x6d   :  { %484 = vmatpush.msrb.mxu1 %v2260_v5  ;;  %533 = vmatpush.msrb.mxu3 %v2260_v5 }
  0x6e   :  { %453 = vmatpush.msrb.mxu0 %v446_v60  ;;  %505 = vmatpush.msrb.mxu2 %v2281_v8  ;;  %v434_v60 = vld [vmem:[%s4406_s7] sm:$0xff] }
  0x6f   :  { %485 = vmatpush.msrb.mxu1 %v2274_v7  ;;  %534 = vmatpush.msrb.mxu3 %v2274_v7 }
  0x70   :  { %454 = vmatpush.msrb.mxu0 %v445_v0  ;;  %506 = vmatpush.msrb.mxu2 %v2295_v10 }
  0x71   :  { %486 = vmatpush.msrb.mxu1 %v2288_v9  ;;  %535 = vmatpush.msrb.mxu3 %v2288_v9 }
  0x72   :  { %455 = vmatpush.msrb.mxu0 %v444_v25  ;;  %507 = vmatpush.msrb.mxu2 %v2309_v12 }
  0x73   :  { %487 = vmatpush.msrb.mxu1 %v2302_v11  ;;  %536 = vmatpush.msrb.mxu3 %v2302_v11 }
  0x74   :  { %456 = vmatpush.msrb.mxu0 %v443_v40  ;;  %508 = vmatpush.msrb.mxu2 %v2331_v16 }
  0x75   :  { %488 = vmatpush.msrb.mxu1 %v2316_v13  ;;  %537 = vmatpush.msrb.mxu3 %v2316_v13 }
  0x76   :  { %457 = vmatpush.msrb.mxu0 %v442_v44  ;;  %509 = vmatpush.msrb.mxu2 %v2340_v17 }
  0x77   :  { %489 = vmatpush.msrb.mxu1 %v2326_v15  ;;  %538 = vmatpush.msrb.mxu3 %v2326_v15 }
  0x78   :  { %458 = vmatpush.msrb.mxu0 %v441_v48  ;;  %510 = vmatpush.msrb.mxu2 %v2354_v19 }
  0x79   :  { %490 = vmatpush.msrb.mxu1 %v2347_v18  ;;  %539 = vmatpush.msrb.mxu3 %v2347_v18 }
  0x7a   :  { %459 = vmatpush.msrb.mxu0 %v440_v51  ;;  %511 = vmatpush.msrb.mxu2 %v2376_v23 }
  0x7b   :  { %491 = vmatpush.msrb.mxu1 %v2361_v20  ;;  %540 = vmatpush.msrb.mxu3 %v2361_v20 }
  0x7c   :  { %460 = vmatpush.msrb.mxu0 %v439_v54  ;;  %512 = vmatpush.msrb.mxu2 %v2389_v26  ;;  %v479_v54 = vld.sshfl [vmem:[#allocation1 + $0x8] sm:$0xff pattern:$0x73625140] }
  0x7d   :  { %492 = vmatpush.msrb.mxu1 %v2371_v22  ;;  %541 = vmatpush.msrb.mxu3 %v2371_v22 }
  0x7e   :  { %461 = vmatpush.msrb.mxu0 %v438_v56  ;;  %513 = vmatpush.msrb.mxu2 %v2403_v28  ;;  %v1834_v56 = vld [vmem:[%s4399_s0 + $0x14] sm:$0xf] }
  0x7f   :  { %493 = vmatpush.msrb.mxu1 %v2396_v27  ;;  %542 = vmatpush.msrb.mxu3 %v2396_v27  ;;  %526 = vst [vmem:[#allocation1] ss:$4 sm:$0xff] %v1834_v56  ;;  %v1915_v56 = vld [vmem:[%s4406_s7 + $0xf0] sm:$0xff] }
  0x80   :  { %462 = vmatpush.msrb.mxu0 %v437_v57  ;;  %514 = vmatpush.msrb.mxu2 %v2417_v30 }
  0x81   :  { %494 = vmatpush.msrb.mxu1 %v2410_v29  ;;  %543 = vmatpush.msrb.mxu3 %v2410_v29 }
  0x82   :  { %463 = vmatpush.msrb.mxu0 %v436_v58  ;;  %515 = vmatpush.msrb.mxu2 %v2439_v34 }
  0x83   :  { %495 = vmatpush.msrb.mxu1 %v2424_v31  ;;  %544 = vmatpush.msrb.mxu3 %v2424_v31 }
  0x84   :  { %464 = vmatpush.msrb.mxu0 %v435_v59  ;;  %516 = vmatpush.msrb.mxu2 %v2452_v37  ;;  %v1888_v59 = vld [vmem:[%s4402_s3 + $0x398] sm:$0xff] }
  0x85   :  { %496 = vmatpush.msrb.mxu1 %v2434_v33  ;;  %545 = vmatpush.msrb.mxu3 %v2434_v33 }
  0x86   :  { %465 = vmatpush.msrb.mxu0 %v434_v60  ;;  %517 = vmatpush.msrb.mxu2 %v2468_v39  ;;  %v527_v57 = vld.sshfl [vmem:[#allocation1] sm:$0xff pattern:$0x73625140]  ;;  %v528_v58 = vld.sshfl [vmem:[#allocation1 + $0x8] sm:$0xff pattern:$0x73625140] }
  0x87   :  { %497 = vmatpush.msrb.mxu1 %v2459_v38  ;;  %546 = vmatpush.msrb.mxu3 %v2459_v38  ;;  %v1861_v60 = vld [vmem:[%s4402_s3 + $0x2c0] sm:$0xff] }
  0xb8   :  { %v103_v61 = vpop.f32.mrf.mxu0 }
  0xb9   :  { %v104_v14 = vadd.f32 %v2824_v62, %v103_v61  ;;  %v1870_v61 = vld [vmem:[%s4402_s3 + $0x308] sm:$0xff] }
  0xbb   :  { %v123_v63 = vpop.f32.mrf.mxu1 }
  0xbc   :  { %v152_v0 = vpop.f32.mrf.mxu2  ;;  %v124_v32 = vadd.f32 %v123_v63, %v104_v14  ;;  %v1871_v63 = vld [vmem:[%s4402_s3 + $0x310] sm:$0xff]  ;;  %v1866_v14 = vld [vmem:[%s4402_s3 + $0x2e8] sm:$0xff] }
  0xbd   :  { %v153_v21 = vadd.f32 %v2824_v62, %v152_v0  ;;  %v1857_v0 = vld [vmem:[%s4402_s3 + $0x2a0] sm:$0xff] }
  0xbe   :  { %v126_v42 = vmax.f32 %v124_v32, 0.0  ;;  %v1884_v32 = vld [vmem:[%s4402_s3 + $0x378] sm:$0xff] }
  0xbf   :  { %v172_v24 = vpop.f32.mrf.mxu3 }
  0xc0   :  { %v173_v35 = vadd.f32 %v172_v24, %v153_v21  ;;  %v1867_v21 = vld [vmem:[%s4402_s3 + $0x2f0] sm:$0xff]  ;;  %v1853_v24 = vld [vmem:[%s4402_s3 + $0x280] sm:$0xff] }
  0xc2   :  { %v202_v25 = vpop.f32.mrf.mxu0  ;;  %v175_v43 = vmax.f32 %v173_v35, 0.0  ;;  %v1863_v35 = vld [vmem:[%s4402_s3 + $0x2d0] sm:$0xff] }
  0xc3   :  { %v203_v36 = vadd.f32 %v2824_v62, %v202_v25  ;;  %v1862_v25 = vld [vmem:[%s4402_s3 + $0x2c8] sm:$0xff] }
  0xc4   :  { %v222_v40 = vpop.f32.mrf.mxu1  ;;  %v176_v49 = vmax.f32 %v126_v42, %v175_v43  ;;  %v1845_v42 = vld [vmem:[%s4402_s3 + $0x240] sm:$0xff]  ;;  %v1854_v43 = vld [vmem:[%s4402_s3 + $0x288] sm:$0xff] }
  0xc5   :  { %v223_v41 = vadd.f32 %v222_v40, %v203_v36  ;;  %v1849_v36 = vld [vmem:[%s4402_s3 + $0x260] sm:$0xff]  ;;  %v1858_v40 = vld [vmem:[%s4402_s3 + $0x2a8] sm:$0xff] }
  0xc7   :  { %v225_v46 = vmax.f32 %v223_v41, 0.0  ;;  %v1859_v41 = vld [vmem:[%s4402_s3 + $0x2b0] sm:$0xff] }
  0xc8   :  { %v252_v44 = vpop.f32.mrf.mxu2 }
  0xc9   :  { %v253_v47 = vadd.f32 %v2824_v62, %v252_v44  ;;  %v226_v51 = vmax.f32 %v176_v49, %v225_v46  ;;  %v1880_v44 = vld [vmem:[%s4402_s3 + $0x358] sm:$0xff]  ;;  %v1841_v46 = vld [vmem:[%s4402_s3 + $0x220] sm:$0xff]  ;;  %v1851_v49 = vld [vmem:[%s4402_s3 + $0x270] sm:$0xff] }
  0xca   :  { %v272_v48 = vpop.f32.mrf.mxu3 }
  0xcb   :  { %v273_v50 = vadd.f32 %v272_v48, %v253_v47  ;;  %v1850_v47 = vld [vmem:[%s4402_s3 + $0x268] sm:$0xff]  ;;  %v1876_v48 = vld [vmem:[%s4402_s3 + $0x338] sm:$0xff] }
  0xcd   :  { %v275_v52 = vmax.f32 %v273_v50, 0.0  ;;  %v1837_v50 = vld [vmem:[%s4402_s3 + $0x200] sm:$0xff] }
  0xcf   :  { %v276_v53 = vmax.f32 %v226_v51, %v275_v52  ;;  %v1846_v51 = vld [vmem:[%s4402_s3 + $0x248] sm:$0xff]  ;;  %v1872_v52 = vld [vmem:[%s4402_s3 + $0x318] sm:$0xff] }
  0xd1   :  { %357 = vmatmul.f32.vlgmr.msra.gmra.mxu0 %v276_v53  ;;  %377 = vmatmul.f32.vlgmr.msra.gmra.mxu1 %v276_v53 }
  0xd2   :  { %397 = vmatmul.f32.vlgmr.msra.gmra.mxu2 %v276_v53  ;;  %417 = vmatmul.f32.vlgmr.msra.gmra.mxu3 %v276_v53 }
  0xd3   :  { %551 = vmatpush.msra.mxu0 %v2246_v3  ;;  %601 = vmatpush.msra.mxu2 %v2246_v3 }
  0xd4   :  { %581 = vmatpush.msra.mxu1 %v2236_v1  ;;  %631 = vmatpush.msra.mxu3 %v2236_v1  ;;  %v1835_v1 = vld [vmem:[%s4399_s0 + $0x18] sm:$0xf] }
  0xd5   :  { %552 = vmatpush.msra.mxu0 %v2253_v4  ;;  %602 = vmatpush.msra.mxu2 %v2253_v4  ;;  %576 = vst [vmem:[#allocation1] ss:$4 sm:$0xff] %v1835_v1  ;;  %v1914_v1 = vld [vmem:[%s4406_s7 + $0xe8] sm:$0xff] }
  0xd6   :  { %582 = vmatpush.msra.mxu1 %v2241_v2  ;;  %632 = vmatpush.msra.mxu3 %v2241_v2  ;;  %v1836_v2 = vld [vmem:[%s4399_s0 + $0x1c] sm:$0xf] }
  0xd7   :  { %553 = vmatpush.msra.mxu0 %v2267_v6  ;;  %603 = vmatpush.msra.mxu2 %v2267_v6 }
  0xd8   :  { %583 = vmatpush.msra.mxu1 %v2260_v5  ;;  %633 = vmatpush.msra.mxu3 %v2260_v5 }
  0xd9   :  { %554 = vmatpush.msra.mxu0 %v2281_v8  ;;  %604 = vmatpush.msra.mxu2 %v2281_v8 }
  0xda   :  { %466 = vmatmul.f32.vlgmr.msrb.gmra.mxu0 %v276_v53  ;;  %584 = vmatpush.msra.mxu1 %v2274_v7  ;;  %v1916_v53 = vld [vmem:[%s4406_s7 + $0xf8] sm:$0xff] }
  0xdb   :  { %555 = vmatpush.msra.mxu0 %v2295_v10  ;;  %605 = vmatpush.msra.mxu2 %v2295_v10 }
  0xdc   :  { %585 = vmatpush.msra.mxu1 %v2288_v9  ;;  %634 = vmatpush.msra.mxu3 %v2274_v7  ;;  %v578_v5 = vld.sshfl [vmem:[#allocation1 + $0x8] sm:$0xff pattern:$0x73625140]  ;;  %v577_v7 = vld.sshfl [vmem:[#allocation1] sm:$0xff pattern:$0x73625140] }
  0xdd   :  { %556 = vmatpush.msra.mxu0 %v2309_v12  ;;  %606 = vmatpush.msra.mxu2 %v2309_v12  ;;  %626 = vst [vmem:[#allocation1] ss:$4 sm:$0xff] %v1836_v2  ;;  %v1868_v2 = vld [vmem:[%s4402_s3 + $0x2f8] sm:$0xff] }
  0xde   :  { %586 = vmatpush.msra.mxu1 %v2302_v11  ;;  %635 = vmatpush.msra.mxu3 %v2288_v9 }
  0xdf   :  { %557 = vmatpush.msra.mxu0 %v2331_v16  ;;  %607 = vmatpush.msra.mxu2 %v2331_v16 }
  0xe0   :  { %587 = vmatpush.msra.mxu1 %v2316_v13  ;;  %636 = vmatpush.msra.mxu3 %v2302_v11  ;;  %v1898_v11 = vld [vmem:[%s4402_s3 + $0x3e8] sm:$0xff] }
  0xe1   :  { %558 = vmatpush.msra.mxu0 %v2340_v17  ;;  %608 = vmatpush.msra.mxu2 %v2340_v17 }
  0xe2   :  { %588 = vmatpush.msra.mxu1 %v2326_v15  ;;  %637 = vmatpush.msra.mxu3 %v2316_v13  ;;  %v1899_v13 = vld [vmem:[%s4402_s3 + $0x3f0] sm:$0xff] }
  0xe3   :  { %559 = vmatpush.msra.mxu0 %v2354_v19  ;;  %609 = vmatpush.msra.mxu2 %v2354_v19 }
  0xe4   :  { %589 = vmatpush.msra.mxu1 %v2347_v18  ;;  %638 = vmatpush.msra.mxu3 %v2326_v15  ;;  %v627_v9 = vld.sshfl [vmem:[#allocation1] sm:$0xff pattern:$0x73625140] }
  0xe5   :  { %560 = vmatpush.msra.mxu0 %v2376_v23  ;;  %610 = vmatpush.msra.mxu2 %v2376_v23  ;;  %v1881_v15 = vld [vmem:[%s4402_s3 + $0x360] sm:$0xff] }
  0xe6   :  { %590 = vmatpush.msra.mxu1 %v2361_v20  ;;  %639 = vmatpush.msra.mxu3 %v2347_v18  ;;  %v1891_v18 = vld [vmem:[%s4402_s3 + $0x3b0] sm:$0xff] }
  0xe7   :  { %561 = vmatpush.msra.mxu0 %v2389_v26  ;;  %611 = vmatpush.msra.mxu2 %v2389_v26 }
  0xe8   :  { %518 = vmatmul.f32.vlgmr.msrb.gmra.mxu2 %v479_v54  ;;  %591 = vmatpush.msra.mxu1 %v2371_v22  ;;  %v1847_v54 = vld [vmem:[%s4402_s3 + $0x250] sm:$0xff] }
  0xe9   :  { %562 = vmatpush.msra.mxu0 %v2403_v28  ;;  %612 = vmatpush.msra.mxu2 %v2403_v28 }
  0xea   :  { %640 = vmatpush.msra.mxu3 %v2361_v20  ;;  %592 = vmatpush.msra.mxu1 %v2396_v27  ;;  %v1886_v20 = vld [vmem:[%s4402_s3 + $0x388] sm:$0xff] }
  0xeb   :  { %563 = vmatpush.msra.mxu0 %v2417_v30  ;;  %613 = vmatpush.msra.mxu2 %v2417_v30 }
  0xec   :  { %641 = vmatpush.msra.mxu3 %v2371_v22  ;;  %498 = vmatmul.f32.vlgmr.msrb.gmra.mxu1 %v2851_v55  ;;  %v1887_v22 = vld [vmem:[%s4402_s3 + $0x390] sm:$0xff]  ;;  %v1842_v55 = vld [vmem:[%s4402_s3 + $0x228] sm:$0xff] }
  0xed   :  { %564 = vmatpush.msra.mxu0 %v2439_v34  ;;  %614 = vmatpush.msra.mxu2 %v2439_v34 }
  0xee   :  { %547 = vmatmul.f32.vlgmr.msrb.gmra.mxu3 %v527_v57  ;;  %593 = vmatpush.msra.mxu1 %v2410_v29  ;;  %v1838_v57 = vld [vmem:[%s4402_s3 + $0x208] sm:$0xff] }
  0xef   :  { %565 = vmatpush.msra.mxu0 %v2452_v37  ;;  %615 = vmatpush.msra.mxu2 %v2452_v37 }
  0xf0   :  { %642 = vmatpush.msra.mxu3 %v2396_v27  ;;  %594 = vmatpush.msra.mxu1 %v2424_v31  ;;  %v1883_v27 = vld [vmem:[%s4402_s3 + $0x370] sm:$0xff] }
  0xf1   :  { %566 = vmatpush.msra.mxu0 %v2468_v39  ;;  %616 = vmatpush.msra.mxu2 %v2468_v39 }
  0xf2   :  { %643 = vmatpush.msra.mxu3 %v2410_v29  ;;  %617 = vmatmul.f32.vlgmr.msra.gmra.mxu2 %v578_v5  ;;  %v1869_v29 = vld [vmem:[%s4402_s3 + $0x300] sm:$0xff] }
  0xf3   :  { %651 = vmatpush.msrb.mxu0 %v2246_v3  ;;  %595 = vmatpush.msra.mxu1 %v2434_v33  ;;  %v628_v3 = vld.sshfl [vmem:[#allocation1 + $0x8] sm:$0xff pattern:$0x73625140]  ;;  %v1913_v5 = vld [vmem:[%s4406_s7 + $0xe0] sm:$0xff] }
  0xf4   :  { %644 = vmatpush.msra.mxu3 %v2424_v31  ;;  %567 = vmatmul.f32.vlgmr.msra.gmra.mxu0 %v528_v58  ;;  %v1879_v31 = vld [vmem:[%s4402_s3 + $0x350] sm:$0xff] }
  0xf5   :  { %652 = vmatpush.msrb.mxu0 %v2253_v4  ;;  %596 = vmatpush.msra.mxu1 %v2459_v38  ;;  %v1897_v4 = vld [vmem:[%s4402_s3 + $0x3e0] sm:$0xff]  ;;  %v1843_v58 = vld [vmem:[%s4402_s3 + $0x230] sm:$0xff] }
  0xf6   :  { %645 = vmatpush.msra.mxu3 %v2434_v33  ;;  %597 = vmatmul.f32.vlgmr.msra.gmra.mxu1 %v577_v7  ;;  %v1896_v33 = vld [vmem:[%s4402_s3 + $0x3d8] sm:$0xff] }
  0xf7   :  { %653 = vmatpush.msrb.mxu0 %v2267_v6  ;;  %738 = vmatpush.msrb.mxu1 %v1897_v4  ;;  %v1893_v6 = vld [vmem:[%s4402_s3 + $0x3c0] sm:$0xff]  ;;  %v1912_v7 = vld [vmem:[%s4406_s7 + $0xd8] sm:$0xff] }
  0xf8   :  { %646 = vmatpush.msra.mxu3 %v2459_v38  ;;  %758 = vmatpush.msrb.mxu2 %v1898_v11  ;;  %v1892_v38 = vld [vmem:[%s4402_s3 + $0x3b8] sm:$0xff] }
  0xf9   :  { %654 = vmatpush.msrb.mxu0 %v2281_v8  ;;  %647 = vmatmul.f32.vlgmr.msra.gmra.mxu3 %v627_v9  ;;  %v1889_v8 = vld [vmem:[%s4402_s3 + $0x3a0] sm:$0xff]  ;;  %v3129_v9 = vld [vmem:[%s4400_s1 + $0x78] sm:$0xff] }
  0xfa   :  { %739 = vmatpush.msrb.mxu1 %v1893_v6  ;;  %778 = vmatpush.msrb.mxu3 %v1899_v13  ;;  %v1864_v4 = vld [vmem:[%s4402_s3 + $0x2d8] sm:$0xff]  ;;  %v1910_v13 = vld [vmem:[%s4406_s7 + $0xc8] sm:$0xff] }
  0xfb   :  { %655 = vmatpush.msrb.mxu0 %v2295_v10  ;;  %v1885_v10 = vld [vmem:[%s4402_s3 + $0x380] sm:$0xff]  ;;  %v1860_v6 = vld [vmem:[%s4402_s3 + $0x2b8] sm:$0xff] }
  0xfc   :  { %740 = vmatpush.msrb.mxu1 %v1889_v8  ;;  %v1911_v8 = vld [vmem:[%s4406_s7 + $0xd0] sm:$0xff]  ;;  %v3153_v11 = vld [vmem:[%s4400_s1 + $0xf8] sm:$0xff] }
  0xfd   :  { %656 = vmatpush.msrb.mxu0 %v2309_v12  ;;  %v1894_v12 = vld [vmem:[%s4402_s3 + $0x3c8] sm:$0xff] }
  0xfe   :  { %741 = vmatpush.msrb.mxu1 %v1885_v10  ;;  %759 = vmatpush.msrb.mxu2 %v1894_v12  ;;  %v3147_v10 = vld [vmem:[%s4400_s1 + $0x70] sm:$0xff]  ;;  %v1856_v12 = vld [vmem:[%s4402_s3 + $0x298] sm:$0xff] }
  0xff   :  { %657 = vmatpush.msrb.mxu0 %v2331_v16  ;;  %v1890_v16 = vld [vmem:[%s4402_s3 + $0x3a8] sm:$0xff] }
 0x100   :  { %742 = vmatpush.msrb.mxu1 %v1881_v15  ;;  %760 = vmatpush.msrb.mxu2 %v1890_v16  ;;  %v3165_v15 = vld [vmem:[%s4400_s1 + $0x68] sm:$0xff]  ;;  %v3171_v16 = vld [vmem:[%s4400_s1 + $0xf0] sm:$0xff] }
 0x101   :  { %658 = vmatpush.msrb.mxu0 %v2340_v17  ;;  %v1895_v17 = vld [vmem:[%s4402_s3 + $0x3d0] sm:$0xff] }
 0x102   :  { %779 = vmatpush.msrb.mxu3 %v1895_v17  ;;  %761 = vmatpush.msrb.mxu2 %v1886_v20  ;;  %v1852_v17 = vld [vmem:[%s4402_s3 + $0x278] sm:$0xff]  ;;  %v3189_v20 = vld [vmem:[%s4400_s1 + $0xe8] sm:$0xff] }
 0x103   :  { %659 = vmatpush.msrb.mxu0 %v2354_v19  ;;  %v1877_v19 = vld [vmem:[%s4402_s3 + $0x340] sm:$0xff] }
 0x104   :  { %780 = vmatpush.msrb.mxu3 %v1891_v18  ;;  %743 = vmatpush.msrb.mxu1 %v1877_v19  ;;  %v1909_v18 = vld [vmem:[%s4406_s7 + $0xc0] sm:$0xff] }
 0x105   :  { %660 = vmatpush.msrb.mxu0 %v2376_v23  ;;  %v1873_v23 = vld [vmem:[%s4402_s3 + $0x320] sm:$0xff] }
 0x106   :  { %781 = vmatpush.msrb.mxu3 %v1887_v22  ;;  %744 = vmatpush.msrb.mxu1 %v1873_v23  ;;  %v3183_v19 = vld [vmem:[%s4400_s1 + $0x60] sm:$0xff]  ;;  %v1908_v22 = vld [vmem:[%s4406_s7 + $0xb8] sm:$0xff] }
 0x107   :  { %661 = vmatpush.msrb.mxu0 %v2389_v26  ;;  %v1882_v26 = vld [vmem:[%s4402_s3 + $0x368] sm:$0xff]  ;;  %v3198_v23 = vld [vmem:[%s4400_s1 + $0x58] sm:$0xff] }
 0x108   :  { %762 = vmatpush.msrb.mxu2 %v1882_v26  ;;  %782 = vmatpush.msrb.mxu3 %v1883_v27  ;;  %v3204_v26 = vld [vmem:[%s4400_s1 + $0xe0] sm:$0xff]  ;;  %v1907_v27 = vld [vmem:[%s4406_s7 + $0xb0] sm:$0xff] }
 0x109   :  { %662 = vmatpush.msrb.mxu0 %v2403_v28  ;;  %v1900_v28 = vld [vmem:[%s4402_s3 + $0x3f8] sm:$0xff]  ;;  %745 = vmatpush.msrb.mxu1 %v1869_v29 }
 0x10a   :  { %783 = vmatpush.msrb.mxu3 %v1879_v31  ;;  %v3219_v29 = vld [vmem:[%s4400_s1 + $0xd8] sm:$0xff]  ;;  %v3228_v31 = vld [vmem:[%s4400_s1 + $0x48] sm:$0xff] }
 0x10b   :  { %663 = vmatpush.msrb.mxu0 %v2417_v30  ;;  %v1878_v30 = vld [vmem:[%s4402_s3 + $0x348] sm:$0xff] }
 0x10c   :  { %763 = vmatpush.msrb.mxu2 %v1878_v30  ;;  %v1906_v30 = vld [vmem:[%s4406_s7 + $0xa8] sm:$0xff] }
 0x10d   :  { %664 = vmatpush.msrb.mxu0 %v2439_v34  ;;  %v1865_v34 = vld [vmem:[%s4402_s3 + $0x2e0] sm:$0xff] }
 0x10e   :  { %746 = vmatpush.msrb.mxu1 %v1865_v34  ;;  %v1905_v34 = vld [vmem:[%s4406_s7 + $0xa0] sm:$0xff] }
 0x10f   :  { %665 = vmatpush.msrb.mxu0 %v2452_v37  ;;  %v1874_v37 = vld [vmem:[%s4402_s3 + $0x328] sm:$0xff] }
 0x110   :  { %764 = vmatpush.msrb.mxu2 %v1874_v37  ;;  %747 = vmatpush.msrb.mxu1 %v1861_v60  ;;  %v3243_v37 = vld [vmem:[%s4400_s1 + $0x40] sm:$0xff]  ;;  %v1848_v60 = vld [vmem:[%s4402_s3 + $0x258] sm:$0xff] }
 0x111   :  { %666 = vmatpush.msrb.mxu0 %v2468_v39  ;;  %v1875_v39 = vld [vmem:[%s4402_s3 + $0x330] sm:$0xff] }
 0x112   :  { %667 = vmatmul.f32.vlgmr.msrb.gmra.mxu0 %v628_v3  ;;  %784 = vmatpush.msrb.mxu3 %v1875_v39  ;;  %v1839_v3 = vld [vmem:[%s4402_s3 + $0x210] sm:$0xff]  ;;  %v3255_v39 = vld [vmem:[%s4400_s1 + $0x38] sm:$0xff] }
 0x113   :  { %798 = vmatpush.msra.mxu0 %v1900_v28  ;;  %765 = vmatpush.msrb.mxu2 %v1870_v61  ;;  %v3213_v28 = vld [vmem:[%s4400_s1 + $0x50] sm:$0xff]  ;;  %v1904_v61 = vld [vmem:[%s4406_s7 + $0x98] sm:$0xff] }
 0x114   :  { %785 = vmatpush.msrb.mxu3 %v1871_v63  ;;  %748 = vmatpush.msrb.mxu1 %v1857_v0  ;;  %v3273_v63 = vld [vmem:[%s4400_s1 + $0x30] sm:$0xff]  ;;  %v1844_v0 = vld [vmem:[%s4402_s3 + $0x238] sm:$0xff] }
 0x115   :  { %799 = vmatpush.msra.mxu0 %v1896_v33  ;;  %766 = vmatpush.msrb.mxu2 %v1866_v14  ;;  %v3234_v33 = vld [vmem:[%s4400_s1 + $0xd0] sm:$0xff] }
 0x116   :  { %786 = vmatpush.msrb.mxu3 %v1867_v21  ;;  %749 = vmatpush.msrb.mxu1 %v1853_v24  ;;  %v1903_v14 = vld [vmem:[%s4406_s7 + $0x90] sm:$0xff]  ;;  %v3285_v21 = vld [vmem:[%s4400_s1 + $0xb8] sm:$0xff]  ;;  %v3291_v24 = vld [vmem:[%s4400_s1 + $0x28] sm:$0xff] }
 0x117   :  { %800 = vmatpush.msra.mxu0 %v1892_v38  ;;  %767 = vmatpush.msrb.mxu2 %v1862_v25  ;;  %v3249_v38 = vld [vmem:[%s4400_s1 + $0xc8] sm:$0xff] }
 0x118   :  { %787 = vmatpush.msrb.mxu3 %v1863_v35  ;;  %750 = vmatpush.msrb.mxu1 %v1849_v36  ;;  %v1840_v35 = vld [vmem:[%s4402_s3 + $0x218] sm:$0xff]  ;;  %v1902_v36 = vld [vmem:[%s4406_s7 + $0x88] sm:$0xff] }
 0x119   :  { %801 = vmatpush.msra.mxu0 %v1888_v59  ;;  %768 = vmatpush.msrb.mxu2 %v1858_v40  ;;  %v3261_v59 = vld [vmem:[%s4400_s1 + $0xc0] sm:$0xff]  ;;  %v3307_v40 = vld [vmem:[%s4400_s1 + $0xb0] sm:$0xff] }
 0x11a   :  { %788 = vmatpush.msrb.mxu3 %v1859_v41  ;;  %751 = vmatpush.msrb.mxu1 %v1845_v42  ;;  %v3313_v41 = vld [vmem:[%s4400_s1 + $0x20] sm:$0xff] }
 0x11b   :  { %802 = vmatpush.msra.mxu0 %v1884_v32  ;;  %769 = vmatpush.msrb.mxu2 %v1854_v43  ;;  %v1901_v42 = vld [vmem:[%s4406_s7 + $0x80] sm:$0xff]  ;;  %v3323_v43 = vld [vmem:[%s4400_s1 + $0xa8] sm:$0xff] }
 0x11c   :  { %789 = vmatpush.msrb.mxu3 %v1855_v45  ;;  %752 = vmatpush.msrb.mxu1 %v1841_v46  ;;  %v3331_v45 = vld [vmem:[%s4400_s1 + $0x18] sm:$0xff]  ;;  %v3338_v46 = vld [vmem:[%s4400_s1 + $0xa0] sm:$0xff] }
 0x11d   :  { %803 = vmatpush.msra.mxu0 %v1880_v44  ;;  %770 = vmatpush.msrb.mxu2 %v1850_v47 }
 0x11e   :  { %790 = vmatpush.msrb.mxu3 %v1851_v49  ;;  %753 = vmatpush.msrb.mxu1 %v1837_v50  ;;  %v3353_v49 = vld [vmem:[%s4400_s1 + $0x98] sm:$0xff] }
 0x11f   :  { %804 = vmatpush.msra.mxu0 %v1876_v48  ;;  %771 = vmatpush.msrb.mxu2 %v1846_v51  ;;  %v3346_v48 = vld [vmem:[%s4400_s1 + $0x10] sm:$0xff]  ;;  %v3359_v51 = vld [vmem:[%s4400_s1 + $0x8] sm:$0xff] }
 0x120   :  { %839 = vmatpush.msra.mxu1 %v1916_v53  ;;  %791 = vmatpush.msrb.mxu3 %v1847_v54  ;;  %v3374_v54 = vld [vmem:[%s4400_s1] sm:$0xff] }
 0x121   :  { %805 = vmatpush.msra.mxu0 %v1872_v52  ;;  %772 = vmatpush.msrb.mxu2 %v1842_v55  ;;  %v3366_v52 = vld [vmem:[%s4400_s1 + $0x90] sm:$0xff]  ;;  %v3381_v55 = vld [vmem:[%s4400_s1 + $0x88] sm:$0xff] }
 0x122   :  { %840 = vmatpush.msra.mxu1 %v1915_v56  ;;  %792 = vmatpush.msrb.mxu3 %v1843_v58 }
 0x123   :  { %773 = vmatpush.msrb.mxu2 %v1838_v57  ;;  %806 = vmatpush.msra.mxu0 %v1868_v2 }
 0x124   :  { %841 = vmatpush.msra.mxu1 %v1914_v1  ;;  %793 = vmatpush.msrb.mxu3 %v1839_v3  ;;  %v3388_v1 = vld [vmem:[%s4400_s1 + $0x80] sm:$0xff] }
 0x125   :  { %868 = vmatpush.msra.mxu2 %v3129_v9  ;;  %807 = vmatpush.msra.mxu0 %v1864_v4 }
 0x126   :  { %842 = vmatpush.msra.mxu1 %v1913_v5  ;;  %888 = vmatpush.msra.mxu3 %v3153_v11 }
 0x127   :  { %869 = vmatpush.msra.mxu2 %v3147_v10  ;;  %808 = vmatpush.msra.mxu0 %v1860_v6 }
 0x128   :  { %843 = vmatpush.msra.mxu1 %v1912_v7  ;;  %889 = vmatpush.msra.mxu3 %v3171_v16 }
 0x129   :  { %870 = vmatpush.msra.mxu2 %v3165_v15  ;;  %809 = vmatpush.msra.mxu0 %v1856_v12 }
 0x12a   :  { %844 = vmatpush.msra.mxu1 %v1911_v8  ;;  %890 = vmatpush.msra.mxu3 %v3189_v20 }
 0x12b   :  { %871 = vmatpush.msra.mxu2 %v3183_v19  ;;  %810 = vmatpush.msra.mxu0 %v1852_v17 }
 0x12c   :  { %845 = vmatpush.msra.mxu1 %v1910_v13  ;;  %891 = vmatpush.msra.mxu3 %v3204_v26 }
 0x12d   :  { %872 = vmatpush.msra.mxu2 %v3198_v23  ;;  %811 = vmatpush.msra.mxu0 %v1848_v60 }
 0x12e   :  { %846 = vmatpush.msra.mxu1 %v1909_v18  ;;  %892 = vmatpush.msra.mxu3 %v3219_v29 }
 0x12f   :  { %873 = vmatpush.msra.mxu2 %v3213_v28  ;;  %812 = vmatpush.msra.mxu0 %v1844_v0 }
 0x130   :  { %847 = vmatpush.msra.mxu1 %v1908_v22  ;;  %893 = vmatpush.msra.mxu3 %v3234_v33 }
 0x131   :  { %874 = vmatpush.msra.mxu2 %v3228_v31  ;;  %813 = vmatpush.msra.mxu0 %v1840_v35 }
 0x132   :  { %848 = vmatpush.msra.mxu1 %v1907_v27  ;;  %894 = vmatpush.msra.mxu3 %v3249_v38  ;;  %v1917_v27 = vld [vmem:[%s4399_s0 + $0x20] sm:$0xf] }
 0x133   :  { %875 = vmatpush.msra.mxu2 %v3243_v37  ;;  %917 = vmatpush.msrb.mxu0 %v3129_v9  ;;  %863 = vst [vmem:[#allocation1] ss:$4 sm:$0xff] %v1917_v27  ;;  %v1961_v27 = vld [vmem:[%s4402_s3 + $0x540] sm:$0xff] }
 0x134   :  { %849 = vmatpush.msra.mxu1 %v1906_v30  ;;  %895 = vmatpush.msra.mxu3 %v3261_v59 }
 0x135   :  { %876 = vmatpush.msra.mxu2 %v3255_v39  ;;  %918 = vmatpush.msrb.mxu0 %v3147_v10 }
 0x136   :  { %850 = vmatpush.msra.mxu1 %v1905_v34  ;;  %896 = vmatpush.msra.mxu3 %v3285_v21 }
 0x137   :  { %877 = vmatpush.msra.mxu2 %v3273_v63  ;;  %919 = vmatpush.msrb.mxu0 %v3165_v15 }
 0x138   :  { %851 = vmatpush.msra.mxu1 %v1904_v61  ;;  %897 = vmatpush.msra.mxu3 %v3307_v40 }
 0x139   :  { %878 = vmatpush.msra.mxu2 %v3291_v24  ;;  %920 = vmatpush.msrb.mxu0 %v3183_v19 }
 0x13a   :  { %852 = vmatpush.msra.mxu1 %v1903_v14  ;;  %898 = vmatpush.msra.mxu3 %v3323_v43  ;;  %v864_v35 = vld.sshfl [vmem:[#allocation1] sm:$0xff pattern:$0x73625140] }
 0x13b   :  { %879 = vmatpush.msra.mxu2 %v3313_v41  ;;  %921 = vmatpush.msrb.mxu0 %v3198_v23 }
 0x13c   :  { %853 = vmatpush.msra.mxu1 %v1902_v36  ;;  %899 = vmatpush.msra.mxu3 %v3338_v46  ;;  %v3408_v36 = vld.sshfl [vmem:[#allocation1 + $0x8] sm:$0xff pattern:$0x73625140] }
 0x13d   :  { %880 = vmatpush.msra.mxu2 %v3331_v45  ;;  %922 = vmatpush.msrb.mxu0 %v3213_v28 }
 0x13e   :  { %854 = vmatpush.msra.mxu1 %v1901_v42  ;;  %900 = vmatpush.msra.mxu3 %v3353_v49  ;;  %v1918_v42 = vld [vmem:[%s4399_s0 + $0x24] sm:$0xf] }
 0x13f   :  { %881 = vmatpush.msra.mxu2 %v3346_v48  ;;  %923 = vmatpush.msrb.mxu0 %v3228_v31  ;;  %912 = vst [vmem:[#allocation1] ss:$4 sm:$0xff] %v1918_v42  ;;  %v1971_v42 = vld [vmem:[%s4402_s3 + $0x590] sm:$0xff] }
 0x140   :  { %901 = vmatpush.msra.mxu3 %v3366_v52 }
 0x141   :  { %882 = vmatpush.msra.mxu2 %v3359_v51  ;;  %924 = vmatpush.msrb.mxu0 %v3243_v37 }
 0x142   :  { %902 = vmatpush.msra.mxu3 %v3381_v55 }
 0x143   :  { %883 = vmatpush.msra.mxu2 %v3374_v54  ;;  %925 = vmatpush.msrb.mxu0 %v3255_v39 }
 0x144   :  { %903 = vmatpush.msra.mxu3 %v3388_v1 }
 0x145   :  { %926 = vmatpush.msrb.mxu0 %v3273_v63 }
 0x147   :  { %927 = vmatpush.msrb.mxu0 %v3291_v24 }
 0x149   :  { %928 = vmatpush.msrb.mxu0 %v3313_v41 }
 0x14b   :  { %929 = vmatpush.msrb.mxu0 %v3331_v45 }
 0x14d   :  { %930 = vmatpush.msrb.mxu0 %v3346_v48 }
 0x14e   :  { %v3294_v25 = vpop.f32.mrf.mxu0  ;;  %v3296_v32 = vpop.f32.mrf.mxu1 }
 0x14f   :  { %931 = vmatpush.msrb.mxu0 %v3359_v51 }
 0x151   :  { %932 = vmatpush.msrb.mxu0 %v3374_v54 }
 0x155   :  { %v3326_v44 = vpop.f32.mrf.mxu2  ;;  %v3341_v47 = vpop.f32.mrf.mxu3 }
 0x157   :  { %v3369_v53 = vpop.f32.mrf.mxu0 }
 0x169   :  { %v499_v50 = vpop.f32.mrf.mxu1 }
 0x16a   :  { %v500_v58 = vadd.f32 %v2824_v62, %v499_v50  ;;  %v1919_v50 = vld [vmem:[%s4399_s0 + $0x28] sm:$0xf] }
 0x16b   :  { %v519_v56 = vpop.f32.mrf.mxu2 }
 0x16c   :  { %v520_v3 = vadd.f32 %v519_v56, %v500_v58  ;;  %v913_v56 = vld.sshfl [vmem:[#allocation1] sm:$0xff pattern:$0x73625140] }
 0x16e   :  { %v522_v13 = vmax.f32 %v520_v3, 0.0 }
 0x171   :  { %v548_v57 = vpop.f32.mrf.mxu3  ;;  %v568_v5 = vpop.f32.mrf.mxu0 }
 0x172   :  { %v549_v2 = vadd.f32 %v2824_v62, %v548_v57  ;;  %v914_v57 = vld.sshfl [vmem:[#allocation1 + $0x8] sm:$0xff pattern:$0x73625140] }
 0x173   :  { %v598_v7 = vpop.f32.mrf.mxu1  ;;  %962 = vst [vmem:[#allocation1] ss:$4 sm:$0xff] %v1919_v50  ;;  %v1976_v50 = vld [vmem:[%s4402_s3 + $0x5b8] sm:$0xff] }
 0x174   :  { %v569_v4 = vadd.f32 %v568_v5, %v549_v2  ;;  %v599_v6 = vadd.f32 %v2824_v62, %v598_v7  ;;  %v1920_v5 = vld [vmem:[%s4399_s0 + $0x2c] sm:$0xf] }
 0x175   :  { %v618_v8 = vpop.f32.mrf.mxu2 }
 0x176   :  { %v571_v17 = vmax.f32 %v569_v4, 0.0  ;;  %v619_v18 = vadd.f32 %v618_v8, %v599_v6  ;;  %v1981_v4 = vld [vmem:[%s4402_s3 + $0x5e0] sm:$0xff] }
 0x177   :  { %v1977_v6 = vld [vmem:[%s4402_s3 + $0x5c0] sm:$0xff] }
 0x178   :  { %v572_v30 = vmax.f32 %v522_v13, %v571_v17  ;;  %v621_v34 = vmax.f32 %v619_v18, 0.0  ;;  %v1973_v8 = vld [vmem:[%s4402_s3 + $0x5a0] sm:$0xff]  ;;  %v1982_v13 = vld [vmem:[%s4402_s3 + $0x5e8] sm:$0xff] }
 0x179   :  { %v1965_v17 = vld [vmem:[%s4402_s3 + $0x560] sm:$0xff]  ;;  %v1978_v18 = vld [vmem:[%s4402_s3 + $0x5c8] sm:$0xff] }
 0x17a   :  { %v622_v0 = vmax.f32 %v572_v30, %v621_v34  ;;  %v963_v58 = vld.sshfl [vmem:[#allocation1] sm:$0xff pattern:$0x73625140]  ;;  %v964_v2 = vld.sshfl [vmem:[#allocation1 + $0x8] sm:$0xff pattern:$0x73625140] }
 0x17b   :  { %1012 = vst [vmem:[#allocation1] ss:$4 sm:$0xff] %v1920_v5  ;;  %v1983_v30 = vld [vmem:[%s4402_s3 + $0x5f0] sm:$0xff]  ;;  %v1970_v34 = vld [vmem:[%s4402_s3 + $0x588] sm:$0xff] }
 0x17c   :  { %v648_v12 = vpop.f32.mrf.mxu3  ;;  %v1958_v5 = vld [vmem:[%s4402_s3 + $0x528] sm:$0xff] }
 0x17d   :  { %v649_v22 = vadd.f32 %v2824_v62, %v648_v12  ;;  %v1969_v12 = vld [vmem:[%s4402_s3 + $0x580] sm:$0xff] }
 0x182   :  { %v1013_v7 = vld.sshfl [vmem:[#allocation1] sm:$0xff pattern:$0x73625140]  ;;  %v1014_v3 = vld.sshfl [vmem:[#allocation1 + $0x8] sm:$0xff pattern:$0x73625140] }
 0x18f   :  { %v668_v60 = vpop.f32.mrf.mxu0 }
 0x190   :  { %v669_v61 = vadd.f32 %v668_v60, %v649_v22  ;;  %v1974_v22 = vld [vmem:[%s4402_s3 + $0x5a8] sm:$0xff]  ;;  %v1979_v60 = vld [vmem:[%s4402_s3 + $0x5d0] sm:$0xff] }
 0x192   :  { %v671_v14 = vmax.f32 %v669_v61, 0.0  ;;  %v1984_v61 = vld [vmem:[%s4402_s3 + $0x5f8] sm:$0xff] }
 0x194   :  { %v672_v62 = vmax.f32 %v622_v0, %v671_v14  ;;  %v1957_v0 = vld [vmem:[%s4402_s3 + $0x520] sm:$0xff]  ;;  %v1975_v14 = vld [vmem:[%s4402_s3 + $0x5b0] sm:$0xff] }
 0x196   :  { %754 = vmatmul.f32.vlgmr.msrb.gmra.mxu1 %v672_v62  ;;  %774 = vmatmul.f32.vlgmr.msrb.gmra.mxu2 %v672_v62 }
 0x197   :  { %794 = vmatmul.f32.vlgmr.msrb.gmra.mxu3 %v672_v62  ;;  %814 = vmatmul.f32.vlgmr.msra.gmra.mxu0 %v672_v62 }
 0x198   :  { %937 = vmatpush.msrb.mxu1 %v3153_v11  ;;  %967 = vmatpush.msrb.mxu2 %v3129_v9 }
 0x199   :  { %987 = vmatpush.msrb.mxu3 %v3153_v11  ;;  %1017 = vmatpush.msra.mxu0 %v3129_v9 }
 0x19a   :  { %938 = vmatpush.msrb.mxu1 %v3171_v16  ;;  %968 = vmatpush.msrb.mxu2 %v3147_v10 }
 0x19b   :  { %988 = vmatpush.msrb.mxu3 %v3171_v16  ;;  %1018 = vmatpush.msra.mxu0 %v3147_v10 }
 0x19c   :  { %939 = vmatpush.msrb.mxu1 %v3189_v20  ;;  %969 = vmatpush.msrb.mxu2 %v3165_v15 }
 0x19d   :  { %989 = vmatpush.msrb.mxu3 %v3189_v20  ;;  %1019 = vmatpush.msra.mxu0 %v3165_v15 }
 0x19e   :  { %940 = vmatpush.msrb.mxu1 %v3204_v26  ;;  %970 = vmatpush.msrb.mxu2 %v3183_v19 }
 0x19f   :  { %855 = vmatmul.f32.vlgmr.msra.gmra.mxu1 %v672_v62  ;;  %990 = vmatpush.msrb.mxu3 %v3204_v26  ;;  %v1966_v62 = vld [vmem:[%s4402_s3 + $0x568] sm:$0xff] }
 0x1a0   :  { %941 = vmatpush.msrb.mxu1 %v3219_v29  ;;  %971 = vmatpush.msrb.mxu2 %v3198_v23 }
 0x1a1   :  { %991 = vmatpush.msrb.mxu3 %v3219_v29  ;;  %1020 = vmatpush.msra.mxu0 %v3183_v19 }
 0x1a2   :  { %942 = vmatpush.msrb.mxu1 %v3234_v33  ;;  %972 = vmatpush.msrb.mxu2 %v3213_v28 }
 0x1a3   :  { %992 = vmatpush.msrb.mxu3 %v3234_v33  ;;  %1021 = vmatpush.msra.mxu0 %v3198_v23 }
 0x1a4   :  { %943 = vmatpush.msrb.mxu1 %v3249_v38  ;;  %973 = vmatpush.msrb.mxu2 %v3228_v31 }
 0x1a5   :  { %993 = vmatpush.msrb.mxu3 %v3249_v38  ;;  %884 = vmatmul.f32.vlgmr.msra.gmra.mxu2 %v864_v35  ;;  %v1980_v35 = vld [vmem:[%s4402_s3 + $0x5d8] sm:$0xff] }
 0x1a6   :  { %944 = vmatpush.msrb.mxu1 %v3261_v59  ;;  %974 = vmatpush.msrb.mxu2 %v3243_v37 }
 0x1a7   :  { %994 = vmatpush.msrb.mxu3 %v3261_v59  ;;  %1022 = vmatpush.msra.mxu0 %v3213_v28 }
 0x1a8   :  { %945 = vmatpush.msrb.mxu1 %v3285_v21  ;;  %975 = vmatpush.msrb.mxu2 %v3255_v39 }
 0x1a9   :  { %995 = vmatpush.msrb.mxu3 %v3285_v21  ;;  %1023 = vmatpush.msra.mxu0 %v3228_v31 }
 0x1aa   :  { %946 = vmatpush.msrb.mxu1 %v3307_v40  ;;  %976 = vmatpush.msrb.mxu2 %v3273_v63 }
 0x1ab   :  { %996 = vmatpush.msrb.mxu3 %v3307_v40  ;;  %1024 = vmatpush.msra.mxu0 %v3243_v37 }
 0x1ac   :  { %947 = vmatpush.msrb.mxu1 %v3323_v43  ;;  %977 = vmatpush.msrb.mxu2 %v3291_v24 }
 0x1ad   :  { %997 = vmatpush.msrb.mxu3 %v3323_v43  ;;  %1025 = vmatpush.msra.mxu0 %v3255_v39 }
 0x1ae   :  { %948 = vmatpush.msrb.mxu1 %v3338_v46  ;;  %978 = vmatpush.msrb.mxu2 %v3313_v41 }
 0x1af   :  { %998 = vmatpush.msrb.mxu3 %v3338_v46  ;;  %1026 = vmatpush.msra.mxu0 %v3273_v63 }
 0x1b0   :  { %949 = vmatpush.msrb.mxu1 %v3353_v49  ;;  %979 = vmatpush.msrb.mxu2 %v3331_v45 }
 0x1b1   :  { %904 = vmatmul.f32.vlgmr.msra.gmra.mxu3 %v3408_v36  ;;  %1027 = vmatpush.msra.mxu0 %v3291_v24  ;;  %v1953_v36 = vld [vmem:[%s4402_s3 + $0x500] sm:$0xff] }
 0x1b2   :  { %950 = vmatpush.msrb.mxu1 %v3366_v52  ;;  %980 = vmatpush.msrb.mxu2 %v3346_v48 }
 0x1b3   :  { %999 = vmatpush.msrb.mxu3 %v3353_v49  ;;  %933 = vmatmul.f32.vlgmr.msrb.gmra.mxu0 %v913_v56  ;;  %v1962_v56 = vld [vmem:[%s4402_s3 + $0x548] sm:$0xff] }
 0x1b4   :  { %951 = vmatpush.msrb.mxu1 %v3381_v55  ;;  %981 = vmatpush.msrb.mxu2 %v3359_v51 }
 0x1b5   :  { %1000 = vmatpush.msrb.mxu3 %v3366_v52  ;;  %1028 = vmatpush.msra.mxu0 %v3313_v41 }
 0x1b6   :  { %952 = vmatpush.msrb.mxu1 %v3388_v1  ;;  %982 = vmatpush.msrb.mxu2 %v3374_v54 }
 0x1b7   :  { %1001 = vmatpush.msrb.mxu3 %v3381_v55  ;;  %983 = vmatmul.f32.vlgmr.msrb.gmra.mxu2 %v963_v58  ;;  %v1967_v58 = vld [vmem:[%s4402_s3 + $0x570] sm:$0xff] }
 0x1b8   :  { %1037 = vmatpush.msra.mxu1 %v3153_v11  ;;  %1029 = vmatpush.msra.mxu0 %v3331_v45 }
 0x1b9   :  { %953 = vmatmul.f32.vlgmr.msrb.gmra.mxu1 %v914_v57  ;;  %1002 = vmatpush.msrb.mxu3 %v3388_v1  ;;  %v1949_v57 = vld [vmem:[%s4402_s3 + $0x4e0] sm:$0xff] }
 0x1ba   :  { %1038 = vmatpush.msra.mxu1 %v3171_v16  ;;  %1003 = vmatmul.f32.vlgmr.msrb.gmra.mxu3 %v964_v2  ;;  %v1972_v2 = vld [vmem:[%s4402_s3 + $0x598] sm:$0xff] }
 0x1bb   :  { %1030 = vmatpush.msra.mxu0 %v3346_v48  ;;  %1124 = vmatpush.msra.mxu2 %v1981_v4  ;;  %v1954_v4 = vld [vmem:[%s4402_s3 + $0x508] sm:$0xff] }
 0x1bc   :  { %1039 = vmatpush.msra.mxu1 %v3189_v20  ;;  %1144 = vmatpush.msra.mxu3 %v1982_v13 }
 0x1bd   :  { %1031 = vmatpush.msra.mxu0 %v3359_v51  ;;  %1125 = vmatpush.msra.mxu2 %v1977_v6  ;;  %v1941_v6 = vld [vmem:[%s4402_s3 + $0x4a0] sm:$0xff] }
 0x1be   :  { %1040 = vmatpush.msra.mxu1 %v3204_v26  ;;  %1145 = vmatpush.msra.mxu3 %v1978_v18  ;;  %v1933_v18 = vld [vmem:[%s4402_s3 + $0x460] sm:$0xff] }
 0x1bf   :  { %1032 = vmatpush.msra.mxu0 %v3374_v54  ;;  %1126 = vmatpush.msra.mxu2 %v1973_v8 }
 0x1c0   :  { %1041 = vmatpush.msra.mxu1 %v3219_v29  ;;  %1033 = vmatmul.f32.vlgmr.msra.gmra.mxu0 %v1013_v7  ;;  %v74_v7 = vld [vmem:[%s4403_s4] sm:$0xf] }
 0x1c1   :  { %1127 = vmatpush.msra.mxu2 %v1969_v12  ;;  %1164 = vmatpush.msrb.mxu0 %v1983_v30  ;;  %v422_v8 = vperm.slane %v74_v7, 0  ;;  %v1950_v12 = vld [vmem:[%s4402_s3 + $0x4e8] sm:$0xff]  ;;  %v425_v13 = vperm.slane %v74_v7, 3 }
 0x1c2   :  { %1042 = vmatpush.msra.mxu1 %v3234_v33  ;;  %1146 = vmatpush.msra.mxu3 %v1974_v22 }
 0x1c3   :  { %1128 = vmatpush.msra.mxu2 %v1965_v17  ;;  %1165 = vmatpush.msrb.mxu0 %v1979_v60  ;;  %v1937_v17 = vld [vmem:[%s4402_s3 + $0x480] sm:$0xff]  ;;  %v430_v22 = vadd.f32 %v422_v8, %v3294_v25  ;;  %v423_v60 = vperm.slane %v74_v7, 1  ;;  %v1999_v8 = vld [vmem:[%s4406_s7 + $0x170] sm:$0xff] }
 0x1c4   :  { %1043 = vmatpush.msra.mxu1 %v3249_v38  ;;  %1147 = vmatpush.msra.mxu3 %v1970_v34  ;;  %v1929_v34 = vld [vmem:[%s4402_s3 + $0x440] sm:$0xff] }
 0x1c5   :  { %1129 = vmatpush.msra.mxu2 %v1961_v27  ;;  %1166 = vmatpush.msrb.mxu0 %v1975_v14  ;;  %v433_v27 = vadd.f32 %v425_v13, %v3341_v47  ;;  %v424_v14 = vperm.slane %v74_v7, 2  ;;  %v1925_v25 = vld [vmem:[%s4402_s3 + $0x420] sm:$0xff] }
 0x1c6   :  { %1044 = vmatpush.msra.mxu1 %v3261_v59  ;;  %1148 = vmatpush.msra.mxu3 %v1966_v62  ;;  %v2091_v47 = vld [vmem:[%s4407_s8] ss:$0 sm:$0xff] }
 0x1c7   :  { %1130 = vmatpush.msra.mxu2 %v1957_v0  ;;  %1167 = vmatpush.msrb.mxu0 %v1971_v42  ;;  %v1963_v42 = vld [vmem:[%s4402_s3 + $0x550] sm:$0xff] }
 0x1c8   :  { %1045 = vmatpush.msra.mxu1 %v3285_v21  ;;  %1149 = vmatpush.msra.mxu3 %v1962_v56  ;;  %v431_v56 = vadd.f32 %v423_v60, %v3296_v32  ;;  %v1964_v32 = vld [vmem:[%s4402_s3 + $0x558] sm:$0xff]  ;;  %v1997_v60 = vld [vmem:[%s4406_s7 + $0x160] sm:$0xff] }
 0x1c9   :  { %1131 = vmatpush.msra.mxu2 %v1953_v36  ;;  %1168 = vmatpush.msrb.mxu0 %v1967_v58  ;;  %v1946_v36 = vld [vmem:[%s4402_s3 + $0x4c8] sm:$0xff] }
 0x1ca   :  { %1046 = vmatpush.msra.mxu1 %v3307_v40  ;;  %1150 = vmatpush.msra.mxu3 %v1958_v5  ;;  %v1942_v58 = vld [vmem:[%s4402_s3 + $0x4a8] sm:$0xff]  ;;  %v432_v5 = vadd.f32 %v424_v14, %v3326_v44  ;;  %v1955_v44 = vld [vmem:[%s4402_s3 + $0x510] sm:$0xff] }
 0x1cb   :  { %1132 = vmatpush.msra.mxu2 %v1949_v57  ;;  %v2000_v57 = vld [vmem:[%s4406_s7 + $0x178] sm:$0xff]  ;;  %1169 = vmatpush.msrb.mxu0 %v1963_v42  ;;  %v1995_v14 = vld [vmem:[%s4406_s7 + $0x150] sm:$0xff] }
 0x1cc   :  { %1047 = vmatpush.msra.mxu1 %v3323_v43  ;;  %1151 = vmatpush.msra.mxu3 %v1954_v4  ;;  %v1943_v42 = vld [vmem:[%s4402_s3 + $0x4b0] sm:$0xff] }
 0x1ce   :  { %1048 = vmatpush.msra.mxu1 %v3338_v46  ;;  %1152 = vmatpush.msra.mxu3 %v1950_v12  ;;  %v473_v12 = vadd.f32 %v2091_v47, %v3369_v53  ;;  %v1951_v53 = vld [vmem:[%s4402_s3 + $0x4f0] sm:$0xff] }
 0x1cf   :  { %v1947_v47 = vld [vmem:[%s4402_s3 + $0x4d0] sm:$0xff] }
 0x1d0   :  { %1049 = vmatpush.msra.mxu1 %v3353_v49  ;;  %1153 = vmatpush.msra.mxu3 %v1946_v36  ;;  %v1926_v36 = vld [vmem:[%s4402_s3 + $0x428] sm:$0xff] }
 0x1d2   :  { %1050 = vmatpush.msra.mxu1 %v3366_v52  ;;  %1154 = vmatpush.msra.mxu3 %v1942_v58  ;;  %v1939_v58 = vld [vmem:[%s4402_s3 + $0x490] sm:$0xff] }
 0x1d4   :  { %1051 = vmatpush.msra.mxu1 %v3381_v55 }
 0x1d6   :  { %1052 = vmatpush.msra.mxu1 %v3388_v1 }
 0x1d7   :  { %1053 = vmatmul.f32.vlgmr.msra.gmra.mxu1 %v1014_v3  ;;  %v1945_v3 = vld [vmem:[%s4402_s3 + $0x4c0] sm:$0xff] }
 0x1d8   :  { %1184 = vmatpush.msrb.mxu1 %v1984_v61  ;;  %1133 = vmatpush.msra.mxu2 %v1945_v3  ;;  %v1938_v3 = vld [vmem:[%s4402_s3 + $0x488] sm:$0xff] }
 0x1d9   :  { %1155 = vmatpush.msra.mxu3 %v1938_v3  ;;  %v1992_v3 = vld [vmem:[%s4406_s7 + $0x138] sm:$0xff] }
 0x1da   :  { %1185 = vmatpush.msrb.mxu1 %v1980_v35  ;;  %1134 = vmatpush.msra.mxu2 %v1941_v6  ;;  %v1921_v35 = vld [vmem:[%s4402_s3 + $0x400] sm:$0xff] }
 0x1dc   :  { %1186 = vmatpush.msrb.mxu1 %v1976_v50  ;;  %1135 = vmatpush.msra.mxu2 %v1937_v17  ;;  %v1968_v50 = vld [vmem:[%s4402_s3 + $0x578] sm:$0xff] }
 0x1dd   :  { %v1960_v17 = vld [vmem:[%s4402_s3 + $0x538] sm:$0xff] }
 0x1de   :  { %1187 = vmatpush.msrb.mxu1 %v1972_v2  ;;  %1136 = vmatpush.msra.mxu2 %v1933_v18  ;;  %v1959_v2 = vld [vmem:[%s4402_s3 + $0x530] sm:$0xff] }
 0x1df   :  { %1170 = vmatpush.msrb.mxu0 %v1959_v2  ;;  %v1944_v2 = vld [vmem:[%s4402_s3 + $0x4b8] sm:$0xff] }
 0x1e0   :  { %1137 = vmatpush.msra.mxu2 %v1929_v34  ;;  %1188 = vmatpush.msrb.mxu1 %v1968_v50  ;;  %v1956_v34 = vld [vmem:[%s4402_s3 + $0x518] sm:$0xff]  ;;  %v1994_v50 = vld [vmem:[%s4406_s7 + $0x148] sm:$0xff] }
 0x1e1   :  { %1171 = vmatpush.msrb.mxu0 %v1955_v44  ;;  %v1989_v44 = vld [vmem:[%s4406_s7 + $0x120] sm:$0xff] }
 0x1e2   :  { %1138 = vmatpush.msra.mxu2 %v1925_v25  ;;  %1189 = vmatpush.msrb.mxu1 %v1964_v32  ;;  %v1930_v25 = vld [vmem:[%s4402_s3 + $0x448] sm:$0xff]  ;;  %v1940_v32 = vld [vmem:[%s4402_s3 + $0x498] sm:$0xff] }
 0x1e3   :  { %1172 = vmatpush.msrb.mxu0 %v1951_v53  ;;  %v1987_v53 = vld [vmem:[%s4406_s7 + $0x110] sm:$0xff] }
 0x1e4   :  { %1139 = vmatpush.msra.mxu2 %v1921_v35  ;;  %1190 = vmatpush.msrb.mxu1 %v1960_v17  ;;  %v1952_v35 = vld [vmem:[%s4402_s3 + $0x4f8] sm:$0xff] }
 0x1e5   :  { %1173 = vmatpush.msrb.mxu0 %v1947_v47  ;;  %v1936_v17 = vld [vmem:[%s4402_s3 + $0x478] sm:$0xff] }
 0x1e6   :  { %1225 = vmatpush.msrb.mxu2 %v2000_v57  ;;  %1191 = vmatpush.msrb.mxu1 %v1956_v34  ;;  %v1922_v57 = vld [vmem:[%s4402_s3 + $0x408] sm:$0xff]  ;;  %v1923_v34 = vld [vmem:[%s4402_s3 + $0x410] sm:$0xff] }
 0x1e7   :  { %1174 = vmatpush.msrb.mxu0 %v1943_v42  ;;  %v3791_v42 = vld [vmem:[%s4401_s2] ss:$0 sm:$0xff] }
 0x1e8   :  { %1226 = vmatpush.msrb.mxu2 %v1999_v8  ;;  %1192 = vmatpush.msrb.mxu1 %v1952_v35  ;;  %v1990_v8 = vld [vmem:[%s4406_s7 + $0x128] sm:$0xff] }
 0x1e9   :  { %1175 = vmatpush.msrb.mxu0 %v1939_v58 }
 0x213   :  { %v755_v30 = vpop.f32.mrf.mxu1 }
 0x214   :  { %v3601_v61 = vadd.f32 %v755_v30, %v430_v22  ;;  %v815_v0 = vpop.f32.mrf.mxu0  ;;  %v1998_v22 = vld [vmem:[%s4406_s7 + $0x168] sm:$0xff] }
 0x215   :  { %v3603_v62 = vadd.f32 %v815_v0, %v433_v27  ;;  %v1934_v27 = vld [vmem:[%s4402_s3 + $0x468] sm:$0xff]  ;;  %1227 = vmatpush.msrb.mxu2 %v1998_v22  ;;  %v1996_v0 = vld [vmem:[%s4406_s7 + $0x158] sm:$0xff]  ;;  %v1927_v22 = vld [vmem:[%s4402_s3 + $0x430] sm:$0xff] }
 0x216   :  { %1156 = vmatpush.msra.mxu3 %v1934_v27  ;;  %v1932_v27 = vld [vmem:[%s4402_s3 + $0x458] sm:$0xff] }
 0x217   :  { %1228 = vmatpush.msrb.mxu2 %v1997_v60  ;;  %v1928_v60 = vld [vmem:[%s4402_s3 + $0x438] sm:$0xff] }
 0x218   :  { %1157 = vmatpush.msra.mxu3 %v1930_v25  ;;  %v1985_v25 = vld [vmem:[%s4406_s7 + $0x100] sm:$0xff] }
 0x219   :  { %v775_v7 = vpop.f32.mrf.mxu2  ;;  %1229 = vmatpush.msrb.mxu2 %v1996_v0  ;;  %v1986_v0 = vld [vmem:[%s4406_s7 + $0x108] sm:$0xff] }
 0x21a   :  { %v3640_v4 = vadd.f32 %v775_v7, %v431_v56  ;;  %v795_v6 = vpop.f32.mrf.mxu3  ;;  %v1948_v56 = vld [vmem:[%s4402_s3 + $0x4d8] sm:$0xff]  ;;  %1158 = vmatpush.msra.mxu3 %v1926_v36  ;;  %v1935_v7 = vld [vmem:[%s4402_s3 + $0x470] sm:$0xff] }
 0x21b   :  { %v3649_v13 = vadd.f32 %v795_v6, %v432_v5  ;;  %1230 = vmatpush.msrb.mxu2 %v1995_v14  ;;  %v1993_v5 = vld [vmem:[%s4406_s7 + $0x140] sm:$0xff]  ;;  %1193 = vmatpush.msrb.mxu1 %v1948_v56  ;;  %v1991_v6 = vld [vmem:[%s4406_s7 + $0x130] sm:$0xff]  ;;  %v1924_v14 = vld [vmem:[%s4402_s3 + $0x418] sm:$0xff] }
 0x21c   :  { %v856_v18 = vpop.f32.mrf.mxu1  ;;  %1159 = vmatpush.msra.mxu3 %v1922_v57  ;;  %1176 = vmatpush.msrb.mxu0 %v1935_v7 }
 0x21d   :  { %v3663_v30 = vadd.f32 %v856_v18, %v473_v12  ;;  %1231 = vmatpush.msrb.mxu2 %v1994_v50  ;;  %1194 = vmatpush.msrb.mxu1 %v1944_v2  ;;  %v1931_v12 = vld [vmem:[%s4402_s3 + $0x450] sm:$0xff]  ;;  %v1988_v18 = vld [vmem:[%s4406_s7 + $0x118] sm:$0xff] }
 0x21e   :  { %1254 = vmatpush.msrb.mxu3 %v3129_v9  ;;  %1177 = vmatpush.msrb.mxu0 %v1931_v12 }
 0x21f   :  { %1232 = vmatpush.msrb.mxu2 %v1993_v5  ;;  %1195 = vmatpush.msrb.mxu1 %v1940_v32 }
 0x220   :  { %1255 = vmatpush.msrb.mxu3 %v3147_v10  ;;  %1178 = vmatpush.msrb.mxu0 %v1927_v22 }
 0x221   :  { %1233 = vmatpush.msrb.mxu2 %v1992_v3  ;;  %1196 = vmatpush.msrb.mxu1 %v1936_v17 }
 0x222   :  { %1256 = vmatpush.msrb.mxu3 %v3165_v15  ;;  %1179 = vmatpush.msrb.mxu0 %v1923_v34 }
 0x223   :  { %1234 = vmatpush.msrb.mxu2 %v1991_v6  ;;  %1197 = vmatpush.msrb.mxu1 %v1932_v27 }
 0x224   :  { %1257 = vmatpush.msrb.mxu3 %v3183_v19  ;;  %1274 = vmatpush.msra.mxu0 %v3153_v11 }
 0x225   :  { %1235 = vmatpush.msrb.mxu2 %v1990_v8  ;;  %1198 = vmatpush.msrb.mxu1 %v1928_v60  ;;  %v2001_v60 = vld [vmem:[%s4399_s0 + $0x30] sm:$0xf] }
 0x226   :  { %1258 = vmatpush.msrb.mxu3 %v3198_v23  ;;  %1275 = vmatpush.msra.mxu0 %v3171_v16  ;;  %1249 = vst [vmem:[#allocation1] ss:$4 sm:$0xff] %v2001_v60 }
 0x227   :  { %1236 = vmatpush.msrb.mxu2 %v1989_v44  ;;  %1199 = vmatpush.msrb.mxu1 %v1924_v14 }
 0x228   :  { %1259 = vmatpush.msrb.mxu3 %v3213_v28  ;;  %1276 = vmatpush.msra.mxu0 %v3189_v20  ;;  %v885_v47 = vpop.f32.mrf.mxu2 }
 0x229   :  { %1237 = vmatpush.msrb.mxu2 %v1988_v18  ;;  %1303 = vmatpush.msra.mxu1 %v3129_v9  ;;  %v886_v50 = vadd.f32 %v3791_v42, %v885_v47  ;;  %v2059_v47 = vld [vmem:[%s4402_s3 + $0x7b0] sm:$0xff] }
 0x22a   :  { %1260 = vmatpush.msrb.mxu3 %v3228_v31  ;;  %1277 = vmatpush.msra.mxu0 %v3204_v26 }
 0x22b   :  { %1238 = vmatpush.msrb.mxu2 %v1987_v53  ;;  %1304 = vmatpush.msra.mxu1 %v3147_v10 }
 0x22c   :  { %1261 = vmatpush.msrb.mxu3 %v3243_v37  ;;  %1278 = vmatpush.msra.mxu0 %v3219_v29 }
 0x22d   :  { %1239 = vmatpush.msrb.mxu2 %v1986_v0  ;;  %1305 = vmatpush.msra.mxu1 %v3165_v15  ;;  %v1250_v14 = vld.sshfl [vmem:[#allocation1] sm:$0xff pattern:$0x73625140] }
 0x22e   :  { %1262 = vmatpush.msrb.mxu3 %v3255_v39  ;;  %1279 = vmatpush.msra.mxu0 %v3234_v33 }
 0x22f   :  { %1240 = vmatpush.msrb.mxu2 %v1985_v25  ;;  %1306 = vmatpush.msra.mxu1 %v3183_v19  ;;  %v1251_v25 = vld.sshfl [vmem:[#allocation1 + $0x8] sm:$0xff pattern:$0x73625140] }
 0x230   :  { %1263 = vmatpush.msrb.mxu3 %v3273_v63  ;;  %v934_v36 = vpop.f32.mrf.mxu0  ;;  %1280 = vmatpush.msra.mxu0 %v3249_v38 }
 0x231   :  { %1307 = vmatpush.msra.mxu1 %v3198_v23  ;;  %v935_v56 = vadd.f32 %v3791_v42, %v934_v36  ;;  %v2045_v36 = vld [vmem:[%s4402_s3 + $0x740] sm:$0xff] }
 0x232   :  { %1264 = vmatpush.msrb.mxu3 %v3291_v24  ;;  %1281 = vmatpush.msra.mxu0 %v3261_v59 }
 0x233   :  { %1308 = vmatpush.msra.mxu1 %v3213_v28 }
 0x234   :  { %v905_v35 = vpop.f32.mrf.mxu3  ;;  %1265 = vmatpush.msrb.mxu3 %v3313_v41  ;;  %1282 = vmatpush.msra.mxu0 %v3285_v21 }
 0x235   :  { %1309 = vmatpush.msra.mxu1 %v3228_v31  ;;  %v906_v2 = vadd.f32 %v905_v35, %v886_v50  ;;  %v2060_v35 = vld [vmem:[%s4402_s3 + $0x7b8] sm:$0xff]  ;;  %v2054_v50 = vld [vmem:[%s4402_s3 + $0x788] sm:$0xff] }
 0x236   :  { %1266 = vmatpush.msrb.mxu3 %v3331_v45  ;;  %v954_v57 = vpop.f32.mrf.mxu1  ;;  %1283 = vmatpush.msra.mxu0 %v3307_v40 }
 0x237   :  { %1310 = vmatpush.msra.mxu1 %v3243_v37  ;;  %v955_v5 = vadd.f32 %v954_v57, %v935_v56  ;;  %v908_v6 = vmax.f32 %v906_v2, 0.0  ;;  %v2055_v56 = vld [vmem:[%s4402_s3 + $0x790] sm:$0xff]  ;;  %v2056_v57 = vld [vmem:[%s4402_s3 + $0x798] sm:$0xff]  ;;  %v2037_v2 = vld [vmem:[%s4402_s3 + $0x700] sm:$0xff] }
 0x238   :  { %1267 = vmatpush.msrb.mxu3 %v3346_v48  ;;  %1284 = vmatpush.msra.mxu0 %v3323_v43 }
 0x239   :  { %1311 = vmatpush.msra.mxu1 %v3255_v39  ;;  %v957_v8 = vmax.f32 %v955_v5, 0.0  ;;  %v2033_v5 = vld [vmem:[%s4402_s3 + $0x6e0] sm:$0xff] }
 0x23a   :  { %v984_v58 = vpop.f32.mrf.mxu2  ;;  %1268 = vmatpush.msrb.mxu3 %v3359_v51  ;;  %1285 = vmatpush.msra.mxu0 %v3338_v46 }
 0x23b   :  { %v985_v7 = vadd.f32 %v3791_v42, %v984_v58  ;;  %1312 = vmatpush.msra.mxu1 %v3273_v63  ;;  %v958_v17 = vmax.f32 %v908_v6, %v957_v8  ;;  %v2041_v58 = vld [vmem:[%s4402_s3 + $0x720] sm:$0xff]  ;;  %v2046_v6 = vld [vmem:[%s4402_s3 + $0x748] sm:$0xff]  ;;  %v2047_v8 = vld [vmem:[%s4402_s3 + $0x750] sm:$0xff] }
 0x23c   :  { %1269 = vmatpush.msrb.mxu3 %v3374_v54  ;;  %1286 = vmatpush.msra.mxu0 %v3353_v49 }
 0x23d   :  { %v1004_v32 = vpop.f32.mrf.mxu3  ;;  %v1034_v3 = vpop.f32.mrf.mxu0  ;;  %1313 = vmatpush.msra.mxu1 %v3291_v24 }
 0x23e   :  { %v1005_v44 = vadd.f32 %v1004_v32, %v985_v7  ;;  %v1035_v12 = vadd.f32 %v3791_v42, %v1034_v3  ;;  %1287 = vmatpush.msra.mxu0 %v3366_v52  ;;  %v2050_v7 = vld [vmem:[%s4402_s3 + $0x768] sm:$0xff]  ;;  %v2051_v32 = vld [vmem:[%s4402_s3 + $0x770] sm:$0xff]  ;;  %v2052_v3 = vld [vmem:[%s4402_s3 + $0x778] sm:$0xff] }
 0x23f   :  { %1314 = vmatpush.msra.mxu1 %v3313_v41 }
 0x240   :  { %v1007_v18 = vmax.f32 %v1005_v44, 0.0  ;;  %1288 = vmatpush.msra.mxu0 %v3381_v55  ;;  %v2029_v44 = vld [vmem:[%s4402_s3 + $0x6c0] sm:$0xff] }
 0x241   :  { %1315 = vmatpush.msra.mxu1 %v3331_v45 }
 0x242   :  { %v1008_v53 = vmax.f32 %v958_v17, %v1007_v18  ;;  %1289 = vmatpush.msra.mxu0 %v3388_v1  ;;  %v2042_v17 = vld [vmem:[%s4402_s3 + $0x728] sm:$0xff] }
 0x243   :  { %1316 = vmatpush.msra.mxu1 %v3346_v48 }
 0x245   :  { %1317 = vmatpush.msra.mxu1 %v3359_v51 }
 0x247   :  { %1318 = vmatpush.msra.mxu1 %v3374_v54 }
 0x254   :  { %v1054_v22 = vpop.f32.mrf.mxu1 }
 0x255   :  { %v1055_v27 = vadd.f32 %v1054_v22, %v1035_v12  ;;  %v2048_v12 = vld [vmem:[%s4402_s3 + $0x758] sm:$0xff] }
 0x257   :  { %v1057_v34 = vmax.f32 %v1055_v27, 0.0  ;;  %v2043_v27 = vld [vmem:[%s4402_s3 + $0x730] sm:$0xff] }
 0x259   :  { %v1058_v0 = vmax.f32 %v1008_v53, %v1057_v34  ;;  %v2044_v53 = vld [vmem:[%s4402_s3 + $0x738] sm:$0xff] }
 0x25b   :  { %1140 = vmatmul.f32.vlgmr.msra.gmra.mxu2 %v1058_v0  ;;  %1160 = vmatmul.f32.vlgmr.msra.gmra.mxu3 %v1058_v0 }
 0x25c   :  { %1180 = vmatmul.f32.vlgmr.msrb.gmra.mxu0 %v1058_v0  ;;  %1200 = vmatmul.f32.vlgmr.msrb.gmra.mxu1 %v1058_v0 }
 0x25d   :  { %1323 = vmatpush.msra.mxu2 %v3153_v11  ;;  %1353 = vmatpush.msra.mxu3 %v3129_v9 }
 0x25e   :  { %1373 = vmatpush.msrb.mxu0 %v3153_v11  ;;  %1403 = vmatpush.msrb.mxu1 %v3129_v9  ;;  %v2002_v11 = vld [vmem:[%s4399_s0 + $0x34] sm:$0xf]  ;;  %v2003_v9 = vld [vmem:[%s4399_s0 + $0x38] sm:$0xf] }
 0x25f   :  { %1324 = vmatpush.msra.mxu2 %v3171_v16  ;;  %1354 = vmatpush.msra.mxu3 %v3147_v10  ;;  %1298 = vst [vmem:[#allocation1] ss:$4 sm:$0xff] %v2002_v11 }
 0x260   :  { %1374 = vmatpush.msrb.mxu0 %v3171_v16  ;;  %1404 = vmatpush.msrb.mxu1 %v3147_v10 }
 0x261   :  { %1325 = vmatpush.msra.mxu2 %v3189_v20  ;;  %1355 = vmatpush.msra.mxu3 %v3165_v15 }
 0x262   :  { %1375 = vmatpush.msrb.mxu0 %v3189_v20  ;;  %1405 = vmatpush.msrb.mxu1 %v3165_v15  ;;  %v2004_v20 = vld [vmem:[%s4399_s0 + $0x3c] sm:$0xf] }
 0x263   :  { %1326 = vmatpush.msra.mxu2 %v3204_v26  ;;  %1356 = vmatpush.msra.mxu3 %v3183_v19 }
 0x264   :  { %1241 = vmatmul.f32.vlgmr.msrb.gmra.mxu2 %v1058_v0  ;;  %1376 = vmatpush.msrb.mxu0 %v3204_v26  ;;  %v2131_v26 = vld [vmem:[%s4400_s1 + $0xf0] sm:$0xff]  ;;  %v2025_v0 = vld [vmem:[%s4402_s3 + $0x6a0] sm:$0xff] }
 0x265   :  { %1327 = vmatpush.msra.mxu2 %v3219_v29  ;;  %1357 = vmatpush.msra.mxu3 %v3198_v23 }
 0x266   :  { %1377 = vmatpush.msrb.mxu0 %v3219_v29  ;;  %1406 = vmatpush.msrb.mxu1 %v3183_v19  ;;  %v1299_v10 = vld.sshfl [vmem:[#allocation1] sm:$0xff pattern:$0x73625140]  ;;  %v1300_v15 = vld.sshfl [vmem:[#allocation1 + $0x8] sm:$0xff pattern:$0x73625140] }
 0x267   :  { %1328 = vmatpush.msra.mxu2 %v3234_v33  ;;  %1358 = vmatpush.msra.mxu3 %v3213_v28  ;;  %1348 = vst [vmem:[#allocation1] ss:$4 sm:$0xff] %v2003_v9  ;;  %v2133_v29 = vld [vmem:[%s4400_s1 + $0xe0] sm:$0xff] }
 0x268   :  { %1378 = vmatpush.msrb.mxu0 %v3234_v33  ;;  %1407 = vmatpush.msrb.mxu1 %v3198_v23  ;;  %v2130_v23 = vld [vmem:[%s4400_s1 + $0xf8] sm:$0xff] }
 0x269   :  { %1329 = vmatpush.msra.mxu2 %v3249_v38  ;;  %1359 = vmatpush.msra.mxu3 %v3228_v31  ;;  %v2134_v33 = vld [vmem:[%s4400_s1 + $0xd8] sm:$0xff] }
 0x26a   :  { %1379 = vmatpush.msrb.mxu0 %v3249_v38  ;;  %1270 = vmatmul.f32.vlgmr.msrb.gmra.mxu3 %v1250_v14  ;;  %v2136_v38 = vld [vmem:[%s4400_s1 + $0xc8] sm:$0xff]  ;;  %v2021_v14 = vld [vmem:[%s4402_s3 + $0x680] sm:$0xff] }
 0x26b   :  { %1330 = vmatpush.msra.mxu2 %v3261_v59  ;;  %1360 = vmatpush.msra.mxu3 %v3243_v37 }
 0x26c   :  { %1380 = vmatpush.msrb.mxu0 %v3261_v59  ;;  %1408 = vmatpush.msrb.mxu1 %v3213_v28  ;;  %v2132_v28 = vld [vmem:[%s4400_s1 + $0xe8] sm:$0xff]  ;;  %v2138_v59 = vld [vmem:[%s4400_s1 + $0xb8] sm:$0xff] }
 0x26d   :  { %1331 = vmatpush.msra.mxu2 %v3285_v21  ;;  %1361 = vmatpush.msra.mxu3 %v3255_v39 }
 0x26e   :  { %1381 = vmatpush.msrb.mxu0 %v3285_v21  ;;  %1409 = vmatpush.msrb.mxu1 %v3228_v31  ;;  %v1349_v16 = vld.sshfl [vmem:[#allocation1] sm:$0xff pattern:$0x73625140]  ;;  %v1350_v19 = vld.sshfl [vmem:[#allocation1 + $0x8] sm:$0xff pattern:$0x73625140] }
 0x26f   :  { %1332 = vmatpush.msra.mxu2 %v3307_v40  ;;  %1362 = vmatpush.msra.mxu3 %v3273_v63  ;;  %1398 = vst [vmem:[#allocation1] ss:$4 sm:$0xff] %v2004_v20  ;;  %v2140_v21 = vld [vmem:[%s4400_s1 + $0xa8] sm:$0xff]  ;;  %v2040_v20 = vld [vmem:[%s4402_s3 + $0x718] sm:$0xff] }
 0x270   :  { %1382 = vmatpush.msrb.mxu0 %v3307_v40  ;;  %1410 = vmatpush.msrb.mxu1 %v3243_v37  ;;  %v2135_v37 = vld [vmem:[%s4400_s1 + $0xd0] sm:$0xff]  ;;  %v2065_v40 = vld [vmem:[%s4402_s3 + $0x7e0] sm:$0xff] }
 0x271   :  { %1333 = vmatpush.msra.mxu2 %v3323_v43  ;;  %1363 = vmatpush.msra.mxu3 %v3291_v24 }
 0x272   :  { %1383 = vmatpush.msrb.mxu0 %v3323_v43  ;;  %1411 = vmatpush.msrb.mxu1 %v3255_v39  ;;  %v2137_v39 = vld [vmem:[%s4400_s1 + $0xc0] sm:$0xff] }
 0x273   :  { %1334 = vmatpush.msra.mxu2 %v3338_v46  ;;  %1364 = vmatpush.msra.mxu3 %v3313_v41  ;;  %v2057_v43 = vld [vmem:[%s4402_s3 + $0x7a0] sm:$0xff] }
 0x274   :  { %1384 = vmatpush.msrb.mxu0 %v3338_v46  ;;  %1412 = vmatpush.msrb.mxu1 %v3273_v63  ;;  %v2139_v63 = vld [vmem:[%s4400_s1 + $0xb0] sm:$0xff] }
 0x275   :  { %1335 = vmatpush.msra.mxu2 %v3353_v49  ;;  %1365 = vmatpush.msra.mxu3 %v3331_v45 }
 0x276   :  { %1290 = vmatmul.f32.vlgmr.msra.gmra.mxu0 %v1251_v25  ;;  %1413 = vmatpush.msrb.mxu1 %v3291_v24  ;;  %v1399_v31 = vld.sshfl [vmem:[#allocation1] sm:$0xff pattern:$0x73625140]  ;;  %v1400_v24 = vld.sshfl [vmem:[#allocation1 + $0x8] sm:$0xff pattern:$0x73625140] }
 0x277   :  { %1336 = vmatpush.msra.mxu2 %v3366_v52  ;;  %1366 = vmatpush.msra.mxu3 %v3346_v48 }
 0x278   :  { %1385 = vmatpush.msrb.mxu0 %v3353_v49  ;;  %1319 = vmatmul.f32.vlgmr.msra.gmra.mxu1 %v1299_v10  ;;  %v2013_v10 = vld [vmem:[%s4402_s3 + $0x640] sm:$0xff] }
 0x279   :  { %1337 = vmatpush.msra.mxu2 %v3381_v55  ;;  %1367 = vmatpush.msra.mxu3 %v3359_v51 }
 0x27a   :  { %1386 = vmatpush.msrb.mxu0 %v3366_v52  ;;  %1414 = vmatpush.msrb.mxu1 %v3313_v41  ;;  %v2061_v41 = vld [vmem:[%s4402_s3 + $0x7c0] sm:$0xff] }
 0x27b   :  { %1338 = vmatpush.msra.mxu2 %v3388_v1  ;;  %1368 = vmatpush.msra.mxu3 %v3374_v54 }
 0x27c   :  { %1369 = vmatmul.f32.vlgmr.msra.gmra.mxu3 %v1349_v16  ;;  %1339 = vmatmul.f32.vlgmr.msra.gmra.mxu2 %v1300_v15  ;;  %v2009_v15 = vld [vmem:[%s4402_s3 + $0x620] sm:$0xff] }
 0x27d   :  { %1423 = vmatpush.msrb.mxu2 %v2130_v23  ;;  %1387 = vmatpush.msrb.mxu0 %v3381_v55  ;;  %v2005_v16 = vld [vmem:[%s4402_s3 + $0x600] sm:$0xff]  ;;  %v2083_v23 = vld [vmem:[%s4406_s7 + $0x1f0] sm:$0xff] }
 0x27e   :  { %1415 = vmatpush.msrb.mxu1 %v3331_v45  ;;  %1510 = vmatpush.msrb.mxu3 %v2065_v40  ;;  %v2053_v45 = vld [vmem:[%s4402_s3 + $0x780] sm:$0xff]  ;;  %v2022_v40 = vld [vmem:[%s4402_s3 + $0x688] sm:$0xff] }
 0x27f   :  { %1424 = vmatpush.msrb.mxu2 %v2131_v26  ;;  %1388 = vmatpush.msrb.mxu0 %v3388_v1 }
 0x280   :  { %1389 = vmatmul.f32.vlgmr.msrb.gmra.mxu0 %v1350_v19  ;;  %1416 = vmatpush.msrb.mxu1 %v3346_v48  ;;  %v2067_v48 = vld [vmem:[%s4402_s3 + $0x7f0] sm:$0xff] }
 0x281   :  { %1425 = vmatpush.msrb.mxu2 %v2132_v28  ;;  %1511 = vmatpush.msrb.mxu3 %v2061_v41  ;;  %v2039_v19 = vld [vmem:[%s4402_s3 + $0x710] sm:$0xff]  ;;  %v2034_v28 = vld [vmem:[%s4402_s3 + $0x6e8] sm:$0xff] }
 0x282   :  { %1417 = vmatpush.msrb.mxu1 %v3359_v51  ;;  %v2062_v51 = vld [vmem:[%s4402_s3 + $0x7c8] sm:$0xff]  ;;  %v2023_v41 = vld [vmem:[%s4402_s3 + $0x690] sm:$0xff] }
 0x283   :  { %1426 = vmatpush.msrb.mxu2 %v2133_v29  ;;  %1512 = vmatpush.msrb.mxu3 %v2057_v43  ;;  %v2035_v29 = vld [vmem:[%s4402_s3 + $0x6f0] sm:$0xff]  ;;  %v2024_v43 = vld [vmem:[%s4402_s3 + $0x698] sm:$0xff] }
 0x284   :  { %1418 = vmatpush.msrb.mxu1 %v3374_v54  ;;  %v2049_v54 = vld [vmem:[%s4402_s3 + $0x760] sm:$0xff] }
 0x285   :  { %1427 = vmatpush.msrb.mxu2 %v2134_v33  ;;  %1419 = vmatmul.f32.vlgmr.msrb.gmra.mxu1 %v1399_v31  ;;  %v2036_v31 = vld [vmem:[%s4402_s3 + $0x6f8] sm:$0xff] }
 0x286   :  { %1550 = vmatpush.msra.mxu1 %v2067_v48  ;;  %1513 = vmatpush.msrb.mxu3 %v2053_v45  ;;  %v2080_v45 = vld [vmem:[%s4406_s7 + $0x1d8] sm:$0xff]  ;;  %v2078_v48 = vld [vmem:[%s4406_s7 + $0x1c8] sm:$0xff] }
 0x287   :  { %1428 = vmatpush.msrb.mxu2 %v2135_v37  ;;  %v2030_v37 = vld [vmem:[%s4402_s3 + $0x6c8] sm:$0xff] }
 0x288   :  { %1514 = vmatpush.msrb.mxu3 %v2049_v54  ;;  %v2020_v54 = vld [vmem:[%s4402_s3 + $0x678] sm:$0xff] }
 0x289   :  { %1429 = vmatpush.msrb.mxu2 %v2136_v38  ;;  %v2031_v38 = vld [vmem:[%s4402_s3 + $0x6d0] sm:$0xff] }
 0x28a   :  { %1515 = vmatpush.msrb.mxu3 %v2045_v36  ;;  %v2075_v36 = vld [vmem:[%s4406_s7 + $0x1b0] sm:$0xff] }
 0x28b   :  { %1430 = vmatpush.msrb.mxu2 %v2137_v39  ;;  %v2082_v39 = vld [vmem:[%s4406_s7 + $0x1e8] sm:$0xff] }
 0x28c   :  { %1516 = vmatpush.msrb.mxu3 %v2041_v58  ;;  %v2074_v58 = vld [vmem:[%s4406_s7 + $0x1a8] sm:$0xff] }
 0x28d   :  { %1431 = vmatpush.msrb.mxu2 %v2138_v59  ;;  %v2026_v59 = vld [vmem:[%s4402_s3 + $0x6a8] sm:$0xff] }
 0x28e   :  { %1517 = vmatpush.msrb.mxu3 %v2037_v2  ;;  %v2006_v2 = vld [vmem:[%s4402_s3 + $0x608] sm:$0xff] }
 0x28f   :  { %1432 = vmatpush.msrb.mxu2 %v2139_v63  ;;  %v2027_v63 = vld [vmem:[%s4402_s3 + $0x6b0] sm:$0xff] }
 0x290   :  { %1518 = vmatpush.msrb.mxu3 %v2033_v5  ;;  %v2007_v5 = vld [vmem:[%s4402_s3 + $0x610] sm:$0xff] }
 0x291   :  { %1433 = vmatpush.msrb.mxu2 %v2140_v21  ;;  %v2028_v21 = vld [vmem:[%s4402_s3 + $0x6b8] sm:$0xff] }
 0x292   :  { %1519 = vmatpush.msrb.mxu3 %v2029_v44  ;;  %v2070_v44 = vld [vmem:[%s4406_s7 + $0x188] sm:$0xff] }
 0x293   :  { %1434 = vmatpush.msrb.mxu2 %v3338_v46  ;;  %v2066_v46 = vld [vmem:[%s4402_s3 + $0x7e8] sm:$0xff] }
 0x294   :  { %1530 = vmatpush.msra.mxu0 %v2066_v46  ;;  %1520 = vmatpush.msrb.mxu3 %v2025_v0  ;;  %v2079_v46 = vld [vmem:[%s4406_s7 + $0x1d0] sm:$0xff] }
 0x295   :  { %1435 = vmatpush.msrb.mxu2 %v3353_v49  ;;  %v2068_v49 = vld [vmem:[%s4402_s3 + $0x7f8] sm:$0xff]  ;;  %v1678_v0 = vld [vmem:[%s4404_s5 + $0x170] sm:$0xff] }
 0x296   :  { %1531 = vmatpush.msra.mxu0 %v2062_v51  ;;  %1521 = vmatpush.msrb.mxu3 %v2021_v14  ;;  %v2018_v51 = vld [vmem:[%s4402_s3 + $0x668] sm:$0xff] }
 0x297   :  { %1436 = vmatpush.msrb.mxu2 %v3366_v52  ;;  %v2063_v52 = vld [vmem:[%s4402_s3 + $0x7d0] sm:$0xff]  ;;  %v1661_v14 = vld [vmem:[%s4404_s5 + $0xe8] sm:$0xff] }
 0x298   :  { %1551 = vmatpush.msra.mxu1 %v2063_v52  ;;  %v2019_v52 = vld [vmem:[%s4402_s3 + $0x670] sm:$0xff] }
 0x299   :  { %1437 = vmatpush.msrb.mxu2 %v3381_v55  ;;  %v2064_v55 = vld [vmem:[%s4402_s3 + $0x7d8] sm:$0xff] }
 0x29a   :  { %1552 = vmatpush.msra.mxu1 %v2059_v47  ;;  %v2015_v47 = vld [vmem:[%s4402_s3 + $0x650] sm:$0xff] }
 0x29b   :  { %1438 = vmatpush.msrb.mxu2 %v3388_v1  ;;  %v2058_v1 = vld [vmem:[%s4402_s3 + $0x7a8] sm:$0xff] }
 0x29c   :  { %1439 = vmatmul.f32.vlgmr.msrb.gmra.mxu2 %v1400_v24  ;;  %1532 = vmatpush.msra.mxu0 %v2058_v1  ;;  %v2081_v24 = vld [vmem:[%s4406_s7 + $0x1e0] sm:$0xff]  ;;  %v2014_v1 = vld [vmem:[%s4402_s3 + $0x648] sm:$0xff] }
 0x29d   :  { %1570 = vmatpush.msra.mxu2 %v2068_v49  ;;  %1553 = vmatpush.msra.mxu1 %v2055_v56  ;;  %v2077_v49 = vld [vmem:[%s4406_s7 + $0x1c0] sm:$0xff]  ;;  %v2011_v56 = vld [vmem:[%s4402_s3 + $0x630] sm:$0xff] }
 0x29e   :  { %1533 = vmatpush.msra.mxu0 %v2054_v50  ;;  %v2010_v50 = vld [vmem:[%s4402_s3 + $0x628] sm:$0xff] }
 0x29f   :  { %1571 = vmatpush.msra.mxu2 %v2064_v55  ;;  %1554 = vmatpush.msra.mxu1 %v2051_v32  ;;  %v2076_v55 = vld [vmem:[%s4406_s7 + $0x1b8] sm:$0xff]  ;;  %v2073_v32 = vld [vmem:[%s4406_s7 + $0x1a0] sm:$0xff] }
 0x2a0   :  { %1534 = vmatpush.msra.mxu0 %v2050_v7  ;;  %v2008_v7 = vld [vmem:[%s4402_s3 + $0x618] sm:$0xff] }
 0x2a1   :  { %1572 = vmatpush.msra.mxu2 %v2060_v35  ;;  %1555 = vmatpush.msra.mxu1 %v2047_v8  ;;  %v2016_v35 = vld [vmem:[%s4402_s3 + $0x658] sm:$0xff] }
 0x2a2   :  { %1535 = vmatpush.msra.mxu0 %v2046_v6  ;;  %v2071_v6 = vld [vmem:[%s4406_s7 + $0x190] sm:$0xff] }
 0x2a3   :  { %1573 = vmatpush.msra.mxu2 %v2056_v57  ;;  %1556 = vmatpush.msra.mxu1 %v2043_v27  ;;  %v2012_v57 = vld [vmem:[%s4402_s3 + $0x638] sm:$0xff]  ;;  %v1662_v27 = vld [vmem:[%s4404_s5 + $0xf0] sm:$0xff] }
 0x2a4   :  { %1536 = vmatpush.msra.mxu0 %v2042_v17 }
 0x2a5   :  { %1574 = vmatpush.msra.mxu2 %v2052_v3  ;;  %1557 = vmatpush.msra.mxu1 %v2039_v19  ;;  %v2072_v3 = vld [vmem:[%s4406_s7 + $0x198] sm:$0xff] }
 0x2a7   :  { %1575 = vmatpush.msra.mxu2 %v2048_v12  ;;  %1558 = vmatpush.msra.mxu1 %v2035_v29  ;;  %v2069_v12 = vld [vmem:[%s4406_s7 + $0x180] sm:$0xff] }
 0x2a9   :  { %1576 = vmatpush.msra.mxu2 %v2044_v53  ;;  %1559 = vmatpush.msra.mxu1 %v2031_v38  ;;  %v1658_v38 = vld [vmem:[%s4404_s5 + $0xd0] sm:$0xff] }
 0x2ab   :  { %1577 = vmatpush.msra.mxu2 %v2040_v20  ;;  %1560 = vmatpush.msra.mxu1 %v2027_v63  ;;  %v1645_v20 = vld [vmem:[%s4404_s5 + $0x68] sm:$0xff] }
 0x2ac   :  { %v1657_v63 = vld [vmem:[%s4404_s5 + $0xc8] sm:$0xff] }
 0x2ad   :  { %1578 = vmatpush.msra.mxu2 %v2036_v31  ;;  %1561 = vmatpush.msra.mxu1 %v2023_v41 }
 0x2af   :  { %1562 = vmatpush.msra.mxu1 %v2019_v52  ;;  %v1655_v52 = vld [vmem:[%s4404_s5 + $0xb8] sm:$0xff] }
 0x2b1   :  { %1563 = vmatpush.msra.mxu1 %v2015_v47 }
 0x2b3   :  { %1564 = vmatpush.msra.mxu1 %v2011_v56 }
 0x2b5   :  { %1565 = vmatpush.msra.mxu1 %v2007_v5 }
 0x2d9   :  { %v1181_v18 = vpop.f32.mrf.mxu0  ;;  %v1201_v22 = vpop.f32.mrf.mxu1 }
 0x2da   :  { %v4026_v34 = vadd.f32 %v1181_v18, %v3649_v13  ;;  %v4029_v60 = vadd.f32 %v1201_v22, %v3603_v62  ;;  %v2017_v62 = vld [vmem:[%s4402_s3 + $0x660] sm:$0xff]  ;;  %v1663_v18 = vld [vmem:[%s4404_s5 + $0xf8] sm:$0xff] }
 0x2db   :  { %1522 = vmatpush.msrb.mxu3 %v2017_v62  ;;  %v1679_v22 = vld [vmem:[%s4404_s5 + $0x178] sm:$0xff]  ;;  %1720 = vmatpush.msrb.mxu1 %v1663_v18  ;;  %v1646_v62 = vld [vmem:[%s4404_s5 + $0x70] sm:$0xff] }
 0x2dc   :  { %v1694_v18 = vld [vmem:[%s4404_s5 + $0x1f0] sm:$0xff] }
 0x2dd   :  { %1523 = vmatpush.msrb.mxu3 %v2013_v10  ;;  %1721 = vmatpush.msrb.mxu1 %v1662_v27  ;;  %v1666_v27 = vld [vmem:[%s4404_s5 + $0x110] sm:$0xff] }
 0x2de   :  { %v1141_v13 = vpop.f32.mrf.mxu2  ;;  %v1161_v25 = vpop.f32.mrf.mxu3 }
 0x2df   :  { %v4041_v11 = vadd.f32 %v1141_v13, %v3601_v61  ;;  %v4044_v9 = vadd.f32 %v1161_v25, %v3640_v4  ;;  %v2084_v61 = vld [vmem:[%s4406_s7 + $0x1f8] sm:$0xff]  ;;  %1524 = vmatpush.msrb.mxu3 %v2009_v15  ;;  %v2038_v4 = vld [vmem:[%s4402_s3 + $0x708] sm:$0xff]  ;;  %1722 = vmatpush.msrb.mxu1 %v1661_v14 }
 0x2e0   :  { %1537 = vmatpush.msra.mxu0 %v2038_v4  ;;  %v1677_v13 = vld [vmem:[%s4404_s5 + $0x168] sm:$0xff]  ;;  %v1647_v25 = vld [vmem:[%s4404_s5 + $0x78] sm:$0xff] }
 0x2e1   :  { %1525 = vmatpush.msrb.mxu3 %v2005_v16  ;;  %v1660_v16 = vld [vmem:[%s4404_s5 + $0xe0] sm:$0xff]  ;;  %v1691_v14 = vld [vmem:[%s4404_s5 + $0x1d8] sm:$0xff] }
 0x2e2   :  { %1538 = vmatpush.msra.mxu0 %v2034_v28  ;;  %1723 = vmatpush.msrb.mxu1 %v1660_v16  ;;  %v1644_v28 = vld [vmem:[%s4404_s5 + $0x60] sm:$0xff]  ;;  %v1685_v16 = vld [vmem:[%s4404_s5 + $0x1a8] sm:$0xff] }
 0x2e3   :  { %1611 = vmatpush.msra.mxu3 %v2084_v61  ;;  %v1676_v61 = vld [vmem:[%s4404_s5 + $0x160] sm:$0xff] }
 0x2e4   :  { %1539 = vmatpush.msra.mxu0 %v2030_v37 }
 0x2e5   :  { %1612 = vmatpush.msra.mxu3 %v2083_v23  ;;  %v1659_v23 = vld [vmem:[%s4404_s5 + $0xd8] sm:$0xff] }
 0x2e6   :  { %1540 = vmatpush.msra.mxu0 %v2026_v59  ;;  %1724 = vmatpush.msrb.mxu1 %v1659_v23  ;;  %v1643_v59 = vld [vmem:[%s4404_s5 + $0x58] sm:$0xff] }
 0x2e7   :  { %v1242_v26 = vpop.f32.mrf.mxu2  ;;  %1613 = vmatpush.msra.mxu3 %v2082_v39  ;;  %v1674_v39 = vld [vmem:[%s4404_s5 + $0x150] sm:$0xff]  ;;  %v1635_v23 = vld [vmem:[%s4404_s5 + $0x18] sm:$0xff] }
 0x2e8   :  { %v4080_v33 = vadd.f32 %v1242_v26, %v3663_v30  ;;  %v2032_v30 = vld [vmem:[%s4402_s3 + $0x6d8] sm:$0xff]  ;;  %1541 = vmatpush.msra.mxu0 %v2022_v40  ;;  %1725 = vmatpush.msrb.mxu1 %v1658_v38  ;;  %v1642_v40 = vld [vmem:[%s4404_s5 + $0x50] sm:$0xff]  ;;  %v1633_v38 = vld [vmem:[%s4404_s5 + $0x8] sm:$0xff] }
 0x2e9   :  { %1579 = vmatpush.msra.mxu2 %v2032_v30  ;;  %1614 = vmatpush.msra.mxu3 %v2081_v24  ;;  %v1675_v26 = vld [vmem:[%s4404_s5 + $0x158] sm:$0xff] }
 0x2ea   :  { %1542 = vmatpush.msra.mxu0 %v2018_v51  ;;  %1726 = vmatpush.msrb.mxu1 %v1657_v63 }
 0x2eb   :  { %1580 = vmatpush.msra.mxu2 %v2028_v21  ;;  %1615 = vmatpush.msra.mxu3 %v2080_v45  ;;  %v1673_v21 = vld [vmem:[%s4404_s5 + $0x148] sm:$0xff] }
 0x2ec   :  { %1543 = vmatpush.msra.mxu0 %v2014_v1 }
 0x2ed   :  { %1581 = vmatpush.msra.mxu2 %v2024_v43  ;;  %1616 = vmatpush.msra.mxu3 %v2079_v46  ;;  %v1271_v8 = vpop.f32.mrf.mxu3  ;;  %v1656_v46 = vld [vmem:[%s4404_s5 + $0xc0] sm:$0xff] }
 0x2ee   :  { %1544 = vmatpush.msra.mxu0 %v2010_v50  ;;  %v1272_v10 = vadd.f32 %v3791_v42, %v1271_v8  ;;  %1727 = vmatpush.msrb.mxu1 %v1656_v46  ;;  %v1639_v50 = vld [vmem:[%s4404_s5 + $0x38] sm:$0xff] }
 0x2ef   :  { %1617 = vmatpush.msra.mxu3 %v2078_v48  ;;  %1582 = vmatpush.msra.mxu2 %v2020_v54  ;;  %v1672_v48 = vld [vmem:[%s4404_s5 + $0x140] sm:$0xff]  ;;  %v1671_v54 = vld [vmem:[%s4404_s5 + $0x138] sm:$0xff] }
 0x2f0   :  { %1545 = vmatpush.msra.mxu0 %v2006_v2  ;;  %1728 = vmatpush.msrb.mxu1 %v1655_v52  ;;  %v1638_v2 = vld [vmem:[%s4404_s5 + $0x30] sm:$0xff]  ;;  %v1695_v8 = vld [vmem:[%s4404_s5 + $0x1f8] sm:$0xff]  ;;  %v2167_v52 = vmov 0  }
 0x2f1   :  { %1618 = vmatpush.msra.mxu3 %v2077_v49  ;;  %1583 = vmatpush.msra.mxu2 %v2016_v35  ;;  %v1641_v49 = vld [vmem:[%s4404_s5 + $0x48] sm:$0xff]  ;;  %v1670_v35 = vld [vmem:[%s4404_s5 + $0x130] sm:$0xff] }
 0x2f2   :  { %1700 = vmatpush.msrb.mxu0 %v1647_v25  ;;  %v1689_v25 = vld [vmem:[%s4404_s5 + $0x1c8] sm:$0xff]  ;;  %2088 = vset.pattern.permute.xlu1 %v2167_v52 }
 0x2f3   :  { %1619 = vmatpush.msra.mxu3 %v2076_v55  ;;  %1584 = vmatpush.msra.mxu2 %v2012_v57  ;;  %v1291_v17 = vpop.f32.mrf.mxu0  ;;  %v1640_v55 = vld [vmem:[%s4404_s5 + $0x40] sm:$0xff]  ;;  %v1653_v57 = vld [vmem:[%s4404_s5 + $0xa8] sm:$0xff] }
 0x2f4   :  { %1701 = vmatpush.msrb.mxu0 %v1646_v62  ;;  %v1292_v29 = vadd.f32 %v1291_v17, %v1272_v10  ;;  %v1637_v17 = vld [vmem:[%s4404_s5 + $0x28] sm:$0xff]  ;;  %v1688_v62 = vld [vmem:[%s4404_s5 + $0x1c0] sm:$0xff]  ;;  %v1687_v10 = vld [vmem:[%s4404_s5 + $0x1b8] sm:$0xff]  ;;  %2089 = vset.pattern.permute.xlu0 %v2167_v52 }
 0x2f5   :  { %1620 = vmatpush.msra.mxu3 %v2075_v36  ;;  %1585 = vmatpush.msra.mxu2 %v2008_v7  ;;  %v1320_v53 = vpop.f32.mrf.mxu1 }
 0x2f6   :  { %v1321_v15 = vadd.f32 %v3791_v42, %v1320_v53  ;;  %1702 = vmatpush.msrb.mxu0 %v1645_v20  ;;  %v1294_v41 = vmax.f32 %v1292_v29, 0.0  ;;  %v1693_v53 = vld [vmem:[%s4404_s5 + $0x1e8] sm:$0xff]  ;;  %v1684_v20 = vld [vmem:[%s4404_s5 + $0x1a0] sm:$0xff]  ;;  %v1683_v29 = vld [vmem:[%s4404_s5 + $0x198] sm:$0xff] }
 0x2f7   :  { %1621 = vmatpush.msra.mxu3 %v2074_v58  ;;  %1740 = vmatpush.msrb.mxu2 %v1679_v22  ;;  %v1669_v58 = vld [vmem:[%s4404_s5 + $0x128] sm:$0xff]  ;;  %v1650_v22 = vld [vmem:[%s4404_s5 + $0x90] sm:$0xff] }
 0x2f8   :  { %1703 = vmatpush.msrb.mxu0 %v1644_v28  ;;  %v1664_v28 = vld [vmem:[%s4404_s5 + $0x100] sm:$0xff] }
 0x2f9   :  { %1622 = vmatpush.msra.mxu3 %v2073_v32  ;;  %1741 = vmatpush.msrb.mxu2 %v1678_v0  ;;  %v1652_v32 = vld [vmem:[%s4404_s5 + $0xa0] sm:$0xff] }
 0x2fa   :  { %1704 = vmatpush.msrb.mxu0 %v1643_v59  ;;  %v1692_v0 = vld [vmem:[%s4404_s5 + $0x1e0] sm:$0xff] }
 0x2fb   :  { %1623 = vmatpush.msra.mxu3 %v2072_v3  ;;  %1742 = vmatpush.msrb.mxu2 %v1677_v13  ;;  %v1668_v3 = vld [vmem:[%s4404_s5 + $0x120] sm:$0xff]  ;;  %v1690_v13 = vld [vmem:[%s4404_s5 + $0x1d0] sm:$0xff] }
 0x2fc   :  { %1705 = vmatpush.msrb.mxu0 %v1642_v40  ;;  %v1680_v59 = vld [vmem:[%s4404_s5 + $0x180] sm:$0xff] }
 0x2fd   :  { %1624 = vmatpush.msra.mxu3 %v2071_v6  ;;  %1743 = vmatpush.msrb.mxu2 %v1676_v61  ;;  %v1390_v30 = vpop.f32.mrf.mxu0  ;;  %v1636_v61 = vld [vmem:[%s4404_s5 + $0x20] sm:$0xff] }
 0x2fe   :  { %1706 = vmatpush.msrb.mxu0 %v1641_v49 }
 0x2ff   :  { %1625 = vmatpush.msra.mxu3 %v2070_v44  ;;  %v1340_v4 = vpop.f32.mrf.mxu2  ;;  %v1370_v19 = vpop.f32.mrf.mxu3  ;;  %1744 = vmatpush.msrb.mxu2 %v1675_v26  ;;  %v1651_v44 = vld [vmem:[%s4404_s5 + $0x98] sm:$0xff]  ;;  %v1648_v26 = vld [vmem:[%s4404_s5 + $0x80] sm:$0xff] }
 0x300   :  { %v1341_v31 = vadd.f32 %v1340_v4, %v1321_v15  ;;  %v1371_v37 = vadd.f32 %v3791_v42, %v1370_v19  ;;  %1707 = vmatpush.msrb.mxu0 %v1640_v55  ;;  %v1686_v15 = vld [vmem:[%s4404_s5 + $0x1b0] sm:$0xff]  ;;  %v1649_v4 = vld [vmem:[%s4404_s5 + $0x88] sm:$0xff] }
 0x301   :  { %1626 = vmatpush.msra.mxu3 %v2069_v12  ;;  %1745 = vmatpush.msrb.mxu2 %v1674_v39  ;;  %v1667_v12 = vld [vmem:[%s4404_s5 + $0x118] sm:$0xff]  ;;  %v1665_v19 = vld [vmem:[%s4404_s5 + $0x108] sm:$0xff] }
 0x302   :  { %v1420_v24 = vpop.f32.mrf.mxu1  ;;  %v1343_v43 = vmax.f32 %v1341_v31, 0.0  ;;  %v1391_v45 = vadd.f32 %v1390_v30, %v1371_v37  ;;  %1708 = vmatpush.msrb.mxu0 %v1639_v50  ;;  %v1634_v31 = vld [vmem:[%s4404_s5 + $0x10] sm:$0xff]  ;;  %v1681_v39 = vld [vmem:[%s4404_s5 + $0x188] sm:$0xff]  ;;  %v1632_v30 = vld [vmem:[%s4404_s5] sm:$0xff] }
 0x303   :  { %1746 = vmatpush.msrb.mxu2 %v1673_v21  ;;  %v1421_v51 = vadd.f32 %v3791_v42, %v1420_v24  ;;  %v1654_v42 = vld [vmem:[%s4404_s5 + $0xb0] sm:$0xff] }
 0x304   :  { %v1344_v1 = vmax.f32 %v1294_v41, %v1343_v43  ;;  %v1393_v47 = vmax.f32 %v1391_v45, 0.0  ;;  %1729 = vmatpush.msrb.mxu1 %v1654_v42  ;;  %1709 = vmatpush.msrb.mxu0 %v1638_v2  ;;  %v1682_v37 = vld [vmem:[%s4404_s5 + $0x190] sm:$0xff] }
 0x305   :  { %1747 = vmatpush.msrb.mxu2 %v1672_v48  ;;  %v2092_v48 = vld [vmem:[%s4408_s9] ss:$0 sm:$0xff] }
 0x306   :  { %v1394_v5 = vmax.f32 %v1344_v1, %v1393_v47  ;;  %1730 = vmatpush.msrb.mxu1 %v1653_v57  ;;  %1710 = vmatpush.msrb.mxu0 %v1637_v17 }
 0x307   :  { %1748 = vmatpush.msrb.mxu2 %v1671_v54 }
 0x308   :  { %1731 = vmatpush.msrb.mxu1 %v1652_v32  ;;  %1711 = vmatpush.msrb.mxu0 %v1636_v61 }
 0x309   :  { %1749 = vmatpush.msrb.mxu2 %v1670_v35 }
 0x30a   :  { %1732 = vmatpush.msrb.mxu1 %v1651_v44  ;;  %1712 = vmatpush.msrb.mxu0 %v1635_v23 }
 0x30b   :  { %1750 = vmatpush.msrb.mxu2 %v1669_v58  ;;  %v2168_v58 = vmov 6.0  }
 0x30c   :  { %1733 = vmatpush.msrb.mxu1 %v1650_v22  ;;  %1713 = vmatpush.msrb.mxu0 %v1634_v31  ;;  %2095 = vrcp.f32 %v2168_v58 }
 0x30d   :  { %1751 = vmatpush.msrb.mxu2 %v1668_v3 }
 0x30e   :  { %1734 = vmatpush.msrb.mxu1 %v1649_v4  ;;  %1714 = vmatpush.msrb.mxu0 %v1633_v38 }
 0x30f   :  { %1752 = vmatpush.msrb.mxu2 %v1667_v12 }
 0x310   :  { %1735 = vmatpush.msrb.mxu1 %v1648_v26  ;;  %1715 = vmatpush.msrb.mxu0 %v1632_v30 }
 0x311   :  { %1753 = vmatpush.msrb.mxu2 %v1666_v27 }
 0x312   :  { %v2096_v2 = vpop.eup %2095 }
 0x313   :  { %1754 = vmatpush.msrb.mxu2 %v1665_v19  ;;  %vm1803_vm2 = vweird.f32 %v2096_v2 }
 0x315   :  { %1755 = vmatpush.msrb.mxu2 %v1664_v28 }
 0x31f   :  { %v1440_v36 = vpop.f32.mrf.mxu2 }
 0x320   :  { %v1441_v56 = vadd.f32 %v1440_v36, %v1421_v51 }
 0x322   :  { %v1443_v7 = vmax.f32 %v1441_v56, 0.0 }
 0x324   :  { %v1444_v6 = vmax.f32 %v1394_v5, %v1443_v7  ;;  %v1799_v5 = vmul.f32 6.0, %v2096_v2 }
 0x326   :  { %1526 = vmatmul.f32.vlgmr.msrb.gmra.mxu3 %v1444_v6  ;;  %1546 = vmatmul.f32.vlgmr.msra.gmra.mxu0 %v1444_v6  ;;  %v1800_v7 = vsub.f32 1.0, %v1799_v5 }
 0x327   :  { %1566 = vmatmul.f32.vlgmr.msra.gmra.mxu1 %v1444_v6  ;;  %1586 = vmatmul.f32.vlgmr.msra.gmra.mxu2 %v1444_v6 }
 0x328   :  { %1760 = vmatpush.msrb.mxu3 %v1695_v8  ;;  %v1801_v32 = vmul.f32 %v2096_v2, %v1800_v7 }
 0x32a   :  { %1761 = vmatpush.msrb.mxu3 %v1694_v18  ;;  %v1802_v3 = vadd.f32 %v2096_v2, %v1801_v32 }
 0x32c   :  { %1762 = vmatpush.msrb.mxu3 %v1693_v53 }
 0x32e   :  { %1627 = vmatmul.f32.vlgmr.msra.gmra.mxu3 %v1444_v6  ;;  %v1804_v6 = vsel %vm1803_vm2, %v2096_v2, %v1802_v3 }
 0x32f   :  { %1763 = vmatpush.msrb.mxu3 %v1692_v0 }
 0x331   :  { %1764 = vmatpush.msrb.mxu3 %v1691_v14 }
 0x333   :  { %1765 = vmatpush.msrb.mxu3 %v1690_v13 }
 0x335   :  { %1766 = vmatpush.msrb.mxu3 %v1689_v25 }
 0x337   :  { %1767 = vmatpush.msrb.mxu3 %v1688_v62 }
 0x339   :  { %1768 = vmatpush.msrb.mxu3 %v1687_v10 }
 0x33b   :  { %1769 = vmatpush.msrb.mxu3 %v1686_v15 }
 0x33d   :  { %1770 = vmatpush.msrb.mxu3 %v1685_v16 }
 0x33f   :  { %1771 = vmatpush.msrb.mxu3 %v1684_v20 }
 0x341   :  { %1772 = vmatpush.msrb.mxu3 %v1683_v29 }
 0x343   :  { %1773 = vmatpush.msrb.mxu3 %v1682_v37 }
 0x345   :  { %1774 = vmatpush.msrb.mxu3 %v1681_v39 }
 0x347   :  { %1775 = vmatpush.msrb.mxu3 %v1680_v59 }
 0x3a3   :  { %v1547_v63 = vpop.f32.mrf.mxu0 }
 0x3a4   :  { %v1591_v21 = vadd.f32 %v1547_v63, %v4044_v9  ;;  %v1567_v24 = vpop.f32.mrf.mxu1 }
 0x3a5   :  { %v1592_v40 = vadd.f32 %v1567_v24, %v4026_v34 }
 0x3a6   :  { %1736 = vmatmul.f32.vlgmr.msrb.gmra.mxu1 %v1591_v21 }
 0x3a7   :  { %1756 = vmatmul.f32.vlgmr.msrb.gmra.mxu2 %v1592_v40 }
 0x3a9   :  { %v1527_v41 = vpop.f32.mrf.mxu3 }
 0x3aa   :  { %v1590_v43 = vadd.f32 %v1527_v41, %v4041_v11  ;;  %v1587_v45 = vpop.f32.mrf.mxu2  ;;  %v2094_v11 = vld [vmem:[#allocation2] ss:$0 sm:$0xff] }
 0x3ab   :  { %v1593_v46 = vadd.f32 %v1587_v45, %v4029_v60  ;;  %v2093_v60 = vld [vmem:[%s4405_s6] ss:$0 sm:$0xff]  ;;  %s2169_s6 = smov [#allocation3]  }
 0x3ac   :  { %1716 = vmatmul.f32.vlgmr.msrb.gmra.mxu0 %v1590_v43  ;;  %s1819_s9 = sshll.u32 %s2169_s6, 4  ;;  %s1820_s9 = int_to_ptr.vmem [resolvable:$true] %s1819_s9 }
 0x3ad   :  { %1776 = vmatmul.f32.vlgmr.msrb.gmra.mxu3 %v1593_v46 }
 0x3b1   :  { %v1628_v49 = vpop.f32.mrf.mxu3 }
 0x3b2   :  { %v1631_v9 = vadd.f32 %v1628_v49, %v4080_v33 }
 0x3b4   :  { %v1784_v51 = vmul.f32 %v2092_v48, %v1631_v9 }
 0x3b6   :  { %v1786_v34 = vsel %vm1785_vm0, %v1784_v51, 0.0 }
 0x3b7   :  { %1787 = vadd.xlane.f32.xlu0 %v1786_v34 }
 0x423   :  { %v1737_v47 = vpop.f32.mrf.mxu1 }
 0x429   :  { %v1717_v54 = vpop.f32.mrf.mxu0 }
 0x42a   :  { %v1718_v55 = vadd.f32 %v2093_v60, %v1717_v54  ;;  %v1788_v1 = vpop.xlane.xlu0 %1787  ;;  %v1757_v36 = vpop.f32.mrf.mxu2 }
 0x42b   :  { %v1793_v42 = vadd.f32 %v2094_v11, %v1788_v1 }
 0x42c   :  { %v1738_v35 = vadd.f32 %v1737_v47, %v1718_v55 }
 0x42d   :  { %1809 = vperm.xlu1 %2088, %v1793_v42  }
 0x42e   :  { %v1758_v33 = vadd.f32 %v1757_v36, %v1738_v35 }
 0x430   :  { %v1777_v50 = vpop.f32.mrf.mxu3 }
 0x431   :  { %v1778_v56 = vadd.f32 %v1777_v50, %v1758_v33 }
 0x433   :  { %v1795_v57 = vsel %vm1794_vm1, %v1778_v56, 0.0 }
 0x434   :  { %1796 = vadd.xlane.f32.xlu0 %v1795_v57 }
 0x49f   :  { %v1810_v17 = vpop.permute.xlu1 %1809 }
 0x4a7   :  { %v1797_v8 = vpop.xlane.xlu0 %1796 }
 0x4a8   :  { %v1805_v44 = vmul.f32 %v1804_v6, %v1797_v8 }
 0x4aa   :  { %v1806_v12 = vsub.f32 %v1778_v56, %v1805_v44 }
 0x4ac   :  { %v1812_v18 = vadd.f32 %v1810_v17, %v1806_v12 }
 0x4ae   :  { %1813 = vst.msk [vmem:[#allocation3] sm:$0x3] %vm1794_vm1, %v1812_v18 }
 0x4af   :  { %1824 = dma.vmem_to_hbm [thread:$0]  %s1820_s9, 32, %s1822_s18, [#allocation4]  }
 0x4b0   :  { %2165 = dma.done.wait [#allocation4], 32  }
 0x4b1   :  { %2166 = vsyncadd [#allocation4], 4294967264 }
 0x4b2   :  { %1829 = vsyncpa [#allocation4], 1 }

</bundles_post_ra>
